<compile_context>
chip_gen: v7x
topology: tpu7x:2x2x1
jax: 0.10.0
libtpu: 0.0.40
codegen_flags: <defaults>
</compile_context>

<pallas_src>
import jax
import jax.numpy as jnp
from jax import lax
from jax.experimental import pallas as pl
from jax.experimental.pallas import tpu as pltpu


# ----------------------------- Pallas kernel ------------------------------ #
def _make_kernel(num_layers, B, H, TT, dmax):
    def kernel(x_ref, h0_ref, wcat_ref, bcat_ref, a_ref, w4_ref, out_ref,
               h_state):
        # x_ref    : (TT, B, dmax)                 out_ref : (TT, B, H)
        # h0_ref   : (num_layers, 1, H) f32        h_state : VMEM (num_layers, B, H)
        # wcat_ref : (num_layers, dmax+H, 4H) bf16
        # bcat_ref : (num_layers, 1, 4H) f32
        # a_ref    : (num_layers, 2H, 2H) bf16     w4_ref : (num_layers, 2H, H) bf16

        @pl.when(pl.program_id(0) == 0)
        def _init():
            for l in range(num_layers):
                h_state[l] = jnp.broadcast_to(h0_ref[l], (B, H))

        # loop-invariant constants (hoisted: JAX does not CSE broadcasts)
        rr = lax.broadcasted_iota(jnp.int32, (1, H, H), 1)   # dest index r
        cc = lax.broadcasted_iota(jnp.int32, (1, H, H), 2)   # source idx c / pos k
        ones_hh = jnp.ones((H, H), jnp.bfloat16)

        def bdot(a, w):
            # bf16 operands, f32 accumulation: single MXU pass on all targets.
            return jnp.dot(a.astype(jnp.bfloat16), w,
                           preferred_element_type=jnp.float32)

        def stable_ascending_sort(h):
            # h: (B, H) f32 -> stable ascending sort along axis 1 (batched),
            # matching torch.sort(dim=1, stable=True).
            hc = jnp.broadcast_to(h[:, None, :], (B, H, H))   # [b,r,c] = h[b,c]
            hr = jnp.transpose(hc, (0, 2, 1))                 # [b,r,c] = h[b,r]
            # "element c is placed before element r" (stable index tie-break)
            before = (hc < hr) | ((hc == hr) & (cc < rr))     # (B, H, H) bool
            # rank(r) = #elements before r; ones(H,H) on the MXU replicates the
            # rank across lanes (== target position k).  0/1 operands -> the
            # bf16 pass is exact (integers < 2^8).
            rank = bdot(before.astype(jnp.float32).reshape(B * H, H), ones_hh)
            rank_i = rank.astype(jnp.int32).reshape(B, H, H)
            onehot = (rank_i == cc).astype(jnp.float32)       # [b,r,k] permutation
            # sorted[b,k] = sum_r h[b,r] * onehot[b,r,k] -- VPU mul + XLU
            # sublane reduce, keeps the selection off the MXU dependent chain.
            return jnp.sum(hr * onehot, axis=1)               # (B, H)

        def step(tt, carry):
            inp = x_ref[tt]                                   # (B, dmax)
            for l in range(num_layers):
                h_prev = h_state[l]                           # (B, H)
                if l > 0 and dmax > H:                        # static; uniform K
                    inp = jnp.pad(inp, ((0, 0), (0, dmax - H)))

                # ---- nn.GRUCell: one fused (B,K)@(K,4H) MXU push -----------
                xh = jnp.concatenate([inp, h_prev], axis=-1)  # (B, dmax+H)
                g = bdot(xh, wcat_ref[l]) + bcat_ref[l]       # (B, 4H)
                r = jax.nn.sigmoid(g[:, :H])
                z = jax.nn.sigmoid(g[:, H:2 * H])
                n = jnp.tanh(g[:, 2 * H:3 * H] + r * g[:, 3 * H:])
                hn = (1.0 - z) * n + z * h_prev               # (B, H)

                # ---- SortAttn (folded to dense (2H,2H) pre-ReLU map) -------
                srt = stable_ascending_sort(hn)
                u = jax.nn.relu(bdot(jnp.concatenate([hn, srt], axis=-1),
                                     a_ref[l]))               # (B, 2H)
                scores = jax.nn.sigmoid(bdot(u, w4_ref[l]))   # (B, H)
                hn = hn * scores

                h_state[l] = hn
                inp = hn

            # TODO(synk): v5e lane-dense output (one (1, B*H) row per step)
            # only pays if the (B,H)->(1,B*H) relayout folds into the last
            # layer; not worth an extra XLU shuffle at B=2, H=32.
            out_ref[tt] = inp                                 # (B, H)
            return carry

        # Capped unroll keeps LLO visibility without risking vreg spill when a
        # caller picks a large block_t.
        lax.fori_loop(0, TT, step, 0, unroll=min(TT, 8))

    return kernel


# ---------------------------- parameter folding --------------------------- #
def _prepare_params(raw_params, H, din0, groups=4, weight_dtype=jnp.bfloat16):
    """Fold PyTorch-layout weights into stacked kernel-layout arrays (exact)."""
    dmax = max(din0, H)
    twoH, threeH, fourH = 2 * H, 3 * H, 4 * H
    GH = twoH // groups

    # Shuffle == fixed permutation of the flattened (groups, GH) vector.
    p_idx = jnp.arange(twoH)
    perm = (p_idx % groups) * GH + p_idx // groups
    P = jnp.zeros((twoH, twoH), jnp.float32).at[perm, p_idx].set(1.0)

    wcat_l, bcat_l, a_l, w4_l = [], [], [], []
    for li, (W_ih, W_hh, b_ih, b_hh, W1, W2, W3, W4) in enumerate(raw_params):
        din = din0 if li == 0 else H
        Wx = W_ih.T.astype(jnp.float32)          # (din, 3H), cols [r|z|n]
        Wh = W_hh.T.astype(jnp.float32)          # (H, 3H)
        # Fused GRU weight: [x | h] @ W_cat gives columns
        #   [0:2H)  = (W_ir x + W_hr h) | (W_iz x + W_hz h)
        #   [2H:3H) = W_in x             [3H:4H) = W_hn h
        Wcat = jnp.zeros((dmax + H, fourH), jnp.float32)
        Wcat = Wcat.at[:din, :twoH].set(Wx[:, :twoH])
        Wcat = Wcat.at[dmax:, :twoH].set(Wh[:, :twoH])
        Wcat = Wcat.at[:din, twoH:threeH].set(Wx[:, twoH:])
        Wcat = Wcat.at[dmax:, threeH:].set(Wh[:, twoH:])
        bcat = jnp.concatenate([b_ih[:twoH] + b_hh[:twoH],
                                b_ih[twoH:], b_hh[twoH:]]).reshape(1, fourH)
        wcat_l.append(Wcat)
        bcat_l.append(bcat.astype(jnp.float32))

        # SortAttn: Linear(W1) per se-row -> Flatten -> Shuffle -> Linear(W2)
        # per group -> Shuffle -> Linear(W3) per group  ==  one dense map.
        BD1 = jnp.kron(jnp.eye(2, dtype=jnp.float32), W1.T)
        BD2 = jnp.kron(jnp.eye(groups, dtype=jnp.float32), W2.T)
        BD3 = jnp.kron(jnp.eye(groups, dtype=jnp.float32), W3.T)
        a_l.append(BD1 @ P @ BD2 @ P @ BD3)                   # (2H, 2H)
        w4_l.append(W4.T.astype(jnp.float32))                 # (2H, H)

    # bf16 weights: single-pass MXU on all generations, half the resident
    # VMEM / first-step DMA.  Biases stay f32 (added after f32 accumulation).
    wcat = jnp.stack(wcat_l).astype(weight_dtype)
    bcat = jnp.stack(bcat_l)
    a = jnp.stack(a_l).astype(weight_dtype)
    w4 = jnp.stack(w4_l).astype(weight_dtype)
    return (wcat, bcat, a, w4), dmax


# --------------------------------- wrapper -------------------------------- #
def sort_gru_encoder_forward(x, raw_params, hidden0, windows, block_t=None,
                             weight_dtype=jnp.bfloat16):
    B, L, C = x.shape
    num_layers, _, H = hidden0.shape
    T = L // windows
    din0 = windows * C

    (wcat, bcat, a, w4), dmax = _prepare_params(
        raw_params, H, din0, weight_dtype=weight_dtype)

    xw = x.reshape(B, T, din0)                               # patch_window
    xt = jnp.transpose(xw, (1, 0, 2)).astype(jnp.float32)    # (T, B, din0)
    if dmax > din0:                                          # uniform K per layer
        xt = jnp.pad(xt, ((0, 0), (0, 0), (0, dmax - din0)))

    # Whole sequence in one grid step by default: the recurrence makes the grid
    # sequential, so extra grid steps only add overhead.  block_t is only for
    # huge T where the streamed x block would not fit VMEM.
    TT = T if block_t is None else max(1, min(block_t, T))
    T_pad = ((T + TT - 1) // TT) * TT
    if T_pad != T:
        # Padded tail steps run on zero input and are discarded (wasted, exact).
        xt = jnp.pad(xt, ((0, T_pad - T), (0, 0), (0, 0)))

    twoH, fourH = 2 * H, 4 * H
    # TODO(synk): when H/num_layers grow on v7x (64 MiB VMEM), mark the four
    # constant weight specs with pipeline_mode=pl.Buffered(1); irrelevant here.
    in_specs = [
        pl.BlockSpec((TT, B, dmax), lambda t: (t, 0, 0)),                 # x block
        pl.BlockSpec((num_layers, 1, H), lambda t: (0, 0, 0)),            # hidden_0
        pl.BlockSpec((num_layers, dmax + H, fourH), lambda t: (0, 0, 0)), # fused GRU W
        pl.BlockSpec((num_layers, 1, fourH), lambda t: (0, 0, 0)),        # fused GRU b
        pl.BlockSpec((num_layers, twoH, twoH), lambda t: (0, 0, 0)),      # SortAttn A
        pl.BlockSpec((num_layers, twoH, H), lambda t: (0, 0, 0)),         # W4
    ]

    out = pl.pallas_call(
        _make_kernel(num_layers, B, H, TT, dmax),
        out_shape=jax.ShapeDtypeStruct((T_pad, B, H), jnp.float32),
        grid_spec=pltpu.PrefetchScalarGridSpec(
            num_scalar_prefetch=0,
            grid=(T_pad // TT,),
            in_specs=in_specs,
            out_specs=pl.BlockSpec((TT, B, H), lambda t: (t, 0, 0)),
            scratch_shapes=[pltpu.VMEM((num_layers, B, H), jnp.float32)],
        ),
        # recurrence over time -> the single grid axis must stay sequential
        compiler_params=pltpu.CompilerParams(dimension_semantics=("arbitrary",)),
    )(xt, hidden0.astype(jnp.float32), wcat, bcat, a, w4)

    out = out[:T]
    return jnp.transpose(out, (1, 0, 2))                     # (B, T, H)


# ------------------------ pure-JAX reference (check) ----------------------- #
def ref_forward(x, raw_params, hidden0, windows, groups=4):
    B, L, C = x.shape
    num_layers, _, H = hidden0.shape
    T = L // windows
    xw = x.reshape(B, T, windows * C)
    h = jnp.broadcast_to(hidden0, (num_layers, B, H))
    outs = []
    with jax.default_matmul_precision("highest"):
        for t in range(T):
            inp = xw[:, t]
            new_h = []
            for l in range(num_layers):
                W_ih, W_hh, b_ih, b_hh, W1, W2, W3, W4 = raw_params[l]
                hl = h[l]
                gi = inp @ W_ih.T + b_ih
                gh = hl @ W_hh.T + b_hh
                r = jax.nn.sigmoid(gi[:, :H] + gh[:, :H])
                z = jax.nn.sigmoid(gi[:, H:2 * H] + gh[:, H:2 * H])
                n = jnp.tanh(gi[:, 2 * H:] + r * gh[:, 2 * H:])
                hn = (1 - z) * n + z * hl
                srt = jnp.sort(hn, axis=1)
                se = jnp.stack([hn, srt], axis=1)                    # (B, 2, H)
                y = se @ W1.T
                y = y.reshape(B, 2 * H).reshape(B, groups, -1)
                GH = y.shape[-1]
                y = jnp.swapaxes(y, -1, -2).reshape(B, groups, GH)   # Shuffle
                y = y @ W2.T
                y = jnp.swapaxes(y, -1, -2).reshape(B, groups, GH)   # Shuffle
                y = y @ W3.T
                y = jax.nn.relu(y).reshape(B, groups * GH)
                scores = jax.nn.sigmoid(y @ W4.T)
                hn = hn * scores
                new_h.append(hn)
                inp = hn
            h = jnp.stack(new_h, axis=0)
            outs.append(inp)
    return jnp.stack(outs, axis=1)


# ------------------------------ deterministic init ------------------------- #
def init_params(key, windows, in_channel, out_channel, num_layers, groups=4):
    H = out_channel
    GH = 2 * H // groups
    params = []
    din = windows * in_channel
    for _ in range(num_layers):
        key, *ks = jax.random.split(key, 9)

        def u(k, shape, scale):
            return jax.random.uniform(k, shape, jnp.float32, -scale, scale)

        s = 1.0 / float(H) ** 0.5
        W_ih = u(ks[0], (3 * H, din), s)
        W_hh = u(ks[1], (3 * H, H), s)
        b_ih = u(ks[2], (3 * H,), s)
        b_hh = u(ks[3], (3 * H,), s)
        W1 = u(ks[4], (H, H), 1.0 / float(H) ** 0.5)
        W2 = u(ks[5], (GH, GH), 1.0 / float(GH) ** 0.5)
        W3 = u(ks[6], (GH, GH), 1.0 / float(GH) ** 0.5)
        W4 = u(ks[7], (H, 2 * H), 1.0 / float(2 * H) ** 0.5)
        params.append((W_ih, W_hh, b_ih, b_hh, W1, W2, W3, W4))
        din = H
    return params


if __name__ == "__main__":
    key = jax.random.PRNGKey(0)
    B, L, in_channel = 2, 16, 4
    windows, out_channel, num_layers = 2, 32, 2
    H = out_channel

    k_x, k_p = jax.random.split(key)
    x = jax.random.normal(k_x, (B, L, in_channel), jnp.float32)
    raw_params = init_params(k_p, windows, in_channel, out_channel, num_layers)
    hidden0 = jnp.zeros((num_layers, 1, H), jnp.float32)  # nn.Parameter(torch.zeros)

    y_ref = ref_forward(x, raw_params, hidden0, windows)

    # bf16 single-pass matmuls over an 8-step / 2-layer recurrence drift from
    # the "highest"-precision f32 reference by a few 1e-2; structural bugs show
    # up as O(1) errors, so 1e-1 still separates them cleanly.
    TOL = 1e-1

    # Default path: whole sequence in one grid step (TT = T, grid=(1,)).
    y = sort_gru_encoder_forward(x, raw_params, hidden0, windows)
    y = jax.block_until_ready(y)
    assert y.shape == (B, L // windows, H), y.shape
    err = float(jnp.max(jnp.abs(y - y_ref)))
    if not (err < TOL):
        raise AssertionError(f"kernel mismatch vs reference (grid=1): {err}")

    # Also exercise the cross-grid-step hidden-state carry (block_t < T).
    y2 = sort_gru_encoder_forward(x, raw_params, hidden0, windows, block_t=4)
    y2 = jax.block_until_ready(y2)
    err2 = float(jnp.max(jnp.abs(y2 - y_ref)))
    if not (err2 < TOL):
        raise AssertionError(f"kernel mismatch vs reference (block_t=4): {err2}")

    print("KERNEL_OK")
</pallas_src>

<mosaic_0001>
module attributes {stable_mosaic.version = 11 : i64} {
  func.func @kernel(%arg0: i32, %arg1: memref<8x2x32xf32, #tpu.memory_space<vmem>>, %arg2: memref<2x1x32xf32, #tpu.memory_space<vmem>>, %arg3: memref<2x64x128xbf16, #tpu.memory_space<vmem>>, %arg4: memref<2x1x128xf32, #tpu.memory_space<vmem>>, %arg5: memref<2x64x64xbf16, #tpu.memory_space<vmem>>, %arg6: memref<2x64x32xbf16, #tpu.memory_space<vmem>>, %arg7: memref<8x2x32xf32, #tpu.memory_space<vmem>>, %arg8: memref<2x2x32xf32, #tpu.memory_space<vmem>>) attributes {dimension_semantics = [#tpu.dimension_semantics<arbitrary>], iteration_bounds = array<i64: 1>, scalar_prefetch = 0 : i64, scratch_operands = 1 : i64, tpu.core_type = #tpu.core_type<tc>, window_params = [{transform_indices = @transform_0, window_bounds = array<i64: 8, 2, 32>}, {pipeline_mode = #tpu.pipeline_mode<synchronous>, transform_indices = @transform_1, window_bounds = array<i64: 2, 1, 32>}, {pipeline_mode = #tpu.pipeline_mode<synchronous>, transform_indices = @transform_2, window_bounds = array<i64: 2, 64, 128>}, {pipeline_mode = #tpu.pipeline_mode<synchronous>, transform_indices = @transform_3, window_bounds = array<i64: 2, 1, 128>}, {pipeline_mode = #tpu.pipeline_mode<synchronous>, transform_indices = @transform_4, window_bounds = array<i64: 2, 64, 64>}, {pipeline_mode = #tpu.pipeline_mode<synchronous>, transform_indices = @transform_5, window_bounds = array<i64: 2, 64, 32>}, {transform_indices = @transform_6, window_bounds = array<i64: 8, 2, 32>}]} {
    %c0_i32 = arith.constant 0 : i32
    %0 = arith.cmpi eq, %arg0, %c0_i32 : i32
    %1 = arith.extui %0 : i1 to i32
    %c0_i32_0 = arith.constant 0 : i32
    %2 = arith.cmpi ne, %1, %c0_i32_0 : i32
    scf.if %2 {
      %c0_480 = arith.constant 0 : index
      %c0_481 = arith.constant 0 : index
      %c0_482 = arith.constant 0 : index
      %1278 = vector.load %arg2[%c0_480, %c0_481, %c0_482] : memref<2x1x32xf32, #tpu.memory_space<vmem>>, vector<1x1x32xf32>
      %1279 = vector.shape_cast %1278 : vector<1x1x32xf32> to vector<1x32xf32>
      %1280 = vector.shape_cast %1279 : vector<1x32xf32> to vector<1x32xf32>
      %1281 = vector.broadcast %1280 : vector<1x32xf32> to vector<2x32xf32>
      %c0_483 = arith.constant 0 : index
      %c0_484 = arith.constant 0 : index
      %c0_485 = arith.constant 0 : index
      %1282 = vector.load %arg8[%c0_483, %c0_484, %c0_485] : memref<2x2x32xf32, #tpu.memory_space<vmem>>, vector<1x2x32xf32>
      %1283 = vector.shape_cast %1282 : vector<1x2x32xf32> to vector<2x32xf32>
      %1284 = vector.shape_cast %1281 : vector<2x32xf32> to vector<1x2x32xf32>
      tpu.vector_store %arg8[%c0_483, %c0_484, %c0_485], %1284 {strides = array<i32>} : memref<2x2x32xf32, #tpu.memory_space<vmem>>, vector<1x2x32xf32>,
      %c1_486 = arith.constant 1 : index
      %c0_487 = arith.constant 0 : index
      %c0_488 = arith.constant 0 : index
      %1285 = vector.load %arg2[%c1_486, %c0_487, %c0_488] : memref<2x1x32xf32, #tpu.memory_space<vmem>>, vector<1x1x32xf32>
      %1286 = vector.shape_cast %1285 : vector<1x1x32xf32> to vector<1x32xf32>
      %1287 = vector.shape_cast %1286 : vector<1x32xf32> to vector<1x32xf32>
      %1288 = vector.broadcast %1287 : vector<1x32xf32> to vector<2x32xf32>
      %c1_489 = arith.constant 1 : index
      %c0_490 = arith.constant 0 : index
      %c0_491 = arith.constant 0 : index
      %1289 = vector.load %arg8[%c1_489, %c0_490, %c0_491] : memref<2x2x32xf32, #tpu.memory_space<vmem>>, vector<1x2x32xf32>
      %1290 = vector.shape_cast %1289 : vector<1x2x32xf32> to vector<2x32xf32>
      %1291 = vector.shape_cast %1288 : vector<2x32xf32> to vector<1x2x32xf32>
      tpu.vector_store %arg8[%c1_489, %c0_490, %c0_491], %1291 {strides = array<i32>} : memref<2x2x32xf32, #tpu.memory_space<vmem>>, vector<1x2x32xf32>,
    } else {
    }
    %3 = tpu.iota {dimensions = array<i32: 1>} : vector<1x32x32xi32>
    %4 = tpu.iota {dimensions = array<i32: 2>} : vector<1x32x32xi32>
    %cst = arith.constant 1.000000e+00 : bf16
    %5 = vector.broadcast %cst : bf16 to vector<32x32xbf16>
    %c0_i32_1 = arith.constant 0 : i32
    %6 = arith.index_cast %c0_i32_1 : i32 to index
    %c0 = arith.constant 0 : index
    %c0_2 = arith.constant 0 : index
    %7 = vector.load %arg1[%6, %c0, %c0_2] : memref<8x2x32xf32, #tpu.memory_space<vmem>>, vector<1x2x32xf32>
    %8 = vector.shape_cast %7 : vector<1x2x32xf32> to vector<2x32xf32>
    %c0_3 = arith.constant 0 : index
    %c0_4 = arith.constant 0 : index
    %c0_5 = arith.constant 0 : index
    %9 = vector.load %arg8[%c0_3, %c0_4, %c0_5] : memref<2x2x32xf32, #tpu.memory_space<vmem>>, vector<1x2x32xf32>
    %10 = vector.shape_cast %9 : vector<1x2x32xf32> to vector<2x32xf32>
    %11 = tpu.concatenate %8, %10 in 1 : vector<2x32xf32>, vector<2x32xf32> -> vector<2x64xf32>
    %c0_6 = arith.constant 0 : index
    %c0_7 = arith.constant 0 : index
    %c0_8 = arith.constant 0 : index
    %12 = vector.load %arg3[%c0_6, %c0_7, %c0_8] : memref<2x64x128xbf16, #tpu.memory_space<vmem>>, vector<1x64x128xbf16>
    %13 = vector.shape_cast %12 : vector<1x64x128xbf16> to vector<64x128xbf16>
    %14 = arith.truncf %11 : vector<2x64xf32> to vector<2x64xbf16>
    %cst_9 = arith.constant dense<0.000000e+00> : vector<2x128xf32>
    %15 = tpu.matmul %14, %13, %cst_9 {dimension_numbers = #tpu.dot_dimension_numbers<[1], [0], [0], [1], [0, 0, 1, 1], [], []>} : vector<2x64xbf16>, vector<64x128xbf16>, vector<2x128xf32> -> vector<2x128xf32>
    %c0_10 = arith.constant 0 : index
    %c0_11 = arith.constant 0 : index
    %c0_12 = arith.constant 0 : index
    %16 = vector.load %arg4[%c0_10, %c0_11, %c0_12] : memref<2x1x128xf32, #tpu.memory_space<vmem>>, vector<1x1x128xf32>
    %17 = vector.shape_cast %16 : vector<1x1x128xf32> to vector<1x128xf32>
    %18 = vector.broadcast %17 : vector<1x128xf32> to vector<2x128xf32>
    %19 = arith.addf %15, %18 : vector<2x128xf32>
    %20 = vector.extract_strided_slice %19 {offsets = [0, 0], sizes = [2, 32], strides = [1, 1]} : vector<2x128xf32> to vector<2x32xf32>
    %21 = arith.negf %20 : vector<2x32xf32>
    %22 = math.exp %21 : vector<2x32xf32>
    %cst_13 = arith.constant 1.000000e+00 : f32
    %23 = vector.broadcast %cst_13 : f32 to vector<2x32xf32>
    %24 = arith.addf %23, %22 : vector<2x32xf32>
    %25 = arith.divf %23, %24 : vector<2x32xf32>
    %26 = vector.extract_strided_slice %19 {offsets = [0, 32], sizes = [2, 32], strides = [1, 1]} : vector<2x128xf32> to vector<2x32xf32>
    %27 = arith.negf %26 : vector<2x32xf32>
    %28 = math.exp %27 : vector<2x32xf32>
    %cst_14 = arith.constant 1.000000e+00 : f32
    %29 = vector.broadcast %cst_14 : f32 to vector<2x32xf32>
    %30 = arith.addf %29, %28 : vector<2x32xf32>
    %31 = arith.divf %29, %30 : vector<2x32xf32>
    %32 = vector.extract_strided_slice %19 {offsets = [0, 64], sizes = [2, 32], strides = [1, 1]} : vector<2x128xf32> to vector<2x32xf32>
    %33 = vector.extract_strided_slice %19 {offsets = [0, 96], sizes = [2, 32], strides = [1, 1]} : vector<2x128xf32> to vector<2x32xf32>
    %34 = arith.mulf %25, %33 : vector<2x32xf32>
    %35 = arith.addf %32, %34 : vector<2x32xf32>
    %36 = math.tanh %35 : vector<2x32xf32>
    %cst_15 = arith.constant 1.000000e+00 : f32
    %37 = vector.broadcast %cst_15 : f32 to vector<2x32xf32>
    %38 = arith.subf %37, %31 : vector<2x32xf32>
    %39 = arith.mulf %38, %36 : vector<2x32xf32>
    %40 = arith.mulf %31, %10 : vector<2x32xf32>
    %41 = arith.addf %39, %40 : vector<2x32xf32>
    %42 = vector.shape_cast %41 : vector<2x32xf32> to vector<2x1x32xf32>
    %43 = vector.shape_cast %42 : vector<2x1x32xf32> to vector<2x1x32xf32>
    %44 = vector.broadcast %43 : vector<2x1x32xf32> to vector<2x32x32xf32>
    %45 = tpu.transpose %44, [0, 2, 1] : vector<2x32x32xf32> -> vector<2x32x32xf32>
    %46 = arith.cmpf olt, %44, %45 : vector<2x32x32xf32>
    %47 = arith.cmpf oeq, %44, %45 : vector<2x32x32xf32>
    %48 = arith.cmpi slt, %4, %3 : vector<1x32x32xi32>
    %49 = vector.broadcast %48 : vector<1x32x32xi1> to vector<2x32x32xi1>
    %50 = arith.andi %47, %49 : vector<2x32x32xi1>
    %51 = arith.ori %46, %50 : vector<2x32x32xi1>
    %52 = arith.extui %51 : vector<2x32x32xi1> to vector<2x32x32xi32>
    %53 = arith.sitofp %52 : vector<2x32x32xi32> to vector<2x32x32xf32>
    %54 = vector.shape_cast %53 : vector<2x32x32xf32> to vector<64x32xf32>
    %55 = arith.truncf %54 : vector<64x32xf32> to vector<64x32xbf16>
    %cst_16 = arith.constant dense<0.000000e+00> : vector<64x32xf32>
    %56 = tpu.matmul %55, %5, %cst_16 {dimension_numbers = #tpu.dot_dimension_numbers<[1], [0], [0], [1], [0, 0, 1, 1], [], []>} : vector<64x32xbf16>, vector<32x32xbf16>, vector<64x32xf32> -> vector<64x32xf32>
    %57 = arith.fptosi %56 : vector<64x32xf32> to vector<64x32xi32>
    %58 = vector.shape_cast %57 : vector<64x32xi32> to vector<2x32x32xi32>
    %59 = vector.broadcast %4 : vector<1x32x32xi32> to vector<2x32x32xi32>
    %60 = arith.cmpi eq, %58, %59 : vector<2x32x32xi32>
    %61 = arith.extui %60 : vector<2x32x32xi1> to vector<2x32x32xi32>
    %62 = arith.sitofp %61 : vector<2x32x32xi32> to vector<2x32x32xf32>
    %63 = arith.mulf %45, %62 : vector<2x32x32xf32>
    %cst_17 = arith.constant dense<0.000000e+00> : vector<2x32xf32>
    %64 = vector.multi_reduction <add>, %63, %cst_17 [1] : vector<2x32x32xf32> to vector<2x32xf32>
    %65 = tpu.concatenate %41, %64 in 1 : vector<2x32xf32>, vector<2x32xf32> -> vector<2x64xf32>
    %c0_18 = arith.constant 0 : index
    %c0_19 = arith.constant 0 : index
    %c0_20 = arith.constant 0 : index
    %66 = vector.load %arg5[%c0_18, %c0_19, %c0_20] : memref<2x64x64xbf16, #tpu.memory_space<vmem>>, vector<1x64x64xbf16>
    %67 = vector.shape_cast %66 : vector<1x64x64xbf16> to vector<64x64xbf16>
    %68 = arith.truncf %65 : vector<2x64xf32> to vector<2x64xbf16>
    %cst_21 = arith.constant dense<0.000000e+00> : vector<2x64xf32>
    %69 = tpu.matmul %68, %67, %cst_21 {dimension_numbers = #tpu.dot_dimension_numbers<[1], [0], [0], [1], [0, 0, 1, 1], [], []>} : vector<2x64xbf16>, vector<64x64xbf16>, vector<2x64xf32> -> vector<2x64xf32>
    %cst_22 = arith.constant 0.000000e+00 : f32
    %70 = vector.broadcast %cst_22 : f32 to vector<2x64xf32>
    %71 = arith.maximumf %69, %70 : vector<2x64xf32>
    %c0_23 = arith.constant 0 : index
    %c0_24 = arith.constant 0 : index
    %c0_25 = arith.constant 0 : index
    %72 = vector.load %arg6[%c0_23, %c0_24, %c0_25] : memref<2x64x32xbf16, #tpu.memory_space<vmem>>, vector<1x64x32xbf16>
    %73 = vector.shape_cast %72 : vector<1x64x32xbf16> to vector<64x32xbf16>
    %74 = arith.truncf %71 : vector<2x64xf32> to vector<2x64xbf16>
    %cst_26 = arith.constant dense<0.000000e+00> : vector<2x32xf32>
    %75 = tpu.matmul %74, %73, %cst_26 {dimension_numbers = #tpu.dot_dimension_numbers<[1], [0], [0], [1], [0, 0, 1, 1], [], []>} : vector<2x64xbf16>, vector<64x32xbf16>, vector<2x32xf32> -> vector<2x32xf32>
    %76 = arith.negf %75 : vector<2x32xf32>
    %77 = math.exp %76 : vector<2x32xf32>
    %cst_27 = arith.constant 1.000000e+00 : f32
    %78 = vector.broadcast %cst_27 : f32 to vector<2x32xf32>
    %79 = arith.addf %78, %77 : vector<2x32xf32>
    %80 = arith.divf %78, %79 : vector<2x32xf32>
    %81 = arith.mulf %41, %80 : vector<2x32xf32>
    %c0_28 = arith.constant 0 : index
    %c0_29 = arith.constant 0 : index
    %c0_30 = arith.constant 0 : index
    %82 = vector.load %arg8[%c0_28, %c0_29, %c0_30] : memref<2x2x32xf32, #tpu.memory_space<vmem>>, vector<1x2x32xf32>
    %83 = vector.shape_cast %82 : vector<1x2x32xf32> to vector<2x32xf32>
    %84 = vector.shape_cast %81 : vector<2x32xf32> to vector<1x2x32xf32>
    tpu.vector_store %arg8[%c0_28, %c0_29, %c0_30], %84 {strides = array<i32>} : memref<2x2x32xf32, #tpu.memory_space<vmem>>, vector<1x2x32xf32>,
    %c1 = arith.constant 1 : index
    %c0_31 = arith.constant 0 : index
    %c0_32 = arith.constant 0 : index
    %85 = vector.load %arg8[%c1, %c0_31, %c0_32] : memref<2x2x32xf32, #tpu.memory_space<vmem>>, vector<1x2x32xf32>
    %86 = vector.shape_cast %85 : vector<1x2x32xf32> to vector<2x32xf32>
    %87 = tpu.concatenate %81, %86 in 1 : vector<2x32xf32>, vector<2x32xf32> -> vector<2x64xf32>
    %c1_33 = arith.constant 1 : index
    %c0_34 = arith.constant 0 : index
    %c0_35 = arith.constant 0 : index
    %88 = vector.load %arg3[%c1_33, %c0_34, %c0_35] : memref<2x64x128xbf16, #tpu.memory_space<vmem>>, vector<1x64x128xbf16>
    %89 = vector.shape_cast %88 : vector<1x64x128xbf16> to vector<64x128xbf16>
    %90 = arith.truncf %87 : vector<2x64xf32> to vector<2x64xbf16>
    %cst_36 = arith.constant dense<0.000000e+00> : vector<2x128xf32>
    %91 = tpu.matmul %90, %89, %cst_36 {dimension_numbers = #tpu.dot_dimension_numbers<[1], [0], [0], [1], [0, 0, 1, 1], [], []>} : vector<2x64xbf16>, vector<64x128xbf16>, vector<2x128xf32> -> vector<2x128xf32>
    %c1_37 = arith.constant 1 : index
    %c0_38 = arith.constant 0 : index
    %c0_39 = arith.constant 0 : index
    %92 = vector.load %arg4[%c1_37, %c0_38, %c0_39] : memref<2x1x128xf32, #tpu.memory_space<vmem>>, vector<1x1x128xf32>
    %93 = vector.shape_cast %92 : vector<1x1x128xf32> to vector<1x128xf32>
    %94 = vector.broadcast %93 : vector<1x128xf32> to vector<2x128xf32>
    %95 = arith.addf %91, %94 : vector<2x128xf32>
    %96 = vector.extract_strided_slice %95 {offsets = [0, 0], sizes = [2, 32], strides = [1, 1]} : vector<2x128xf32> to vector<2x32xf32>
    %97 = arith.negf %96 : vector<2x32xf32>
    %98 = math.exp %97 : vector<2x32xf32>
    %cst_40 = arith.constant 1.000000e+00 : f32
    %99 = vector.broadcast %cst_40 : f32 to vector<2x32xf32>
    %100 = arith.addf %99, %98 : vector<2x32xf32>
    %101 = arith.divf %99, %100 : vector<2x32xf32>
    %102 = vector.extract_strided_slice %95 {offsets = [0, 32], sizes = [2, 32], strides = [1, 1]} : vector<2x128xf32> to vector<2x32xf32>
    %103 = arith.negf %102 : vector<2x32xf32>
    %104 = math.exp %103 : vector<2x32xf32>
    %cst_41 = arith.constant 1.000000e+00 : f32
    %105 = vector.broadcast %cst_41 : f32 to vector<2x32xf32>
    %106 = arith.addf %105, %104 : vector<2x32xf32>
    %107 = arith.divf %105, %106 : vector<2x32xf32>
    %108 = vector.extract_strided_slice %95 {offsets = [0, 64], sizes = [2, 32], strides = [1, 1]} : vector<2x128xf32> to vector<2x32xf32>
    %109 = vector.extract_strided_slice %95 {offsets = [0, 96], sizes = [2, 32], strides = [1, 1]} : vector<2x128xf32> to vector<2x32xf32>
    %110 = arith.mulf %101, %109 : vector<2x32xf32>
    %111 = arith.addf %108, %110 : vector<2x32xf32>
    %112 = math.tanh %111 : vector<2x32xf32>
    %cst_42 = arith.constant 1.000000e+00 : f32
    %113 = vector.broadcast %cst_42 : f32 to vector<2x32xf32>
    %114 = arith.subf %113, %107 : vector<2x32xf32>
    %115 = arith.mulf %114, %112 : vector<2x32xf32>
    %116 = arith.mulf %107, %86 : vector<2x32xf32>
    %117 = arith.addf %115, %116 : vector<2x32xf32>
    %118 = vector.shape_cast %117 : vector<2x32xf32> to vector<2x1x32xf32>
    %119 = vector.shape_cast %118 : vector<2x1x32xf32> to vector<2x1x32xf32>
    %120 = vector.broadcast %119 : vector<2x1x32xf32> to vector<2x32x32xf32>
    %121 = tpu.transpose %120, [0, 2, 1] : vector<2x32x32xf32> -> vector<2x32x32xf32>
    %122 = arith.cmpf olt, %120, %121 : vector<2x32x32xf32>
    %123 = arith.cmpf oeq, %120, %121 : vector<2x32x32xf32>
    %124 = arith.cmpi slt, %4, %3 : vector<1x32x32xi32>
    %125 = vector.broadcast %124 : vector<1x32x32xi1> to vector<2x32x32xi1>
    %126 = arith.andi %123, %125 : vector<2x32x32xi1>
    %127 = arith.ori %122, %126 : vector<2x32x32xi1>
    %128 = arith.extui %127 : vector<2x32x32xi1> to vector<2x32x32xi32>
    %129 = arith.sitofp %128 : vector<2x32x32xi32> to vector<2x32x32xf32>
    %130 = vector.shape_cast %129 : vector<2x32x32xf32> to vector<64x32xf32>
    %131 = arith.truncf %130 : vector<64x32xf32> to vector<64x32xbf16>
    %cst_43 = arith.constant dense<0.000000e+00> : vector<64x32xf32>
    %132 = tpu.matmul %131, %5, %cst_43 {dimension_numbers = #tpu.dot_dimension_numbers<[1], [0], [0], [1], [0, 0, 1, 1], [], []>} : vector<64x32xbf16>, vector<32x32xbf16>, vector<64x32xf32> -> vector<64x32xf32>
    %133 = arith.fptosi %132 : vector<64x32xf32> to vector<64x32xi32>
    %134 = vector.shape_cast %133 : vector<64x32xi32> to vector<2x32x32xi32>
    %135 = vector.broadcast %4 : vector<1x32x32xi32> to vector<2x32x32xi32>
    %136 = arith.cmpi eq, %134, %135 : vector<2x32x32xi32>
    %137 = arith.extui %136 : vector<2x32x32xi1> to vector<2x32x32xi32>
    %138 = arith.sitofp %137 : vector<2x32x32xi32> to vector<2x32x32xf32>
    %139 = arith.mulf %121, %138 : vector<2x32x32xf32>
    %cst_44 = arith.constant dense<0.000000e+00> : vector<2x32xf32>
    %140 = vector.multi_reduction <add>, %139, %cst_44 [1] : vector<2x32x32xf32> to vector<2x32xf32>
    %141 = tpu.concatenate %117, %140 in 1 : vector<2x32xf32>, vector<2x32xf32> -> vector<2x64xf32>
    %c1_45 = arith.constant 1 : index
    %c0_46 = arith.constant 0 : index
    %c0_47 = arith.constant 0 : index
    %142 = vector.load %arg5[%c1_45, %c0_46, %c0_47] : memref<2x64x64xbf16, #tpu.memory_space<vmem>>, vector<1x64x64xbf16>
    %143 = vector.shape_cast %142 : vector<1x64x64xbf16> to vector<64x64xbf16>
    %144 = arith.truncf %141 : vector<2x64xf32> to vector<2x64xbf16>
    %cst_48 = arith.constant dense<0.000000e+00> : vector<2x64xf32>
    %145 = tpu.matmul %144, %143, %cst_48 {dimension_numbers = #tpu.dot_dimension_numbers<[1], [0], [0], [1], [0, 0, 1, 1], [], []>} : vector<2x64xbf16>, vector<64x64xbf16>, vector<2x64xf32> -> vector<2x64xf32>
    %cst_49 = arith.constant 0.000000e+00 : f32
    %146 = vector.broadcast %cst_49 : f32 to vector<2x64xf32>
    %147 = arith.maximumf %145, %146 : vector<2x64xf32>
    %c1_50 = arith.constant 1 : index
    %c0_51 = arith.constant 0 : index
    %c0_52 = arith.constant 0 : index
    %148 = vector.load %arg6[%c1_50, %c0_51, %c0_52] : memref<2x64x32xbf16, #tpu.memory_space<vmem>>, vector<1x64x32xbf16>
    %149 = vector.shape_cast %148 : vector<1x64x32xbf16> to vector<64x32xbf16>
    %150 = arith.truncf %147 : vector<2x64xf32> to vector<2x64xbf16>
    %cst_53 = arith.constant dense<0.000000e+00> : vector<2x32xf32>
    %151 = tpu.matmul %150, %149, %cst_53 {dimension_numbers = #tpu.dot_dimension_numbers<[1], [0], [0], [1], [0, 0, 1, 1], [], []>} : vector<2x64xbf16>, vector<64x32xbf16>, vector<2x32xf32> -> vector<2x32xf32>
    %152 = arith.negf %151 : vector<2x32xf32>
    %153 = math.exp %152 : vector<2x32xf32>
    %cst_54 = arith.constant 1.000000e+00 : f32
    %154 = vector.broadcast %cst_54 : f32 to vector<2x32xf32>
    %155 = arith.addf %154, %153 : vector<2x32xf32>
    %156 = arith.divf %154, %155 : vector<2x32xf32>
    %157 = arith.mulf %117, %156 : vector<2x32xf32>
    %c1_55 = arith.constant 1 : index
    %c0_56 = arith.constant 0 : index
    %c0_57 = arith.constant 0 : index
    %158 = vector.load %arg8[%c1_55, %c0_56, %c0_57] : memref<2x2x32xf32, #tpu.memory_space<vmem>>, vector<1x2x32xf32>
    %159 = vector.shape_cast %158 : vector<1x2x32xf32> to vector<2x32xf32>
    %160 = vector.shape_cast %157 : vector<2x32xf32> to vector<1x2x32xf32>
    tpu.vector_store %arg8[%c1_55, %c0_56, %c0_57], %160 {strides = array<i32>} : memref<2x2x32xf32, #tpu.memory_space<vmem>>, vector<1x2x32xf32>,
    %161 = arith.index_cast %c0_i32_1 : i32 to index
    %c0_58 = arith.constant 0 : index
    %c0_59 = arith.constant 0 : index
    %162 = vector.load %arg7[%161, %c0_58, %c0_59] : memref<8x2x32xf32, #tpu.memory_space<vmem>>, vector<1x2x32xf32>
    %163 = vector.shape_cast %162 : vector<1x2x32xf32> to vector<2x32xf32>
    %164 = vector.shape_cast %157 : vector<2x32xf32> to vector<1x2x32xf32>
    tpu.vector_store %arg7[%161, %c0_58, %c0_59], %164 {strides = array<i32>} : memref<8x2x32xf32, #tpu.memory_space<vmem>>, vector<1x2x32xf32>,
    %c1_i32 = arith.constant 1 : i32
    %165 = arith.index_cast %c1_i32 : i32 to index
    %c0_60 = arith.constant 0 : index
    %c0_61 = arith.constant 0 : index
    %166 = vector.load %arg1[%165, %c0_60, %c0_61] : memref<8x2x32xf32, #tpu.memory_space<vmem>>, vector<1x2x32xf32>
    %167 = vector.shape_cast %166 : vector<1x2x32xf32> to vector<2x32xf32>
    %c0_62 = arith.constant 0 : index
    %c0_63 = arith.constant 0 : index
    %c0_64 = arith.constant 0 : index
    %168 = vector.load %arg8[%c0_62, %c0_63, %c0_64] : memref<2x2x32xf32, #tpu.memory_space<vmem>>, vector<1x2x32xf32>
    %169 = vector.shape_cast %168 : vector<1x2x32xf32> to vector<2x32xf32>
    %170 = tpu.concatenate %167, %169 in 1 : vector<2x32xf32>, vector<2x32xf32> -> vector<2x64xf32>
    %c0_65 = arith.constant 0 : index
    %c0_66 = arith.constant 0 : index
    %c0_67 = arith.constant 0 : index
    %171 = vector.load %arg3[%c0_65, %c0_66, %c0_67] : memref<2x64x128xbf16, #tpu.memory_space<vmem>>, vector<1x64x128xbf16>
    %172 = vector.shape_cast %171 : vector<1x64x128xbf16> to vector<64x128xbf16>
    %173 = arith.truncf %170 : vector<2x64xf32> to vector<2x64xbf16>
    %cst_68 = arith.constant dense<0.000000e+00> : vector<2x128xf32>
    %174 = tpu.matmul %173, %172, %cst_68 {dimension_numbers = #tpu.dot_dimension_numbers<[1], [0], [0], [1], [0, 0, 1, 1], [], []>} : vector<2x64xbf16>, vector<64x128xbf16>, vector<2x128xf32> -> vector<2x128xf32>
    %c0_69 = arith.constant 0 : index
    %c0_70 = arith.constant 0 : index
    %c0_71 = arith.constant 0 : index
    %175 = vector.load %arg4[%c0_69, %c0_70, %c0_71] : memref<2x1x128xf32, #tpu.memory_space<vmem>>, vector<1x1x128xf32>
    %176 = vector.shape_cast %175 : vector<1x1x128xf32> to vector<1x128xf32>
    %177 = vector.broadcast %176 : vector<1x128xf32> to vector<2x128xf32>
    %178 = arith.addf %174, %177 : vector<2x128xf32>
    %179 = vector.extract_strided_slice %178 {offsets = [0, 0], sizes = [2, 32], strides = [1, 1]} : vector<2x128xf32> to vector<2x32xf32>
    %180 = arith.negf %179 : vector<2x32xf32>
    %181 = math.exp %180 : vector<2x32xf32>
    %cst_72 = arith.constant 1.000000e+00 : f32
    %182 = vector.broadcast %cst_72 : f32 to vector<2x32xf32>
    %183 = arith.addf %182, %181 : vector<2x32xf32>
    %184 = arith.divf %182, %183 : vector<2x32xf32>
    %185 = vector.extract_strided_slice %178 {offsets = [0, 32], sizes = [2, 32], strides = [1, 1]} : vector<2x128xf32> to vector<2x32xf32>
    %186 = arith.negf %185 : vector<2x32xf32>
    %187 = math.exp %186 : vector<2x32xf32>
    %cst_73 = arith.constant 1.000000e+00 : f32
    %188 = vector.broadcast %cst_73 : f32 to vector<2x32xf32>
    %189 = arith.addf %188, %187 : vector<2x32xf32>
    %190 = arith.divf %188, %189 : vector<2x32xf32>
    %191 = vector.extract_strided_slice %178 {offsets = [0, 64], sizes = [2, 32], strides = [1, 1]} : vector<2x128xf32> to vector<2x32xf32>
    %192 = vector.extract_strided_slice %178 {offsets = [0, 96], sizes = [2, 32], strides = [1, 1]} : vector<2x128xf32> to vector<2x32xf32>
    %193 = arith.mulf %184, %192 : vector<2x32xf32>
    %194 = arith.addf %191, %193 : vector<2x32xf32>
    %195 = math.tanh %194 : vector<2x32xf32>
    %cst_74 = arith.constant 1.000000e+00 : f32
    %196 = vector.broadcast %cst_74 : f32 to vector<2x32xf32>
    %197 = arith.subf %196, %190 : vector<2x32xf32>
    %198 = arith.mulf %197, %195 : vector<2x32xf32>
    %199 = arith.mulf %190, %169 : vector<2x32xf32>
    %200 = arith.addf %198, %199 : vector<2x32xf32>
    %201 = vector.shape_cast %200 : vector<2x32xf32> to vector<2x1x32xf32>
    %202 = vector.shape_cast %201 : vector<2x1x32xf32> to vector<2x1x32xf32>
    %203 = vector.broadcast %202 : vector<2x1x32xf32> to vector<2x32x32xf32>
    %204 = tpu.transpose %203, [0, 2, 1] : vector<2x32x32xf32> -> vector<2x32x32xf32>
    %205 = arith.cmpf olt, %203, %204 : vector<2x32x32xf32>
    %206 = arith.cmpf oeq, %203, %204 : vector<2x32x32xf32>
    %207 = arith.cmpi slt, %4, %3 : vector<1x32x32xi32>
    %208 = vector.broadcast %207 : vector<1x32x32xi1> to vector<2x32x32xi1>
    %209 = arith.andi %206, %208 : vector<2x32x32xi1>
    %210 = arith.ori %205, %209 : vector<2x32x32xi1>
    %211 = arith.extui %210 : vector<2x32x32xi1> to vector<2x32x32xi32>
    %212 = arith.sitofp %211 : vector<2x32x32xi32> to vector<2x32x32xf32>
    %213 = vector.shape_cast %212 : vector<2x32x32xf32> to vector<64x32xf32>
    %214 = arith.truncf %213 : vector<64x32xf32> to vector<64x32xbf16>
    %cst_75 = arith.constant dense<0.000000e+00> : vector<64x32xf32>
    %215 = tpu.matmul %214, %5, %cst_75 {dimension_numbers = #tpu.dot_dimension_numbers<[1], [0], [0], [1], [0, 0, 1, 1], [], []>} : vector<64x32xbf16>, vector<32x32xbf16>, vector<64x32xf32> -> vector<64x32xf32>
    %216 = arith.fptosi %215 : vector<64x32xf32> to vector<64x32xi32>
    %217 = vector.shape_cast %216 : vector<64x32xi32> to vector<2x32x32xi32>
    %218 = vector.broadcast %4 : vector<1x32x32xi32> to vector<2x32x32xi32>
    %219 = arith.cmpi eq, %217, %218 : vector<2x32x32xi32>
    %220 = arith.extui %219 : vector<2x32x32xi1> to vector<2x32x32xi32>
    %221 = arith.sitofp %220 : vector<2x32x32xi32> to vector<2x32x32xf32>
    %222 = arith.mulf %204, %221 : vector<2x32x32xf32>
    %cst_76 = arith.constant dense<0.000000e+00> : vector<2x32xf32>
    %223 = vector.multi_reduction <add>, %222, %cst_76 [1] : vector<2x32x32xf32> to vector<2x32xf32>
    %224 = tpu.concatenate %200, %223 in 1 : vector<2x32xf32>, vector<2x32xf32> -> vector<2x64xf32>
    %c0_77 = arith.constant 0 : index
    %c0_78 = arith.constant 0 : index
    %c0_79 = arith.constant 0 : index
    %225 = vector.load %arg5[%c0_77, %c0_78, %c0_79] : memref<2x64x64xbf16, #tpu.memory_space<vmem>>, vector<1x64x64xbf16>
    %226 = vector.shape_cast %225 : vector<1x64x64xbf16> to vector<64x64xbf16>
    %227 = arith.truncf %224 : vector<2x64xf32> to vector<2x64xbf16>
    %cst_80 = arith.constant dense<0.000000e+00> : vector<2x64xf32>
    %228 = tpu.matmul %227, %226, %cst_80 {dimension_numbers = #tpu.dot_dimension_numbers<[1], [0], [0], [1], [0, 0, 1, 1], [], []>} : vector<2x64xbf16>, vector<64x64xbf16>, vector<2x64xf32> -> vector<2x64xf32>
    %cst_81 = arith.constant 0.000000e+00 : f32
    %229 = vector.broadcast %cst_81 : f32 to vector<2x64xf32>
    %230 = arith.maximumf %228, %229 : vector<2x64xf32>
    %c0_82 = arith.constant 0 : index
    %c0_83 = arith.constant 0 : index
    %c0_84 = arith.constant 0 : index
    %231 = vector.load %arg6[%c0_82, %c0_83, %c0_84] : memref<2x64x32xbf16, #tpu.memory_space<vmem>>, vector<1x64x32xbf16>
    %232 = vector.shape_cast %231 : vector<1x64x32xbf16> to vector<64x32xbf16>
    %233 = arith.truncf %230 : vector<2x64xf32> to vector<2x64xbf16>
    %cst_85 = arith.constant dense<0.000000e+00> : vector<2x32xf32>
    %234 = tpu.matmul %233, %232, %cst_85 {dimension_numbers = #tpu.dot_dimension_numbers<[1], [0], [0], [1], [0, 0, 1, 1], [], []>} : vector<2x64xbf16>, vector<64x32xbf16>, vector<2x32xf32> -> vector<2x32xf32>
    %235 = arith.negf %234 : vector<2x32xf32>
    %236 = math.exp %235 : vector<2x32xf32>
    %cst_86 = arith.constant 1.000000e+00 : f32
    %237 = vector.broadcast %cst_86 : f32 to vector<2x32xf32>
    %238 = arith.addf %237, %236 : vector<2x32xf32>
    %239 = arith.divf %237, %238 : vector<2x32xf32>
    %240 = arith.mulf %200, %239 : vector<2x32xf32>
    %c0_87 = arith.constant 0 : index
    %c0_88 = arith.constant 0 : index
    %c0_89 = arith.constant 0 : index
    %241 = vector.load %arg8[%c0_87, %c0_88, %c0_89] : memref<2x2x32xf32, #tpu.memory_space<vmem>>, vector<1x2x32xf32>
    %242 = vector.shape_cast %241 : vector<1x2x32xf32> to vector<2x32xf32>
    %243 = vector.shape_cast %240 : vector<2x32xf32> to vector<1x2x32xf32>
    tpu.vector_store %arg8[%c0_87, %c0_88, %c0_89], %243 {strides = array<i32>} : memref<2x2x32xf32, #tpu.memory_space<vmem>>, vector<1x2x32xf32>,
    %c1_90 = arith.constant 1 : index
    %c0_91 = arith.constant 0 : index
    %c0_92 = arith.constant 0 : index
    %244 = vector.load %arg8[%c1_90, %c0_91, %c0_92] : memref<2x2x32xf32, #tpu.memory_space<vmem>>, vector<1x2x32xf32>
    %245 = vector.shape_cast %244 : vector<1x2x32xf32> to vector<2x32xf32>
    %246 = tpu.concatenate %240, %245 in 1 : vector<2x32xf32>, vector<2x32xf32> -> vector<2x64xf32>
    %c1_93 = arith.constant 1 : index
    %c0_94 = arith.constant 0 : index
    %c0_95 = arith.constant 0 : index
    %247 = vector.load %arg3[%c1_93, %c0_94, %c0_95] : memref<2x64x128xbf16, #tpu.memory_space<vmem>>, vector<1x64x128xbf16>
    %248 = vector.shape_cast %247 : vector<1x64x128xbf16> to vector<64x128xbf16>
    %249 = arith.truncf %246 : vector<2x64xf32> to vector<2x64xbf16>
    %cst_96 = arith.constant dense<0.000000e+00> : vector<2x128xf32>
    %250 = tpu.matmul %249, %248, %cst_96 {dimension_numbers = #tpu.dot_dimension_numbers<[1], [0], [0], [1], [0, 0, 1, 1], [], []>} : vector<2x64xbf16>, vector<64x128xbf16>, vector<2x128xf32> -> vector<2x128xf32>
    %c1_97 = arith.constant 1 : index
    %c0_98 = arith.constant 0 : index
    %c0_99 = arith.constant 0 : index
    %251 = vector.load %arg4[%c1_97, %c0_98, %c0_99] : memref<2x1x128xf32, #tpu.memory_space<vmem>>, vector<1x1x128xf32>
    %252 = vector.shape_cast %251 : vector<1x1x128xf32> to vector<1x128xf32>
    %253 = vector.broadcast %252 : vector<1x128xf32> to vector<2x128xf32>
    %254 = arith.addf %250, %253 : vector<2x128xf32>
    %255 = vector.extract_strided_slice %254 {offsets = [0, 0], sizes = [2, 32], strides = [1, 1]} : vector<2x128xf32> to vector<2x32xf32>
    %256 = arith.negf %255 : vector<2x32xf32>
    %257 = math.exp %256 : vector<2x32xf32>
    %cst_100 = arith.constant 1.000000e+00 : f32
    %258 = vector.broadcast %cst_100 : f32 to vector<2x32xf32>
    %259 = arith.addf %258, %257 : vector<2x32xf32>
    %260 = arith.divf %258, %259 : vector<2x32xf32>
    %261 = vector.extract_strided_slice %254 {offsets = [0, 32], sizes = [2, 32], strides = [1, 1]} : vector<2x128xf32> to vector<2x32xf32>
    %262 = arith.negf %261 : vector<2x32xf32>
    %263 = math.exp %262 : vector<2x32xf32>
    %cst_101 = arith.constant 1.000000e+00 : f32
    %264 = vector.broadcast %cst_101 : f32 to vector<2x32xf32>
    %265 = arith.addf %264, %263 : vector<2x32xf32>
    %266 = arith.divf %264, %265 : vector<2x32xf32>
    %267 = vector.extract_strided_slice %254 {offsets = [0, 64], sizes = [2, 32], strides = [1, 1]} : vector<2x128xf32> to vector<2x32xf32>
    %268 = vector.extract_strided_slice %254 {offsets = [0, 96], sizes = [2, 32], strides = [1, 1]} : vector<2x128xf32> to vector<2x32xf32>
    %269 = arith.mulf %260, %268 : vector<2x32xf32>
    %270 = arith.addf %267, %269 : vector<2x32xf32>
    %271 = math.tanh %270 : vector<2x32xf32>
    %cst_102 = arith.constant 1.000000e+00 : f32
    %272 = vector.broadcast %cst_102 : f32 to vector<2x32xf32>
    %273 = arith.subf %272, %266 : vector<2x32xf32>
    %274 = arith.mulf %273, %271 : vector<2x32xf32>
    %275 = arith.mulf %266, %245 : vector<2x32xf32>
    %276 = arith.addf %274, %275 : vector<2x32xf32>
    %277 = vector.shape_cast %276 : vector<2x32xf32> to vector<2x1x32xf32>
    %278 = vector.shape_cast %277 : vector<2x1x32xf32> to vector<2x1x32xf32>
    %279 = vector.broadcast %278 : vector<2x1x32xf32> to vector<2x32x32xf32>
    %280 = tpu.transpose %279, [0, 2, 1] : vector<2x32x32xf32> -> vector<2x32x32xf32>
    %281 = arith.cmpf olt, %279, %280 : vector<2x32x32xf32>
    %282 = arith.cmpf oeq, %279, %280 : vector<2x32x32xf32>
    %283 = arith.cmpi slt, %4, %3 : vector<1x32x32xi32>
    %284 = vector.broadcast %283 : vector<1x32x32xi1> to vector<2x32x32xi1>
    %285 = arith.andi %282, %284 : vector<2x32x32xi1>
    %286 = arith.ori %281, %285 : vector<2x32x32xi1>
    %287 = arith.extui %286 : vector<2x32x32xi1> to vector<2x32x32xi32>
    %288 = arith.sitofp %287 : vector<2x32x32xi32> to vector<2x32x32xf32>
    %289 = vector.shape_cast %288 : vector<2x32x32xf32> to vector<64x32xf32>
    %290 = arith.truncf %289 : vector<64x32xf32> to vector<64x32xbf16>
    %cst_103 = arith.constant dense<0.000000e+00> : vector<64x32xf32>
    %291 = tpu.matmul %290, %5, %cst_103 {dimension_numbers = #tpu.dot_dimension_numbers<[1], [0], [0], [1], [0, 0, 1, 1], [], []>} : vector<64x32xbf16>, vector<32x32xbf16>, vector<64x32xf32> -> vector<64x32xf32>
    %292 = arith.fptosi %291 : vector<64x32xf32> to vector<64x32xi32>
    %293 = vector.shape_cast %292 : vector<64x32xi32> to vector<2x32x32xi32>
    %294 = vector.broadcast %4 : vector<1x32x32xi32> to vector<2x32x32xi32>
    %295 = arith.cmpi eq, %293, %294 : vector<2x32x32xi32>
    %296 = arith.extui %295 : vector<2x32x32xi1> to vector<2x32x32xi32>
    %297 = arith.sitofp %296 : vector<2x32x32xi32> to vector<2x32x32xf32>
    %298 = arith.mulf %280, %297 : vector<2x32x32xf32>
    %cst_104 = arith.constant dense<0.000000e+00> : vector<2x32xf32>
    %299 = vector.multi_reduction <add>, %298, %cst_104 [1] : vector<2x32x32xf32> to vector<2x32xf32>
    %300 = tpu.concatenate %276, %299 in 1 : vector<2x32xf32>, vector<2x32xf32> -> vector<2x64xf32>
    %c1_105 = arith.constant 1 : index
    %c0_106 = arith.constant 0 : index
    %c0_107 = arith.constant 0 : index
    %301 = vector.load %arg5[%c1_105, %c0_106, %c0_107] : memref<2x64x64xbf16, #tpu.memory_space<vmem>>, vector<1x64x64xbf16>
    %302 = vector.shape_cast %301 : vector<1x64x64xbf16> to vector<64x64xbf16>
    %303 = arith.truncf %300 : vector<2x64xf32> to vector<2x64xbf16>
    %cst_108 = arith.constant dense<0.000000e+00> : vector<2x64xf32>
    %304 = tpu.matmul %303, %302, %cst_108 {dimension_numbers = #tpu.dot_dimension_numbers<[1], [0], [0], [1], [0, 0, 1, 1], [], []>} : vector<2x64xbf16>, vector<64x64xbf16>, vector<2x64xf32> -> vector<2x64xf32>
    %cst_109 = arith.constant 0.000000e+00 : f32
    %305 = vector.broadcast %cst_109 : f32 to vector<2x64xf32>
    %306 = arith.maximumf %304, %305 : vector<2x64xf32>
    %c1_110 = arith.constant 1 : index
    %c0_111 = arith.constant 0 : index
    %c0_112 = arith.constant 0 : index
    %307 = vector.load %arg6[%c1_110, %c0_111, %c0_112] : memref<2x64x32xbf16, #tpu.memory_space<vmem>>, vector<1x64x32xbf16>
    %308 = vector.shape_cast %307 : vector<1x64x32xbf16> to vector<64x32xbf16>
    %309 = arith.truncf %306 : vector<2x64xf32> to vector<2x64xbf16>
    %cst_113 = arith.constant dense<0.000000e+00> : vector<2x32xf32>
    %310 = tpu.matmul %309, %308, %cst_113 {dimension_numbers = #tpu.dot_dimension_numbers<[1], [0], [0], [1], [0, 0, 1, 1], [], []>} : vector<2x64xbf16>, vector<64x32xbf16>, vector<2x32xf32> -> vector<2x32xf32>
    %311 = arith.negf %310 : vector<2x32xf32>
    %312 = math.exp %311 : vector<2x32xf32>
    %cst_114 = arith.constant 1.000000e+00 : f32
    %313 = vector.broadcast %cst_114 : f32 to vector<2x32xf32>
    %314 = arith.addf %313, %312 : vector<2x32xf32>
    %315 = arith.divf %313, %314 : vector<2x32xf32>
    %316 = arith.mulf %276, %315 : vector<2x32xf32>
    %c1_115 = arith.constant 1 : index
    %c0_116 = arith.constant 0 : index
    %c0_117 = arith.constant 0 : index
    %317 = vector.load %arg8[%c1_115, %c0_116, %c0_117] : memref<2x2x32xf32, #tpu.memory_space<vmem>>, vector<1x2x32xf32>
    %318 = vector.shape_cast %317 : vector<1x2x32xf32> to vector<2x32xf32>
    %319 = vector.shape_cast %316 : vector<2x32xf32> to vector<1x2x32xf32>
    tpu.vector_store %arg8[%c1_115, %c0_116, %c0_117], %319 {strides = array<i32>} : memref<2x2x32xf32, #tpu.memory_space<vmem>>, vector<1x2x32xf32>,
    %320 = arith.index_cast %c1_i32 : i32 to index
    %c0_118 = arith.constant 0 : index
    %c0_119 = arith.constant 0 : index
    %321 = vector.load %arg7[%320, %c0_118, %c0_119] : memref<8x2x32xf32, #tpu.memory_space<vmem>>, vector<1x2x32xf32>
    %322 = vector.shape_cast %321 : vector<1x2x32xf32> to vector<2x32xf32>
    %323 = vector.shape_cast %316 : vector<2x32xf32> to vector<1x2x32xf32>
    tpu.vector_store %arg7[%320, %c0_118, %c0_119], %323 {strides = array<i32>} : memref<8x2x32xf32, #tpu.memory_space<vmem>>, vector<1x2x32xf32>,
    %c2_i32 = arith.constant 2 : i32
    %324 = arith.index_cast %c2_i32 : i32 to index
    %c0_120 = arith.constant 0 : index
    %c0_121 = arith.constant 0 : index
    %325 = vector.load %arg1[%324, %c0_120, %c0_121] : memref<8x2x32xf32, #tpu.memory_space<vmem>>, vector<1x2x32xf32>
    %326 = vector.shape_cast %325 : vector<1x2x32xf32> to vector<2x32xf32>
    %c0_122 = arith.constant 0 : index
    %c0_123 = arith.constant 0 : index
    %c0_124 = arith.constant 0 : index
    %327 = vector.load %arg8[%c0_122, %c0_123, %c0_124] : memref<2x2x32xf32, #tpu.memory_space<vmem>>, vector<1x2x32xf32>
    %328 = vector.shape_cast %327 : vector<1x2x32xf32> to vector<2x32xf32>
    %329 = tpu.concatenate %326, %328 in 1 : vector<2x32xf32>, vector<2x32xf32> -> vector<2x64xf32>
    %c0_125 = arith.constant 0 : index
    %c0_126 = arith.constant 0 : index
    %c0_127 = arith.constant 0 : index
    %330 = vector.load %arg3[%c0_125, %c0_126, %c0_127] : memref<2x64x128xbf16, #tpu.memory_space<vmem>>, vector<1x64x128xbf16>
    %331 = vector.shape_cast %330 : vector<1x64x128xbf16> to vector<64x128xbf16>
    %332 = arith.truncf %329 : vector<2x64xf32> to vector<2x64xbf16>
    %cst_128 = arith.constant dense<0.000000e+00> : vector<2x128xf32>
    %333 = tpu.matmul %332, %331, %cst_128 {dimension_numbers = #tpu.dot_dimension_numbers<[1], [0], [0], [1], [0, 0, 1, 1], [], []>} : vector<2x64xbf16>, vector<64x128xbf16>, vector<2x128xf32> -> vector<2x128xf32>
    %c0_129 = arith.constant 0 : index
    %c0_130 = arith.constant 0 : index
    %c0_131 = arith.constant 0 : index
    %334 = vector.load %arg4[%c0_129, %c0_130, %c0_131] : memref<2x1x128xf32, #tpu.memory_space<vmem>>, vector<1x1x128xf32>
    %335 = vector.shape_cast %334 : vector<1x1x128xf32> to vector<1x128xf32>
    %336 = vector.broadcast %335 : vector<1x128xf32> to vector<2x128xf32>
    %337 = arith.addf %333, %336 : vector<2x128xf32>
    %338 = vector.extract_strided_slice %337 {offsets = [0, 0], sizes = [2, 32], strides = [1, 1]} : vector<2x128xf32> to vector<2x32xf32>
    %339 = arith.negf %338 : vector<2x32xf32>
    %340 = math.exp %339 : vector<2x32xf32>
    %cst_132 = arith.constant 1.000000e+00 : f32
    %341 = vector.broadcast %cst_132 : f32 to vector<2x32xf32>
    %342 = arith.addf %341, %340 : vector<2x32xf32>
    %343 = arith.divf %341, %342 : vector<2x32xf32>
    %344 = vector.extract_strided_slice %337 {offsets = [0, 32], sizes = [2, 32], strides = [1, 1]} : vector<2x128xf32> to vector<2x32xf32>
    %345 = arith.negf %344 : vector<2x32xf32>
    %346 = math.exp %345 : vector<2x32xf32>
    %cst_133 = arith.constant 1.000000e+00 : f32
    %347 = vector.broadcast %cst_133 : f32 to vector<2x32xf32>
    %348 = arith.addf %347, %346 : vector<2x32xf32>
    %349 = arith.divf %347, %348 : vector<2x32xf32>
    %350 = vector.extract_strided_slice %337 {offsets = [0, 64], sizes = [2, 32], strides = [1, 1]} : vector<2x128xf32> to vector<2x32xf32>
    %351 = vector.extract_strided_slice %337 {offsets = [0, 96], sizes = [2, 32], strides = [1, 1]} : vector<2x128xf32> to vector<2x32xf32>
    %352 = arith.mulf %343, %351 : vector<2x32xf32>
    %353 = arith.addf %350, %352 : vector<2x32xf32>
    %354 = math.tanh %353 : vector<2x32xf32>
    %cst_134 = arith.constant 1.000000e+00 : f32
    %355 = vector.broadcast %cst_134 : f32 to vector<2x32xf32>
    %356 = arith.subf %355, %349 : vector<2x32xf32>
    %357 = arith.mulf %356, %354 : vector<2x32xf32>
    %358 = arith.mulf %349, %328 : vector<2x32xf32>
    %359 = arith.addf %357, %358 : vector<2x32xf32>
    %360 = vector.shape_cast %359 : vector<2x32xf32> to vector<2x1x32xf32>
    %361 = vector.shape_cast %360 : vector<2x1x32xf32> to vector<2x1x32xf32>
    %362 = vector.broadcast %361 : vector<2x1x32xf32> to vector<2x32x32xf32>
    %363 = tpu.transpose %362, [0, 2, 1] : vector<2x32x32xf32> -> vector<2x32x32xf32>
    %364 = arith.cmpf olt, %362, %363 : vector<2x32x32xf32>
    %365 = arith.cmpf oeq, %362, %363 : vector<2x32x32xf32>
    %366 = arith.cmpi slt, %4, %3 : vector<1x32x32xi32>
    %367 = vector.broadcast %366 : vector<1x32x32xi1> to vector<2x32x32xi1>
    %368 = arith.andi %365, %367 : vector<2x32x32xi1>
    %369 = arith.ori %364, %368 : vector<2x32x32xi1>
    %370 = arith.extui %369 : vector<2x32x32xi1> to vector<2x32x32xi32>
    %371 = arith.sitofp %370 : vector<2x32x32xi32> to vector<2x32x32xf32>
    %372 = vector.shape_cast %371 : vector<2x32x32xf32> to vector<64x32xf32>
    %373 = arith.truncf %372 : vector<64x32xf32> to vector<64x32xbf16>
    %cst_135 = arith.constant dense<0.000000e+00> : vector<64x32xf32>
    %374 = tpu.matmul %373, %5, %cst_135 {dimension_numbers = #tpu.dot_dimension_numbers<[1], [0], [0], [1], [0, 0, 1, 1], [], []>} : vector<64x32xbf16>, vector<32x32xbf16>, vector<64x32xf32> -> vector<64x32xf32>
    %375 = arith.fptosi %374 : vector<64x32xf32> to vector<64x32xi32>
    %376 = vector.shape_cast %375 : vector<64x32xi32> to vector<2x32x32xi32>
    %377 = vector.broadcast %4 : vector<1x32x32xi32> to vector<2x32x32xi32>
    %378 = arith.cmpi eq, %376, %377 : vector<2x32x32xi32>
    %379 = arith.extui %378 : vector<2x32x32xi1> to vector<2x32x32xi32>
    %380 = arith.sitofp %379 : vector<2x32x32xi32> to vector<2x32x32xf32>
    %381 = arith.mulf %363, %380 : vector<2x32x32xf32>
    %cst_136 = arith.constant dense<0.000000e+00> : vector<2x32xf32>
    %382 = vector.multi_reduction <add>, %381, %cst_136 [1] : vector<2x32x32xf32> to vector<2x32xf32>
    %383 = tpu.concatenate %359, %382 in 1 : vector<2x32xf32>, vector<2x32xf32> -> vector<2x64xf32>
    %c0_137 = arith.constant 0 : index
    %c0_138 = arith.constant 0 : index
    %c0_139 = arith.constant 0 : index
    %384 = vector.load %arg5[%c0_137, %c0_138, %c0_139] : memref<2x64x64xbf16, #tpu.memory_space<vmem>>, vector<1x64x64xbf16>
    %385 = vector.shape_cast %384 : vector<1x64x64xbf16> to vector<64x64xbf16>
    %386 = arith.truncf %383 : vector<2x64xf32> to vector<2x64xbf16>
    %cst_140 = arith.constant dense<0.000000e+00> : vector<2x64xf32>
    %387 = tpu.matmul %386, %385, %cst_140 {dimension_numbers = #tpu.dot_dimension_numbers<[1], [0], [0], [1], [0, 0, 1, 1], [], []>} : vector<2x64xbf16>, vector<64x64xbf16>, vector<2x64xf32> -> vector<2x64xf32>
    %cst_141 = arith.constant 0.000000e+00 : f32
    %388 = vector.broadcast %cst_141 : f32 to vector<2x64xf32>
    %389 = arith.maximumf %387, %388 : vector<2x64xf32>
    %c0_142 = arith.constant 0 : index
    %c0_143 = arith.constant 0 : index
    %c0_144 = arith.constant 0 : index
    %390 = vector.load %arg6[%c0_142, %c0_143, %c0_144] : memref<2x64x32xbf16, #tpu.memory_space<vmem>>, vector<1x64x32xbf16>
    %391 = vector.shape_cast %390 : vector<1x64x32xbf16> to vector<64x32xbf16>
    %392 = arith.truncf %389 : vector<2x64xf32> to vector<2x64xbf16>
    %cst_145 = arith.constant dense<0.000000e+00> : vector<2x32xf32>
    %393 = tpu.matmul %392, %391, %cst_145 {dimension_numbers = #tpu.dot_dimension_numbers<[1], [0], [0], [1], [0, 0, 1, 1], [], []>} : vector<2x64xbf16>, vector<64x32xbf16>, vector<2x32xf32> -> vector<2x32xf32>
    %394 = arith.negf %393 : vector<2x32xf32>
    %395 = math.exp %394 : vector<2x32xf32>
    %cst_146 = arith.constant 1.000000e+00 : f32
    %396 = vector.broadcast %cst_146 : f32 to vector<2x32xf32>
    %397 = arith.addf %396, %395 : vector<2x32xf32>
    %398 = arith.divf %396, %397 : vector<2x32xf32>
    %399 = arith.mulf %359, %398 : vector<2x32xf32>
    %c0_147 = arith.constant 0 : index
    %c0_148 = arith.constant 0 : index
    %c0_149 = arith.constant 0 : index
    %400 = vector.load %arg8[%c0_147, %c0_148, %c0_149] : memref<2x2x32xf32, #tpu.memory_space<vmem>>, vector<1x2x32xf32>
    %401 = vector.shape_cast %400 : vector<1x2x32xf32> to vector<2x32xf32>
    %402 = vector.shape_cast %399 : vector<2x32xf32> to vector<1x2x32xf32>
    tpu.vector_store %arg8[%c0_147, %c0_148, %c0_149], %402 {strides = array<i32>} : memref<2x2x32xf32, #tpu.memory_space<vmem>>, vector<1x2x32xf32>,
    %c1_150 = arith.constant 1 : index
    %c0_151 = arith.constant 0 : index
    %c0_152 = arith.constant 0 : index
    %403 = vector.load %arg8[%c1_150, %c0_151, %c0_152] : memref<2x2x32xf32, #tpu.memory_space<vmem>>, vector<1x2x32xf32>
    %404 = vector.shape_cast %403 : vector<1x2x32xf32> to vector<2x32xf32>
    %405 = tpu.concatenate %399, %404 in 1 : vector<2x32xf32>, vector<2x32xf32> -> vector<2x64xf32>
    %c1_153 = arith.constant 1 : index
    %c0_154 = arith.constant 0 : index
    %c0_155 = arith.constant 0 : index
    %406 = vector.load %arg3[%c1_153, %c0_154, %c0_155] : memref<2x64x128xbf16, #tpu.memory_space<vmem>>, vector<1x64x128xbf16>
    %407 = vector.shape_cast %406 : vector<1x64x128xbf16> to vector<64x128xbf16>
    %408 = arith.truncf %405 : vector<2x64xf32> to vector<2x64xbf16>
    %cst_156 = arith.constant dense<0.000000e+00> : vector<2x128xf32>
    %409 = tpu.matmul %408, %407, %cst_156 {dimension_numbers = #tpu.dot_dimension_numbers<[1], [0], [0], [1], [0, 0, 1, 1], [], []>} : vector<2x64xbf16>, vector<64x128xbf16>, vector<2x128xf32> -> vector<2x128xf32>
    %c1_157 = arith.constant 1 : index
    %c0_158 = arith.constant 0 : index
    %c0_159 = arith.constant 0 : index
    %410 = vector.load %arg4[%c1_157, %c0_158, %c0_159] : memref<2x1x128xf32, #tpu.memory_space<vmem>>, vector<1x1x128xf32>
    %411 = vector.shape_cast %410 : vector<1x1x128xf32> to vector<1x128xf32>
    %412 = vector.broadcast %411 : vector<1x128xf32> to vector<2x128xf32>
    %413 = arith.addf %409, %412 : vector<2x128xf32>
    %414 = vector.extract_strided_slice %413 {offsets = [0, 0], sizes = [2, 32], strides = [1, 1]} : vector<2x128xf32> to vector<2x32xf32>
    %415 = arith.negf %414 : vector<2x32xf32>
    %416 = math.exp %415 : vector<2x32xf32>
    %cst_160 = arith.constant 1.000000e+00 : f32
    %417 = vector.broadcast %cst_160 : f32 to vector<2x32xf32>
    %418 = arith.addf %417, %416 : vector<2x32xf32>
    %419 = arith.divf %417, %418 : vector<2x32xf32>
    %420 = vector.extract_strided_slice %413 {offsets = [0, 32], sizes = [2, 32], strides = [1, 1]} : vector<2x128xf32> to vector<2x32xf32>
    %421 = arith.negf %420 : vector<2x32xf32>
    %422 = math.exp %421 : vector<2x32xf32>
    %cst_161 = arith.constant 1.000000e+00 : f32
    %423 = vector.broadcast %cst_161 : f32 to vector<2x32xf32>
    %424 = arith.addf %423, %422 : vector<2x32xf32>
    %425 = arith.divf %423, %424 : vector<2x32xf32>
    %426 = vector.extract_strided_slice %413 {offsets = [0, 64], sizes = [2, 32], strides = [1, 1]} : vector<2x128xf32> to vector<2x32xf32>
    %427 = vector.extract_strided_slice %413 {offsets = [0, 96], sizes = [2, 32], strides = [1, 1]} : vector<2x128xf32> to vector<2x32xf32>
    %428 = arith.mulf %419, %427 : vector<2x32xf32>
    %429 = arith.addf %426, %428 : vector<2x32xf32>
    %430 = math.tanh %429 : vector<2x32xf32>
    %cst_162 = arith.constant 1.000000e+00 : f32
    %431 = vector.broadcast %cst_162 : f32 to vector<2x32xf32>
    %432 = arith.subf %431, %425 : vector<2x32xf32>
    %433 = arith.mulf %432, %430 : vector<2x32xf32>
    %434 = arith.mulf %425, %404 : vector<2x32xf32>
    %435 = arith.addf %433, %434 : vector<2x32xf32>
    %436 = vector.shape_cast %435 : vector<2x32xf32> to vector<2x1x32xf32>
    %437 = vector.shape_cast %436 : vector<2x1x32xf32> to vector<2x1x32xf32>
    %438 = vector.broadcast %437 : vector<2x1x32xf32> to vector<2x32x32xf32>
    %439 = tpu.transpose %438, [0, 2, 1] : vector<2x32x32xf32> -> vector<2x32x32xf32>
    %440 = arith.cmpf olt, %438, %439 : vector<2x32x32xf32>
    %441 = arith.cmpf oeq, %438, %439 : vector<2x32x32xf32>
    %442 = arith.cmpi slt, %4, %3 : vector<1x32x32xi32>
    %443 = vector.broadcast %442 : vector<1x32x32xi1> to vector<2x32x32xi1>
    %444 = arith.andi %441, %443 : vector<2x32x32xi1>
    %445 = arith.ori %440, %444 : vector<2x32x32xi1>
    %446 = arith.extui %445 : vector<2x32x32xi1> to vector<2x32x32xi32>
    %447 = arith.sitofp %446 : vector<2x32x32xi32> to vector<2x32x32xf32>
    %448 = vector.shape_cast %447 : vector<2x32x32xf32> to vector<64x32xf32>
    %449 = arith.truncf %448 : vector<64x32xf32> to vector<64x32xbf16>
    %cst_163 = arith.constant dense<0.000000e+00> : vector<64x32xf32>
    %450 = tpu.matmul %449, %5, %cst_163 {dimension_numbers = #tpu.dot_dimension_numbers<[1], [0], [0], [1], [0, 0, 1, 1], [], []>} : vector<64x32xbf16>, vector<32x32xbf16>, vector<64x32xf32> -> vector<64x32xf32>
    %451 = arith.fptosi %450 : vector<64x32xf32> to vector<64x32xi32>
    %452 = vector.shape_cast %451 : vector<64x32xi32> to vector<2x32x32xi32>
    %453 = vector.broadcast %4 : vector<1x32x32xi32> to vector<2x32x32xi32>
    %454 = arith.cmpi eq, %452, %453 : vector<2x32x32xi32>
    %455 = arith.extui %454 : vector<2x32x32xi1> to vector<2x32x32xi32>
    %456 = arith.sitofp %455 : vector<2x32x32xi32> to vector<2x32x32xf32>
    %457 = arith.mulf %439, %456 : vector<2x32x32xf32>
    %cst_164 = arith.constant dense<0.000000e+00> : vector<2x32xf32>
    %458 = vector.multi_reduction <add>, %457, %cst_164 [1] : vector<2x32x32xf32> to vector<2x32xf32>
    %459 = tpu.concatenate %435, %458 in 1 : vector<2x32xf32>, vector<2x32xf32> -> vector<2x64xf32>
    %c1_165 = arith.constant 1 : index
    %c0_166 = arith.constant 0 : index
    %c0_167 = arith.constant 0 : index
    %460 = vector.load %arg5[%c1_165, %c0_166, %c0_167] : memref<2x64x64xbf16, #tpu.memory_space<vmem>>, vector<1x64x64xbf16>
    %461 = vector.shape_cast %460 : vector<1x64x64xbf16> to vector<64x64xbf16>
    %462 = arith.truncf %459 : vector<2x64xf32> to vector<2x64xbf16>
    %cst_168 = arith.constant dense<0.000000e+00> : vector<2x64xf32>
    %463 = tpu.matmul %462, %461, %cst_168 {dimension_numbers = #tpu.dot_dimension_numbers<[1], [0], [0], [1], [0, 0, 1, 1], [], []>} : vector<2x64xbf16>, vector<64x64xbf16>, vector<2x64xf32> -> vector<2x64xf32>
    %cst_169 = arith.constant 0.000000e+00 : f32
    %464 = vector.broadcast %cst_169 : f32 to vector<2x64xf32>
    %465 = arith.maximumf %463, %464 : vector<2x64xf32>
    %c1_170 = arith.constant 1 : index
    %c0_171 = arith.constant 0 : index
    %c0_172 = arith.constant 0 : index
    %466 = vector.load %arg6[%c1_170, %c0_171, %c0_172] : memref<2x64x32xbf16, #tpu.memory_space<vmem>>, vector<1x64x32xbf16>
    %467 = vector.shape_cast %466 : vector<1x64x32xbf16> to vector<64x32xbf16>
    %468 = arith.truncf %465 : vector<2x64xf32> to vector<2x64xbf16>
    %cst_173 = arith.constant dense<0.000000e+00> : vector<2x32xf32>
    %469 = tpu.matmul %468, %467, %cst_173 {dimension_numbers = #tpu.dot_dimension_numbers<[1], [0], [0], [1], [0, 0, 1, 1], [], []>} : vector<2x64xbf16>, vector<64x32xbf16>, vector<2x32xf32> -> vector<2x32xf32>
    %470 = arith.negf %469 : vector<2x32xf32>
    %471 = math.exp %470 : vector<2x32xf32>
    %cst_174 = arith.constant 1.000000e+00 : f32
    %472 = vector.broadcast %cst_174 : f32 to vector<2x32xf32>
    %473 = arith.addf %472, %471 : vector<2x32xf32>
    %474 = arith.divf %472, %473 : vector<2x32xf32>
    %475 = arith.mulf %435, %474 : vector<2x32xf32>
    %c1_175 = arith.constant 1 : index
    %c0_176 = arith.constant 0 : index
    %c0_177 = arith.constant 0 : index
    %476 = vector.load %arg8[%c1_175, %c0_176, %c0_177] : memref<2x2x32xf32, #tpu.memory_space<vmem>>, vector<1x2x32xf32>
    %477 = vector.shape_cast %476 : vector<1x2x32xf32> to vector<2x32xf32>
    %478 = vector.shape_cast %475 : vector<2x32xf32> to vector<1x2x32xf32>
    tpu.vector_store %arg8[%c1_175, %c0_176, %c0_177], %478 {strides = array<i32>} : memref<2x2x32xf32, #tpu.memory_space<vmem>>, vector<1x2x32xf32>,
    %479 = arith.index_cast %c2_i32 : i32 to index
    %c0_178 = arith.constant 0 : index
    %c0_179 = arith.constant 0 : index
    %480 = vector.load %arg7[%479, %c0_178, %c0_179] : memref<8x2x32xf32, #tpu.memory_space<vmem>>, vector<1x2x32xf32>
    %481 = vector.shape_cast %480 : vector<1x2x32xf32> to vector<2x32xf32>
    %482 = vector.shape_cast %475 : vector<2x32xf32> to vector<1x2x32xf32>
    tpu.vector_store %arg7[%479, %c0_178, %c0_179], %482 {strides = array<i32>} : memref<8x2x32xf32, #tpu.memory_space<vmem>>, vector<1x2x32xf32>,
    %c3_i32 = arith.constant 3 : i32
    %483 = arith.index_cast %c3_i32 : i32 to index
    %c0_180 = arith.constant 0 : index
    %c0_181 = arith.constant 0 : index
    %484 = vector.load %arg1[%483, %c0_180, %c0_181] : memref<8x2x32xf32, #tpu.memory_space<vmem>>, vector<1x2x32xf32>
    %485 = vector.shape_cast %484 : vector<1x2x32xf32> to vector<2x32xf32>
    %c0_182 = arith.constant 0 : index
    %c0_183 = arith.constant 0 : index
    %c0_184 = arith.constant 0 : index
    %486 = vector.load %arg8[%c0_182, %c0_183, %c0_184] : memref<2x2x32xf32, #tpu.memory_space<vmem>>, vector<1x2x32xf32>
    %487 = vector.shape_cast %486 : vector<1x2x32xf32> to vector<2x32xf32>
    %488 = tpu.concatenate %485, %487 in 1 : vector<2x32xf32>, vector<2x32xf32> -> vector<2x64xf32>
    %c0_185 = arith.constant 0 : index
    %c0_186 = arith.constant 0 : index
    %c0_187 = arith.constant 0 : index
    %489 = vector.load %arg3[%c0_185, %c0_186, %c0_187] : memref<2x64x128xbf16, #tpu.memory_space<vmem>>, vector<1x64x128xbf16>
    %490 = vector.shape_cast %489 : vector<1x64x128xbf16> to vector<64x128xbf16>
    %491 = arith.truncf %488 : vector<2x64xf32> to vector<2x64xbf16>
    %cst_188 = arith.constant dense<0.000000e+00> : vector<2x128xf32>
    %492 = tpu.matmul %491, %490, %cst_188 {dimension_numbers = #tpu.dot_dimension_numbers<[1], [0], [0], [1], [0, 0, 1, 1], [], []>} : vector<2x64xbf16>, vector<64x128xbf16>, vector<2x128xf32> -> vector<2x128xf32>
    %c0_189 = arith.constant 0 : index
    %c0_190 = arith.constant 0 : index
    %c0_191 = arith.constant 0 : index
    %493 = vector.load %arg4[%c0_189, %c0_190, %c0_191] : memref<2x1x128xf32, #tpu.memory_space<vmem>>, vector<1x1x128xf32>
    %494 = vector.shape_cast %493 : vector<1x1x128xf32> to vector<1x128xf32>
    %495 = vector.broadcast %494 : vector<1x128xf32> to vector<2x128xf32>
    %496 = arith.addf %492, %495 : vector<2x128xf32>
    %497 = vector.extract_strided_slice %496 {offsets = [0, 0], sizes = [2, 32], strides = [1, 1]} : vector<2x128xf32> to vector<2x32xf32>
    %498 = arith.negf %497 : vector<2x32xf32>
    %499 = math.exp %498 : vector<2x32xf32>
    %cst_192 = arith.constant 1.000000e+00 : f32
    %500 = vector.broadcast %cst_192 : f32 to vector<2x32xf32>
    %501 = arith.addf %500, %499 : vector<2x32xf32>
    %502 = arith.divf %500, %501 : vector<2x32xf32>
    %503 = vector.extract_strided_slice %496 {offsets = [0, 32], sizes = [2, 32], strides = [1, 1]} : vector<2x128xf32> to vector<2x32xf32>
    %504 = arith.negf %503 : vector<2x32xf32>
    %505 = math.exp %504 : vector<2x32xf32>
    %cst_193 = arith.constant 1.000000e+00 : f32
    %506 = vector.broadcast %cst_193 : f32 to vector<2x32xf32>
    %507 = arith.addf %506, %505 : vector<2x32xf32>
    %508 = arith.divf %506, %507 : vector<2x32xf32>
    %509 = vector.extract_strided_slice %496 {offsets = [0, 64], sizes = [2, 32], strides = [1, 1]} : vector<2x128xf32> to vector<2x32xf32>
    %510 = vector.extract_strided_slice %496 {offsets = [0, 96], sizes = [2, 32], strides = [1, 1]} : vector<2x128xf32> to vector<2x32xf32>
    %511 = arith.mulf %502, %510 : vector<2x32xf32>
    %512 = arith.addf %509, %511 : vector<2x32xf32>
    %513 = math.tanh %512 : vector<2x32xf32>
    %cst_194 = arith.constant 1.000000e+00 : f32
    %514 = vector.broadcast %cst_194 : f32 to vector<2x32xf32>
    %515 = arith.subf %514, %508 : vector<2x32xf32>
    %516 = arith.mulf %515, %513 : vector<2x32xf32>
    %517 = arith.mulf %508, %487 : vector<2x32xf32>
    %518 = arith.addf %516, %517 : vector<2x32xf32>
    %519 = vector.shape_cast %518 : vector<2x32xf32> to vector<2x1x32xf32>
    %520 = vector.shape_cast %519 : vector<2x1x32xf32> to vector<2x1x32xf32>
    %521 = vector.broadcast %520 : vector<2x1x32xf32> to vector<2x32x32xf32>
    %522 = tpu.transpose %521, [0, 2, 1] : vector<2x32x32xf32> -> vector<2x32x32xf32>
    %523 = arith.cmpf olt, %521, %522 : vector<2x32x32xf32>
    %524 = arith.cmpf oeq, %521, %522 : vector<2x32x32xf32>
    %525 = arith.cmpi slt, %4, %3 : vector<1x32x32xi32>
    %526 = vector.broadcast %525 : vector<1x32x32xi1> to vector<2x32x32xi1>
    %527 = arith.andi %524, %526 : vector<2x32x32xi1>
    %528 = arith.ori %523, %527 : vector<2x32x32xi1>
    %529 = arith.extui %528 : vector<2x32x32xi1> to vector<2x32x32xi32>
    %530 = arith.sitofp %529 : vector<2x32x32xi32> to vector<2x32x32xf32>
    %531 = vector.shape_cast %530 : vector<2x32x32xf32> to vector<64x32xf32>
    %532 = arith.truncf %531 : vector<64x32xf32> to vector<64x32xbf16>
    %cst_195 = arith.constant dense<0.000000e+00> : vector<64x32xf32>
    %533 = tpu.matmul %532, %5, %cst_195 {dimension_numbers = #tpu.dot_dimension_numbers<[1], [0], [0], [1], [0, 0, 1, 1], [], []>} : vector<64x32xbf16>, vector<32x32xbf16>, vector<64x32xf32> -> vector<64x32xf32>
    %534 = arith.fptosi %533 : vector<64x32xf32> to vector<64x32xi32>
    %535 = vector.shape_cast %534 : vector<64x32xi32> to vector<2x32x32xi32>
    %536 = vector.broadcast %4 : vector<1x32x32xi32> to vector<2x32x32xi32>
    %537 = arith.cmpi eq, %535, %536 : vector<2x32x32xi32>
    %538 = arith.extui %537 : vector<2x32x32xi1> to vector<2x32x32xi32>
    %539 = arith.sitofp %538 : vector<2x32x32xi32> to vector<2x32x32xf32>
    %540 = arith.mulf %522, %539 : vector<2x32x32xf32>
    %cst_196 = arith.constant dense<0.000000e+00> : vector<2x32xf32>
    %541 = vector.multi_reduction <add>, %540, %cst_196 [1] : vector<2x32x32xf32> to vector<2x32xf32>
    %542 = tpu.concatenate %518, %541 in 1 : vector<2x32xf32>, vector<2x32xf32> -> vector<2x64xf32>
    %c0_197 = arith.constant 0 : index
    %c0_198 = arith.constant 0 : index
    %c0_199 = arith.constant 0 : index
    %543 = vector.load %arg5[%c0_197, %c0_198, %c0_199] : memref<2x64x64xbf16, #tpu.memory_space<vmem>>, vector<1x64x64xbf16>
    %544 = vector.shape_cast %543 : vector<1x64x64xbf16> to vector<64x64xbf16>
    %545 = arith.truncf %542 : vector<2x64xf32> to vector<2x64xbf16>
    %cst_200 = arith.constant dense<0.000000e+00> : vector<2x64xf32>
    %546 = tpu.matmul %545, %544, %cst_200 {dimension_numbers = #tpu.dot_dimension_numbers<[1], [0], [0], [1], [0, 0, 1, 1], [], []>} : vector<2x64xbf16>, vector<64x64xbf16>, vector<2x64xf32> -> vector<2x64xf32>
    %cst_201 = arith.constant 0.000000e+00 : f32
    %547 = vector.broadcast %cst_201 : f32 to vector<2x64xf32>
    %548 = arith.maximumf %546, %547 : vector<2x64xf32>
    %c0_202 = arith.constant 0 : index
    %c0_203 = arith.constant 0 : index
    %c0_204 = arith.constant 0 : index
    %549 = vector.load %arg6[%c0_202, %c0_203, %c0_204] : memref<2x64x32xbf16, #tpu.memory_space<vmem>>, vector<1x64x32xbf16>
    %550 = vector.shape_cast %549 : vector<1x64x32xbf16> to vector<64x32xbf16>
    %551 = arith.truncf %548 : vector<2x64xf32> to vector<2x64xbf16>
    %cst_205 = arith.constant dense<0.000000e+00> : vector<2x32xf32>
    %552 = tpu.matmul %551, %550, %cst_205 {dimension_numbers = #tpu.dot_dimension_numbers<[1], [0], [0], [1], [0, 0, 1, 1], [], []>} : vector<2x64xbf16>, vector<64x32xbf16>, vector<2x32xf32> -> vector<2x32xf32>
    %553 = arith.negf %552 : vector<2x32xf32>
    %554 = math.exp %553 : vector<2x32xf32>
    %cst_206 = arith.constant 1.000000e+00 : f32
    %555 = vector.broadcast %cst_206 : f32 to vector<2x32xf32>
    %556 = arith.addf %555, %554 : vector<2x32xf32>
    %557 = arith.divf %555, %556 : vector<2x32xf32>
    %558 = arith.mulf %518, %557 : vector<2x32xf32>
    %c0_207 = arith.constant 0 : index
    %c0_208 = arith.constant 0 : index
    %c0_209 = arith.constant 0 : index
    %559 = vector.load %arg8[%c0_207, %c0_208, %c0_209] : memref<2x2x32xf32, #tpu.memory_space<vmem>>, vector<1x2x32xf32>
    %560 = vector.shape_cast %559 : vector<1x2x32xf32> to vector<2x32xf32>
    %561 = vector.shape_cast %558 : vector<2x32xf32> to vector<1x2x32xf32>
    tpu.vector_store %arg8[%c0_207, %c0_208, %c0_209], %561 {strides = array<i32>} : memref<2x2x32xf32, #tpu.memory_space<vmem>>, vector<1x2x32xf32>,
    %c1_210 = arith.constant 1 : index
    %c0_211 = arith.constant 0 : index
    %c0_212 = arith.constant 0 : index
    %562 = vector.load %arg8[%c1_210, %c0_211, %c0_212] : memref<2x2x32xf32, #tpu.memory_space<vmem>>, vector<1x2x32xf32>
    %563 = vector.shape_cast %562 : vector<1x2x32xf32> to vector<2x32xf32>
    %564 = tpu.concatenate %558, %563 in 1 : vector<2x32xf32>, vector<2x32xf32> -> vector<2x64xf32>
    %c1_213 = arith.constant 1 : index
    %c0_214 = arith.constant 0 : index
    %c0_215 = arith.constant 0 : index
    %565 = vector.load %arg3[%c1_213, %c0_214, %c0_215] : memref<2x64x128xbf16, #tpu.memory_space<vmem>>, vector<1x64x128xbf16>
    %566 = vector.shape_cast %565 : vector<1x64x128xbf16> to vector<64x128xbf16>
    %567 = arith.truncf %564 : vector<2x64xf32> to vector<2x64xbf16>
    %cst_216 = arith.constant dense<0.000000e+00> : vector<2x128xf32>
    %568 = tpu.matmul %567, %566, %cst_216 {dimension_numbers = #tpu.dot_dimension_numbers<[1], [0], [0], [1], [0, 0, 1, 1], [], []>} : vector<2x64xbf16>, vector<64x128xbf16>, vector<2x128xf32> -> vector<2x128xf32>
    %c1_217 = arith.constant 1 : index
    %c0_218 = arith.constant 0 : index
    %c0_219 = arith.constant 0 : index
    %569 = vector.load %arg4[%c1_217, %c0_218, %c0_219] : memref<2x1x128xf32, #tpu.memory_space<vmem>>, vector<1x1x128xf32>
    %570 = vector.shape_cast %569 : vector<1x1x128xf32> to vector<1x128xf32>
    %571 = vector.broadcast %570 : vector<1x128xf32> to vector<2x128xf32>
    %572 = arith.addf %568, %571 : vector<2x128xf32>
    %573 = vector.extract_strided_slice %572 {offsets = [0, 0], sizes = [2, 32], strides = [1, 1]} : vector<2x128xf32> to vector<2x32xf32>
    %574 = arith.negf %573 : vector<2x32xf32>
    %575 = math.exp %574 : vector<2x32xf32>
    %cst_220 = arith.constant 1.000000e+00 : f32
    %576 = vector.broadcast %cst_220 : f32 to vector<2x32xf32>
    %577 = arith.addf %576, %575 : vector<2x32xf32>
    %578 = arith.divf %576, %577 : vector<2x32xf32>
    %579 = vector.extract_strided_slice %572 {offsets = [0, 32], sizes = [2, 32], strides = [1, 1]} : vector<2x128xf32> to vector<2x32xf32>
    %580 = arith.negf %579 : vector<2x32xf32>
    %581 = math.exp %580 : vector<2x32xf32>
    %cst_221 = arith.constant 1.000000e+00 : f32
    %582 = vector.broadcast %cst_221 : f32 to vector<2x32xf32>
    %583 = arith.addf %582, %581 : vector<2x32xf32>
    %584 = arith.divf %582, %583 : vector<2x32xf32>
    %585 = vector.extract_strided_slice %572 {offsets = [0, 64], sizes = [2, 32], strides = [1, 1]} : vector<2x128xf32> to vector<2x32xf32>
    %586 = vector.extract_strided_slice %572 {offsets = [0, 96], sizes = [2, 32], strides = [1, 1]} : vector<2x128xf32> to vector<2x32xf32>
    %587 = arith.mulf %578, %586 : vector<2x32xf32>
    %588 = arith.addf %585, %587 : vector<2x32xf32>
    %589 = math.tanh %588 : vector<2x32xf32>
    %cst_222 = arith.constant 1.000000e+00 : f32
    %590 = vector.broadcast %cst_222 : f32 to vector<2x32xf32>
    %591 = arith.subf %590, %584 : vector<2x32xf32>
    %592 = arith.mulf %591, %589 : vector<2x32xf32>
    %593 = arith.mulf %584, %563 : vector<2x32xf32>
    %594 = arith.addf %592, %593 : vector<2x32xf32>
    %595 = vector.shape_cast %594 : vector<2x32xf32> to vector<2x1x32xf32>
    %596 = vector.shape_cast %595 : vector<2x1x32xf32> to vector<2x1x32xf32>
    %597 = vector.broadcast %596 : vector<2x1x32xf32> to vector<2x32x32xf32>
    %598 = tpu.transpose %597, [0, 2, 1] : vector<2x32x32xf32> -> vector<2x32x32xf32>
    %599 = arith.cmpf olt, %597, %598 : vector<2x32x32xf32>
    %600 = arith.cmpf oeq, %597, %598 : vector<2x32x32xf32>
    %601 = arith.cmpi slt, %4, %3 : vector<1x32x32xi32>
    %602 = vector.broadcast %601 : vector<1x32x32xi1> to vector<2x32x32xi1>
    %603 = arith.andi %600, %602 : vector<2x32x32xi1>
    %604 = arith.ori %599, %603 : vector<2x32x32xi1>
    %605 = arith.extui %604 : vector<2x32x32xi1> to vector<2x32x32xi32>
    %606 = arith.sitofp %605 : vector<2x32x32xi32> to vector<2x32x32xf32>
    %607 = vector.shape_cast %606 : vector<2x32x32xf32> to vector<64x32xf32>
    %608 = arith.truncf %607 : vector<64x32xf32> to vector<64x32xbf16>
    %cst_223 = arith.constant dense<0.000000e+00> : vector<64x32xf32>
    %609 = tpu.matmul %608, %5, %cst_223 {dimension_numbers = #tpu.dot_dimension_numbers<[1], [0], [0], [1], [0, 0, 1, 1], [], []>} : vector<64x32xbf16>, vector<32x32xbf16>, vector<64x32xf32> -> vector<64x32xf32>
    %610 = arith.fptosi %609 : vector<64x32xf32> to vector<64x32xi32>
    %611 = vector.shape_cast %610 : vector<64x32xi32> to vector<2x32x32xi32>
    %612 = vector.broadcast %4 : vector<1x32x32xi32> to vector<2x32x32xi32>
    %613 = arith.cmpi eq, %611, %612 : vector<2x32x32xi32>
    %614 = arith.extui %613 : vector<2x32x32xi1> to vector<2x32x32xi32>
    %615 = arith.sitofp %614 : vector<2x32x32xi32> to vector<2x32x32xf32>
    %616 = arith.mulf %598, %615 : vector<2x32x32xf32>
    %cst_224 = arith.constant dense<0.000000e+00> : vector<2x32xf32>
    %617 = vector.multi_reduction <add>, %616, %cst_224 [1] : vector<2x32x32xf32> to vector<2x32xf32>
    %618 = tpu.concatenate %594, %617 in 1 : vector<2x32xf32>, vector<2x32xf32> -> vector<2x64xf32>
    %c1_225 = arith.constant 1 : index
    %c0_226 = arith.constant 0 : index
    %c0_227 = arith.constant 0 : index
    %619 = vector.load %arg5[%c1_225, %c0_226, %c0_227] : memref<2x64x64xbf16, #tpu.memory_space<vmem>>, vector<1x64x64xbf16>
    %620 = vector.shape_cast %619 : vector<1x64x64xbf16> to vector<64x64xbf16>
    %621 = arith.truncf %618 : vector<2x64xf32> to vector<2x64xbf16>
    %cst_228 = arith.constant dense<0.000000e+00> : vector<2x64xf32>
    %622 = tpu.matmul %621, %620, %cst_228 {dimension_numbers = #tpu.dot_dimension_numbers<[1], [0], [0], [1], [0, 0, 1, 1], [], []>} : vector<2x64xbf16>, vector<64x64xbf16>, vector<2x64xf32> -> vector<2x64xf32>
    %cst_229 = arith.constant 0.000000e+00 : f32
    %623 = vector.broadcast %cst_229 : f32 to vector<2x64xf32>
    %624 = arith.maximumf %622, %623 : vector<2x64xf32>
    %c1_230 = arith.constant 1 : index
    %c0_231 = arith.constant 0 : index
    %c0_232 = arith.constant 0 : index
    %625 = vector.load %arg6[%c1_230, %c0_231, %c0_232] : memref<2x64x32xbf16, #tpu.memory_space<vmem>>, vector<1x64x32xbf16>
    %626 = vector.shape_cast %625 : vector<1x64x32xbf16> to vector<64x32xbf16>
    %627 = arith.truncf %624 : vector<2x64xf32> to vector<2x64xbf16>
    %cst_233 = arith.constant dense<0.000000e+00> : vector<2x32xf32>
    %628 = tpu.matmul %627, %626, %cst_233 {dimension_numbers = #tpu.dot_dimension_numbers<[1], [0], [0], [1], [0, 0, 1, 1], [], []>} : vector<2x64xbf16>, vector<64x32xbf16>, vector<2x32xf32> -> vector<2x32xf32>
    %629 = arith.negf %628 : vector<2x32xf32>
    %630 = math.exp %629 : vector<2x32xf32>
    %cst_234 = arith.constant 1.000000e+00 : f32
    %631 = vector.broadcast %cst_234 : f32 to vector<2x32xf32>
    %632 = arith.addf %631, %630 : vector<2x32xf32>
    %633 = arith.divf %631, %632 : vector<2x32xf32>
    %634 = arith.mulf %594, %633 : vector<2x32xf32>
    %c1_235 = arith.constant 1 : index
    %c0_236 = arith.constant 0 : index
    %c0_237 = arith.constant 0 : index
    %635 = vector.load %arg8[%c1_235, %c0_236, %c0_237] : memref<2x2x32xf32, #tpu.memory_space<vmem>>, vector<1x2x32xf32>
    %636 = vector.shape_cast %635 : vector<1x2x32xf32> to vector<2x32xf32>
    %637 = vector.shape_cast %634 : vector<2x32xf32> to vector<1x2x32xf32>
    tpu.vector_store %arg8[%c1_235, %c0_236, %c0_237], %637 {strides = array<i32>} : memref<2x2x32xf32, #tpu.memory_space<vmem>>, vector<1x2x32xf32>,
    %638 = arith.index_cast %c3_i32 : i32 to index
    %c0_238 = arith.constant 0 : index
    %c0_239 = arith.constant 0 : index
    %639 = vector.load %arg7[%638, %c0_238, %c0_239] : memref<8x2x32xf32, #tpu.memory_space<vmem>>, vector<1x2x32xf32>
    %640 = vector.shape_cast %639 : vector<1x2x32xf32> to vector<2x32xf32>
    %641 = vector.shape_cast %634 : vector<2x32xf32> to vector<1x2x32xf32>
    tpu.vector_store %arg7[%638, %c0_238, %c0_239], %641 {strides = array<i32>} : memref<8x2x32xf32, #tpu.memory_space<vmem>>, vector<1x2x32xf32>,
    %c4_i32 = arith.constant 4 : i32
    %642 = arith.index_cast %c4_i32 : i32 to index
    %c0_240 = arith.constant 0 : index
    %c0_241 = arith.constant 0 : index
    %643 = vector.load %arg1[%642, %c0_240, %c0_241] : memref<8x2x32xf32, #tpu.memory_space<vmem>>, vector<1x2x32xf32>
    %644 = vector.shape_cast %643 : vector<1x2x32xf32> to vector<2x32xf32>
    %c0_242 = arith.constant 0 : index
    %c0_243 = arith.constant 0 : index
    %c0_244 = arith.constant 0 : index
    %645 = vector.load %arg8[%c0_242, %c0_243, %c0_244] : memref<2x2x32xf32, #tpu.memory_space<vmem>>, vector<1x2x32xf32>
    %646 = vector.shape_cast %645 : vector<1x2x32xf32> to vector<2x32xf32>
    %647 = tpu.concatenate %644, %646 in 1 : vector<2x32xf32>, vector<2x32xf32> -> vector<2x64xf32>
    %c0_245 = arith.constant 0 : index
    %c0_246 = arith.constant 0 : index
    %c0_247 = arith.constant 0 : index
    %648 = vector.load %arg3[%c0_245, %c0_246, %c0_247] : memref<2x64x128xbf16, #tpu.memory_space<vmem>>, vector<1x64x128xbf16>
    %649 = vector.shape_cast %648 : vector<1x64x128xbf16> to vector<64x128xbf16>
    %650 = arith.truncf %647 : vector<2x64xf32> to vector<2x64xbf16>
    %cst_248 = arith.constant dense<0.000000e+00> : vector<2x128xf32>
    %651 = tpu.matmul %650, %649, %cst_248 {dimension_numbers = #tpu.dot_dimension_numbers<[1], [0], [0], [1], [0, 0, 1, 1], [], []>} : vector<2x64xbf16>, vector<64x128xbf16>, vector<2x128xf32> -> vector<2x128xf32>
    %c0_249 = arith.constant 0 : index
    %c0_250 = arith.constant 0 : index
    %c0_251 = arith.constant 0 : index
    %652 = vector.load %arg4[%c0_249, %c0_250, %c0_251] : memref<2x1x128xf32, #tpu.memory_space<vmem>>, vector<1x1x128xf32>
    %653 = vector.shape_cast %652 : vector<1x1x128xf32> to vector<1x128xf32>
    %654 = vector.broadcast %653 : vector<1x128xf32> to vector<2x128xf32>
    %655 = arith.addf %651, %654 : vector<2x128xf32>
    %656 = vector.extract_strided_slice %655 {offsets = [0, 0], sizes = [2, 32], strides = [1, 1]} : vector<2x128xf32> to vector<2x32xf32>
    %657 = arith.negf %656 : vector<2x32xf32>
    %658 = math.exp %657 : vector<2x32xf32>
    %cst_252 = arith.constant 1.000000e+00 : f32
    %659 = vector.broadcast %cst_252 : f32 to vector<2x32xf32>
    %660 = arith.addf %659, %658 : vector<2x32xf32>
    %661 = arith.divf %659, %660 : vector<2x32xf32>
    %662 = vector.extract_strided_slice %655 {offsets = [0, 32], sizes = [2, 32], strides = [1, 1]} : vector<2x128xf32> to vector<2x32xf32>
    %663 = arith.negf %662 : vector<2x32xf32>
    %664 = math.exp %663 : vector<2x32xf32>
    %cst_253 = arith.constant 1.000000e+00 : f32
    %665 = vector.broadcast %cst_253 : f32 to vector<2x32xf32>
    %666 = arith.addf %665, %664 : vector<2x32xf32>
    %667 = arith.divf %665, %666 : vector<2x32xf32>
    %668 = vector.extract_strided_slice %655 {offsets = [0, 64], sizes = [2, 32], strides = [1, 1]} : vector<2x128xf32> to vector<2x32xf32>
    %669 = vector.extract_strided_slice %655 {offsets = [0, 96], sizes = [2, 32], strides = [1, 1]} : vector<2x128xf32> to vector<2x32xf32>
    %670 = arith.mulf %661, %669 : vector<2x32xf32>
    %671 = arith.addf %668, %670 : vector<2x32xf32>
    %672 = math.tanh %671 : vector<2x32xf32>
    %cst_254 = arith.constant 1.000000e+00 : f32
    %673 = vector.broadcast %cst_254 : f32 to vector<2x32xf32>
    %674 = arith.subf %673, %667 : vector<2x32xf32>
    %675 = arith.mulf %674, %672 : vector<2x32xf32>
    %676 = arith.mulf %667, %646 : vector<2x32xf32>
    %677 = arith.addf %675, %676 : vector<2x32xf32>
    %678 = vector.shape_cast %677 : vector<2x32xf32> to vector<2x1x32xf32>
    %679 = vector.shape_cast %678 : vector<2x1x32xf32> to vector<2x1x32xf32>
    %680 = vector.broadcast %679 : vector<2x1x32xf32> to vector<2x32x32xf32>
    %681 = tpu.transpose %680, [0, 2, 1] : vector<2x32x32xf32> -> vector<2x32x32xf32>
    %682 = arith.cmpf olt, %680, %681 : vector<2x32x32xf32>
    %683 = arith.cmpf oeq, %680, %681 : vector<2x32x32xf32>
    %684 = arith.cmpi slt, %4, %3 : vector<1x32x32xi32>
    %685 = vector.broadcast %684 : vector<1x32x32xi1> to vector<2x32x32xi1>
    %686 = arith.andi %683, %685 : vector<2x32x32xi1>
    %687 = arith.ori %682, %686 : vector<2x32x32xi1>
    %688 = arith.extui %687 : vector<2x32x32xi1> to vector<2x32x32xi32>
    %689 = arith.sitofp %688 : vector<2x32x32xi32> to vector<2x32x32xf32>
    %690 = vector.shape_cast %689 : vector<2x32x32xf32> to vector<64x32xf32>
    %691 = arith.truncf %690 : vector<64x32xf32> to vector<64x32xbf16>
    %cst_255 = arith.constant dense<0.000000e+00> : vector<64x32xf32>
    %692 = tpu.matmul %691, %5, %cst_255 {dimension_numbers = #tpu.dot_dimension_numbers<[1], [0], [0], [1], [0, 0, 1, 1], [], []>} : vector<64x32xbf16>, vector<32x32xbf16>, vector<64x32xf32> -> vector<64x32xf32>
    %693 = arith.fptosi %692 : vector<64x32xf32> to vector<64x32xi32>
    %694 = vector.shape_cast %693 : vector<64x32xi32> to vector<2x32x32xi32>
    %695 = vector.broadcast %4 : vector<1x32x32xi32> to vector<2x32x32xi32>
    %696 = arith.cmpi eq, %694, %695 : vector<2x32x32xi32>
    %697 = arith.extui %696 : vector<2x32x32xi1> to vector<2x32x32xi32>
    %698 = arith.sitofp %697 : vector<2x32x32xi32> to vector<2x32x32xf32>
    %699 = arith.mulf %681, %698 : vector<2x32x32xf32>
    %cst_256 = arith.constant dense<0.000000e+00> : vector<2x32xf32>
    %700 = vector.multi_reduction <add>, %699, %cst_256 [1] : vector<2x32x32xf32> to vector<2x32xf32>
    %701 = tpu.concatenate %677, %700 in 1 : vector<2x32xf32>, vector<2x32xf32> -> vector<2x64xf32>
    %c0_257 = arith.constant 0 : index
    %c0_258 = arith.constant 0 : index
    %c0_259 = arith.constant 0 : index
    %702 = vector.load %arg5[%c0_257, %c0_258, %c0_259] : memref<2x64x64xbf16, #tpu.memory_space<vmem>>, vector<1x64x64xbf16>
    %703 = vector.shape_cast %702 : vector<1x64x64xbf16> to vector<64x64xbf16>
    %704 = arith.truncf %701 : vector<2x64xf32> to vector<2x64xbf16>
    %cst_260 = arith.constant dense<0.000000e+00> : vector<2x64xf32>
    %705 = tpu.matmul %704, %703, %cst_260 {dimension_numbers = #tpu.dot_dimension_numbers<[1], [0], [0], [1], [0, 0, 1, 1], [], []>} : vector<2x64xbf16>, vector<64x64xbf16>, vector<2x64xf32> -> vector<2x64xf32>
    %cst_261 = arith.constant 0.000000e+00 : f32
    %706 = vector.broadcast %cst_261 : f32 to vector<2x64xf32>
    %707 = arith.maximumf %705, %706 : vector<2x64xf32>
    %c0_262 = arith.constant 0 : index
    %c0_263 = arith.constant 0 : index
    %c0_264 = arith.constant 0 : index
    %708 = vector.load %arg6[%c0_262, %c0_263, %c0_264] : memref<2x64x32xbf16, #tpu.memory_space<vmem>>, vector<1x64x32xbf16>
    %709 = vector.shape_cast %708 : vector<1x64x32xbf16> to vector<64x32xbf16>
    %710 = arith.truncf %707 : vector<2x64xf32> to vector<2x64xbf16>
    %cst_265 = arith.constant dense<0.000000e+00> : vector<2x32xf32>
    %711 = tpu.matmul %710, %709, %cst_265 {dimension_numbers = #tpu.dot_dimension_numbers<[1], [0], [0], [1], [0, 0, 1, 1], [], []>} : vector<2x64xbf16>, vector<64x32xbf16>, vector<2x32xf32> -> vector<2x32xf32>
    %712 = arith.negf %711 : vector<2x32xf32>
    %713 = math.exp %712 : vector<2x32xf32>
    %cst_266 = arith.constant 1.000000e+00 : f32
    %714 = vector.broadcast %cst_266 : f32 to vector<2x32xf32>
    %715 = arith.addf %714, %713 : vector<2x32xf32>
    %716 = arith.divf %714, %715 : vector<2x32xf32>
    %717 = arith.mulf %677, %716 : vector<2x32xf32>
    %c0_267 = arith.constant 0 : index
    %c0_268 = arith.constant 0 : index
    %c0_269 = arith.constant 0 : index
    %718 = vector.load %arg8[%c0_267, %c0_268, %c0_269] : memref<2x2x32xf32, #tpu.memory_space<vmem>>, vector<1x2x32xf32>
    %719 = vector.shape_cast %718 : vector<1x2x32xf32> to vector<2x32xf32>
    %720 = vector.shape_cast %717 : vector<2x32xf32> to vector<1x2x32xf32>
    tpu.vector_store %arg8[%c0_267, %c0_268, %c0_269], %720 {strides = array<i32>} : memref<2x2x32xf32, #tpu.memory_space<vmem>>, vector<1x2x32xf32>,
    %c1_270 = arith.constant 1 : index
    %c0_271 = arith.constant 0 : index
    %c0_272 = arith.constant 0 : index
    %721 = vector.load %arg8[%c1_270, %c0_271, %c0_272] : memref<2x2x32xf32, #tpu.memory_space<vmem>>, vector<1x2x32xf32>
    %722 = vector.shape_cast %721 : vector<1x2x32xf32> to vector<2x32xf32>
    %723 = tpu.concatenate %717, %722 in 1 : vector<2x32xf32>, vector<2x32xf32> -> vector<2x64xf32>
    %c1_273 = arith.constant 1 : index
    %c0_274 = arith.constant 0 : index
    %c0_275 = arith.constant 0 : index
    %724 = vector.load %arg3[%c1_273, %c0_274, %c0_275] : memref<2x64x128xbf16, #tpu.memory_space<vmem>>, vector<1x64x128xbf16>
    %725 = vector.shape_cast %724 : vector<1x64x128xbf16> to vector<64x128xbf16>
    %726 = arith.truncf %723 : vector<2x64xf32> to vector<2x64xbf16>
    %cst_276 = arith.constant dense<0.000000e+00> : vector<2x128xf32>
    %727 = tpu.matmul %726, %725, %cst_276 {dimension_numbers = #tpu.dot_dimension_numbers<[1], [0], [0], [1], [0, 0, 1, 1], [], []>} : vector<2x64xbf16>, vector<64x128xbf16>, vector<2x128xf32> -> vector<2x128xf32>
    %c1_277 = arith.constant 1 : index
    %c0_278 = arith.constant 0 : index
    %c0_279 = arith.constant 0 : index
    %728 = vector.load %arg4[%c1_277, %c0_278, %c0_279] : memref<2x1x128xf32, #tpu.memory_space<vmem>>, vector<1x1x128xf32>
    %729 = vector.shape_cast %728 : vector<1x1x128xf32> to vector<1x128xf32>
    %730 = vector.broadcast %729 : vector<1x128xf32> to vector<2x128xf32>
    %731 = arith.addf %727, %730 : vector<2x128xf32>
    %732 = vector.extract_strided_slice %731 {offsets = [0, 0], sizes = [2, 32], strides = [1, 1]} : vector<2x128xf32> to vector<2x32xf32>
    %733 = arith.negf %732 : vector<2x32xf32>
    %734 = math.exp %733 : vector<2x32xf32>
    %cst_280 = arith.constant 1.000000e+00 : f32
    %735 = vector.broadcast %cst_280 : f32 to vector<2x32xf32>
    %736 = arith.addf %735, %734 : vector<2x32xf32>
    %737 = arith.divf %735, %736 : vector<2x32xf32>
    %738 = vector.extract_strided_slice %731 {offsets = [0, 32], sizes = [2, 32], strides = [1, 1]} : vector<2x128xf32> to vector<2x32xf32>
    %739 = arith.negf %738 : vector<2x32xf32>
    %740 = math.exp %739 : vector<2x32xf32>
    %cst_281 = arith.constant 1.000000e+00 : f32
    %741 = vector.broadcast %cst_281 : f32 to vector<2x32xf32>
    %742 = arith.addf %741, %740 : vector<2x32xf32>
    %743 = arith.divf %741, %742 : vector<2x32xf32>
    %744 = vector.extract_strided_slice %731 {offsets = [0, 64], sizes = [2, 32], strides = [1, 1]} : vector<2x128xf32> to vector<2x32xf32>
    %745 = vector.extract_strided_slice %731 {offsets = [0, 96], sizes = [2, 32], strides = [1, 1]} : vector<2x128xf32> to vector<2x32xf32>
    %746 = arith.mulf %737, %745 : vector<2x32xf32>
    %747 = arith.addf %744, %746 : vector<2x32xf32>
    %748 = math.tanh %747 : vector<2x32xf32>
    %cst_282 = arith.constant 1.000000e+00 : f32
    %749 = vector.broadcast %cst_282 : f32 to vector<2x32xf32>
    %750 = arith.subf %749, %743 : vector<2x32xf32>
    %751 = arith.mulf %750, %748 : vector<2x32xf32>
    %752 = arith.mulf %743, %722 : vector<2x32xf32>
    %753 = arith.addf %751, %752 : vector<2x32xf32>
    %754 = vector.shape_cast %753 : vector<2x32xf32> to vector<2x1x32xf32>
    %755 = vector.shape_cast %754 : vector<2x1x32xf32> to vector<2x1x32xf32>
    %756 = vector.broadcast %755 : vector<2x1x32xf32> to vector<2x32x32xf32>
    %757 = tpu.transpose %756, [0, 2, 1] : vector<2x32x32xf32> -> vector<2x32x32xf32>
    %758 = arith.cmpf olt, %756, %757 : vector<2x32x32xf32>
    %759 = arith.cmpf oeq, %756, %757 : vector<2x32x32xf32>
    %760 = arith.cmpi slt, %4, %3 : vector<1x32x32xi32>
    %761 = vector.broadcast %760 : vector<1x32x32xi1> to vector<2x32x32xi1>
    %762 = arith.andi %759, %761 : vector<2x32x32xi1>
    %763 = arith.ori %758, %762 : vector<2x32x32xi1>
    %764 = arith.extui %763 : vector<2x32x32xi1> to vector<2x32x32xi32>
    %765 = arith.sitofp %764 : vector<2x32x32xi32> to vector<2x32x32xf32>
    %766 = vector.shape_cast %765 : vector<2x32x32xf32> to vector<64x32xf32>
    %767 = arith.truncf %766 : vector<64x32xf32> to vector<64x32xbf16>
    %cst_283 = arith.constant dense<0.000000e+00> : vector<64x32xf32>
    %768 = tpu.matmul %767, %5, %cst_283 {dimension_numbers = #tpu.dot_dimension_numbers<[1], [0], [0], [1], [0, 0, 1, 1], [], []>} : vector<64x32xbf16>, vector<32x32xbf16>, vector<64x32xf32> -> vector<64x32xf32>
    %769 = arith.fptosi %768 : vector<64x32xf32> to vector<64x32xi32>
    %770 = vector.shape_cast %769 : vector<64x32xi32> to vector<2x32x32xi32>
    %771 = vector.broadcast %4 : vector<1x32x32xi32> to vector<2x32x32xi32>
    %772 = arith.cmpi eq, %770, %771 : vector<2x32x32xi32>
    %773 = arith.extui %772 : vector<2x32x32xi1> to vector<2x32x32xi32>
    %774 = arith.sitofp %773 : vector<2x32x32xi32> to vector<2x32x32xf32>
    %775 = arith.mulf %757, %774 : vector<2x32x32xf32>
    %cst_284 = arith.constant dense<0.000000e+00> : vector<2x32xf32>
    %776 = vector.multi_reduction <add>, %775, %cst_284 [1] : vector<2x32x32xf32> to vector<2x32xf32>
    %777 = tpu.concatenate %753, %776 in 1 : vector<2x32xf32>, vector<2x32xf32> -> vector<2x64xf32>
    %c1_285 = arith.constant 1 : index
    %c0_286 = arith.constant 0 : index
    %c0_287 = arith.constant 0 : index
    %778 = vector.load %arg5[%c1_285, %c0_286, %c0_287] : memref<2x64x64xbf16, #tpu.memory_space<vmem>>, vector<1x64x64xbf16>
    %779 = vector.shape_cast %778 : vector<1x64x64xbf16> to vector<64x64xbf16>
    %780 = arith.truncf %777 : vector<2x64xf32> to vector<2x64xbf16>
    %cst_288 = arith.constant dense<0.000000e+00> : vector<2x64xf32>
    %781 = tpu.matmul %780, %779, %cst_288 {dimension_numbers = #tpu.dot_dimension_numbers<[1], [0], [0], [1], [0, 0, 1, 1], [], []>} : vector<2x64xbf16>, vector<64x64xbf16>, vector<2x64xf32> -> vector<2x64xf32>
    %cst_289 = arith.constant 0.000000e+00 : f32
    %782 = vector.broadcast %cst_289 : f32 to vector<2x64xf32>
    %783 = arith.maximumf %781, %782 : vector<2x64xf32>
    %c1_290 = arith.constant 1 : index
    %c0_291 = arith.constant 0 : index
    %c0_292 = arith.constant 0 : index
    %784 = vector.load %arg6[%c1_290, %c0_291, %c0_292] : memref<2x64x32xbf16, #tpu.memory_space<vmem>>, vector<1x64x32xbf16>
    %785 = vector.shape_cast %784 : vector<1x64x32xbf16> to vector<64x32xbf16>
    %786 = arith.truncf %783 : vector<2x64xf32> to vector<2x64xbf16>
    %cst_293 = arith.constant dense<0.000000e+00> : vector<2x32xf32>
    %787 = tpu.matmul %786, %785, %cst_293 {dimension_numbers = #tpu.dot_dimension_numbers<[1], [0], [0], [1], [0, 0, 1, 1], [], []>} : vector<2x64xbf16>, vector<64x32xbf16>, vector<2x32xf32> -> vector<2x32xf32>
    %788 = arith.negf %787 : vector<2x32xf32>
    %789 = math.exp %788 : vector<2x32xf32>
    %cst_294 = arith.constant 1.000000e+00 : f32
    %790 = vector.broadcast %cst_294 : f32 to vector<2x32xf32>
    %791 = arith.addf %790, %789 : vector<2x32xf32>
    %792 = arith.divf %790, %791 : vector<2x32xf32>
    %793 = arith.mulf %753, %792 : vector<2x32xf32>
    %c1_295 = arith.constant 1 : index
    %c0_296 = arith.constant 0 : index
    %c0_297 = arith.constant 0 : index
    %794 = vector.load %arg8[%c1_295, %c0_296, %c0_297] : memref<2x2x32xf32, #tpu.memory_space<vmem>>, vector<1x2x32xf32>
    %795 = vector.shape_cast %794 : vector<1x2x32xf32> to vector<2x32xf32>
    %796 = vector.shape_cast %793 : vector<2x32xf32> to vector<1x2x32xf32>
    tpu.vector_store %arg8[%c1_295, %c0_296, %c0_297], %796 {strides = array<i32>} : memref<2x2x32xf32, #tpu.memory_space<vmem>>, vector<1x2x32xf32>,
    %797 = arith.index_cast %c4_i32 : i32 to index
    %c0_298 = arith.constant 0 : index
    %c0_299 = arith.constant 0 : index
    %798 = vector.load %arg7[%797, %c0_298, %c0_299] : memref<8x2x32xf32, #tpu.memory_space<vmem>>, vector<1x2x32xf32>
    %799 = vector.shape_cast %798 : vector<1x2x32xf32> to vector<2x32xf32>
    %800 = vector.shape_cast %793 : vector<2x32xf32> to vector<1x2x32xf32>
    tpu.vector_store %arg7[%797, %c0_298, %c0_299], %800 {strides = array<i32>} : memref<8x2x32xf32, #tpu.memory_space<vmem>>, vector<1x2x32xf32>,
    %c5_i32 = arith.constant 5 : i32
    %801 = arith.index_cast %c5_i32 : i32 to index
    %c0_300 = arith.constant 0 : index
    %c0_301 = arith.constant 0 : index
    %802 = vector.load %arg1[%801, %c0_300, %c0_301] : memref<8x2x32xf32, #tpu.memory_space<vmem>>, vector<1x2x32xf32>
    %803 = vector.shape_cast %802 : vector<1x2x32xf32> to vector<2x32xf32>
    %c0_302 = arith.constant 0 : index
    %c0_303 = arith.constant 0 : index
    %c0_304 = arith.constant 0 : index
    %804 = vector.load %arg8[%c0_302, %c0_303, %c0_304] : memref<2x2x32xf32, #tpu.memory_space<vmem>>, vector<1x2x32xf32>
    %805 = vector.shape_cast %804 : vector<1x2x32xf32> to vector<2x32xf32>
    %806 = tpu.concatenate %803, %805 in 1 : vector<2x32xf32>, vector<2x32xf32> -> vector<2x64xf32>
    %c0_305 = arith.constant 0 : index
    %c0_306 = arith.constant 0 : index
    %c0_307 = arith.constant 0 : index
    %807 = vector.load %arg3[%c0_305, %c0_306, %c0_307] : memref<2x64x128xbf16, #tpu.memory_space<vmem>>, vector<1x64x128xbf16>
    %808 = vector.shape_cast %807 : vector<1x64x128xbf16> to vector<64x128xbf16>
    %809 = arith.truncf %806 : vector<2x64xf32> to vector<2x64xbf16>
    %cst_308 = arith.constant dense<0.000000e+00> : vector<2x128xf32>
    %810 = tpu.matmul %809, %808, %cst_308 {dimension_numbers = #tpu.dot_dimension_numbers<[1], [0], [0], [1], [0, 0, 1, 1], [], []>} : vector<2x64xbf16>, vector<64x128xbf16>, vector<2x128xf32> -> vector<2x128xf32>
    %c0_309 = arith.constant 0 : index
    %c0_310 = arith.constant 0 : index
    %c0_311 = arith.constant 0 : index
    %811 = vector.load %arg4[%c0_309, %c0_310, %c0_311] : memref<2x1x128xf32, #tpu.memory_space<vmem>>, vector<1x1x128xf32>
    %812 = vector.shape_cast %811 : vector<1x1x128xf32> to vector<1x128xf32>
    %813 = vector.broadcast %812 : vector<1x128xf32> to vector<2x128xf32>
    %814 = arith.addf %810, %813 : vector<2x128xf32>
    %815 = vector.extract_strided_slice %814 {offsets = [0, 0], sizes = [2, 32], strides = [1, 1]} : vector<2x128xf32> to vector<2x32xf32>
    %816 = arith.negf %815 : vector<2x32xf32>
    %817 = math.exp %816 : vector<2x32xf32>
    %cst_312 = arith.constant 1.000000e+00 : f32
    %818 = vector.broadcast %cst_312 : f32 to vector<2x32xf32>
    %819 = arith.addf %818, %817 : vector<2x32xf32>
    %820 = arith.divf %818, %819 : vector<2x32xf32>
    %821 = vector.extract_strided_slice %814 {offsets = [0, 32], sizes = [2, 32], strides = [1, 1]} : vector<2x128xf32> to vector<2x32xf32>
    %822 = arith.negf %821 : vector<2x32xf32>
    %823 = math.exp %822 : vector<2x32xf32>
    %cst_313 = arith.constant 1.000000e+00 : f32
    %824 = vector.broadcast %cst_313 : f32 to vector<2x32xf32>
    %825 = arith.addf %824, %823 : vector<2x32xf32>
    %826 = arith.divf %824, %825 : vector<2x32xf32>
    %827 = vector.extract_strided_slice %814 {offsets = [0, 64], sizes = [2, 32], strides = [1, 1]} : vector<2x128xf32> to vector<2x32xf32>
    %828 = vector.extract_strided_slice %814 {offsets = [0, 96], sizes = [2, 32], strides = [1, 1]} : vector<2x128xf32> to vector<2x32xf32>
    %829 = arith.mulf %820, %828 : vector<2x32xf32>
    %830 = arith.addf %827, %829 : vector<2x32xf32>
    %831 = math.tanh %830 : vector<2x32xf32>
    %cst_314 = arith.constant 1.000000e+00 : f32
    %832 = vector.broadcast %cst_314 : f32 to vector<2x32xf32>
    %833 = arith.subf %832, %826 : vector<2x32xf32>
    %834 = arith.mulf %833, %831 : vector<2x32xf32>
    %835 = arith.mulf %826, %805 : vector<2x32xf32>
    %836 = arith.addf %834, %835 : vector<2x32xf32>
    %837 = vector.shape_cast %836 : vector<2x32xf32> to vector<2x1x32xf32>
    %838 = vector.shape_cast %837 : vector<2x1x32xf32> to vector<2x1x32xf32>
    %839 = vector.broadcast %838 : vector<2x1x32xf32> to vector<2x32x32xf32>
    %840 = tpu.transpose %839, [0, 2, 1] : vector<2x32x32xf32> -> vector<2x32x32xf32>
    %841 = arith.cmpf olt, %839, %840 : vector<2x32x32xf32>
    %842 = arith.cmpf oeq, %839, %840 : vector<2x32x32xf32>
    %843 = arith.cmpi slt, %4, %3 : vector<1x32x32xi32>
    %844 = vector.broadcast %843 : vector<1x32x32xi1> to vector<2x32x32xi1>
    %845 = arith.andi %842, %844 : vector<2x32x32xi1>
    %846 = arith.ori %841, %845 : vector<2x32x32xi1>
    %847 = arith.extui %846 : vector<2x32x32xi1> to vector<2x32x32xi32>
    %848 = arith.sitofp %847 : vector<2x32x32xi32> to vector<2x32x32xf32>
    %849 = vector.shape_cast %848 : vector<2x32x32xf32> to vector<64x32xf32>
    %850 = arith.truncf %849 : vector<64x32xf32> to vector<64x32xbf16>
    %cst_315 = arith.constant dense<0.000000e+00> : vector<64x32xf32>
    %851 = tpu.matmul %850, %5, %cst_315 {dimension_numbers = #tpu.dot_dimension_numbers<[1], [0], [0], [1], [0, 0, 1, 1], [], []>} : vector<64x32xbf16>, vector<32x32xbf16>, vector<64x32xf32> -> vector<64x32xf32>
    %852 = arith.fptosi %851 : vector<64x32xf32> to vector<64x32xi32>
    %853 = vector.shape_cast %852 : vector<64x32xi32> to vector<2x32x32xi32>
    %854 = vector.broadcast %4 : vector<1x32x32xi32> to vector<2x32x32xi32>
    %855 = arith.cmpi eq, %853, %854 : vector<2x32x32xi32>
    %856 = arith.extui %855 : vector<2x32x32xi1> to vector<2x32x32xi32>
    %857 = arith.sitofp %856 : vector<2x32x32xi32> to vector<2x32x32xf32>
    %858 = arith.mulf %840, %857 : vector<2x32x32xf32>
    %cst_316 = arith.constant dense<0.000000e+00> : vector<2x32xf32>
    %859 = vector.multi_reduction <add>, %858, %cst_316 [1] : vector<2x32x32xf32> to vector<2x32xf32>
    %860 = tpu.concatenate %836, %859 in 1 : vector<2x32xf32>, vector<2x32xf32> -> vector<2x64xf32>
    %c0_317 = arith.constant 0 : index
    %c0_318 = arith.constant 0 : index
    %c0_319 = arith.constant 0 : index
    %861 = vector.load %arg5[%c0_317, %c0_318, %c0_319] : memref<2x64x64xbf16, #tpu.memory_space<vmem>>, vector<1x64x64xbf16>
    %862 = vector.shape_cast %861 : vector<1x64x64xbf16> to vector<64x64xbf16>
    %863 = arith.truncf %860 : vector<2x64xf32> to vector<2x64xbf16>
    %cst_320 = arith.constant dense<0.000000e+00> : vector<2x64xf32>
    %864 = tpu.matmul %863, %862, %cst_320 {dimension_numbers = #tpu.dot_dimension_numbers<[1], [0], [0], [1], [0, 0, 1, 1], [], []>} : vector<2x64xbf16>, vector<64x64xbf16>, vector<2x64xf32> -> vector<2x64xf32>
    %cst_321 = arith.constant 0.000000e+00 : f32
    %865 = vector.broadcast %cst_321 : f32 to vector<2x64xf32>
    %866 = arith.maximumf %864, %865 : vector<2x64xf32>
    %c0_322 = arith.constant 0 : index
    %c0_323 = arith.constant 0 : index
    %c0_324 = arith.constant 0 : index
    %867 = vector.load %arg6[%c0_322, %c0_323, %c0_324] : memref<2x64x32xbf16, #tpu.memory_space<vmem>>, vector<1x64x32xbf16>
    %868 = vector.shape_cast %867 : vector<1x64x32xbf16> to vector<64x32xbf16>
    %869 = arith.truncf %866 : vector<2x64xf32> to vector<2x64xbf16>
    %cst_325 = arith.constant dense<0.000000e+00> : vector<2x32xf32>
    %870 = tpu.matmul %869, %868, %cst_325 {dimension_numbers = #tpu.dot_dimension_numbers<[1], [0], [0], [1], [0, 0, 1, 1], [], []>} : vector<2x64xbf16>, vector<64x32xbf16>, vector<2x32xf32> -> vector<2x32xf32>
    %871 = arith.negf %870 : vector<2x32xf32>
    %872 = math.exp %871 : vector<2x32xf32>
    %cst_326 = arith.constant 1.000000e+00 : f32
    %873 = vector.broadcast %cst_326 : f32 to vector<2x32xf32>
    %874 = arith.addf %873, %872 : vector<2x32xf32>
    %875 = arith.divf %873, %874 : vector<2x32xf32>
    %876 = arith.mulf %836, %875 : vector<2x32xf32>
    %c0_327 = arith.constant 0 : index
    %c0_328 = arith.constant 0 : index
    %c0_329 = arith.constant 0 : index
    %877 = vector.load %arg8[%c0_327, %c0_328, %c0_329] : memref<2x2x32xf32, #tpu.memory_space<vmem>>, vector<1x2x32xf32>
    %878 = vector.shape_cast %877 : vector<1x2x32xf32> to vector<2x32xf32>
    %879 = vector.shape_cast %876 : vector<2x32xf32> to vector<1x2x32xf32>
    tpu.vector_store %arg8[%c0_327, %c0_328, %c0_329], %879 {strides = array<i32>} : memref<2x2x32xf32, #tpu.memory_space<vmem>>, vector<1x2x32xf32>,
    %c1_330 = arith.constant 1 : index
    %c0_331 = arith.constant 0 : index
    %c0_332 = arith.constant 0 : index
    %880 = vector.load %arg8[%c1_330, %c0_331, %c0_332] : memref<2x2x32xf32, #tpu.memory_space<vmem>>, vector<1x2x32xf32>
    %881 = vector.shape_cast %880 : vector<1x2x32xf32> to vector<2x32xf32>
    %882 = tpu.concatenate %876, %881 in 1 : vector<2x32xf32>, vector<2x32xf32> -> vector<2x64xf32>
    %c1_333 = arith.constant 1 : index
    %c0_334 = arith.constant 0 : index
    %c0_335 = arith.constant 0 : index
    %883 = vector.load %arg3[%c1_333, %c0_334, %c0_335] : memref<2x64x128xbf16, #tpu.memory_space<vmem>>, vector<1x64x128xbf16>
    %884 = vector.shape_cast %883 : vector<1x64x128xbf16> to vector<64x128xbf16>
    %885 = arith.truncf %882 : vector<2x64xf32> to vector<2x64xbf16>
    %cst_336 = arith.constant dense<0.000000e+00> : vector<2x128xf32>
    %886 = tpu.matmul %885, %884, %cst_336 {dimension_numbers = #tpu.dot_dimension_numbers<[1], [0], [0], [1], [0, 0, 1, 1], [], []>} : vector<2x64xbf16>, vector<64x128xbf16>, vector<2x128xf32> -> vector<2x128xf32>
    %c1_337 = arith.constant 1 : index
    %c0_338 = arith.constant 0 : index
    %c0_339 = arith.constant 0 : index
    %887 = vector.load %arg4[%c1_337, %c0_338, %c0_339] : memref<2x1x128xf32, #tpu.memory_space<vmem>>, vector<1x1x128xf32>
    %888 = vector.shape_cast %887 : vector<1x1x128xf32> to vector<1x128xf32>
    %889 = vector.broadcast %888 : vector<1x128xf32> to vector<2x128xf32>
    %890 = arith.addf %886, %889 : vector<2x128xf32>
    %891 = vector.extract_strided_slice %890 {offsets = [0, 0], sizes = [2, 32], strides = [1, 1]} : vector<2x128xf32> to vector<2x32xf32>
    %892 = arith.negf %891 : vector<2x32xf32>
    %893 = math.exp %892 : vector<2x32xf32>
    %cst_340 = arith.constant 1.000000e+00 : f32
    %894 = vector.broadcast %cst_340 : f32 to vector<2x32xf32>
    %895 = arith.addf %894, %893 : vector<2x32xf32>
    %896 = arith.divf %894, %895 : vector<2x32xf32>
    %897 = vector.extract_strided_slice %890 {offsets = [0, 32], sizes = [2, 32], strides = [1, 1]} : vector<2x128xf32> to vector<2x32xf32>
    %898 = arith.negf %897 : vector<2x32xf32>
    %899 = math.exp %898 : vector<2x32xf32>
    %cst_341 = arith.constant 1.000000e+00 : f32
    %900 = vector.broadcast %cst_341 : f32 to vector<2x32xf32>
    %901 = arith.addf %900, %899 : vector<2x32xf32>
    %902 = arith.divf %900, %901 : vector<2x32xf32>
    %903 = vector.extract_strided_slice %890 {offsets = [0, 64], sizes = [2, 32], strides = [1, 1]} : vector<2x128xf32> to vector<2x32xf32>
    %904 = vector.extract_strided_slice %890 {offsets = [0, 96], sizes = [2, 32], strides = [1, 1]} : vector<2x128xf32> to vector<2x32xf32>
    %905 = arith.mulf %896, %904 : vector<2x32xf32>
    %906 = arith.addf %903, %905 : vector<2x32xf32>
    %907 = math.tanh %906 : vector<2x32xf32>
    %cst_342 = arith.constant 1.000000e+00 : f32
    %908 = vector.broadcast %cst_342 : f32 to vector<2x32xf32>
    %909 = arith.subf %908, %902 : vector<2x32xf32>
    %910 = arith.mulf %909, %907 : vector<2x32xf32>
    %911 = arith.mulf %902, %881 : vector<2x32xf32>
    %912 = arith.addf %910, %911 : vector<2x32xf32>
    %913 = vector.shape_cast %912 : vector<2x32xf32> to vector<2x1x32xf32>
    %914 = vector.shape_cast %913 : vector<2x1x32xf32> to vector<2x1x32xf32>
    %915 = vector.broadcast %914 : vector<2x1x32xf32> to vector<2x32x32xf32>
    %916 = tpu.transpose %915, [0, 2, 1] : vector<2x32x32xf32> -> vector<2x32x32xf32>
    %917 = arith.cmpf olt, %915, %916 : vector<2x32x32xf32>
    %918 = arith.cmpf oeq, %915, %916 : vector<2x32x32xf32>
    %919 = arith.cmpi slt, %4, %3 : vector<1x32x32xi32>
    %920 = vector.broadcast %919 : vector<1x32x32xi1> to vector<2x32x32xi1>
    %921 = arith.andi %918, %920 : vector<2x32x32xi1>
    %922 = arith.ori %917, %921 : vector<2x32x32xi1>
    %923 = arith.extui %922 : vector<2x32x32xi1> to vector<2x32x32xi32>
    %924 = arith.sitofp %923 : vector<2x32x32xi32> to vector<2x32x32xf32>
    %925 = vector.shape_cast %924 : vector<2x32x32xf32> to vector<64x32xf32>
    %926 = arith.truncf %925 : vector<64x32xf32> to vector<64x32xbf16>
    %cst_343 = arith.constant dense<0.000000e+00> : vector<64x32xf32>
    %927 = tpu.matmul %926, %5, %cst_343 {dimension_numbers = #tpu.dot_dimension_numbers<[1], [0], [0], [1], [0, 0, 1, 1], [], []>} : vector<64x32xbf16>, vector<32x32xbf16>, vector<64x32xf32> -> vector<64x32xf32>
    %928 = arith.fptosi %927 : vector<64x32xf32> to vector<64x32xi32>
    %929 = vector.shape_cast %928 : vector<64x32xi32> to vector<2x32x32xi32>
    %930 = vector.broadcast %4 : vector<1x32x32xi32> to vector<2x32x32xi32>
    %931 = arith.cmpi eq, %929, %930 : vector<2x32x32xi32>
    %932 = arith.extui %931 : vector<2x32x32xi1> to vector<2x32x32xi32>
    %933 = arith.sitofp %932 : vector<2x32x32xi32> to vector<2x32x32xf32>
    %934 = arith.mulf %916, %933 : vector<2x32x32xf32>
    %cst_344 = arith.constant dense<0.000000e+00> : vector<2x32xf32>
    %935 = vector.multi_reduction <add>, %934, %cst_344 [1] : vector<2x32x32xf32> to vector<2x32xf32>
    %936 = tpu.concatenate %912, %935 in 1 : vector<2x32xf32>, vector<2x32xf32> -> vector<2x64xf32>
    %c1_345 = arith.constant 1 : index
    %c0_346 = arith.constant 0 : index
    %c0_347 = arith.constant 0 : index
    %937 = vector.load %arg5[%c1_345, %c0_346, %c0_347] : memref<2x64x64xbf16, #tpu.memory_space<vmem>>, vector<1x64x64xbf16>
    %938 = vector.shape_cast %937 : vector<1x64x64xbf16> to vector<64x64xbf16>
    %939 = arith.truncf %936 : vector<2x64xf32> to vector<2x64xbf16>
    %cst_348 = arith.constant dense<0.000000e+00> : vector<2x64xf32>
    %940 = tpu.matmul %939, %938, %cst_348 {dimension_numbers = #tpu.dot_dimension_numbers<[1], [0], [0], [1], [0, 0, 1, 1], [], []>} : vector<2x64xbf16>, vector<64x64xbf16>, vector<2x64xf32> -> vector<2x64xf32>
    %cst_349 = arith.constant 0.000000e+00 : f32
    %941 = vector.broadcast %cst_349 : f32 to vector<2x64xf32>
    %942 = arith.maximumf %940, %941 : vector<2x64xf32>
    %c1_350 = arith.constant 1 : index
    %c0_351 = arith.constant 0 : index
    %c0_352 = arith.constant 0 : index
    %943 = vector.load %arg6[%c1_350, %c0_351, %c0_352] : memref<2x64x32xbf16, #tpu.memory_space<vmem>>, vector<1x64x32xbf16>
    %944 = vector.shape_cast %943 : vector<1x64x32xbf16> to vector<64x32xbf16>
    %945 = arith.truncf %942 : vector<2x64xf32> to vector<2x64xbf16>
    %cst_353 = arith.constant dense<0.000000e+00> : vector<2x32xf32>
    %946 = tpu.matmul %945, %944, %cst_353 {dimension_numbers = #tpu.dot_dimension_numbers<[1], [0], [0], [1], [0, 0, 1, 1], [], []>} : vector<2x64xbf16>, vector<64x32xbf16>, vector<2x32xf32> -> vector<2x32xf32>
    %947 = arith.negf %946 : vector<2x32xf32>
    %948 = math.exp %947 : vector<2x32xf32>
    %cst_354 = arith.constant 1.000000e+00 : f32
    %949 = vector.broadcast %cst_354 : f32 to vector<2x32xf32>
    %950 = arith.addf %949, %948 : vector<2x32xf32>
    %951 = arith.divf %949, %950 : vector<2x32xf32>
    %952 = arith.mulf %912, %951 : vector<2x32xf32>
    %c1_355 = arith.constant 1 : index
    %c0_356 = arith.constant 0 : index
    %c0_357 = arith.constant 0 : index
    %953 = vector.load %arg8[%c1_355, %c0_356, %c0_357] : memref<2x2x32xf32, #tpu.memory_space<vmem>>, vector<1x2x32xf32>
    %954 = vector.shape_cast %953 : vector<1x2x32xf32> to vector<2x32xf32>
    %955 = vector.shape_cast %952 : vector<2x32xf32> to vector<1x2x32xf32>
    tpu.vector_store %arg8[%c1_355, %c0_356, %c0_357], %955 {strides = array<i32>} : memref<2x2x32xf32, #tpu.memory_space<vmem>>, vector<1x2x32xf32>,
    %956 = arith.index_cast %c5_i32 : i32 to index
    %c0_358 = arith.constant 0 : index
    %c0_359 = arith.constant 0 : index
    %957 = vector.load %arg7[%956, %c0_358, %c0_359] : memref<8x2x32xf32, #tpu.memory_space<vmem>>, vector<1x2x32xf32>
    %958 = vector.shape_cast %957 : vector<1x2x32xf32> to vector<2x32xf32>
    %959 = vector.shape_cast %952 : vector<2x32xf32> to vector<1x2x32xf32>
    tpu.vector_store %arg7[%956, %c0_358, %c0_359], %959 {strides = array<i32>} : memref<8x2x32xf32, #tpu.memory_space<vmem>>, vector<1x2x32xf32>,
    %c6_i32 = arith.constant 6 : i32
    %960 = arith.index_cast %c6_i32 : i32 to index
    %c0_360 = arith.constant 0 : index
    %c0_361 = arith.constant 0 : index
    %961 = vector.load %arg1[%960, %c0_360, %c0_361] : memref<8x2x32xf32, #tpu.memory_space<vmem>>, vector<1x2x32xf32>
    %962 = vector.shape_cast %961 : vector<1x2x32xf32> to vector<2x32xf32>
    %c0_362 = arith.constant 0 : index
    %c0_363 = arith.constant 0 : index
    %c0_364 = arith.constant 0 : index
    %963 = vector.load %arg8[%c0_362, %c0_363, %c0_364] : memref<2x2x32xf32, #tpu.memory_space<vmem>>, vector<1x2x32xf32>
    %964 = vector.shape_cast %963 : vector<1x2x32xf32> to vector<2x32xf32>
    %965 = tpu.concatenate %962, %964 in 1 : vector<2x32xf32>, vector<2x32xf32> -> vector<2x64xf32>
    %c0_365 = arith.constant 0 : index
    %c0_366 = arith.constant 0 : index
    %c0_367 = arith.constant 0 : index
    %966 = vector.load %arg3[%c0_365, %c0_366, %c0_367] : memref<2x64x128xbf16, #tpu.memory_space<vmem>>, vector<1x64x128xbf16>
    %967 = vector.shape_cast %966 : vector<1x64x128xbf16> to vector<64x128xbf16>
    %968 = arith.truncf %965 : vector<2x64xf32> to vector<2x64xbf16>
    %cst_368 = arith.constant dense<0.000000e+00> : vector<2x128xf32>
    %969 = tpu.matmul %968, %967, %cst_368 {dimension_numbers = #tpu.dot_dimension_numbers<[1], [0], [0], [1], [0, 0, 1, 1], [], []>} : vector<2x64xbf16>, vector<64x128xbf16>, vector<2x128xf32> -> vector<2x128xf32>
    %c0_369 = arith.constant 0 : index
    %c0_370 = arith.constant 0 : index
    %c0_371 = arith.constant 0 : index
    %970 = vector.load %arg4[%c0_369, %c0_370, %c0_371] : memref<2x1x128xf32, #tpu.memory_space<vmem>>, vector<1x1x128xf32>
    %971 = vector.shape_cast %970 : vector<1x1x128xf32> to vector<1x128xf32>
    %972 = vector.broadcast %971 : vector<1x128xf32> to vector<2x128xf32>
    %973 = arith.addf %969, %972 : vector<2x128xf32>
    %974 = vector.extract_strided_slice %973 {offsets = [0, 0], sizes = [2, 32], strides = [1, 1]} : vector<2x128xf32> to vector<2x32xf32>
    %975 = arith.negf %974 : vector<2x32xf32>
    %976 = math.exp %975 : vector<2x32xf32>
    %cst_372 = arith.constant 1.000000e+00 : f32
    %977 = vector.broadcast %cst_372 : f32 to vector<2x32xf32>
    %978 = arith.addf %977, %976 : vector<2x32xf32>
    %979 = arith.divf %977, %978 : vector<2x32xf32>
    %980 = vector.extract_strided_slice %973 {offsets = [0, 32], sizes = [2, 32], strides = [1, 1]} : vector<2x128xf32> to vector<2x32xf32>
    %981 = arith.negf %980 : vector<2x32xf32>
    %982 = math.exp %981 : vector<2x32xf32>
    %cst_373 = arith.constant 1.000000e+00 : f32
    %983 = vector.broadcast %cst_373 : f32 to vector<2x32xf32>
    %984 = arith.addf %983, %982 : vector<2x32xf32>
    %985 = arith.divf %983, %984 : vector<2x32xf32>
    %986 = vector.extract_strided_slice %973 {offsets = [0, 64], sizes = [2, 32], strides = [1, 1]} : vector<2x128xf32> to vector<2x32xf32>
    %987 = vector.extract_strided_slice %973 {offsets = [0, 96], sizes = [2, 32], strides = [1, 1]} : vector<2x128xf32> to vector<2x32xf32>
    %988 = arith.mulf %979, %987 : vector<2x32xf32>
    %989 = arith.addf %986, %988 : vector<2x32xf32>
    %990 = math.tanh %989 : vector<2x32xf32>
    %cst_374 = arith.constant 1.000000e+00 : f32
    %991 = vector.broadcast %cst_374 : f32 to vector<2x32xf32>
    %992 = arith.subf %991, %985 : vector<2x32xf32>
    %993 = arith.mulf %992, %990 : vector<2x32xf32>
    %994 = arith.mulf %985, %964 : vector<2x32xf32>
    %995 = arith.addf %993, %994 : vector<2x32xf32>
    %996 = vector.shape_cast %995 : vector<2x32xf32> to vector<2x1x32xf32>
    %997 = vector.shape_cast %996 : vector<2x1x32xf32> to vector<2x1x32xf32>
    %998 = vector.broadcast %997 : vector<2x1x32xf32> to vector<2x32x32xf32>
    %999 = tpu.transpose %998, [0, 2, 1] : vector<2x32x32xf32> -> vector<2x32x32xf32>
    %1000 = arith.cmpf olt, %998, %999 : vector<2x32x32xf32>
    %1001 = arith.cmpf oeq, %998, %999 : vector<2x32x32xf32>
    %1002 = arith.cmpi slt, %4, %3 : vector<1x32x32xi32>
    %1003 = vector.broadcast %1002 : vector<1x32x32xi1> to vector<2x32x32xi1>
    %1004 = arith.andi %1001, %1003 : vector<2x32x32xi1>
    %1005 = arith.ori %1000, %1004 : vector<2x32x32xi1>
    %1006 = arith.extui %1005 : vector<2x32x32xi1> to vector<2x32x32xi32>
    %1007 = arith.sitofp %1006 : vector<2x32x32xi32> to vector<2x32x32xf32>
    %1008 = vector.shape_cast %1007 : vector<2x32x32xf32> to vector<64x32xf32>
    %1009 = arith.truncf %1008 : vector<64x32xf32> to vector<64x32xbf16>
    %cst_375 = arith.constant dense<0.000000e+00> : vector<64x32xf32>
    %1010 = tpu.matmul %1009, %5, %cst_375 {dimension_numbers = #tpu.dot_dimension_numbers<[1], [0], [0], [1], [0, 0, 1, 1], [], []>} : vector<64x32xbf16>, vector<32x32xbf16>, vector<64x32xf32> -> vector<64x32xf32>
    %1011 = arith.fptosi %1010 : vector<64x32xf32> to vector<64x32xi32>
    %1012 = vector.shape_cast %1011 : vector<64x32xi32> to vector<2x32x32xi32>
    %1013 = vector.broadcast %4 : vector<1x32x32xi32> to vector<2x32x32xi32>
    %1014 = arith.cmpi eq, %1012, %1013 : vector<2x32x32xi32>
    %1015 = arith.extui %1014 : vector<2x32x32xi1> to vector<2x32x32xi32>
    %1016 = arith.sitofp %1015 : vector<2x32x32xi32> to vector<2x32x32xf32>
    %1017 = arith.mulf %999, %1016 : vector<2x32x32xf32>
    %cst_376 = arith.constant dense<0.000000e+00> : vector<2x32xf32>
    %1018 = vector.multi_reduction <add>, %1017, %cst_376 [1] : vector<2x32x32xf32> to vector<2x32xf32>
    %1019 = tpu.concatenate %995, %1018 in 1 : vector<2x32xf32>, vector<2x32xf32> -> vector<2x64xf32>
    %c0_377 = arith.constant 0 : index
    %c0_378 = arith.constant 0 : index
    %c0_379 = arith.constant 0 : index
    %1020 = vector.load %arg5[%c0_377, %c0_378, %c0_379] : memref<2x64x64xbf16, #tpu.memory_space<vmem>>, vector<1x64x64xbf16>
    %1021 = vector.shape_cast %1020 : vector<1x64x64xbf16> to vector<64x64xbf16>
    %1022 = arith.truncf %1019 : vector<2x64xf32> to vector<2x64xbf16>
    %cst_380 = arith.constant dense<0.000000e+00> : vector<2x64xf32>
    %1023 = tpu.matmul %1022, %1021, %cst_380 {dimension_numbers = #tpu.dot_dimension_numbers<[1], [0], [0], [1], [0, 0, 1, 1], [], []>} : vector<2x64xbf16>, vector<64x64xbf16>, vector<2x64xf32> -> vector<2x64xf32>
    %cst_381 = arith.constant 0.000000e+00 : f32
    %1024 = vector.broadcast %cst_381 : f32 to vector<2x64xf32>
    %1025 = arith.maximumf %1023, %1024 : vector<2x64xf32>
    %c0_382 = arith.constant 0 : index
    %c0_383 = arith.constant 0 : index
    %c0_384 = arith.constant 0 : index
    %1026 = vector.load %arg6[%c0_382, %c0_383, %c0_384] : memref<2x64x32xbf16, #tpu.memory_space<vmem>>, vector<1x64x32xbf16>
    %1027 = vector.shape_cast %1026 : vector<1x64x32xbf16> to vector<64x32xbf16>
    %1028 = arith.truncf %1025 : vector<2x64xf32> to vector<2x64xbf16>
    %cst_385 = arith.constant dense<0.000000e+00> : vector<2x32xf32>
    %1029 = tpu.matmul %1028, %1027, %cst_385 {dimension_numbers = #tpu.dot_dimension_numbers<[1], [0], [0], [1], [0, 0, 1, 1], [], []>} : vector<2x64xbf16>, vector<64x32xbf16>, vector<2x32xf32> -> vector<2x32xf32>
    %1030 = arith.negf %1029 : vector<2x32xf32>
    %1031 = math.exp %1030 : vector<2x32xf32>
    %cst_386 = arith.constant 1.000000e+00 : f32
    %1032 = vector.broadcast %cst_386 : f32 to vector<2x32xf32>
    %1033 = arith.addf %1032, %1031 : vector<2x32xf32>
    %1034 = arith.divf %1032, %1033 : vector<2x32xf32>
    %1035 = arith.mulf %995, %1034 : vector<2x32xf32>
    %c0_387 = arith.constant 0 : index
    %c0_388 = arith.constant 0 : index
    %c0_389 = arith.constant 0 : index
    %1036 = vector.load %arg8[%c0_387, %c0_388, %c0_389] : memref<2x2x32xf32, #tpu.memory_space<vmem>>, vector<1x2x32xf32>
    %1037 = vector.shape_cast %1036 : vector<1x2x32xf32> to vector<2x32xf32>
    %1038 = vector.shape_cast %1035 : vector<2x32xf32> to vector<1x2x32xf32>
    tpu.vector_store %arg8[%c0_387, %c0_388, %c0_389], %1038 {strides = array<i32>} : memref<2x2x32xf32, #tpu.memory_space<vmem>>, vector<1x2x32xf32>,
    %c1_390 = arith.constant 1 : index
    %c0_391 = arith.constant 0 : index
    %c0_392 = arith.constant 0 : index
    %1039 = vector.load %arg8[%c1_390, %c0_391, %c0_392] : memref<2x2x32xf32, #tpu.memory_space<vmem>>, vector<1x2x32xf32>
    %1040 = vector.shape_cast %1039 : vector<1x2x32xf32> to vector<2x32xf32>
    %1041 = tpu.concatenate %1035, %1040 in 1 : vector<2x32xf32>, vector<2x32xf32> -> vector<2x64xf32>
    %c1_393 = arith.constant 1 : index
    %c0_394 = arith.constant 0 : index
    %c0_395 = arith.constant 0 : index
    %1042 = vector.load %arg3[%c1_393, %c0_394, %c0_395] : memref<2x64x128xbf16, #tpu.memory_space<vmem>>, vector<1x64x128xbf16>
    %1043 = vector.shape_cast %1042 : vector<1x64x128xbf16> to vector<64x128xbf16>
    %1044 = arith.truncf %1041 : vector<2x64xf32> to vector<2x64xbf16>
    %cst_396 = arith.constant dense<0.000000e+00> : vector<2x128xf32>
    %1045 = tpu.matmul %1044, %1043, %cst_396 {dimension_numbers = #tpu.dot_dimension_numbers<[1], [0], [0], [1], [0, 0, 1, 1], [], []>} : vector<2x64xbf16>, vector<64x128xbf16>, vector<2x128xf32> -> vector<2x128xf32>
    %c1_397 = arith.constant 1 : index
    %c0_398 = arith.constant 0 : index
    %c0_399 = arith.constant 0 : index
    %1046 = vector.load %arg4[%c1_397, %c0_398, %c0_399] : memref<2x1x128xf32, #tpu.memory_space<vmem>>, vector<1x1x128xf32>
    %1047 = vector.shape_cast %1046 : vector<1x1x128xf32> to vector<1x128xf32>
    %1048 = vector.broadcast %1047 : vector<1x128xf32> to vector<2x128xf32>
    %1049 = arith.addf %1045, %1048 : vector<2x128xf32>
    %1050 = vector.extract_strided_slice %1049 {offsets = [0, 0], sizes = [2, 32], strides = [1, 1]} : vector<2x128xf32> to vector<2x32xf32>
    %1051 = arith.negf %1050 : vector<2x32xf32>
    %1052 = math.exp %1051 : vector<2x32xf32>
    %cst_400 = arith.constant 1.000000e+00 : f32
    %1053 = vector.broadcast %cst_400 : f32 to vector<2x32xf32>
    %1054 = arith.addf %1053, %1052 : vector<2x32xf32>
    %1055 = arith.divf %1053, %1054 : vector<2x32xf32>
    %1056 = vector.extract_strided_slice %1049 {offsets = [0, 32], sizes = [2, 32], strides = [1, 1]} : vector<2x128xf32> to vector<2x32xf32>
    %1057 = arith.negf %1056 : vector<2x32xf32>
    %1058 = math.exp %1057 : vector<2x32xf32>
    %cst_401 = arith.constant 1.000000e+00 : f32
    %1059 = vector.broadcast %cst_401 : f32 to vector<2x32xf32>
    %1060 = arith.addf %1059, %1058 : vector<2x32xf32>
    %1061 = arith.divf %1059, %1060 : vector<2x32xf32>
    %1062 = vector.extract_strided_slice %1049 {offsets = [0, 64], sizes = [2, 32], strides = [1, 1]} : vector<2x128xf32> to vector<2x32xf32>
    %1063 = vector.extract_strided_slice %1049 {offsets = [0, 96], sizes = [2, 32], strides = [1, 1]} : vector<2x128xf32> to vector<2x32xf32>
    %1064 = arith.mulf %1055, %1063 : vector<2x32xf32>
    %1065 = arith.addf %1062, %1064 : vector<2x32xf32>
    %1066 = math.tanh %1065 : vector<2x32xf32>
    %cst_402 = arith.constant 1.000000e+00 : f32
    %1067 = vector.broadcast %cst_402 : f32 to vector<2x32xf32>
    %1068 = arith.subf %1067, %1061 : vector<2x32xf32>
    %1069 = arith.mulf %1068, %1066 : vector<2x32xf32>
    %1070 = arith.mulf %1061, %1040 : vector<2x32xf32>
    %1071 = arith.addf %1069, %1070 : vector<2x32xf32>
    %1072 = vector.shape_cast %1071 : vector<2x32xf32> to vector<2x1x32xf32>
    %1073 = vector.shape_cast %1072 : vector<2x1x32xf32> to vector<2x1x32xf32>
    %1074 = vector.broadcast %1073 : vector<2x1x32xf32> to vector<2x32x32xf32>
    %1075 = tpu.transpose %1074, [0, 2, 1] : vector<2x32x32xf32> -> vector<2x32x32xf32>
    %1076 = arith.cmpf olt, %1074, %1075 : vector<2x32x32xf32>
    %1077 = arith.cmpf oeq, %1074, %1075 : vector<2x32x32xf32>
    %1078 = arith.cmpi slt, %4, %3 : vector<1x32x32xi32>
    %1079 = vector.broadcast %1078 : vector<1x32x32xi1> to vector<2x32x32xi1>
    %1080 = arith.andi %1077, %1079 : vector<2x32x32xi1>
    %1081 = arith.ori %1076, %1080 : vector<2x32x32xi1>
    %1082 = arith.extui %1081 : vector<2x32x32xi1> to vector<2x32x32xi32>
    %1083 = arith.sitofp %1082 : vector<2x32x32xi32> to vector<2x32x32xf32>
    %1084 = vector.shape_cast %1083 : vector<2x32x32xf32> to vector<64x32xf32>
    %1085 = arith.truncf %1084 : vector<64x32xf32> to vector<64x32xbf16>
    %cst_403 = arith.constant dense<0.000000e+00> : vector<64x32xf32>
    %1086 = tpu.matmul %1085, %5, %cst_403 {dimension_numbers = #tpu.dot_dimension_numbers<[1], [0], [0], [1], [0, 0, 1, 1], [], []>} : vector<64x32xbf16>, vector<32x32xbf16>, vector<64x32xf32> -> vector<64x32xf32>
    %1087 = arith.fptosi %1086 : vector<64x32xf32> to vector<64x32xi32>
    %1088 = vector.shape_cast %1087 : vector<64x32xi32> to vector<2x32x32xi32>
    %1089 = vector.broadcast %4 : vector<1x32x32xi32> to vector<2x32x32xi32>
    %1090 = arith.cmpi eq, %1088, %1089 : vector<2x32x32xi32>
    %1091 = arith.extui %1090 : vector<2x32x32xi1> to vector<2x32x32xi32>
    %1092 = arith.sitofp %1091 : vector<2x32x32xi32> to vector<2x32x32xf32>
    %1093 = arith.mulf %1075, %1092 : vector<2x32x32xf32>
    %cst_404 = arith.constant dense<0.000000e+00> : vector<2x32xf32>
    %1094 = vector.multi_reduction <add>, %1093, %cst_404 [1] : vector<2x32x32xf32> to vector<2x32xf32>
    %1095 = tpu.concatenate %1071, %1094 in 1 : vector<2x32xf32>, vector<2x32xf32> -> vector<2x64xf32>
    %c1_405 = arith.constant 1 : index
    %c0_406 = arith.constant 0 : index
    %c0_407 = arith.constant 0 : index
    %1096 = vector.load %arg5[%c1_405, %c0_406, %c0_407] : memref<2x64x64xbf16, #tpu.memory_space<vmem>>, vector<1x64x64xbf16>
    %1097 = vector.shape_cast %1096 : vector<1x64x64xbf16> to vector<64x64xbf16>
    %1098 = arith.truncf %1095 : vector<2x64xf32> to vector<2x64xbf16>
    %cst_408 = arith.constant dense<0.000000e+00> : vector<2x64xf32>
    %1099 = tpu.matmul %1098, %1097, %cst_408 {dimension_numbers = #tpu.dot_dimension_numbers<[1], [0], [0], [1], [0, 0, 1, 1], [], []>} : vector<2x64xbf16>, vector<64x64xbf16>, vector<2x64xf32> -> vector<2x64xf32>
    %cst_409 = arith.constant 0.000000e+00 : f32
    %1100 = vector.broadcast %cst_409 : f32 to vector<2x64xf32>
    %1101 = arith.maximumf %1099, %1100 : vector<2x64xf32>
    %c1_410 = arith.constant 1 : index
    %c0_411 = arith.constant 0 : index
    %c0_412 = arith.constant 0 : index
    %1102 = vector.load %arg6[%c1_410, %c0_411, %c0_412] : memref<2x64x32xbf16, #tpu.memory_space<vmem>>, vector<1x64x32xbf16>
    %1103 = vector.shape_cast %1102 : vector<1x64x32xbf16> to vector<64x32xbf16>
    %1104 = arith.truncf %1101 : vector<2x64xf32> to vector<2x64xbf16>
    %cst_413 = arith.constant dense<0.000000e+00> : vector<2x32xf32>
    %1105 = tpu.matmul %1104, %1103, %cst_413 {dimension_numbers = #tpu.dot_dimension_numbers<[1], [0], [0], [1], [0, 0, 1, 1], [], []>} : vector<2x64xbf16>, vector<64x32xbf16>, vector<2x32xf32> -> vector<2x32xf32>
    %1106 = arith.negf %1105 : vector<2x32xf32>
    %1107 = math.exp %1106 : vector<2x32xf32>
    %cst_414 = arith.constant 1.000000e+00 : f32
    %1108 = vector.broadcast %cst_414 : f32 to vector<2x32xf32>
    %1109 = arith.addf %1108, %1107 : vector<2x32xf32>
    %1110 = arith.divf %1108, %1109 : vector<2x32xf32>
    %1111 = arith.mulf %1071, %1110 : vector<2x32xf32>
    %c1_415 = arith.constant 1 : index
    %c0_416 = arith.constant 0 : index
    %c0_417 = arith.constant 0 : index
    %1112 = vector.load %arg8[%c1_415, %c0_416, %c0_417] : memref<2x2x32xf32, #tpu.memory_space<vmem>>, vector<1x2x32xf32>
    %1113 = vector.shape_cast %1112 : vector<1x2x32xf32> to vector<2x32xf32>
    %1114 = vector.shape_cast %1111 : vector<2x32xf32> to vector<1x2x32xf32>
    tpu.vector_store %arg8[%c1_415, %c0_416, %c0_417], %1114 {strides = array<i32>} : memref<2x2x32xf32, #tpu.memory_space<vmem>>, vector<1x2x32xf32>,
    %1115 = arith.index_cast %c6_i32 : i32 to index
    %c0_418 = arith.constant 0 : index
    %c0_419 = arith.constant 0 : index
    %1116 = vector.load %arg7[%1115, %c0_418, %c0_419] : memref<8x2x32xf32, #tpu.memory_space<vmem>>, vector<1x2x32xf32>
    %1117 = vector.shape_cast %1116 : vector<1x2x32xf32> to vector<2x32xf32>
    %1118 = vector.shape_cast %1111 : vector<2x32xf32> to vector<1x2x32xf32>
    tpu.vector_store %arg7[%1115, %c0_418, %c0_419], %1118 {strides = array<i32>} : memref<8x2x32xf32, #tpu.memory_space<vmem>>, vector<1x2x32xf32>,
    %c7_i32 = arith.constant 7 : i32
    %1119 = arith.index_cast %c7_i32 : i32 to index
    %c0_420 = arith.constant 0 : index
    %c0_421 = arith.constant 0 : index
    %1120 = vector.load %arg1[%1119, %c0_420, %c0_421] : memref<8x2x32xf32, #tpu.memory_space<vmem>>, vector<1x2x32xf32>
    %1121 = vector.shape_cast %1120 : vector<1x2x32xf32> to vector<2x32xf32>
    %c0_422 = arith.constant 0 : index
    %c0_423 = arith.constant 0 : index
    %c0_424 = arith.constant 0 : index
    %1122 = vector.load %arg8[%c0_422, %c0_423, %c0_424] : memref<2x2x32xf32, #tpu.memory_space<vmem>>, vector<1x2x32xf32>
    %1123 = vector.shape_cast %1122 : vector<1x2x32xf32> to vector<2x32xf32>
    %1124 = tpu.concatenate %1121, %1123 in 1 : vector<2x32xf32>, vector<2x32xf32> -> vector<2x64xf32>
    %c0_425 = arith.constant 0 : index
    %c0_426 = arith.constant 0 : index
    %c0_427 = arith.constant 0 : index
    %1125 = vector.load %arg3[%c0_425, %c0_426, %c0_427] : memref<2x64x128xbf16, #tpu.memory_space<vmem>>, vector<1x64x128xbf16>
    %1126 = vector.shape_cast %1125 : vector<1x64x128xbf16> to vector<64x128xbf16>
    %1127 = arith.truncf %1124 : vector<2x64xf32> to vector<2x64xbf16>
    %cst_428 = arith.constant dense<0.000000e+00> : vector<2x128xf32>
    %1128 = tpu.matmul %1127, %1126, %cst_428 {dimension_numbers = #tpu.dot_dimension_numbers<[1], [0], [0], [1], [0, 0, 1, 1], [], []>} : vector<2x64xbf16>, vector<64x128xbf16>, vector<2x128xf32> -> vector<2x128xf32>
    %c0_429 = arith.constant 0 : index
    %c0_430 = arith.constant 0 : index
    %c0_431 = arith.constant 0 : index
    %1129 = vector.load %arg4[%c0_429, %c0_430, %c0_431] : memref<2x1x128xf32, #tpu.memory_space<vmem>>, vector<1x1x128xf32>
    %1130 = vector.shape_cast %1129 : vector<1x1x128xf32> to vector<1x128xf32>
    %1131 = vector.broadcast %1130 : vector<1x128xf32> to vector<2x128xf32>
    %1132 = arith.addf %1128, %1131 : vector<2x128xf32>
    %1133 = vector.extract_strided_slice %1132 {offsets = [0, 0], sizes = [2, 32], strides = [1, 1]} : vector<2x128xf32> to vector<2x32xf32>
    %1134 = arith.negf %1133 : vector<2x32xf32>
    %1135 = math.exp %1134 : vector<2x32xf32>
    %cst_432 = arith.constant 1.000000e+00 : f32
    %1136 = vector.broadcast %cst_432 : f32 to vector<2x32xf32>
    %1137 = arith.addf %1136, %1135 : vector<2x32xf32>
    %1138 = arith.divf %1136, %1137 : vector<2x32xf32>
    %1139 = vector.extract_strided_slice %1132 {offsets = [0, 32], sizes = [2, 32], strides = [1, 1]} : vector<2x128xf32> to vector<2x32xf32>
    %1140 = arith.negf %1139 : vector<2x32xf32>
    %1141 = math.exp %1140 : vector<2x32xf32>
    %cst_433 = arith.constant 1.000000e+00 : f32
    %1142 = vector.broadcast %cst_433 : f32 to vector<2x32xf32>
    %1143 = arith.addf %1142, %1141 : vector<2x32xf32>
    %1144 = arith.divf %1142, %1143 : vector<2x32xf32>
    %1145 = vector.extract_strided_slice %1132 {offsets = [0, 64], sizes = [2, 32], strides = [1, 1]} : vector<2x128xf32> to vector<2x32xf32>
    %1146 = vector.extract_strided_slice %1132 {offsets = [0, 96], sizes = [2, 32], strides = [1, 1]} : vector<2x128xf32> to vector<2x32xf32>
    %1147 = arith.mulf %1138, %1146 : vector<2x32xf32>
    %1148 = arith.addf %1145, %1147 : vector<2x32xf32>
    %1149 = math.tanh %1148 : vector<2x32xf32>
    %cst_434 = arith.constant 1.000000e+00 : f32
    %1150 = vector.broadcast %cst_434 : f32 to vector<2x32xf32>
    %1151 = arith.subf %1150, %1144 : vector<2x32xf32>
    %1152 = arith.mulf %1151, %1149 : vector<2x32xf32>
    %1153 = arith.mulf %1144, %1123 : vector<2x32xf32>
    %1154 = arith.addf %1152, %1153 : vector<2x32xf32>
    %1155 = vector.shape_cast %1154 : vector<2x32xf32> to vector<2x1x32xf32>
    %1156 = vector.shape_cast %1155 : vector<2x1x32xf32> to vector<2x1x32xf32>
    %1157 = vector.broadcast %1156 : vector<2x1x32xf32> to vector<2x32x32xf32>
    %1158 = tpu.transpose %1157, [0, 2, 1] : vector<2x32x32xf32> -> vector<2x32x32xf32>
    %1159 = arith.cmpf olt, %1157, %1158 : vector<2x32x32xf32>
    %1160 = arith.cmpf oeq, %1157, %1158 : vector<2x32x32xf32>
    %1161 = arith.cmpi slt, %4, %3 : vector<1x32x32xi32>
    %1162 = vector.broadcast %1161 : vector<1x32x32xi1> to vector<2x32x32xi1>
    %1163 = arith.andi %1160, %1162 : vector<2x32x32xi1>
    %1164 = arith.ori %1159, %1163 : vector<2x32x32xi1>
    %1165 = arith.extui %1164 : vector<2x32x32xi1> to vector<2x32x32xi32>
    %1166 = arith.sitofp %1165 : vector<2x32x32xi32> to vector<2x32x32xf32>
    %1167 = vector.shape_cast %1166 : vector<2x32x32xf32> to vector<64x32xf32>
    %1168 = arith.truncf %1167 : vector<64x32xf32> to vector<64x32xbf16>
    %cst_435 = arith.constant dense<0.000000e+00> : vector<64x32xf32>
    %1169 = tpu.matmul %1168, %5, %cst_435 {dimension_numbers = #tpu.dot_dimension_numbers<[1], [0], [0], [1], [0, 0, 1, 1], [], []>} : vector<64x32xbf16>, vector<32x32xbf16>, vector<64x32xf32> -> vector<64x32xf32>
    %1170 = arith.fptosi %1169 : vector<64x32xf32> to vector<64x32xi32>
    %1171 = vector.shape_cast %1170 : vector<64x32xi32> to vector<2x32x32xi32>
    %1172 = vector.broadcast %4 : vector<1x32x32xi32> to vector<2x32x32xi32>
    %1173 = arith.cmpi eq, %1171, %1172 : vector<2x32x32xi32>
    %1174 = arith.extui %1173 : vector<2x32x32xi1> to vector<2x32x32xi32>
    %1175 = arith.sitofp %1174 : vector<2x32x32xi32> to vector<2x32x32xf32>
    %1176 = arith.mulf %1158, %1175 : vector<2x32x32xf32>
    %cst_436 = arith.constant dense<0.000000e+00> : vector<2x32xf32>
    %1177 = vector.multi_reduction <add>, %1176, %cst_436 [1] : vector<2x32x32xf32> to vector<2x32xf32>
    %1178 = tpu.concatenate %1154, %1177 in 1 : vector<2x32xf32>, vector<2x32xf32> -> vector<2x64xf32>
    %c0_437 = arith.constant 0 : index
    %c0_438 = arith.constant 0 : index
    %c0_439 = arith.constant 0 : index
    %1179 = vector.load %arg5[%c0_437, %c0_438, %c0_439] : memref<2x64x64xbf16, #tpu.memory_space<vmem>>, vector<1x64x64xbf16>
    %1180 = vector.shape_cast %1179 : vector<1x64x64xbf16> to vector<64x64xbf16>
    %1181 = arith.truncf %1178 : vector<2x64xf32> to vector<2x64xbf16>
    %cst_440 = arith.constant dense<0.000000e+00> : vector<2x64xf32>
    %1182 = tpu.matmul %1181, %1180, %cst_440 {dimension_numbers = #tpu.dot_dimension_numbers<[1], [0], [0], [1], [0, 0, 1, 1], [], []>} : vector<2x64xbf16>, vector<64x64xbf16>, vector<2x64xf32> -> vector<2x64xf32>
    %cst_441 = arith.constant 0.000000e+00 : f32
    %1183 = vector.broadcast %cst_441 : f32 to vector<2x64xf32>
    %1184 = arith.maximumf %1182, %1183 : vector<2x64xf32>
    %c0_442 = arith.constant 0 : index
    %c0_443 = arith.constant 0 : index
    %c0_444 = arith.constant 0 : index
    %1185 = vector.load %arg6[%c0_442, %c0_443, %c0_444] : memref<2x64x32xbf16, #tpu.memory_space<vmem>>, vector<1x64x32xbf16>
    %1186 = vector.shape_cast %1185 : vector<1x64x32xbf16> to vector<64x32xbf16>
    %1187 = arith.truncf %1184 : vector<2x64xf32> to vector<2x64xbf16>
    %cst_445 = arith.constant dense<0.000000e+00> : vector<2x32xf32>
    %1188 = tpu.matmul %1187, %1186, %cst_445 {dimension_numbers = #tpu.dot_dimension_numbers<[1], [0], [0], [1], [0, 0, 1, 1], [], []>} : vector<2x64xbf16>, vector<64x32xbf16>, vector<2x32xf32> -> vector<2x32xf32>
    %1189 = arith.negf %1188 : vector<2x32xf32>
    %1190 = math.exp %1189 : vector<2x32xf32>
    %cst_446 = arith.constant 1.000000e+00 : f32
    %1191 = vector.broadcast %cst_446 : f32 to vector<2x32xf32>
    %1192 = arith.addf %1191, %1190 : vector<2x32xf32>
    %1193 = arith.divf %1191, %1192 : vector<2x32xf32>
    %1194 = arith.mulf %1154, %1193 : vector<2x32xf32>
    %c0_447 = arith.constant 0 : index
    %c0_448 = arith.constant 0 : index
    %c0_449 = arith.constant 0 : index
    %1195 = vector.load %arg8[%c0_447, %c0_448, %c0_449] : memref<2x2x32xf32, #tpu.memory_space<vmem>>, vector<1x2x32xf32>
    %1196 = vector.shape_cast %1195 : vector<1x2x32xf32> to vector<2x32xf32>
    %1197 = vector.shape_cast %1194 : vector<2x32xf32> to vector<1x2x32xf32>
    tpu.vector_store %arg8[%c0_447, %c0_448, %c0_449], %1197 {strides = array<i32>} : memref<2x2x32xf32, #tpu.memory_space<vmem>>, vector<1x2x32xf32>,
    %c1_450 = arith.constant 1 : index
    %c0_451 = arith.constant 0 : index
    %c0_452 = arith.constant 0 : index
    %1198 = vector.load %arg8[%c1_450, %c0_451, %c0_452] : memref<2x2x32xf32, #tpu.memory_space<vmem>>, vector<1x2x32xf32>
    %1199 = vector.shape_cast %1198 : vector<1x2x32xf32> to vector<2x32xf32>
    %1200 = tpu.concatenate %1194, %1199 in 1 : vector<2x32xf32>, vector<2x32xf32> -> vector<2x64xf32>
    %c1_453 = arith.constant 1 : index
    %c0_454 = arith.constant 0 : index
    %c0_455 = arith.constant 0 : index
    %1201 = vector.load %arg3[%c1_453, %c0_454, %c0_455] : memref<2x64x128xbf16, #tpu.memory_space<vmem>>, vector<1x64x128xbf16>
    %1202 = vector.shape_cast %1201 : vector<1x64x128xbf16> to vector<64x128xbf16>
    %1203 = arith.truncf %1200 : vector<2x64xf32> to vector<2x64xbf16>
    %cst_456 = arith.constant dense<0.000000e+00> : vector<2x128xf32>
    %1204 = tpu.matmul %1203, %1202, %cst_456 {dimension_numbers = #tpu.dot_dimension_numbers<[1], [0], [0], [1], [0, 0, 1, 1], [], []>} : vector<2x64xbf16>, vector<64x128xbf16>, vector<2x128xf32> -> vector<2x128xf32>
    %c1_457 = arith.constant 1 : index
    %c0_458 = arith.constant 0 : index
    %c0_459 = arith.constant 0 : index
    %1205 = vector.load %arg4[%c1_457, %c0_458, %c0_459] : memref<2x1x128xf32, #tpu.memory_space<vmem>>, vector<1x1x128xf32>
    %1206 = vector.shape_cast %1205 : vector<1x1x128xf32> to vector<1x128xf32>
    %1207 = vector.broadcast %1206 : vector<1x128xf32> to vector<2x128xf32>
    %1208 = arith.addf %1204, %1207 : vector<2x128xf32>
    %1209 = vector.extract_strided_slice %1208 {offsets = [0, 0], sizes = [2, 32], strides = [1, 1]} : vector<2x128xf32> to vector<2x32xf32>
    %1210 = arith.negf %1209 : vector<2x32xf32>
    %1211 = math.exp %1210 : vector<2x32xf32>
    %cst_460 = arith.constant 1.000000e+00 : f32
    %1212 = vector.broadcast %cst_460 : f32 to vector<2x32xf32>
    %1213 = arith.addf %1212, %1211 : vector<2x32xf32>
    %1214 = arith.divf %1212, %1213 : vector<2x32xf32>
    %1215 = vector.extract_strided_slice %1208 {offsets = [0, 32], sizes = [2, 32], strides = [1, 1]} : vector<2x128xf32> to vector<2x32xf32>
    %1216 = arith.negf %1215 : vector<2x32xf32>
    %1217 = math.exp %1216 : vector<2x32xf32>
    %cst_461 = arith.constant 1.000000e+00 : f32
    %1218 = vector.broadcast %cst_461 : f32 to vector<2x32xf32>
    %1219 = arith.addf %1218, %1217 : vector<2x32xf32>
    %1220 = arith.divf %1218, %1219 : vector<2x32xf32>
    %1221 = vector.extract_strided_slice %1208 {offsets = [0, 64], sizes = [2, 32], strides = [1, 1]} : vector<2x128xf32> to vector<2x32xf32>
    %1222 = vector.extract_strided_slice %1208 {offsets = [0, 96], sizes = [2, 32], strides = [1, 1]} : vector<2x128xf32> to vector<2x32xf32>
    %1223 = arith.mulf %1214, %1222 : vector<2x32xf32>
    %1224 = arith.addf %1221, %1223 : vector<2x32xf32>
    %1225 = math.tanh %1224 : vector<2x32xf32>
    %cst_462 = arith.constant 1.000000e+00 : f32
    %1226 = vector.broadcast %cst_462 : f32 to vector<2x32xf32>
    %1227 = arith.subf %1226, %1220 : vector<2x32xf32>
    %1228 = arith.mulf %1227, %1225 : vector<2x32xf32>
    %1229 = arith.mulf %1220, %1199 : vector<2x32xf32>
    %1230 = arith.addf %1228, %1229 : vector<2x32xf32>
    %1231 = vector.shape_cast %1230 : vector<2x32xf32> to vector<2x1x32xf32>
    %1232 = vector.shape_cast %1231 : vector<2x1x32xf32> to vector<2x1x32xf32>
    %1233 = vector.broadcast %1232 : vector<2x1x32xf32> to vector<2x32x32xf32>
    %1234 = tpu.transpose %1233, [0, 2, 1] : vector<2x32x32xf32> -> vector<2x32x32xf32>
    %1235 = arith.cmpf olt, %1233, %1234 : vector<2x32x32xf32>
    %1236 = arith.cmpf oeq, %1233, %1234 : vector<2x32x32xf32>
    %1237 = arith.cmpi slt, %4, %3 : vector<1x32x32xi32>
    %1238 = vector.broadcast %1237 : vector<1x32x32xi1> to vector<2x32x32xi1>
    %1239 = arith.andi %1236, %1238 : vector<2x32x32xi1>
    %1240 = arith.ori %1235, %1239 : vector<2x32x32xi1>
    %1241 = arith.extui %1240 : vector<2x32x32xi1> to vector<2x32x32xi32>
    %1242 = arith.sitofp %1241 : vector<2x32x32xi32> to vector<2x32x32xf32>
    %1243 = vector.shape_cast %1242 : vector<2x32x32xf32> to vector<64x32xf32>
    %1244 = arith.truncf %1243 : vector<64x32xf32> to vector<64x32xbf16>
    %cst_463 = arith.constant dense<0.000000e+00> : vector<64x32xf32>
    %1245 = tpu.matmul %1244, %5, %cst_463 {dimension_numbers = #tpu.dot_dimension_numbers<[1], [0], [0], [1], [0, 0, 1, 1], [], []>} : vector<64x32xbf16>, vector<32x32xbf16>, vector<64x32xf32> -> vector<64x32xf32>
    %1246 = arith.fptosi %1245 : vector<64x32xf32> to vector<64x32xi32>
    %1247 = vector.shape_cast %1246 : vector<64x32xi32> to vector<2x32x32xi32>
    %1248 = vector.broadcast %4 : vector<1x32x32xi32> to vector<2x32x32xi32>
    %1249 = arith.cmpi eq, %1247, %1248 : vector<2x32x32xi32>
    %1250 = arith.extui %1249 : vector<2x32x32xi1> to vector<2x32x32xi32>
    %1251 = arith.sitofp %1250 : vector<2x32x32xi32> to vector<2x32x32xf32>
    %1252 = arith.mulf %1234, %1251 : vector<2x32x32xf32>
    %cst_464 = arith.constant dense<0.000000e+00> : vector<2x32xf32>
    %1253 = vector.multi_reduction <add>, %1252, %cst_464 [1] : vector<2x32x32xf32> to vector<2x32xf32>
    %1254 = tpu.concatenate %1230, %1253 in 1 : vector<2x32xf32>, vector<2x32xf32> -> vector<2x64xf32>
    %c1_465 = arith.constant 1 : index
    %c0_466 = arith.constant 0 : index
    %c0_467 = arith.constant 0 : index
    %1255 = vector.load %arg5[%c1_465, %c0_466, %c0_467] : memref<2x64x64xbf16, #tpu.memory_space<vmem>>, vector<1x64x64xbf16>
    %1256 = vector.shape_cast %1255 : vector<1x64x64xbf16> to vector<64x64xbf16>
    %1257 = arith.truncf %1254 : vector<2x64xf32> to vector<2x64xbf16>
    %cst_468 = arith.constant dense<0.000000e+00> : vector<2x64xf32>
    %1258 = tpu.matmul %1257, %1256, %cst_468 {dimension_numbers = #tpu.dot_dimension_numbers<[1], [0], [0], [1], [0, 0, 1, 1], [], []>} : vector<2x64xbf16>, vector<64x64xbf16>, vector<2x64xf32> -> vector<2x64xf32>
    %cst_469 = arith.constant 0.000000e+00 : f32
    %1259 = vector.broadcast %cst_469 : f32 to vector<2x64xf32>
    %1260 = arith.maximumf %1258, %1259 : vector<2x64xf32>
    %c1_470 = arith.constant 1 : index
    %c0_471 = arith.constant 0 : index
    %c0_472 = arith.constant 0 : index
    %1261 = vector.load %arg6[%c1_470, %c0_471, %c0_472] : memref<2x64x32xbf16, #tpu.memory_space<vmem>>, vector<1x64x32xbf16>
    %1262 = vector.shape_cast %1261 : vector<1x64x32xbf16> to vector<64x32xbf16>
    %1263 = arith.truncf %1260 : vector<2x64xf32> to vector<2x64xbf16>
    %cst_473 = arith.constant dense<0.000000e+00> : vector<2x32xf32>
    %1264 = tpu.matmul %1263, %1262, %cst_473 {dimension_numbers = #tpu.dot_dimension_numbers<[1], [0], [0], [1], [0, 0, 1, 1], [], []>} : vector<2x64xbf16>, vector<64x32xbf16>, vector<2x32xf32> -> vector<2x32xf32>
    %1265 = arith.negf %1264 : vector<2x32xf32>
    %1266 = math.exp %1265 : vector<2x32xf32>
    %cst_474 = arith.constant 1.000000e+00 : f32
    %1267 = vector.broadcast %cst_474 : f32 to vector<2x32xf32>
    %1268 = arith.addf %1267, %1266 : vector<2x32xf32>
    %1269 = arith.divf %1267, %1268 : vector<2x32xf32>
    %1270 = arith.mulf %1230, %1269 : vector<2x32xf32>
    %c1_475 = arith.constant 1 : index
    %c0_476 = arith.constant 0 : index
    %c0_477 = arith.constant 0 : index
    %1271 = vector.load %arg8[%c1_475, %c0_476, %c0_477] : memref<2x2x32xf32, #tpu.memory_space<vmem>>, vector<1x2x32xf32>
    %1272 = vector.shape_cast %1271 : vector<1x2x32xf32> to vector<2x32xf32>
    %1273 = vector.shape_cast %1270 : vector<2x32xf32> to vector<1x2x32xf32>
    tpu.vector_store %arg8[%c1_475, %c0_476, %c0_477], %1273 {strides = array<i32>} : memref<2x2x32xf32, #tpu.memory_space<vmem>>, vector<1x2x32xf32>,
    %1274 = arith.index_cast %c7_i32 : i32 to index
    %c0_478 = arith.constant 0 : index
    %c0_479 = arith.constant 0 : index
    %1275 = vector.load %arg7[%1274, %c0_478, %c0_479] : memref<8x2x32xf32, #tpu.memory_space<vmem>>, vector<1x2x32xf32>
    %1276 = vector.shape_cast %1275 : vector<1x2x32xf32> to vector<2x32xf32>
    %1277 = vector.shape_cast %1270 : vector<2x32xf32> to vector<1x2x32xf32>
    tpu.vector_store %arg7[%1274, %c0_478, %c0_479], %1277 {strides = array<i32>} : memref<8x2x32xf32, #tpu.memory_space<vmem>>, vector<1x2x32xf32>,
    %c8_i32 = arith.constant 8 : i32
    return
  }
  func.func @transform_0(%arg0: i32) -> (i32, i32, i32) {
    %c0_i32 = arith.constant 0 : i32
    %c0_i32_0 = arith.constant 0 : i32
    %c0_i32_1 = arith.constant 0 : i32
    return %arg0, %c0_i32, %c0_i32_0 : i32, i32, i32
  }
  func.func @transform_1(%arg0: i32) -> (i32, i32, i32) {
    %c0_i32 = arith.constant 0 : i32
    %c0_i32_0 = arith.constant 0 : i32
    %c0_i32_1 = arith.constant 0 : i32
    %c0_i32_2 = arith.constant 0 : i32
    return %c0_i32, %c0_i32_0, %c0_i32_1 : i32, i32, i32
  }
  func.func @transform_2(%arg0: i32) -> (i32, i32, i32) {
    %c0_i32 = arith.constant 0 : i32
    %c0_i32_0 = arith.constant 0 : i32
    %c0_i32_1 = arith.constant 0 : i32
    %c0_i32_2 = arith.constant 0 : i32
    return %c0_i32, %c0_i32_0, %c0_i32_1 : i32, i32, i32
  }
  func.func @transform_3(%arg0: i32) -> (i32, i32, i32) {
    %c0_i32 = arith.constant 0 : i32
    %c0_i32_0 = arith.constant 0 : i32
    %c0_i32_1 = arith.constant 0 : i32
    %c0_i32_2 = arith.constant 0 : i32
    return %c0_i32, %c0_i32_0, %c0_i32_1 : i32, i32, i32
  }
  func.func @transform_4(%arg0: i32) -> (i32, i32, i32) {
    %c0_i32 = arith.constant 0 : i32
    %c0_i32_0 = arith.constant 0 : i32
    %c0_i32_1 = arith.constant 0 : i32
    %c0_i32_2 = arith.constant 0 : i32
    return %c0_i32, %c0_i32_0, %c0_i32_1 : i32, i32, i32
  }
  func.func @transform_5(%arg0: i32) -> (i32, i32, i32) {
    %c0_i32 = arith.constant 0 : i32
    %c0_i32_0 = arith.constant 0 : i32
    %c0_i32_1 = arith.constant 0 : i32
    %c0_i32_2 = arith.constant 0 : i32
    return %c0_i32, %c0_i32_0, %c0_i32_1 : i32, i32, i32
  }
  func.func @transform_6(%arg0: i32) -> (i32, i32, i32) {
    %c0_i32 = arith.constant 0 : i32
    %c0_i32_0 = arith.constant 0 : i32
    %c0_i32_1 = arith.constant 0 : i32
    return %arg0, %c0_i32, %c0_i32_0 : i32, i32, i32
  }
}

</mosaic_0001>

<bundles_post_ra>
// kernel: tpu_custom_call.1
= control target key start
LH: loop header
LB: loop body
LE: loop exit
PB: predicated region body
PF: predicated region fallthrough
CT: control target
= control target key end

     0   :  { %11 = vsyncpa [#allocation4], 0  ;;  %s16147_s0 = inlined_call_operand.vmem [shape: f32[8,2,32], index: 0, kind: input, shape index: {}]   ;;  %s16148_s1 = inlined_call_operand.vmem [shape: f32[2,1,32], index: 1, kind: input, shape index: {}]   ;;  %s16149_s2 = inlined_call_operand.vmem [shape: bf16[2,64,128], index: 2, kind: input, shape index: {}]   ;;  %s16150_s3 = inlined_call_operand.vmem [shape: f32[2,1,128], index: 3, kind: input, shape index: {}]   ;;  %s16151_s4 = inlined_call_operand.hbm [shape: bf16[2,64,64], index: 4, kind: input, shape index: {}]   ;;  %s16152_s5 = inlined_call_operand.vmem [shape: bf16[2,64,32], index: 5, kind: input, shape index: {}]   ;;  %s16153_s6 = inlined_call_operand.hbm [shape: f32[8,2,32], index: 6, kind: output, shape index: {}]  }
   0x1   :  { %12 = vsyncpa [#allocation5], 0  ;;  %s12840_s21 = smov [#allocation3]   ;;  %s12792_s25 = scalar_lea.hbm %s16151_s4, 1024 }
   0x2   :  { %s26_s22 = sshll.u32 %s12840_s21, 4  ;;  %p12793_p0 = scmp.ne.s32.totalorder %s16151_s4, %s12792_s25  ;;  %s27_s22 = int_to_ptr.vmem [resolvable:$true] %s26_s22 }
   0x3   :  { %p12796_p1 = scmp.lt.u32.totalorder %s12792_s25, %s16151_s4 }
   0x5   :  { %p12798_p2 = pnand %p12796_p1, %p12793_p0 }
   0x7   :  { %12801 = shalt.err (!%p12798_p2)
}
   0x8   :  { %s12802_s30 = scalar_lea.vmem %s27_s22, 1024  ;;  %p12807_p4 = scmp.lt.s32.totalorder %s27_s22, %s27_s22 }
   0x9   :  { %p12803_p3 = scmp.ne.s32.totalorder %s27_s22, %s12802_s30  ;;  %p12808_p5 = scmp.lt.s32.totalorder %s12802_s30, %s12802_s30 }
   0xb   :  { %p12809_p6 = por %p12808_p5, %p12807_p4 }
   0xd   :  { %p12810_p7 = pnand %p12809_p6, %p12803_p3 }
   0xf   :  { %12813 = shalt.err (!%p12810_p7)
}
  0x10   :  { %s12841_s7 = smov 64   ;;  %s12842_s8 = smov 4  }
  0x11   :  { %32 = dma.hbm_to_vmem [thread:$0]  %s16151_s4, 1024, %s27_s22, [#allocation4], %s12841_s7, %s12841_s7, %s12842_s8  }
  0x12   :  { %12836 = dma.done.wait [#allocation4], 1024  }
  0x13   :  { %12837 = vsyncadd [#allocation4], 4294966272  ;;  %v12843_v0 = vmov 0.0   ;;  %vm16154_vm0 = vcmask 254976   ;;  %vm16156_vm1 = vmmov 0   ;;  %v12440_v2 = vld [vmem:[%s16149_s2] sm:$0xff]   ;;  %v63_v26 = vlaneseq }
  0x14   :  { %11404 = vmatprep.subr.bf16.mxu0 %v12843_v0  ;;  %11412 = vmatprep.mubr.msk.bf16.mxu0 %vm16156_vm1, %v12843_v0  ;;  %v10314_v1 = vld [vmem:[%s16148_s1] ss:$0 sm:$0xff]  ;;  %v12441_v3 = vld [vmem:[%s16149_s2 + $0x8] sm:$0xff]   ;;  %v12442_v4 = vld [vmem:[%s16149_s2 + $0x10] sm:$0xff]   ;;  %s12845_s18 = smov 32   ;;  %vm16161_vm2 = vcmask 261120  }
  0x15   :  { %52 = vst.msk [vmem:[#allocation2] sm:$0x3] %vm16154_vm0, %v10314_v1  ;;  %11405 = vmatpush3.bf16.msra.mxu0 %v12440_v2  ;;  %v12443_v6 = vld [vmem:[%s16149_s2 + $0x18] sm:$0xff]   ;;  %vm16155_vm3 = vcmask 523264   ;;  %v70_v7 = vld [vmem:[%s16147_s0] sm:$0x3] }
  0x16   :  { %11406 = vmatprep.subr.bf16.mxu0 %v12843_v0  ;;  %v10317_v11 = vld [vmem:[%s16150_s3] ss:$0 sm:$0xff]  ;;  %s12846_s25 = smov 96   ;;  %v12847_v27 = vmov 1966171168   ;;  %v64_v29 = vshrl.u32 %v63_v26, 7 }
  0x17   :  { %v189_v28 = vunpack.c.l.s4 %v12847_v27  ;;  %v12947_v41 = vand.u32 127, %v63_v26  ;;  %v12848_v48 = vmov 0  }
  0x18   :  { %v12942_v37 = vsub.s32 0, %v64_v29  ;;  %v65_v42 = vadd.s32 8, %v64_v29  ;;  %v66_v45 = vadd.s32 16, %v64_v29  ;;  %v67_v47 = vadd.s32 24, %v64_v29 }
  0x19   :  { %11407 = vmatpush3.bf16.msra.mxu0 %v12441_v3  ;;  %v190_v30 = vunpack.c.0.s8 %v189_v28  ;;  %vm338_vm4 = vcmp.lt.s32.totalorder %v12947_v41, %v64_v29 }
  0x1a   :  { %11408 = vmatprep.subr.bf16.mxu0 %v12843_v0  ;;  %vm339_vm5 = vcmp.lt.s32.totalorder %v12947_v41, %v65_v42  ;;  %v350_v49 = vsel %vm338_vm4, 1, %v12848_v48  ;;  %vm340_vm6 = vcmp.lt.s32.totalorder %v12947_v41, %v66_v45  ;;  %vm341_vm7 = vcmp.lt.s32.totalorder %v12947_v41, %v67_v47 }
  0x1b   :  { %v12938_v34 = vsub.s32 %v190_v30, %v64_v29  ;;  %v351_v50 = vsel %vm339_vm5, 1, %v12848_v48  ;;  %v352_v51 = vsel %vm340_vm6, 1, %v12848_v48  ;;  %v353_v52 = vsel %vm341_vm7, 1, %v12848_v48 }
  0x1c   :  { %v71_v5 = vld [vmem:[#allocation2] sm:$0x3] }
  0x1d   :  { %73 = vrot.lane.b32.xlu0 %v71_v5, %s12845_s18  ;;  %11409 = vmatpush3.bf16.msra.mxu0 %v12442_v4  ;;  %v12849_v4 = vmov 1065369472  }
  0x1e   :  { %11410 = vmatprep.subr.bf16.mxu0 %v12843_v0  ;;  %11416 = vmatprep.subr.bf16.mxu1 %v12849_v4 }
  0x1f   :  { %11417 = vmatpush3.bf16.msra.mxu1 %v12849_v4 }
  0x20   :  { %11418 = vmatprep.subr.bf16.mxu1 %v12849_v4 }
  0x21   :  { %11411 = vmatpush3.bf16.msra.mxu0 %v12443_v6 }
  0x22   :  { %11440 = vmatprep.subr.bf16.mxu0 %v12843_v0 }
  0x23   :  { %11419 = vmatpush3.bf16.msra.mxu1 %v12849_v4 }
  0x24   :  { %11428 = vmatprep.subr.bf16.mxu1 %v12843_v0 }
  0x8f   :  { %v74_v8 = vpop.permute.xlu0 %73 }
  0x90   :  { %v77_v9 = vsel %vm16161_vm2, %v70_v7, %v74_v8 }
  0x91   :  { %v86_v10 = vpack.c.bf16 %v77_v9, %v77_v9 }
  0x93   :  { %11413 = vmatmul.mubr.msk.bf16.vlgmr.msra.gmra.mrb[0].mxu0 %vm16155_vm3, %v86_v10 }
  0x94   :  { %11448 = vmatprep.mubr.msk.bf16.mxu0 %vm16156_vm1, %v12843_v0 }
 0x166   :  { %v156_v12 = vpop.f32.mrb[0].mxu0 }
 0x167   :  { %v157_v13 = vadd.f32 %v10317_v11, %v156_v12  ;;  %v11414_v14 = vpop.f32.mrb[1].mxu0 }
 0x168   :  { %v159_v15 = vpop.f32.mrb[2].mxu0 }
 0x169   :  { %169 = vrot.lane.b32.xlu0 %v157_v13, %s12845_s18  ;;  %v11415_v16 = vpop.f32.mrb[3].mxu0  ;;  %v10323_v17 = vmul.f32 -1.442695, %v157_v13 }
 0x16b   :  { %12632 = vpow2.f32 %v10323_v17 }
 0x175   :  { %v12633_v18 = vpop.eup %12632 }
 0x176   :  { %v165_v19 = vadd.f32 1.0, %v12633_v18 }
 0x178   :  { %12634 = vrcp.f32 %v165_v19 }
 0x182   :  { %v12635_v20 = vpop.eup %12634 }
 0x183   :  { %v179_v31 = vsub.f32 1.0, %v12635_v20  ;;  %v185_v33 = vmul.f32 %v12635_v20, %v74_v8 }
 0x1db   :  { %v170_v21 = vpop.permute.xlu0 %169 }
 0x1dc   :  { %v172_v22 = vmul.f32 %v12635_v20, %v170_v21 }
 0x1de   :  { %174 = vrot.lane.b32.xlu1 %v172_v22, %s12841_s7 }
 0x250   :  { %v175_v23 = vpop.permute.xlu1 %174 }
 0x251   :  { %v177_v24 = vadd.f32 %v175_v23, %v157_v13 }
 0x253   :  { %12636 = vtanh.f32 %v177_v24 }
 0x25d   :  { %v12637_v25 = vpop.eup %12636 }
 0x25e   :  { %181 = vrot.lane.b32.xlu1 %v12637_v25, %s12846_s25 }
 0x2d0   :  { %v182_v32 = vpop.permute.xlu1 %181 }
 0x2d1   :  { %v184_v35 = vmul.f32 %v182_v32, %v179_v31  ;;  %v12444_v31 = vld [vmem:[#allocation3] sm:$0xff]   ;;  %v12445_v32 = vld [vmem:[#allocation3 + $0x8] sm:$0xff]  }
 0x2d3   :  { %v12940_v36 = vadd.f32 %v185_v33, %v184_v35  ;;  %v12446_v33 = vld [vmem:[#allocation3 + $0x10] sm:$0xff]   ;;  %v12447_v35 = vld [vmem:[#allocation3 + $0x18] sm:$0xff]  }
 0x2d5   :  { %v194_v38 = vrot.slane %v12940_v36, %v12938_v34 }
 0x2d7   :  { %v195_v39 = vcombine.high %v194_v38, %v194_v38  ;;  %v202_v40 = vrot.slane %v194_v38, %v12938_v34 }
 0x2d9   :  { %v209_v43 = vrot.slane %v195_v39, %v12938_v34  ;;  %v12951_v44 = vrot.slane %v202_v40, %v12942_v37 }
 0x2db   :  { %v12955_v46 = vrot.slane %v209_v43, %v12942_v37  ;;  %220 = vrot.lane.b32.xlu0 %v12951_v44, %s12846_s25 }
 0x2dd   :  { %222 = vrot.lane.b32.xlu1 %v12955_v46, %s12846_s25 }
 0x2df   :  { %354 = vrot.lane.b32.xlu0 %v350_v49, %s12845_s18 }
 0x2e1   :  { %356 = vrot.lane.b32.xlu1 %v351_v50, %s12845_s18 }
 0x2e3   :  { %358 = vrot.lane.b32.xlu0 %v352_v51, %s12845_s18 }
 0x2e5   :  { %360 = vrot.lane.b32.xlu1 %v353_v52, %s12845_s18 }
 0x34d   :  { %v221_v53 = vpop.permute.xlu0 %220 }
 0x34e   :  { %226 = vxpose.xlu0.b32.start [1/4] (short) (narrow) %v221_v53, 32 }
 0x34f   :  { %v223_v54 = vpop.permute.xlu1 %222 }
 0x350   :  { %258 = vxpose.xlu1.b32.start [1/4] (short) (narrow) %v223_v54, 32 }
 0x351   :  { %v12968_v55 = vpop.permute.xlu0 %354 }
 0x352   :  { %227 = vxpose.xlu0.b32.cont [2/4] (short) (narrow) %v221_v53, 32  ;;  %vm16158_vm8 = vcmp.ne.s32.totalorder %v12968_v55, 0 }
 0x353   :  { %v12970_v56 = vpop.permute.xlu1 %356 }
 0x354   :  { %259 = vxpose.xlu1.b32.cont [2/4] (short) (narrow) %v223_v54, 32  ;;  %vm16162_vm12 = vcmp.ne.s32.totalorder %v12970_v56, 0 }
 0x355   :  { %v12972_v57 = vpop.permute.xlu0 %358 }
 0x356   :  { %228 = vxpose.xlu0.b32.cont [3/4] (short) (narrow) %v221_v53, 32  ;;  %vm16159_vm6 = vcmp.ne.s32.totalorder %v12972_v57, 0 }
 0x357   :  { %v12974_v58 = vpop.permute.xlu1 %360 }
 0x358   :  { %260 = vxpose.xlu1.b32.cont [3/4] (short) (narrow) %v223_v54, 32 }
 0x35a   :  { %229 = vxpose.xlu0.b32.end [4/4] (short) (narrow) %v221_v53, 32 }
 0x35c   :  { %261 = vxpose.xlu1.b32.end [4/4] (short) (narrow) %v223_v54, 32 }
 0x3ce   :  { %v12976_v59 = vpop.trf.xlu0 }
 0x3cf   :  { %298 = vrot.lane.b32.xlu0 %v12976_v59, %s12845_s18 }
 0x3d0   :  { %v12980_v60 = vpop.trf.xlu1 }
 0x3d2   :  { %v12982_v61 = vpop.trf.xlu0 }
 0x3d3   :  { %300 = vrot.lane.b32.xlu1 %v12982_v61, %s12845_s18 }
 0x3d4   :  { %v12986_v62 = vpop.trf.xlu1 }
 0x3d6   :  { %v12988_v63 = vpop.trf.xlu0 }
 0x3d7   :  { %302 = vrot.lane.b32.xlu0 %v12988_v63, %s12845_s18 }
 0x3d8   :  { %v12994_v2 = vpop.trf.xlu1 }
 0x3da   :  { %v12992_v1 = vpop.trf.xlu0 }
 0x3db   :  { %304 = vrot.lane.b32.xlu1 %v12992_v1, %s12845_s18  ;;  %306 = vrot.lane.b32.xlu0 %v12980_v60, %s12845_s18 }
 0x3dc   :  { %v13004_v3 = vpop.trf.xlu1 }
 0x3df   :  { %308 = vrot.lane.b32.xlu1 %v12986_v62, %s12845_s18  ;;  %310 = vrot.lane.b32.xlu0 %v12994_v2, %s12845_s18 }
 0x3e3   :  { %312 = vrot.lane.b32.xlu1 %v13004_v3, %s12845_s18 }
 0x441   :  { %v299_v5 = vpop.permute.xlu0 %298 }
 0x442   :  { %vm330_vm9 = vcmp.eq.f32.partialorder %v12951_v44, %v299_v5  ;;  %vm322_vm10 = vcmp.lt.f32.partialorder %v12951_v44, %v299_v5 }
 0x443   :  { %vm366_vm11 = vmand %vm330_vm9, %vm16158_vm8 }
 0x444   :  { %vm374_vm13 = vmor %vm322_vm10, %vm366_vm11 }
 0x445   :  { %v301_v6 = vpop.permute.xlu1 %300  ;;  %v10324_v8 = vsel %vm374_vm13, 1.0, %v12843_v0 }
 0x446   :  { %vm323_vm14 = vcmp.lt.f32.partialorder %v12951_v44, %v301_v6  ;;  %vm331_vm15 = vcmp.eq.f32.partialorder %v12951_v44, %v301_v6 }
 0x447   :  { %vm367_vm4 = vmand %vm331_vm15, %vm16162_vm12 }
 0x448   :  { %vm375_vm5 = vmor %vm323_vm14, %vm367_vm4 }
 0x449   :  { %v303_v7 = vpop.permute.xlu0 %302  ;;  %v10325_v9 = vsel %vm375_vm5, 1.0, %v12843_v0 }
 0x44a   :  { %vm332_vm7 = vcmp.eq.f32.partialorder %v12951_v44, %v303_v7  ;;  %v398_v10 = vpack.c.bf16 %v10325_v9, %v10324_v8  ;;  %vm324_vm9 = vcmp.lt.f32.partialorder %v12951_v44, %v303_v7 }
 0x44b   :  { %vm368_vm10 = vmand %vm332_vm7, %vm16159_vm6  ;;  %vm365_vm7 = vcmp.ne.s32.totalorder %v12974_v58, 0 }
 0x44c   :  { %406 = vrot.lane.b32.xlu0 %v398_v10, %s12846_s25  ;;  %vm13031_vm11 = vmor %vm324_vm9, %vm368_vm10 }
 0x44d   :  { %v307_v11 = vpop.permute.xlu0 %306  ;;  %v305_v12 = vpop.permute.xlu1 %304  ;;  %v10326_v17 = vsel %vm13031_vm11, 1.0, %v12843_v0 }
 0x44e   :  { %vm326_vm13 = vcmp.lt.f32.partialorder %v12955_v46, %v307_v11  ;;  %vm334_vm14 = vcmp.eq.f32.partialorder %v12955_v46, %v307_v11  ;;  %vm333_vm15 = vcmp.eq.f32.partialorder %v12951_v44, %v305_v12  ;;  %vm325_vm5 = vcmp.lt.f32.partialorder %v12951_v44, %v305_v12 }
 0x44f   :  { %vm370_vm4 = vmand %vm334_vm14, %vm16158_vm8 }
 0x450   :  { %vm13042_vm0 = vmor %vm326_vm13, %vm370_vm4 }
 0x451   :  { %vm369_vm9 = vmand %vm333_vm15, %vm365_vm7  ;;  %v311_v15 = vpop.permute.xlu0 %310  ;;  %v309_v16 = vpop.permute.xlu1 %308  ;;  %v10328_v21 = vsel %vm13042_vm0, 1.0, %v12843_v0  ;;  %vm16167_vm0 = vmmov 0  }
 0x452   :  { %vm377_vm10 = vmor %vm325_vm5, %vm369_vm9  ;;  %vm328_vm3 = vcmp.lt.f32.partialorder %v12955_v46, %v311_v15  ;;  %vm336_vm1 = vcmp.eq.f32.partialorder %v12955_v46, %v311_v15  ;;  %vm335_vm14 = vcmp.eq.f32.partialorder %v12955_v46, %v309_v16  ;;  %vm327_vm13 = vcmp.lt.f32.partialorder %v12955_v46, %v309_v16 }
 0x453   :  { %vm372_vm8 = vmand %vm336_vm1, %vm16159_vm6  ;;  %v10327_v18 = vsel %vm377_vm10, 1.0, %v12843_v0 }
 0x454   :  { %vm380_vm15 = vmor %vm328_vm3, %vm372_vm8  ;;  %v399_v19 = vpack.c.bf16 %v10327_v18, %v10326_v17 }
 0x455   :  { %vm371_vm4 = vmand %vm335_vm14, %vm16162_vm12  ;;  %v313_v20 = vpop.permute.xlu1 %312  ;;  %v10330_v24 = vsel %vm380_vm15, 1.0, %v12843_v0 }
 0x456   :  { %vm379_vm5 = vmor %vm327_vm13, %vm371_vm4  ;;  %408 = vrot.lane.b32.xlu1 %v399_v19, %s12846_s25  ;;  %vm329_vm9 = vcmp.lt.f32.partialorder %v12955_v46, %v313_v20  ;;  %vm337_vm1 = vcmp.eq.f32.partialorder %v12955_v46, %v313_v20 }
 0x457   :  { %vm373_vm6 = vmand %vm337_vm1, %vm365_vm7  ;;  %v10329_v22 = vsel %vm379_vm5, 1.0, %v12843_v0  ;;  %vm16160_vm5 = vcmask 1041409  }
 0x458   :  { %vm381_vm3 = vmor %vm329_vm9, %vm373_vm6  ;;  %v400_v23 = vpack.c.bf16 %v10329_v22, %v10328_v21  ;;  %vm16168_vm9 = vcmask 523264  }
 0x459   :  { %v10331_v25 = vsel %vm381_vm3, 1.0, %v12843_v0  ;;  %vm16169_vm1 = vmmov %vm16168_vm9  ;;  %vm16170_vm3 = vcmask 254976  }
 0x45a   :  { %410 = vrot.lane.b32.xlu0 %v400_v23, %s12846_s25  ;;  %v401_v26 = vpack.c.bf16 %v10331_v25, %v10330_v24 }
 0x45c   :  { %412 = vrot.lane.b32.xlu1 %v401_v26, %s12846_s25 }
 0x45e   :  { %557 = vrot.lane.b32.xlu0 %v12940_v36, %s12846_s25 }
 0x4be   :  { %v407_v27 = vpop.permute.xlu0 %406 }
 0x4bf   :  { %11420 = vmatprep.mubr.msk.bf16.mxu1 %vm16161_vm2, %v407_v27 }
 0x4c8   :  { %v409_v28 = vpop.permute.xlu1 %408 }
 0x4c9   :  { %11421 = vmatmul.mubr.msk.bf16.vlgmr.msra.gmra.mrb[0].mxu1 %vm16161_vm2, %v409_v28 }
 0x4ca   :  { %11429 = vmatpush3.bf16.msra.mxu1 %v12444_v31 }
 0x4cb   :  { %11430 = vmatprep.subr.bf16.mxu1 %v12843_v0 }
 0x4cc   :  { %v411_v29 = vpop.permute.xlu0 %410 }
 0x4cd   :  { %11424 = vmatprep.mubr.msk.bf16.mxu1 %vm16161_vm2, %v411_v29 }
 0x4ce   :  { %v413_v30 = vpop.permute.xlu1 %412  ;;  %11431 = vmatpush3.bf16.msra.mxu1 %v12445_v32 }
 0x4cf   :  { %11432 = vmatprep.subr.bf16.mxu1 %v12843_v0 }
 0x4d1   :  { %11425 = vmatmul.mubr.msk.bf16.gmra.mrb[4].mxu1 %vm16161_vm2, %v413_v30 }
 0x4d2   :  { %11436 = vmatprep.mubr.msk.bf16.mxu1 %vm16167_vm0, %v12843_v0  ;;  %11433 = vmatpush3.bf16.msra.mxu1 %v12446_v33 }
 0x4d3   :  { %11434 = vmatprep.subr.bf16.mxu1 %v12843_v0 }
 0x4d6   :  { %11435 = vmatpush3.bf16.msra.mxu1 %v12447_v35 }
 0x4d7   :  { %11452 = vmatprep.subr.bf16.mxu1 %v12843_v0 }
 0x59c   :  { %v11422_v38 = vpop.f32.mrb[0].mxu1 }
 0x59d   :  { %v12176_v39 = vtrunc.f32 %v11422_v38  ;;  %v460_v40 = vpop.f32.mrb[1].mxu1 }
 0x59e   :  { %v12172_v42 = vtrunc.f32 %v460_v40  ;;  %v11423_v43 = vpop.f32.mrb[2].mxu1 }
 0x59f   :  { %v12177_v44 = vcvt.f32.s32 %v12176_v39  ;;  %v12178_v45 = vtrunc.f32 %v11423_v43  ;;  %v463_v46 = vpop.f32.mrb[3].mxu1 }
 0x5a0   :  { %v12173_v47 = vcvt.f32.s32 %v12172_v42  ;;  %v12174_v48 = vtrunc.f32 %v463_v46 }
 0x5a1   :  { %vm501_vm8 = vcmp.eq.s32.totalorder %v12177_v44, %v12947_v41  ;;  %v12179_v49 = vcvt.f32.s32 %v12178_v45 }
 0x5a2   :  { %vm499_vm6 = vcmp.eq.s32.totalorder %v12173_v47, %v12947_v41  ;;  %v12175_v50 = vcvt.f32.s32 %v12174_v48  ;;  %v10338_v51 = vsel %vm501_vm8, 1.0, %v12843_v0  ;;  %vm16171_vm8 = vmmov %vm16170_vm3 }
 0x5a3   :  { %v10336_v52 = vsel %vm499_vm6, 1.0, %v12843_v0  ;;  %vm502_vm11 = vcmp.eq.s32.totalorder %v12179_v49, %v12947_v41  ;;  %v525_v9 = vmul.f32 %v10338_v51, %v12988_v63  ;;  %v12450_v51 = vld [vmem:[%s16152_s5 + $0x10] sm:$0xff]   ;;  %vm16172_vm6 = vmmov %vm16169_vm1 }
 0x5a4   :  { %v523_v53 = vmul.f32 %v10336_v52, %v12976_v59  ;;  %v10339_v54 = vsel %vm502_vm11, 1.0, %v12843_v0  ;;  %vm500_vm10 = vcmp.eq.s32.totalorder %v12175_v50, %v12947_v41  ;;  %v11426_v5 = vpop.f32.mrb[4].mxu1 }
 0x5a5   :  { %v10337_v6 = vsel %vm500_vm10, 1.0, %v12843_v0  ;;  %v12184_v7 = vtrunc.f32 %v11426_v5  ;;  %v476_v8 = vpop.f32.mrb[5].mxu1  ;;  %v526_v13 = vmul.f32 %v10339_v54, %v12992_v1  ;;  %v534_v63 = vsel %vm16161_vm2, %v525_v9, 0.0  ;;  %v558_v5 = vpop.permute.xlu0 %557  ;;  %v12451_v9 = vld [vmem:[%s16152_s5 + $0x18] sm:$0xff]  }
 0x5a6   :  { %v524_v10 = vmul.f32 %v10337_v6, %v12982_v61  ;;  %v12180_v11 = vtrunc.f32 %v476_v8  ;;  %v11427_v12 = vpop.f32.mrb[6].mxu1  ;;  %v531_v16 = vsel %vm16161_vm2, %v523_v53, 0.0 }
 0x5a7   :  { %v12185_v14 = vcvt.f32.s32 %v12184_v7  ;;  %v12186_v15 = vtrunc.f32 %v11427_v12  ;;  %v479_v59 = vpop.f32.mrb[7].mxu1  ;;  %v536_v24 = vsel %vm16161_vm2, %v526_v13, 0.0 }
 0x5a8   :  { %v532_v17 = vsel %vm16161_vm2, %v524_v10, 0.0  ;;  %v12181_v18 = vcvt.f32.s32 %v12180_v11  ;;  %v12182_v19 = vtrunc.f32 %v479_v59 }
 0x5a9   :  { %v533_v20 = vadd.f32 %v532_v17, %v531_v16  ;;  %vm505_vm14 = vcmp.eq.s32.totalorder %v12185_v14, %v12947_v41  ;;  %v12187_v21 = vcvt.f32.s32 %v12186_v15 }
 0x5aa   :  { %vm503_vm13 = vcmp.eq.s32.totalorder %v12181_v18, %v12947_v41  ;;  %v12183_v61 = vcvt.f32.s32 %v12182_v19  ;;  %v10342_v1 = vsel %vm505_vm14, 1.0, %v12843_v0  ;;  %vm16173_vm14 = vcmp.ne.s32.totalorder %v12968_v55, 0 }
 0x5ab   :  { %v535_v22 = vadd.f32 %v534_v63, %v533_v20  ;;  %v10340_v23 = vsel %vm503_vm13, 1.0, %v12843_v0  ;;  %vm506_vm15 = vcmp.eq.s32.totalorder %v12187_v21, %v12947_v41  ;;  %v529_v29 = vmul.f32 %v10342_v1, %v12994_v2  ;;  %v10316_v20 = vld [vmem:[%s16148_s1 + $0x1] ss:$0 sm:$0xff]  ;;  %v12454_v1 = vld [vmem:[%s16149_s2 + $0x30] sm:$0xff]  }
 0x5ac   :  { %v527_v25 = vmul.f32 %v10340_v23, %v12980_v60  ;;  %vm504_vm4 = vcmp.eq.s32.totalorder %v12183_v61, %v12947_v41  ;;  %v10343_v27 = vsel %vm506_vm15, 1.0, %v12843_v0  ;;  %62 = vst.msk [vmem:[#allocation2 + $0x2] sm:$0x3] %vm16170_vm3, %v10316_v20  ;;  %v12452_v61 = vld [vmem:[%s16149_s2 + $0x20] sm:$0xff]  }
 0x5ad   :  { %v537_v26 = vadd.f32 %v536_v24, %v535_v22  ;;  %v10341_v28 = vsel %vm504_vm4, 1.0, %v12843_v0  ;;  %v530_v33 = vmul.f32 %v10343_v27, %v13004_v3  ;;  %v547_v39 = vsel %vm16161_vm2, %v529_v29, 0.0  ;;  %v12449_v3 = vld [vmem:[%s16152_s5 + $0x8] sm:$0xff]  }
 0x5ae   :  { %v528_v30 = vmul.f32 %v10341_v28, %v12986_v62  ;;  %v544_v32 = vsel %vm16161_vm2, %v527_v25, 0.0  ;;  %v12448_v62 = vld [vmem:[%s16152_s5] sm:$0xff]   ;;  %v12453_v22 = vld [vmem:[%s16149_s2 + $0x28] sm:$0xff]   ;;  %v12455_v25 = vld [vmem:[%s16149_s2 + $0x38] sm:$0xff]  }
 0x5af   :  { %v538_v31 = vrot.slane %v537_v26, 4  ;;  %v549_v42 = vsel %vm16161_vm2, %v530_v33, 0.0  ;;  %11441 = vmatpush3.bf16.msra.mxu0 %v12448_v62 }
 0x5b0   :  { %v545_v35 = vsel %vm16161_vm2, %v528_v30, 0.0  ;;  %11442 = vmatprep.subr.bf16.mxu0 %v12843_v0 }
 0x5b1   :  { %v546_v38 = vadd.f32 %v545_v35, %v544_v32  ;;  %v539_v60 = vadd.f32 %v538_v31, %v537_v26  ;;  %v10364_v32 = vld [vmem:[%s16150_s3 + $0x1] ss:$0 sm:$0xff] }
 0x5b3   :  { %v548_v40 = vadd.f32 %v547_v39, %v546_v38  ;;  %v540_v44 = vrot.slane %v539_v60, 2  ;;  %11443 = vmatpush3.bf16.msra.mxu0 %v12449_v3  ;;  %v739_v24 = vld [vmem:[#allocation2 + $0x2] sm:$0x3] }
 0x5b4   :  { %11444 = vmatprep.subr.bf16.mxu0 %v12843_v0 }
 0x5b5   :  { %v550_v43 = vadd.f32 %v549_v42, %v548_v40  ;;  %v541_v2 = vadd.f32 %v540_v44, %v539_v60 }
 0x5b7   :  { %v551_v45 = vrot.slane %v550_v43, 4  ;;  %v542_v48 = vrot.slane %v541_v2, 1  ;;  %11445 = vmatpush3.bf16.msra.mxu0 %v12450_v51 }
 0x5b8   :  { %11446 = vmatprep.subr.bf16.mxu0 %v12843_v0 }
 0x5b9   :  { %v552_v46 = vadd.f32 %v551_v45, %v550_v43  ;;  %v543_v52 = vadd.f32 %v542_v48, %v541_v2 }
 0x5bb   :  { %v553_v47 = vrot.slane %v552_v46, 2  ;;  %11447 = vmatpush3.bf16.msra.mxu0 %v12451_v9 }
 0x5bc   :  { %11464 = vmatprep.subr.bf16.mxu0 %v12849_v4 }
 0x5bd   :  { %v554_v49 = vadd.f32 %v553_v47, %v552_v46 }
 0x5bf   :  { %v555_v50 = vrot.slane %v554_v49, 1 }
 0x5c1   :  { %v556_v53 = vadd.f32 %v555_v50, %v554_v49 }
 0x5c3   :  { %v563_v54 = vsel %vm16160_vm5, %v556_v53, %v543_v52  ;;  %vm16174_vm5 = vcmp.ne.s32.totalorder %v12972_v57, 0 }
 0x5c4   :  { %564 = vrot.lane.b32.xlu1 %v563_v54, %s12845_s18 }
 0x636   :  { %v565_v6 = vpop.permute.xlu1 %564 }
 0x637   :  { %v567_v7 = vsel %vm16161_vm2, %v558_v5, %v565_v6 }
 0x638   :  { %v576_v8 = vpack.c.bf16 %v567_v7, %v567_v7 }
 0x63a   :  { %11437 = vmatmul.mubr.msk.bf16.vlgmr.msra.gmra.mrb[8].mxu1 %vm16168_vm9, %v576_v8 }
 0x63b   :  { %11460 = vmatprep.mubr.msk.bf16.mxu1 %vm16167_vm0, %v12843_v0  ;;  %11453 = vmatpush3.bf16.msra.mxu1 %v12452_v61 }
 0x63c   :  { %11454 = vmatprep.subr.bf16.mxu1 %v12843_v0 }
 0x63f   :  { %11455 = vmatpush3.bf16.msra.mxu1 %v12453_v22 }
 0x640   :  { %11456 = vmatprep.subr.bf16.mxu1 %v12843_v0 }
 0x643   :  { %11457 = vmatpush3.bf16.msra.mxu1 %v12454_v1 }
 0x644   :  { %11458 = vmatprep.subr.bf16.mxu1 %v12843_v0 }
 0x647   :  { %11459 = vmatpush3.bf16.msra.mxu1 %v12455_v25 }
 0x648   :  { %11488 = vmatprep.subr.bf16.mxu1 %v12843_v0 }
 0x70d   :  { %v638_v10 = vpop.f32.mrb[8].mxu1 }
 0x70e   :  { %v644_v11 = vmax.f32 %v638_v10, 0.0  ;;  %v11438_v12 = vpop.f32.mrb[9].mxu1 }
 0x70f   :  { %v641_v13 = vpop.f32.mrb[10].mxu1 }
 0x710   :  { %v653_v14 = vpack.c.bf16 %v644_v11, %v644_v11  ;;  %v11439_v15 = vpop.f32.mrb[11].mxu1 }
 0x712   :  { %11449 = vmatmul.mubr.msk.bf16.vlgmr.msra.gmra.mrb[4].mxu0 %vm16169_vm1, %v653_v14 }
 0x713   :  { %11465 = vmatpush3.bf16.msra.mxu0 %v12849_v4 }
 0x714   :  { %11466 = vmatprep.subr.bf16.mxu0 %v12849_v4 }
 0x717   :  { %11467 = vmatpush3.bf16.msra.mxu0 %v12849_v4 }
 0x718   :  { %11476 = vmatprep.subr.bf16.mxu0 %v12843_v0 }
 0x7e5   :  { %v715_v59 = vpop.f32.mrb[4].mxu0 }
 0x7e6   :  { %v10354_v16 = vmul.f32 -1.442695, %v715_v59  ;;  %v11450_v17 = vpop.f32.mrb[5].mxu0 }
 0x7e7   :  { %v718_v18 = vpop.f32.mrb[6].mxu0 }
 0x7e8   :  { %12638 = vpow2.f32 %v10354_v16  ;;  %v11451_v19 = vpop.f32.mrb[7].mxu0 }
 0x7f2   :  { %v12639_v21 = vpop.eup %12638 }
 0x7f3   :  { %v724_v63 = vadd.f32 1.0, %v12639_v21 }
 0x7f5   :  { %12640 = vrcp.f32 %v724_v63 }
 0x7ff   :  { %v12641_v23 = vpop.eup %12640 }
 0x800   :  { %728 = vrot.lane.b32.xlu0 %v12641_v23, %s12845_s18 }
 0x804   :  { %741 = vrot.lane.b32.xlu0 %v739_v24, %s12845_s18 }
 0x872   :  { %v729_v26 = vpop.permute.xlu0 %728 }
 0x873   :  { %v731_v27 = vmul.f32 %v729_v26, %v12940_v36 }
 0x875   :  { %733 = vrot.lane.b32.xlu1 %v731_v27, %s12846_s25 }
 0x876   :  { %v742_v28 = vpop.permute.xlu0 %741 }
 0x8e7   :  { %v734_v29 = vpop.permute.xlu1 %733 }
 0x8e8   :  { %737 = vst.msk [vmem:[#allocation2] sm:$0x3] %vm16171_vm8, %v734_v29  ;;  %v744_v30 = vsel %vm16161_vm2, %v734_v29, %v742_v28 }
 0x8e9   :  { %v754_v31 = vpack.c.bf16 %v744_v30, %v744_v30 }
 0x8eb   :  { %11461 = vmatmul.mubr.msk.bf16.vlgmr.msra.gmra.mrb[12].mxu1 %vm16172_vm6, %v754_v31 }
 0x8ec   :  { %11496 = vmatprep.mubr.msk.bf16.mxu1 %vm16167_vm0, %v12843_v0 }
 0x9be   :  { %v824_v33 = vpop.f32.mrb[12].mxu1 }
 0x9bf   :  { %v825_v36 = vadd.f32 %v10364_v32, %v824_v33  ;;  %v11462_v35 = vpop.f32.mrb[13].mxu1 }
 0x9c0   :  { %v827_v38 = vpop.f32.mrb[14].mxu1  ;;  %v1381_v35 = vld [vmem:[#allocation2] sm:$0x3] }
 0x9c1   :  { %837 = vrot.lane.b32.xlu1 %v825_v36, %s12845_s18  ;;  %v11463_v60 = vpop.f32.mrb[15].mxu1  ;;  %v10370_v39 = vmul.f32 -1.442695, %v825_v36 }
 0x9c3   :  { %12642 = vpow2.f32 %v10370_v39 }
 0x9cd   :  { %v12643_v40 = vpop.eup %12642 }
 0x9ce   :  { %v833_v42 = vadd.f32 1.0, %v12643_v40 }
 0x9d0   :  { %12644 = vrcp.f32 %v833_v42  ;;  %v12456_v42 = vld [vmem:[#allocation3 + $0x20] sm:$0xff]  }
 0x9da   :  { %v12645_v43 = vpop.eup %12644 }
 0x9db   :  { %v847_v47 = vsub.f32 1.0, %v12645_v43  ;;  %v853_v48 = vmul.f32 %v12645_v43, %v742_v28 }
 0xa33   :  { %v838_v44 = vpop.permute.xlu1 %837 }
 0xa34   :  { %v840_v45 = vmul.f32 %v12645_v43, %v838_v44  ;;  %v12457_v43 = vld [vmem:[#allocation3 + $0x28] sm:$0xff]   ;;  %v12458_v44 = vld [vmem:[#allocation3 + $0x30] sm:$0xff]  }
 0xa36   :  { %842 = vrot.lane.b32.xlu0 %v840_v45, %s12841_s7  ;;  %v12459_v45 = vld [vmem:[#allocation3 + $0x38] sm:$0xff]  }
 0xaa8   :  { %v843_v2 = vpop.permute.xlu0 %842 }
 0xaa9   :  { %v845_v46 = vadd.f32 %v843_v2, %v825_v36 }
 0xaab   :  { %12646 = vtanh.f32 %v845_v46 }
 0xab5   :  { %v12647_v62 = vpop.eup %12646 }
 0xab6   :  { %849 = vrot.lane.b32.xlu1 %v12647_v62, %s12846_s25 }
 0xb28   :  { %v850_v3 = vpop.permute.xlu1 %849 }
 0xb29   :  { %v852_v49 = vmul.f32 %v850_v3, %v847_v47 }
 0xb2b   :  { %v13179_v50 = vadd.f32 %v853_v48, %v852_v49 }
 0xb2d   :  { %v862_v51 = vrot.slane %v13179_v50, %v12938_v34 }
 0xb2f   :  { %v863_v52 = vcombine.high %v862_v51, %v862_v51  ;;  %v870_v53 = vrot.slane %v862_v51, %v12938_v34 }
 0xb31   :  { %v877_v54 = vrot.slane %v863_v52, %v12938_v34  ;;  %v881_v5 = vrot.slane %v870_v53, %v12942_v37 }
 0xb33   :  { %v13187_v6 = vrot.slane %v877_v54, %v12942_v37  ;;  %888 = vrot.lane.b32.xlu0 %v881_v5, %s12846_s25 }
 0xb35   :  { %890 = vrot.lane.b32.xlu1 %v13187_v6, %s12846_s25 }
 0xba5   :  { %v889_v7 = vpop.permute.xlu0 %888 }
 0xba6   :  { %894 = vxpose.xlu0.b32.start [1/4] (short) (narrow) %v889_v7, 32 }
 0xba7   :  { %v891_v8 = vpop.permute.xlu1 %890 }
 0xba8   :  { %926 = vxpose.xlu1.b32.start [1/4] (short) (narrow) %v891_v8, 32 }
 0xbaa   :  { %895 = vxpose.xlu0.b32.cont [2/4] (short) (narrow) %v889_v7, 32 }
 0xbac   :  { %927 = vxpose.xlu1.b32.cont [2/4] (short) (narrow) %v891_v8, 32 }
 0xbae   :  { %896 = vxpose.xlu0.b32.cont [3/4] (short) (narrow) %v889_v7, 32 }
 0xbb0   :  { %928 = vxpose.xlu1.b32.cont [3/4] (short) (narrow) %v891_v8, 32 }
 0xbb2   :  { %897 = vxpose.xlu0.b32.end [4/4] (short) (narrow) %v889_v7, 32 }
 0xbb4   :  { %929 = vxpose.xlu1.b32.end [4/4] (short) (narrow) %v891_v8, 32 }
 0xc26   :  { %v13192_v9 = vpop.trf.xlu0 }
 0xc27   :  { %966 = vrot.lane.b32.xlu0 %v13192_v9, %s12845_s18 }
 0xc28   :  { %v13196_v10 = vpop.trf.xlu1 }
 0xc2a   :  { %v13198_v11 = vpop.trf.xlu0 }
 0xc2b   :  { %968 = vrot.lane.b32.xlu1 %v13198_v11, %s12845_s18 }
 0xc2c   :  { %v13202_v12 = vpop.trf.xlu1 }
 0xc2e   :  { %v13204_v13 = vpop.trf.xlu0 }
 0xc2f   :  { %970 = vrot.lane.b32.xlu0 %v13204_v13, %s12845_s18 }
 0xc30   :  { %v13210_v15 = vpop.trf.xlu1 }
 0xc32   :  { %v13208_v14 = vpop.trf.xlu0 }
 0xc33   :  { %972 = vrot.lane.b32.xlu1 %v13208_v14, %s12845_s18  ;;  %974 = vrot.lane.b32.xlu0 %v13196_v10, %s12845_s18 }
 0xc34   :  { %v13220_v59 = vpop.trf.xlu1 }
 0xc37   :  { %976 = vrot.lane.b32.xlu1 %v13202_v12, %s12845_s18  ;;  %978 = vrot.lane.b32.xlu0 %v13210_v15, %s12845_s18 }
 0xc3b   :  { %980 = vrot.lane.b32.xlu1 %v13220_v59, %s12845_s18 }
 0xc99   :  { %v967_v16 = vpop.permute.xlu0 %966 }
 0xc9a   :  { %vm998_vm11 = vcmp.eq.f32.partialorder %v881_v5, %v967_v16  ;;  %vm990_vm10 = vcmp.lt.f32.partialorder %v881_v5, %v967_v16 }
 0xc9b   :  { %vm1006_vm13 = vmand %vm998_vm11, %vm16173_vm14 }
 0xc9c   :  { %vm1014_vm15 = vmor %vm990_vm10, %vm1006_vm13 }
 0xc9d   :  { %v969_v17 = vpop.permute.xlu1 %968  ;;  %v10371_v19 = vsel %vm1014_vm15, 1.0, %v12843_v0  ;;  %vm16177_vm15 = vcmp.ne.s32.totalorder %v12968_v55, 0 }
 0xc9e   :  { %vm991_vm4 = vcmp.lt.f32.partialorder %v881_v5, %v969_v17  ;;  %vm999_vm9 = vcmp.eq.f32.partialorder %v881_v5, %v969_v17 }
 0xc9f   :  { %vm1007_vm1 = vmand %vm999_vm9, %vm16162_vm12  ;;  %vm16180_vm12 = vcmp.ne.s32.totalorder %v12972_v57, 0 }
 0xca0   :  { %vm1015_vm3 = vmor %vm991_vm4, %vm1007_vm1 }
 0xca1   :  { %v971_v18 = vpop.permute.xlu0 %970  ;;  %v10372_v20 = vsel %vm1015_vm3, 1.0, %v12843_v0 }
 0xca2   :  { %vm1000_vm8 = vcmp.eq.f32.partialorder %v881_v5, %v971_v18  ;;  %v1038_v21 = vpack.c.bf16 %v10372_v20, %v10371_v19  ;;  %vm992_vm6 = vcmp.lt.f32.partialorder %v881_v5, %v971_v18 }
 0xca3   :  { %vm1008_vm2 = vmand %vm1000_vm8, %vm16174_vm5 }
 0xca4   :  { %1046 = vrot.lane.b32.xlu0 %v1038_v21, %s12846_s25  ;;  %vm13233_vm11 = vmor %vm992_vm6, %vm1008_vm2 }
 0xca5   :  { %v975_v63 = vpop.permute.xlu0 %974  ;;  %v973_v61 = vpop.permute.xlu1 %972  ;;  %v10373_v25 = vsel %vm13233_vm11, 1.0, %v12843_v0 }
 0xca6   :  { %vm994_vm10 = vcmp.lt.f32.partialorder %v13187_v6, %v975_v63  ;;  %vm1002_vm14 = vcmp.eq.f32.partialorder %v13187_v6, %v975_v63  ;;  %vm1001_vm13 = vcmp.eq.f32.partialorder %v881_v5, %v973_v61  ;;  %vm993_vm9 = vcmp.lt.f32.partialorder %v881_v5, %v973_v61 }
 0xca7   :  { %vm1010_vm4 = vmand %vm1002_vm14, %vm16177_vm15  ;;  %vm16181_vm15 = vcmp.ne.s32.totalorder %v12970_v56, 0 }
 0xca8   :  { %vm13241_vm1 = vmor %vm994_vm10, %vm1010_vm4 }
 0xca9   :  { %vm1009_vm5 = vmand %vm1001_vm13, %vm365_vm7  ;;  %v979_v23 = vpop.permute.xlu0 %978  ;;  %v977_v24 = vpop.permute.xlu1 %976  ;;  %v10375_v29 = vsel %vm13241_vm1, 1.0, %v12843_v0  ;;  %vm16182_vm1 = vcmask 261120  }
 0xcaa   :  { %vm1017_vm2 = vmor %vm993_vm9, %vm1009_vm5  ;;  %vm996_vm3 = vcmp.lt.f32.partialorder %v13187_v6, %v979_v23  ;;  %vm1004_vm8 = vcmp.eq.f32.partialorder %v13187_v6, %v979_v23  ;;  %vm1003_vm6 = vcmp.eq.f32.partialorder %v13187_v6, %v977_v24  ;;  %vm995_vm10 = vcmp.lt.f32.partialorder %v13187_v6, %v977_v24 }
 0xcab   :  { %vm1012_vm14 = vmand %vm1004_vm8, %vm16180_vm12  ;;  %v10374_v26 = vsel %vm1017_vm2, 1.0, %v12843_v0 }
 0xcac   :  { %vm1020_vm13 = vmor %vm996_vm3, %vm1012_vm14  ;;  %v1039_v27 = vpack.c.bf16 %v10374_v26, %v10373_v25 }
 0xcad   :  { %vm1011_vm4 = vmand %vm1003_vm6, %vm16181_vm15  ;;  %v981_v28 = vpop.permute.xlu1 %980  ;;  %v10377_v32 = vsel %vm1020_vm13, 1.0, %v12843_v0 }
 0xcae   :  { %vm1019_vm9 = vmor %vm995_vm10, %vm1011_vm4  ;;  %1048 = vrot.lane.b32.xlu1 %v1039_v27, %s12846_s25  ;;  %vm997_vm5 = vcmp.lt.f32.partialorder %v13187_v6, %v981_v28  ;;  %vm1005_vm12 = vcmp.eq.f32.partialorder %v13187_v6, %v981_v28 }
 0xcaf   :  { %vm1013_vm8 = vmand %vm1005_vm12, %vm365_vm7  ;;  %v10376_v30 = vsel %vm1019_vm9, 1.0, %v12843_v0 }
 0xcb0   :  { %vm1021_vm11 = vmor %vm997_vm5, %vm1013_vm8  ;;  %v1040_v31 = vpack.c.bf16 %v10376_v30, %v10375_v29 }
 0xcb1   :  { %v10378_v33 = vsel %vm1021_vm11, 1.0, %v12843_v0  ;;  %vm16183_vm2 = vmmov %vm16182_vm1 }
 0xcb2   :  { %1050 = vrot.lane.b32.xlu0 %v1040_v31, %s12846_s25  ;;  %v1041_v36 = vpack.c.bf16 %v10378_v33, %v10377_v32  ;;  %vm16184_vm3 = vmmov %vm16182_vm1 }
 0xcb3   :  { %vm16185_vm6 = vmmov %vm16182_vm1 }
 0xcb4   :  { %1052 = vrot.lane.b32.xlu1 %v1041_v36, %s12846_s25  ;;  %vm16186_vm4 = vmmov %vm16182_vm1 }
 0xcb5   :  { %vm16187_vm9 = vmmov %vm16182_vm1 }
 0xcb6   :  { %1197 = vrot.lane.b32.xlu0 %v13179_v50, %s12846_s25  ;;  %vm16188_vm12 = vmmov %vm16182_vm1 }
 0xcba   :  { %1383 = vrot.lane.b32.xlu0 %v1381_v35, %s12845_s18 }
 0xd16   :  { %v1047_v38 = vpop.permute.xlu0 %1046 }
 0xd17   :  { %11468 = vmatprep.mubr.msk.bf16.mxu0 %vm16182_vm1, %v1047_v38 }
 0xd20   :  { %v1049_v60 = vpop.permute.xlu1 %1048 }
 0xd21   :  { %11469 = vmatmul.mubr.msk.bf16.vlgmr.msra.gmra.mrb[8].mxu0 %vm16183_vm2, %v1049_v60 }
 0xd22   :  { %11477 = vmatpush3.bf16.msra.mxu0 %v12456_v42 }
 0xd23   :  { %11478 = vmatprep.subr.bf16.mxu0 %v12843_v0 }
 0xd24   :  { %v1051_v39 = vpop.permute.xlu0 %1050 }
 0xd25   :  { %11472 = vmatprep.mubr.msk.bf16.mxu0 %vm16184_vm3, %v1051_v39  ;;  %vm16189_vm3 = vmmov %vm16182_vm1 }
 0xd26   :  { %v1053_v40 = vpop.permute.xlu1 %1052  ;;  %11479 = vmatpush3.bf16.msra.mxu0 %v12457_v43 }
 0xd27   :  { %11480 = vmatprep.subr.bf16.mxu0 %v12843_v0 }
 0xd29   :  { %11473 = vmatmul.mubr.msk.bf16.gmra.mrb[12].mxu0 %vm16185_vm6, %v1053_v40  ;;  %vm16190_vm6 = vmmov %vm16182_vm1 }
 0xd2a   :  { %11484 = vmatprep.mubr.msk.bf16.mxu0 %vm16167_vm0, %v12843_v0  ;;  %11481 = vmatpush3.bf16.msra.mxu0 %v12458_v44 }
 0xd2b   :  { %11482 = vmatprep.subr.bf16.mxu0 %v12843_v0 }
 0xd2e   :  { %11483 = vmatpush3.bf16.msra.mxu0 %v12459_v45 }
 0xd2f   :  { %11500 = vmatprep.subr.bf16.mxu0 %v12843_v0 }
 0xdf4   :  { %v11470_v2 = vpop.f32.mrb[8].mxu0 }
 0xdf5   :  { %v12192_v46 = vtrunc.f32 %v11470_v2  ;;  %v1100_v62 = vpop.f32.mrb[9].mxu0 }
 0xdf6   :  { %v12188_v47 = vtrunc.f32 %v1100_v62  ;;  %v11471_v3 = vpop.f32.mrb[10].mxu0 }
 0xdf7   :  { %v12193_v48 = vcvt.f32.s32 %v12192_v46  ;;  %v12194_v49 = vtrunc.f32 %v11471_v3  ;;  %v1103_v51 = vpop.f32.mrb[11].mxu0 }
 0xdf8   :  { %v12189_v52 = vcvt.f32.s32 %v12188_v47  ;;  %v12190_v53 = vtrunc.f32 %v1103_v51 }
 0xdf9   :  { %vm1141_vm14 = vcmp.eq.s32.totalorder %v12193_v48, %v12947_v41  ;;  %v12195_v54 = vcvt.f32.s32 %v12194_v49 }
 0xdfa   :  { %vm1139_vm10 = vcmp.eq.s32.totalorder %v12189_v52, %v12947_v41  ;;  %v12191_v5 = vcvt.f32.s32 %v12190_v53  ;;  %v10385_v6 = vsel %vm1141_vm14, 1.0, %v12843_v0  ;;  %vm16191_vm14 = vmmov %vm16182_vm1 }
 0xdfb   :  { %v10383_v7 = vsel %vm1139_vm10, 1.0, %v12843_v0  ;;  %vm1142_vm13 = vcmp.eq.s32.totalorder %v12195_v54, %v12947_v41  ;;  %v1165_v21 = vmul.f32 %v10385_v6, %v13204_v13  ;;  %vm16192_vm10 = vmmov %vm16182_vm1 }
 0xdfc   :  { %v1163_v8 = vmul.f32 %v10383_v7, %v13192_v9  ;;  %v10386_v16 = vsel %vm1142_vm13, 1.0, %v12843_v0  ;;  %vm1140_vm15 = vcmp.eq.s32.totalorder %v12191_v5, %v12947_v41  ;;  %v11474_v17 = vpop.f32.mrb[12].mxu0  ;;  %vm16193_vm13 = vcmask 1041409   ;;  %v12464_v7 = vld [vmem:[%s16152_s5 + $0x20] sm:$0xff]  }
 0xdfd   :  { %v10384_v18 = vsel %vm1140_vm15, 1.0, %v12843_v0  ;;  %v12200_v19 = vtrunc.f32 %v11474_v17  ;;  %v1116_v20 = vpop.f32.mrb[13].mxu0  ;;  %v1166_v1 = vmul.f32 %v10386_v16, %v13208_v14  ;;  %v1174_v13 = vsel %vm16188_vm12, %v1165_v21, 0.0  ;;  %11489 = vmatpush3.bf16.msra.mxu1 %v12464_v7  ;;  %v12466_v16 = vld [vmem:[%s16152_s5 + $0x30] sm:$0xff]   ;;  %v1198_v17 = vpop.permute.xlu0 %1197  ;;  %vm16194_vm15 = vmmov %vm16182_vm1 }
 0xdfe   :  { %v1164_v63 = vmul.f32 %v10384_v18, %v13198_v11  ;;  %v12196_v61 = vtrunc.f32 %v1116_v20  ;;  %v11475_v22 = vpop.f32.mrb[14].mxu0  ;;  %v1171_v25 = vsel %vm16186_vm4, %v1163_v8, 0.0  ;;  %v12465_v8 = vld [vmem:[%s16152_s5 + $0x28] sm:$0xff]   ;;  %11490 = vmatprep.subr.bf16.mxu1 %v12843_v0  ;;  %v12460_v20 = vld [vmem:[%s16149_s2] sm:$0xff]   ;;  %vm16195_vm4 = vcmask 523264  }
 0xdff   :  { %v12201_v23 = vcvt.f32.s32 %v12200_v19  ;;  %v12202_v24 = vtrunc.f32 %v11475_v22  ;;  %v1119_v9 = vpop.f32.mrb[15].mxu0  ;;  %v1176_v33 = vsel %vm16182_vm1, %v1166_v1, 0.0  ;;  %v10410_v22 = vld [vmem:[%s16147_s0 + $0x2] sm:$0x3]  ;;  %vm16198_vm12 = vmmov %vm16195_vm4 }
 0xe00   :  { %v1172_v26 = vsel %vm16187_vm9, %v1164_v63, 0.0  ;;  %v12197_v27 = vcvt.f32.s32 %v12196_v61  ;;  %v12198_v28 = vtrunc.f32 %v1119_v9  ;;  %v12461_v63 = vld [vmem:[%s16149_s2 + $0x8] sm:$0xff]   ;;  %v12462_v61 = vld [vmem:[%s16149_s2 + $0x10] sm:$0xff]   ;;  %vm16196_vm9 = vmmov %vm16182_vm1  ;;  %vm16199_vm1 = vcmp.ne.s32.totalorder %v12968_v55, 0 }
 0xe01   :  { %v1173_v29 = vadd.f32 %v1172_v26, %v1171_v25  ;;  %vm1145_vm5 = vcmp.eq.s32.totalorder %v12201_v23, %v12947_v41  ;;  %v12203_v30 = vcvt.f32.s32 %v12202_v24  ;;  %11491 = vmatpush3.bf16.msra.mxu1 %v12465_v8  ;;  %v1384_v1 = vpop.permute.xlu0 %1383  ;;  %v12463_v23 = vld [vmem:[%s16149_s2 + $0x18] sm:$0xff]  }
 0xe02   :  { %vm1143_vm8 = vcmp.eq.s32.totalorder %v12197_v27, %v12947_v41  ;;  %v12199_v11 = vcvt.f32.s32 %v12198_v28  ;;  %v10389_v14 = vsel %vm1145_vm5, 1.0, %v12843_v0  ;;  %11492 = vmatprep.subr.bf16.mxu1 %v12843_v0  ;;  %v1386_v24 = vsel %vm16196_vm9, %v10410_v22, %v1384_v1  ;;  %vm16197_vm5 = vmmov %vm16195_vm4  ;;  %v12467_v25 = vld [vmem:[%s16152_s5 + $0x38] sm:$0xff]  }
 0xe03   :  { %v1175_v31 = vadd.f32 %v1174_v13, %v1173_v29  ;;  %v10387_v32 = vsel %vm1143_vm8, 1.0, %v12843_v0  ;;  %vm1146_vm11 = vcmp.eq.s32.totalorder %v12203_v30, %v12947_v41  ;;  %v1169_v39 = vmul.f32 %v10389_v14, %v13210_v15 }
 0xe04   :  { %v1167_v36 = vmul.f32 %v10387_v32, %v13196_v10  ;;  %vm1144_vm2 = vcmp.eq.s32.totalorder %v12199_v11, %v12947_v41  ;;  %v10390_v38 = vsel %vm1146_vm11, 1.0, %v12843_v0  ;;  %v1395_v9 = vpack.c.bf16 %v1386_v24, %v1386_v24  ;;  %v10411_v11 = vld [vmem:[%s16150_s3] ss:$0 sm:$0xff] }
 0xe05   :  { %v1177_v35 = vadd.f32 %v1176_v33, %v1175_v31  ;;  %v10388_v60 = vsel %vm1144_vm2, 1.0, %v12843_v0  ;;  %v1170_v44 = vmul.f32 %v10390_v38, %v13220_v59  ;;  %v1187_v46 = vsel %vm16191_vm14, %v1169_v39, 0.0  ;;  %11493 = vmatpush3.bf16.msra.mxu1 %v12466_v16 }
 0xe06   :  { %v1168_v40 = vmul.f32 %v10388_v60, %v13202_v12  ;;  %v1184_v43 = vsel %vm16189_vm3, %v1167_v36, 0.0  ;;  %11494 = vmatprep.subr.bf16.mxu1 %v12843_v0 }
 0xe07   :  { %v1178_v42 = vrot.slane %v1177_v35, 4  ;;  %v1189_v47 = vsel %vm16192_vm10, %v1170_v44, 0.0  ;;  %vm16200_vm10 = vcmp.ne.s32.totalorder %v12970_v56, 0 }
 0xe08   :  { %v1185_v45 = vsel %vm16190_vm6, %v1168_v40, 0.0 }
 0xe09   :  { %v1186_v2 = vadd.f32 %v1185_v45, %v1184_v43  ;;  %v1179_v10 = vadd.f32 %v1178_v42, %v1177_v35  ;;  %11495 = vmatpush3.bf16.msra.mxu1 %v12467_v25 }
 0xe0a   :  { %11512 = vmatprep.subr.bf16.mxu1 %v12849_v4 }
 0xe0b   :  { %v1188_v62 = vadd.f32 %v1187_v46, %v1186_v2  ;;  %v1180_v48 = vrot.slane %v1179_v10, 2 }
 0xe0d   :  { %v1190_v3 = vadd.f32 %v1189_v47, %v1188_v62  ;;  %v1181_v15 = vadd.f32 %v1180_v48, %v1179_v10 }
 0xe0f   :  { %v1191_v49 = vrot.slane %v1190_v3, 4  ;;  %v1182_v52 = vrot.slane %v1181_v15, 1 }
 0xe11   :  { %v1192_v51 = vadd.f32 %v1191_v49, %v1190_v3  ;;  %v1183_v5 = vadd.f32 %v1182_v52, %v1181_v15 }
 0xe13   :  { %v1193_v12 = vrot.slane %v1192_v51, 2 }
 0xe15   :  { %v1194_v53 = vadd.f32 %v1193_v12, %v1192_v51 }
 0xe17   :  { %v1195_v54 = vrot.slane %v1194_v53, 1 }
 0xe19   :  { %v1196_v59 = vadd.f32 %v1195_v54, %v1194_v53 }
 0xe1b   :  { %v1202_v6 = vsel %vm16193_vm13, %v1196_v59, %v1183_v5 }
 0xe1c   :  { %1203 = vrot.lane.b32.xlu1 %v1202_v6, %s12845_s18 }
 0xe8e   :  { %v1204_v18 = vpop.permute.xlu1 %1203 }
 0xe8f   :  { %v1206_v19 = vsel %vm16194_vm15, %v1198_v17, %v1204_v18 }
 0xe90   :  { %v1216_v21 = vpack.c.bf16 %v1206_v19, %v1206_v19 }
 0xe92   :  { %11485 = vmatmul.mubr.msk.bf16.vlgmr.msra.gmra.mrb[16].mxu0 %vm16195_vm4, %v1216_v21 }
 0xe93   :  { %11501 = vmatpush3.bf16.msra.mxu0 %v12460_v20  ;;  %11508 = vmatprep.mubr.msk.bf16.mxu0 %vm16167_vm0, %v12843_v0 }
 0xe94   :  { %11502 = vmatprep.subr.bf16.mxu0 %v12843_v0 }
 0xe97   :  { %11503 = vmatpush3.bf16.msra.mxu0 %v12461_v63 }
 0xe98   :  { %11504 = vmatprep.subr.bf16.mxu0 %v12843_v0 }
 0xe9b   :  { %11505 = vmatpush3.bf16.msra.mxu0 %v12462_v61 }
 0xe9c   :  { %11506 = vmatprep.subr.bf16.mxu0 %v12843_v0 }
 0xe9f   :  { %11507 = vmatpush3.bf16.msra.mxu0 %v12463_v23 }
 0xea0   :  { %11536 = vmatprep.subr.bf16.mxu0 %v12843_v0 }
 0xea2   :  { %11509 = vmatmul.mubr.msk.bf16.vlgmr.msra.gmra.mrb[20].mxu0 %vm16197_vm5, %v1395_v9  ;;  %vm16201_vm5 = vcmp.ne.s32.totalorder %v12972_v57, 0 }
 0xea3   :  { %11544 = vmatprep.mubr.msk.bf16.mxu0 %vm16167_vm0, %v12843_v0 }
 0xf65   :  { %v1278_v26 = vpop.f32.mrb[16].mxu0 }
 0xf66   :  { %v1284_v27 = vmax.f32 %v1278_v26, 0.0  ;;  %v11486_v28 = vpop.f32.mrb[17].mxu0 }
 0xf67   :  { %v1281_v29 = vpop.f32.mrb[18].mxu0 }
 0xf68   :  { %v1294_v30 = vpack.c.bf16 %v1284_v27, %v1284_v27  ;;  %v11487_v13 = vpop.f32.mrb[19].mxu0 }
 0xf6a   :  { %11497 = vmatmul.mubr.msk.bf16.vlgmr.msra.gmra.mrb[16].mxu1 %vm16198_vm12, %v1294_v30 }
 0xf6b   :  { %11513 = vmatpush3.bf16.msra.mxu1 %v12849_v4 }
 0xf6c   :  { %11514 = vmatprep.subr.bf16.mxu1 %v12849_v4 }
 0xf6f   :  { %11515 = vmatpush3.bf16.msra.mxu1 %v12849_v4 }
 0xf70   :  { %11524 = vmatprep.subr.bf16.mxu1 %v12843_v0 }
 0xf75   :  { %v1464_v31 = vpop.f32.mrb[20].mxu0 }
 0xf76   :  { %v1465_v14 = vadd.f32 %v10411_v11, %v1464_v31  ;;  %v11510_v32 = vpop.f32.mrb[21].mxu0 }
 0xf77   :  { %v1467_v33 = vpop.f32.mrb[22].mxu0 }
 0xf78   :  { %1477 = vrot.lane.b32.xlu1 %v1465_v14, %s12845_s18  ;;  %v11511_v36 = vpop.f32.mrb[23].mxu0  ;;  %v10417_v35 = vmul.f32 -1.442695, %v1465_v14 }
 0xf7a   :  { %12648 = vpow2.f32 %v10417_v35 }
 0xf84   :  { %v12649_v38 = vpop.eup %12648 }
 0xf85   :  { %v1473_v60 = vadd.f32 1.0, %v12649_v38 }
 0xf87   :  { %12650 = vrcp.f32 %v1473_v60 }
 0xf91   :  { %v12651_v39 = vpop.eup %12650 }
 0xf92   :  { %v1487_v47 = vsub.f32 1.0, %v12651_v39  ;;  %v1493_v48 = vmul.f32 %v12651_v39, %v1384_v1 }
 0xfea   :  { %v1478_v40 = vpop.permute.xlu1 %1477 }
 0xfeb   :  { %v1480_v42 = vmul.f32 %v12651_v39, %v1478_v40 }
 0xfed   :  { %1482 = vrot.lane.b32.xlu0 %v1480_v42, %s12841_s7 }
0x103d   :  { %v1356_v43 = vpop.f32.mrb[16].mxu1 }
0x103e   :  { %v11498_v44 = vpop.f32.mrb[17].mxu1  ;;  %v10409_v61 = vmul.f32 -1.442695, %v1356_v43 }
0x103f   :  { %v1359_v45 = vpop.f32.mrb[18].mxu1 }
0x1040   :  { %v11499_v2 = vpop.f32.mrb[19].mxu1 }
0x105f   :  { %v1483_v10 = vpop.permute.xlu0 %1482 }
0x1060   :  { %v1485_v46 = vadd.f32 %v1483_v10, %v1465_v14  ;;  %v12468_v10 = vld [vmem:[#allocation3] sm:$0xff]  }
0x1062   :  { %12652 = vtanh.f32 %v1485_v46  ;;  %v12469_v46 = vld [vmem:[#allocation3 + $0x8] sm:$0xff]  }
0x1063   :  { %12654 = vpow2.f32 %v10409_v61 }
0x106c   :  { %v12653_v62 = vpop.eup %12652 }
0x106d   :  { %1489 = vrot.lane.b32.xlu1 %v12653_v62, %s12846_s25  ;;  %v12655_v28 = vpop.eup %12654  ;;  %v12470_v62 = vld [vmem:[#allocation3 + $0x10] sm:$0xff]  }
0x106e   :  { %v1365_v11 = vadd.f32 1.0, %v12655_v28 }
0x1070   :  { %12656 = vrcp.f32 %v1365_v11 }
0x107a   :  { %v12657_v42 = vpop.eup %12656 }
0x10df   :  { %v1490_v3 = vpop.permute.xlu1 %1489 }
0x10e0   :  { %v1492_v49 = vmul.f32 %v1490_v3, %v1487_v47  ;;  %v12471_v47 = vld [vmem:[#allocation3 + $0x18] sm:$0xff]  }
0x10e2   :  { %v13373_v15 = vadd.f32 %v1493_v48, %v1492_v49 }
0x10e4   :  { %v1502_v51 = vrot.slane %v13373_v15, %v12938_v34 }
0x10e6   :  { %v1503_v12 = vcombine.high %v1502_v51, %v1502_v51  ;;  %v1510_v52 = vrot.slane %v1502_v51, %v12938_v34 }
0x10e8   :  { %v1517_v53 = vrot.slane %v1503_v12, %v12938_v34  ;;  %v13380_v54 = vrot.slane %v1510_v52, %v12942_v37 }
0x10ea   :  { %v13383_v5 = vrot.slane %v1517_v53, %v12942_v37  ;;  %1528 = vrot.lane.b32.xlu0 %v13380_v54, %s12846_s25 }
0x10ec   :  { %1530 = vrot.lane.b32.xlu1 %v13383_v5, %s12846_s25 }
0x115c   :  { %v1529_v59 = vpop.permute.xlu0 %1528 }
0x115d   :  { %1534 = vxpose.xlu0.b32.start [1/4] (short) (narrow) %v1529_v59, 32 }
0x115e   :  { %v1531_v6 = vpop.permute.xlu1 %1530 }
0x115f   :  { %1566 = vxpose.xlu1.b32.start [1/4] (short) (narrow) %v1531_v6, 32 }
0x1161   :  { %1535 = vxpose.xlu0.b32.cont [2/4] (short) (narrow) %v1529_v59, 32 }
0x1163   :  { %1567 = vxpose.xlu1.b32.cont [2/4] (short) (narrow) %v1531_v6, 32 }
0x1165   :  { %1536 = vxpose.xlu0.b32.cont [3/4] (short) (narrow) %v1529_v59, 32 }
0x1167   :  { %1568 = vxpose.xlu1.b32.cont [3/4] (short) (narrow) %v1531_v6, 32 }
0x1169   :  { %1537 = vxpose.xlu0.b32.end [4/4] (short) (narrow) %v1529_v59, 32 }
0x116b   :  { %1569 = vxpose.xlu1.b32.end [4/4] (short) (narrow) %v1531_v6, 32 }
0x11dd   :  { %v13389_v7 = vpop.trf.xlu0 }
0x11de   :  { %1606 = vrot.lane.b32.xlu0 %v13389_v7, %s12845_s18 }
0x11df   :  { %v13393_v8 = vpop.trf.xlu1 }
0x11e1   :  { %v13395_v16 = vpop.trf.xlu0 }
0x11e2   :  { %1608 = vrot.lane.b32.xlu1 %v13395_v16, %s12845_s18 }
0x11e3   :  { %v13399_v17 = vpop.trf.xlu1 }
0x11e5   :  { %v13401_v18 = vpop.trf.xlu0 }
0x11e6   :  { %1610 = vrot.lane.b32.xlu0 %v13401_v18, %s12845_s18 }
0x11e7   :  { %v13407_v20 = vpop.trf.xlu1 }
0x11e9   :  { %v13405_v19 = vpop.trf.xlu0 }
0x11ea   :  { %1612 = vrot.lane.b32.xlu1 %v13405_v19, %s12845_s18  ;;  %1614 = vrot.lane.b32.xlu0 %v13393_v8, %s12845_s18 }
0x11eb   :  { %v13417_v21 = vpop.trf.xlu1 }
0x11ee   :  { %1616 = vrot.lane.b32.xlu1 %v13399_v17, %s12845_s18  ;;  %1618 = vrot.lane.b32.xlu0 %v13407_v20, %s12845_s18 }
0x11f2   :  { %1620 = vrot.lane.b32.xlu1 %v13417_v21, %s12845_s18 }
0x1250   :  { %v1607_v63 = vpop.permute.xlu0 %1606 }
0x1251   :  { %vm1638_vm8 = vcmp.eq.f32.partialorder %v13380_v54, %v1607_v63  ;;  %vm1630_vm11 = vcmp.lt.f32.partialorder %v13380_v54, %v1607_v63 }
0x1252   :  { %vm1646_vm2 = vmand %vm1638_vm8, %vm16199_vm1 }
0x1253   :  { %vm1654_vm3 = vmor %vm1630_vm11, %vm1646_vm2 }
0x1254   :  { %v1609_v22 = vpop.permute.xlu1 %1608  ;;  %v10418_v23 = vsel %vm1654_vm3, 1.0, %v12843_v0  ;;  %vm16204_vm3 = vcmp.ne.s32.totalorder %v12968_v55, 0 }
0x1255   :  { %vm1631_vm6 = vcmp.lt.f32.partialorder %v13380_v54, %v1609_v22  ;;  %vm1639_vm14 = vcmp.eq.f32.partialorder %v13380_v54, %v1609_v22 }
0x1256   :  { %vm1647_vm13 = vmand %vm1639_vm14, %vm16200_vm10 }
0x1257   :  { %vm1655_vm15 = vmor %vm1631_vm6, %vm1647_vm13 }
0x1258   :  { %v1611_v1 = vpop.permute.xlu0 %1610  ;;  %v10419_v24 = vsel %vm1655_vm15, 1.0, %v12843_v0 }
0x1259   :  { %vm1640_vm4 = vcmp.eq.f32.partialorder %v13380_v54, %v1611_v1  ;;  %v1678_v9 = vpack.c.bf16 %v10419_v24, %v10418_v23  ;;  %vm1632_vm9 = vcmp.lt.f32.partialorder %v13380_v54, %v1611_v1 }
0x125a   :  { %vm1648_vm12 = vmand %vm1640_vm4, %vm16201_vm5 }
0x125b   :  { %1686 = vrot.lane.b32.xlu0 %v1678_v9, %s12846_s25  ;;  %vm13436_vm8 = vmor %vm1632_vm9, %vm1648_vm12  ;;  %vm16207_vm12 = vcmp.ne.s32.totalorder %v12972_v57, 0 }
0x125c   :  { %v1615_v25 = vpop.permute.xlu0 %1614  ;;  %v1613_v26 = vpop.permute.xlu1 %1612  ;;  %v10420_v31 = vsel %vm13436_vm8, 1.0, %v12843_v0 }
0x125d   :  { %vm1634_vm11 = vcmp.lt.f32.partialorder %v13383_v5, %v1615_v25  ;;  %vm1642_vm1 = vcmp.eq.f32.partialorder %v13383_v5, %v1615_v25  ;;  %vm1641_vm2 = vcmp.eq.f32.partialorder %v13380_v54, %v1613_v26  ;;  %vm1633_vm14 = vcmp.lt.f32.partialorder %v13380_v54, %v1613_v26 }
0x125e   :  { %vm1650_vm6 = vmand %vm1642_vm1, %vm16204_vm3  ;;  %vm16208_vm3 = vcmp.ne.s32.totalorder %v12970_v56, 0 }
0x125f   :  { %vm13446_vm10 = vmor %vm1634_vm11, %vm1650_vm6 }
0x1260   :  { %vm1649_vm13 = vmand %vm1641_vm2, %vm365_vm7  ;;  %v1619_v30 = vpop.permute.xlu0 %1618  ;;  %v1617_v13 = vpop.permute.xlu1 %1616  ;;  %v10422_v36 = vsel %vm13446_vm10, 1.0, %v12843_v0  ;;  %vm16209_vm10 = vcmask 261120  }
0x1261   :  { %vm1657_vm15 = vmor %vm1633_vm14, %vm1649_vm13  ;;  %vm1636_vm4 = vcmp.lt.f32.partialorder %v13383_v5, %v1619_v30  ;;  %vm1644_vm9 = vcmp.eq.f32.partialorder %v13383_v5, %v1619_v30  ;;  %vm1643_vm5 = vcmp.eq.f32.partialorder %v13383_v5, %v1617_v13  ;;  %vm1635_vm11 = vcmp.lt.f32.partialorder %v13383_v5, %v1617_v13 }
0x1262   :  { %vm1652_vm1 = vmand %vm1644_vm9, %vm16207_vm12  ;;  %v10421_v14 = vsel %vm1657_vm15, 1.0, %v12843_v0 }
0x1263   :  { %vm1660_vm2 = vmor %vm1636_vm4, %vm1652_vm1  ;;  %v1679_v32 = vpack.c.bf16 %v10421_v14, %v10420_v31 }
0x1264   :  { %vm1651_vm6 = vmand %vm1643_vm5, %vm16208_vm3  ;;  %v1621_v33 = vpop.permute.xlu1 %1620  ;;  %v10424_v60 = vsel %vm1660_vm2, 1.0, %v12843_v0 }
0x1265   :  { %vm1659_vm14 = vmor %vm1635_vm11, %vm1651_vm6  ;;  %1688 = vrot.lane.b32.xlu1 %v1679_v32, %s12846_s25  ;;  %vm1637_vm13 = vcmp.lt.f32.partialorder %v13383_v5, %v1621_v33  ;;  %vm1645_vm9 = vcmp.eq.f32.partialorder %v13383_v5, %v1621_v33 }
0x1266   :  { %vm1653_vm12 = vmand %vm1645_vm9, %vm365_vm7  ;;  %v10423_v35 = vsel %vm1659_vm14, 1.0, %v12843_v0 }
0x1267   :  { %vm1661_vm8 = vmor %vm1637_vm13, %vm1653_vm12  ;;  %v1680_v38 = vpack.c.bf16 %v10423_v35, %v10422_v36 }
0x1268   :  { %v10425_v39 = vsel %vm1661_vm8, 1.0, %v12843_v0  ;;  %vm16210_vm15 = vmmov %vm16209_vm10 }
0x1269   :  { %1690 = vrot.lane.b32.xlu0 %v1680_v38, %s12846_s25  ;;  %v1681_v40 = vpack.c.bf16 %v10425_v39, %v10424_v60  ;;  %vm16211_vm4 = vmmov %vm16209_vm10 }
0x126a   :  { %vm16212_vm5 = vmmov %vm16211_vm4 }
0x126b   :  { %1692 = vrot.lane.b32.xlu1 %v1681_v40, %s12846_s25  ;;  %vm16213_vm6 = vmmov %vm16211_vm4 }
0x126c   :  { %vm16214_vm14 = vmmov %vm16211_vm4 }
0x126d   :  { %1837 = vrot.lane.b32.xlu0 %v13373_v15, %s12846_s25  ;;  %vm16215_vm9 = vmmov %vm16211_vm4 }
0x1271   :  { %1369 = vrot.lane.b32.xlu0 %v12657_v42, %s12845_s18 }
0x12cd   :  { %v1687_v43 = vpop.permute.xlu0 %1686 }
0x12ce   :  { %11516 = vmatprep.mubr.msk.bf16.mxu1 %vm16209_vm10, %v1687_v43  ;;  %vm16216_vm10 = vmmov %vm16211_vm4 }
0x12d7   :  { %v1689_v44 = vpop.permute.xlu1 %1688 }
0x12d8   :  { %11517 = vmatmul.mubr.msk.bf16.vlgmr.msra.gmra.mrb[20].mxu1 %vm16210_vm15, %v1689_v44 }
0x12d9   :  { %11525 = vmatpush3.bf16.msra.mxu1 %v12468_v10 }
0x12da   :  { %11526 = vmatprep.subr.bf16.mxu1 %v12843_v0 }
0x12db   :  { %v1691_v45 = vpop.permute.xlu0 %1690 }
0x12dc   :  { %11520 = vmatprep.mubr.msk.bf16.mxu1 %vm16211_vm4, %v1691_v45 }
0x12dd   :  { %v1693_v2 = vpop.permute.xlu1 %1692  ;;  %11527 = vmatpush3.bf16.msra.mxu1 %v12469_v46 }
0x12de   :  { %11528 = vmatprep.subr.bf16.mxu1 %v12843_v0 }
0x12e0   :  { %11521 = vmatmul.mubr.msk.bf16.gmra.mrb[24].mxu1 %vm16212_vm5, %v1693_v2  ;;  %vm16217_vm5 = vmmov %vm16211_vm4 }
0x12e1   :  { %11532 = vmatprep.mubr.msk.bf16.mxu1 %vm16167_vm0, %v12843_v0  ;;  %11529 = vmatpush3.bf16.msra.mxu1 %v12470_v62 }
0x12e2   :  { %11530 = vmatprep.subr.bf16.mxu1 %v12843_v0 }
0x12e5   :  { %11531 = vmatpush3.bf16.msra.mxu1 %v12471_v47 }
0x12e6   :  { %11548 = vmatprep.subr.bf16.mxu1 %v12843_v0 }
0x13ab   :  { %v11518_v3 = vpop.f32.mrb[20].mxu1 }
0x13ac   :  { %v12208_v48 = vtrunc.f32 %v11518_v3  ;;  %v1740_v49 = vpop.f32.mrb[21].mxu1 }
0x13ad   :  { %v12204_v51 = vtrunc.f32 %v1740_v49  ;;  %v11519_v12 = vpop.f32.mrb[22].mxu1 }
0x13ae   :  { %v12209_v52 = vcvt.f32.s32 %v12208_v48  ;;  %v12210_v53 = vtrunc.f32 %v11519_v12  ;;  %v1743_v54 = vpop.f32.mrb[23].mxu1 }
0x13af   :  { %v12205_v5 = vcvt.f32.s32 %v12204_v51  ;;  %v12206_v59 = vtrunc.f32 %v1743_v54 }
0x13b0   :  { %vm1781_vm1 = vcmp.eq.s32.totalorder %v12209_v52, %v12947_v41  ;;  %v12211_v6 = vcvt.f32.s32 %v12210_v53 }
0x13b1   :  { %vm1779_vm11 = vcmp.eq.s32.totalorder %v12205_v5, %v12947_v41  ;;  %v12207_v63 = vcvt.f32.s32 %v12206_v59  ;;  %v10432_v61 = vsel %vm1781_vm1, 1.0, %v12843_v0  ;;  %vm16218_vm1 = vmmov %vm16211_vm4  ;;  %v12472_v59 = vld [vmem:[%s16152_s5] sm:$0xff]  }
0x13b2   :  { %v10430_v22 = vsel %vm1779_vm11, 1.0, %v12843_v0  ;;  %vm1782_vm2 = vcmp.eq.s32.totalorder %v12211_v6, %v12947_v41  ;;  %v1805_v27 = vmul.f32 %v10432_v61, %v13401_v18  ;;  %vm16219_vm11 = vmmov %vm16218_vm1  ;;  %11537 = vmatpush3.bf16.msra.mxu0 %v12472_v59  ;;  %v12473_v61 = vld [vmem:[%s16152_s5 + $0x8] sm:$0xff]  }
0x13b3   :  { %v1803_v1 = vmul.f32 %v10430_v22, %v13389_v7  ;;  %v10433_v23 = vsel %vm1782_vm2, 1.0, %v12843_v0  ;;  %vm1780_vm3 = vcmp.eq.s32.totalorder %v12207_v63, %v12947_v41  ;;  %v11522_v24 = vpop.f32.mrb[24].mxu1  ;;  %11538 = vmatprep.subr.bf16.mxu0 %v12843_v0  ;;  %vm16220_vm2 = vcmask 1041409  }
0x13b4   :  { %v10431_v9 = vsel %vm1780_vm3, 1.0, %v12843_v0  ;;  %v12216_v25 = vtrunc.f32 %v11522_v24  ;;  %v1756_v26 = vpop.f32.mrb[25].mxu1  ;;  %v1806_v13 = vmul.f32 %v10433_v23, %v13405_v19  ;;  %v1814_v18 = vsel %vm16215_vm9, %v1805_v27, 0.0  ;;  %v12474_v24 = vld [vmem:[%s16152_s5 + $0x10] sm:$0xff]   ;;  %vm16221_vm3 = vmmov %vm16218_vm1 }
0x13b5   :  { %v1804_v28 = vmul.f32 %v10431_v9, %v13395_v16  ;;  %v12212_v29 = vtrunc.f32 %v1756_v26  ;;  %v11523_v30 = vpop.f32.mrb[26].mxu1  ;;  %v1811_v14 = vsel %vm16213_vm6, %v1803_v1, 0.0  ;;  %vm16222_vm6 = vcmask 523264  }
0x13b6   :  { %v12217_v11 = vcvt.f32.s32 %v12216_v25  ;;  %v12218_v31 = vtrunc.f32 %v11523_v30  ;;  %v1759_v7 = vpop.f32.mrb[27].mxu1  ;;  %v1816_v40 = vsel %vm16216_vm10, %v1806_v13, 0.0  ;;  %11539 = vmatpush3.bf16.msra.mxu0 %v12473_v61  ;;  %vm16225_vm9 = vmmov %vm16222_vm6 }
0x13b7   :  { %v1812_v32 = vsel %vm16214_vm14, %v1804_v28, 0.0  ;;  %v12213_v33 = vcvt.f32.s32 %v12212_v29  ;;  %v12214_v36 = vtrunc.f32 %v1759_v7  ;;  %11540 = vmatprep.subr.bf16.mxu0 %v12843_v0  ;;  %vm16223_vm14 = vcmask 254976   ;;  %vm16228_vm10 = vmmov %vm16222_vm6 }
0x13b8   :  { %v1813_v35 = vadd.f32 %v1812_v32, %v1811_v14  ;;  %vm1785_vm13 = vcmp.eq.s32.totalorder %v12217_v11, %v12947_v41  ;;  %v12219_v38 = vcvt.f32.s32 %v12218_v31 }
0x13b9   :  { %vm1783_vm12 = vcmp.eq.s32.totalorder %v12213_v33, %v12947_v41  ;;  %v12215_v16 = vcvt.f32.s32 %v12214_v36  ;;  %v10436_v19 = vsel %vm1785_vm13, 1.0, %v12843_v0  ;;  %vm16224_vm13 = vmmov %vm16223_vm14 }
0x13ba   :  { %v1815_v60 = vadd.f32 %v1814_v18, %v1813_v35  ;;  %v10434_v39 = vsel %vm1783_vm12, 1.0, %v12843_v0  ;;  %vm1786_vm8 = vcmp.eq.s32.totalorder %v12219_v38, %v12947_v41  ;;  %v1809_v2 = vmul.f32 %v10436_v19, %v13407_v20  ;;  %11541 = vmatpush3.bf16.msra.mxu0 %v12474_v24  ;;  %v12476_v19 = vld [vmem:[%s16149_s2 + $0x20] sm:$0xff]   ;;  %vm16226_vm12 = vmmov %vm16224_vm13 }
0x13bb   :  { %v1807_v42 = vmul.f32 %v10434_v39, %v13393_v8  ;;  %vm1784_vm15 = vcmp.eq.s32.totalorder %v12215_v16, %v12947_v41  ;;  %v10437_v44 = vsel %vm1786_vm8, 1.0, %v12843_v0  ;;  %11542 = vmatprep.subr.bf16.mxu0 %v12843_v0  ;;  %v12477_v39 = vld [vmem:[%s16149_s2 + $0x28] sm:$0xff]   ;;  %vm16227_vm8 = vmmov %vm16218_vm1 }
0x13bc   :  { %v1817_v43 = vadd.f32 %v1816_v40, %v1815_v60  ;;  %v10435_v45 = vsel %vm1784_vm15, 1.0, %v12843_v0  ;;  %v1810_v47 = vmul.f32 %v10437_v44, %v13417_v21  ;;  %v1827_v49 = vsel %vm16218_vm1, %v1809_v2, 0.0  ;;  %v1838_v21 = vpop.permute.xlu0 %1837  ;;  %v12478_v40 = vld [vmem:[%s16149_s2 + $0x30] sm:$0xff]   ;;  %v12479_v44 = vld [vmem:[%s16149_s2 + $0x38] sm:$0xff]  }
0x13bd   :  { %v1808_v10 = vmul.f32 %v10435_v45, %v13399_v17  ;;  %v1824_v62 = vsel %vm16211_vm4, %v1807_v42, 0.0 }
0x13be   :  { %v1818_v46 = vrot.slane %v1817_v43, 4  ;;  %v1829_v12 = vsel %vm16219_vm11, %v1810_v47, 0.0 }
0x13bf   :  { %v1825_v3 = vsel %vm16217_vm5, %v1808_v10, 0.0  ;;  %vm16229_vm5 = vcmp.ne.s32.totalorder %v12968_v55, 0 }
0x13c0   :  { %v1826_v48 = vadd.f32 %v1825_v3, %v1824_v62  ;;  %v1819_v8 = vadd.f32 %v1818_v46, %v1817_v43  ;;  %v1370_v9 = vpop.permute.xlu0 %1369  ;;  %v10458_v3 = vld [vmem:[%s16150_s3 + $0x1] ss:$0 sm:$0xff] }
0x13c1   :  { %v1372_v26 = vmul.f32 %v1370_v9, %v13179_v50  ;;  %v12475_v50 = vld [vmem:[%s16152_s5 + $0x18] sm:$0xff]  }
0x13c2   :  { %v1828_v51 = vadd.f32 %v1827_v49, %v1826_v48  ;;  %v1820_v53 = vrot.slane %v1819_v8, 2  ;;  %11543 = vmatpush3.bf16.msra.mxu0 %v12475_v50 }
0x13c3   :  { %11560 = vmatprep.subr.bf16.mxu0 %v12849_v4 }
0x13c4   :  { %v1830_v52 = vadd.f32 %v1829_v12, %v1828_v51  ;;  %v1821_v20 = vadd.f32 %v1820_v53, %v1819_v8 }
0x13c6   :  { %v1831_v54 = vrot.slane %v1830_v52, 4  ;;  %v1822_v6 = vrot.slane %v1821_v20, 1 }
0x13c8   :  { %v1832_v5 = vadd.f32 %v1831_v54, %v1830_v52  ;;  %v1823_v1 = vadd.f32 %v1822_v6, %v1821_v20 }
0x13ca   :  { %v1833_v17 = vrot.slane %v1832_v5, 2 }
0x13cc   :  { %v1834_v63 = vadd.f32 %v1833_v17, %v1832_v5 }
0x13ce   :  { %v1835_v22 = vrot.slane %v1834_v63, 1 }
0x13d0   :  { %v1836_v23 = vadd.f32 %v1835_v22, %v1834_v63 }
0x13d2   :  { %v1842_v25 = vsel %vm16220_vm2, %v1836_v23, %v1823_v1 }
0x13d3   :  { %1843 = vrot.lane.b32.xlu1 %v1842_v25, %s12845_s18 }
0x13d7   :  { %1374 = vrot.lane.b32.xlu1 %v1372_v26, %s12846_s25 }
0x1445   :  { %v1844_v27 = vpop.permute.xlu1 %1843 }
0x1446   :  { %v1846_v28 = vsel %vm16221_vm3, %v1838_v21, %v1844_v27 }
0x1447   :  { %v1855_v29 = vpack.c.bf16 %v1846_v28, %v1846_v28 }
0x1449   :  { %11533 = vmatmul.mubr.msk.bf16.vlgmr.msra.gmra.mrb[28].mxu1 %vm16222_vm6, %v1855_v29  ;;  %v1375_v30 = vpop.permute.xlu1 %1374  ;;  %vm16230_vm6 = vcmp.ne.s32.totalorder %v12970_v56, 0 }
0x144a   :  { %1377 = vst.msk [vmem:[#allocation2 + $0x2] sm:$0x3] %vm16223_vm14, %v1375_v30  ;;  %11556 = vmatprep.mubr.msk.bf16.mxu1 %vm16167_vm0, %v12843_v0  ;;  %11549 = vmatpush3.bf16.msra.mxu1 %v12476_v19 }
0x144b   :  { %1378 = vst.msk [vmem:[#allocation6] sm:$0x3] %vm16224_vm13, %v1375_v30  ;;  %11550 = vmatprep.subr.bf16.mxu1 %v12843_v0 }
0x144e   :  { %11551 = vmatpush3.bf16.msra.mxu1 %v12477_v39 }
0x144f   :  { %11552 = vmatprep.subr.bf16.mxu1 %v12843_v0 }
0x1451   :  { %v2016_v43 = vld [vmem:[#allocation2 + $0x2] sm:$0x3] }
0x1452   :  { %11553 = vmatpush3.bf16.msra.mxu1 %v12478_v40 }
0x1453   :  { %11554 = vmatprep.subr.bf16.mxu1 %v12843_v0 }
0x1456   :  { %11555 = vmatpush3.bf16.msra.mxu1 %v12479_v44 }
0x1457   :  { %11584 = vmatprep.subr.bf16.mxu1 %v12843_v0 }
0x151c   :  { %v1917_v13 = vpop.f32.mrb[28].mxu1 }
0x151d   :  { %v1923_v11 = vmax.f32 %v1917_v13, 0.0  ;;  %v11534_v31 = vpop.f32.mrb[29].mxu1 }
0x151e   :  { %v1920_v7 = vpop.f32.mrb[30].mxu1 }
0x151f   :  { %v1932_v14 = vpack.c.bf16 %v1923_v11, %v1923_v11  ;;  %v11535_v32 = vpop.f32.mrb[31].mxu1 }
0x1521   :  { %11545 = vmatmul.mubr.msk.bf16.vlgmr.msra.gmra.mrb[24].mxu0 %vm16225_vm9, %v1932_v14 }
0x1522   :  { %11561 = vmatpush3.bf16.msra.mxu0 %v12849_v4 }
0x1523   :  { %11562 = vmatprep.subr.bf16.mxu0 %v12849_v4 }
0x1526   :  { %11563 = vmatpush3.bf16.msra.mxu0 %v12849_v4 }
0x1527   :  { %11572 = vmatprep.subr.bf16.mxu0 %v12843_v0 }
0x15f4   :  { %v1994_v33 = vpop.f32.mrb[24].mxu0 }
0x15f5   :  { %v10448_v36 = vmul.f32 -1.442695, %v1994_v33  ;;  %v11546_v35 = vpop.f32.mrb[25].mxu0 }
0x15f6   :  { %v1997_v38 = vpop.f32.mrb[26].mxu0 }
0x15f7   :  { %12658 = vpow2.f32 %v10448_v36  ;;  %v11547_v18 = vpop.f32.mrb[27].mxu0 }
0x1601   :  { %v12659_v16 = vpop.eup %12658 }
0x1602   :  { %v2003_v60 = vadd.f32 1.0, %v12659_v16 }
0x1604   :  { %12660 = vrcp.f32 %v2003_v60 }
0x160e   :  { %v12661_v42 = vpop.eup %12660 }
0x160f   :  { %2007 = vrot.lane.b32.xlu0 %v12661_v42, %s12845_s18 }
0x1613   :  { %2018 = vrot.lane.b32.xlu0 %v2016_v43, %s12845_s18 }
0x1681   :  { %v2008_v45 = vpop.permute.xlu0 %2007 }
0x1682   :  { %v2010_v2 = vmul.f32 %v2008_v45, %v13373_v15 }
0x1684   :  { %2012 = vrot.lane.b32.xlu1 %v2010_v2, %s12846_s25 }
0x1685   :  { %v2019_v10 = vpop.permute.xlu0 %2018 }
0x16f6   :  { %v2013_v46 = vpop.permute.xlu1 %2012 }
0x16f7   :  { %2015 = vst.msk [vmem:[#allocation2] sm:$0x3] %vm16226_vm12, %v2013_v46  ;;  %v2021_v62 = vsel %vm16227_vm8, %v2013_v46, %v2019_v10  ;;  %vm16231_vm8 = vcmp.ne.s32.totalorder %v12972_v57, 0 }
0x16f8   :  { %v2030_v47 = vpack.c.bf16 %v2021_v62, %v2021_v62 }
0x16fa   :  { %11557 = vmatmul.mubr.msk.bf16.vlgmr.msra.gmra.mrb[32].mxu1 %vm16228_vm10, %v2030_v47 }
0x16fb   :  { %11592 = vmatprep.mubr.msk.bf16.mxu1 %vm16167_vm0, %v12843_v0 }
0x17cd   :  { %v2099_v48 = vpop.f32.mrb[32].mxu1 }
0x17ce   :  { %v2100_v15 = vadd.f32 %v10458_v3, %v2099_v48  ;;  %v11558_v8 = vpop.f32.mrb[33].mxu1 }
0x17cf   :  { %v2102_v49 = vpop.f32.mrb[34].mxu1 }
0x17d0   :  { %2112 = vrot.lane.b32.xlu1 %v2100_v15, %s12845_s18  ;;  %v11559_v51 = vpop.f32.mrb[35].mxu1  ;;  %v10464_v12 = vmul.f32 -1.442695, %v2100_v15 }
0x17d2   :  { %12662 = vpow2.f32 %v10464_v12 }
0x17dc   :  { %v12663_v52 = vpop.eup %12662 }
0x17dd   :  { %v2108_v53 = vadd.f32 1.0, %v12663_v52  ;;  %v12480_v52 = vld [vmem:[#allocation3 + $0x20] sm:$0xff]  }
0x17df   :  { %12664 = vrcp.f32 %v2108_v53  ;;  %v12481_v53 = vld [vmem:[#allocation3 + $0x28] sm:$0xff]  }
0x17e9   :  { %v12665_v54 = vpop.eup %12664 }
0x17ea   :  { %v2122_v6 = vsub.f32 1.0, %v12665_v54  ;;  %v2128_v61 = vmul.f32 %v12665_v54, %v2019_v10 }
0x1842   :  { %v2113_v20 = vpop.permute.xlu1 %2112 }
0x1843   :  { %v2115_v5 = vmul.f32 %v12665_v54, %v2113_v20  ;;  %v12482_v54 = vld [vmem:[#allocation3 + $0x30] sm:$0xff]   ;;  %v12483_v20 = vld [vmem:[#allocation3 + $0x38] sm:$0xff]  }
0x1845   :  { %2117 = vrot.lane.b32.xlu0 %v2115_v5, %s12841_s7 }
0x18b7   :  { %v2118_v17 = vpop.permute.xlu0 %2117 }
0x18b8   :  { %v2120_v59 = vadd.f32 %v2118_v17, %v2100_v15  ;;  %v2655_v15 = vld [vmem:[#allocation2] sm:$0x3] }
0x18ba   :  { %12666 = vtanh.f32 %v2120_v59 }
0x18c4   :  { %v12667_v21 = vpop.eup %12666 }
0x18c5   :  { %2124 = vrot.lane.b32.xlu1 %v12667_v21, %s12846_s25 }
0x1937   :  { %v2125_v63 = vpop.permute.xlu1 %2124 }
0x1938   :  { %v2127_v22 = vmul.f32 %v2125_v63, %v2122_v6 }
0x193a   :  { %v13584_v1 = vadd.f32 %v2128_v61, %v2127_v22 }
0x193c   :  { %v2137_v23 = vrot.slane %v13584_v1, %v12938_v34 }
0x193e   :  { %v2138_v24 = vcombine.high %v2137_v23, %v2137_v23  ;;  %v2145_v9 = vrot.slane %v2137_v23, %v12938_v34 }
0x1940   :  { %v2152_v25 = vrot.slane %v2138_v24, %v12938_v34  ;;  %v2156_v26 = vrot.slane %v2145_v9, %v12942_v37 }
0x1942   :  { %v13592_v27 = vrot.slane %v2152_v25, %v12942_v37  ;;  %2163 = vrot.lane.b32.xlu0 %v2156_v26, %s12846_s25 }
0x1944   :  { %2165 = vrot.lane.b32.xlu1 %v13592_v27, %s12846_s25 }
0x19b4   :  { %v2164_v28 = vpop.permute.xlu0 %2163 }
0x19b5   :  { %2169 = vxpose.xlu0.b32.start [1/4] (short) (narrow) %v2164_v28, 32 }
0x19b6   :  { %v2166_v29 = vpop.permute.xlu1 %2165 }
0x19b7   :  { %2201 = vxpose.xlu1.b32.start [1/4] (short) (narrow) %v2166_v29, 32 }
0x19b9   :  { %2170 = vxpose.xlu0.b32.cont [2/4] (short) (narrow) %v2164_v28, 32 }
0x19bb   :  { %2202 = vxpose.xlu1.b32.cont [2/4] (short) (narrow) %v2166_v29, 32 }
0x19bd   :  { %2171 = vxpose.xlu0.b32.cont [3/4] (short) (narrow) %v2164_v28, 32 }
0x19bf   :  { %2203 = vxpose.xlu1.b32.cont [3/4] (short) (narrow) %v2166_v29, 32 }
0x19c1   :  { %2172 = vxpose.xlu0.b32.end [4/4] (short) (narrow) %v2164_v28, 32 }
0x19c3   :  { %2204 = vxpose.xlu1.b32.end [4/4] (short) (narrow) %v2166_v29, 32 }
0x1a35   :  { %v13597_v30 = vpop.trf.xlu0 }
0x1a36   :  { %2241 = vrot.lane.b32.xlu0 %v13597_v30, %s12845_s18 }
0x1a37   :  { %v13601_v50 = vpop.trf.xlu1 }
0x1a39   :  { %v13603_v13 = vpop.trf.xlu0 }
0x1a3a   :  { %2243 = vrot.lane.b32.xlu1 %v13603_v13, %s12845_s18 }
0x1a3b   :  { %v13607_v11 = vpop.trf.xlu1 }
0x1a3d   :  { %v13609_v31 = vpop.trf.xlu0 }
0x1a3e   :  { %2245 = vrot.lane.b32.xlu0 %v13609_v31, %s12845_s18 }
0x1a3f   :  { %v13615_v14 = vpop.trf.xlu1 }
0x1a41   :  { %v13613_v7 = vpop.trf.xlu0 }
0x1a42   :  { %2247 = vrot.lane.b32.xlu1 %v13613_v7, %s12845_s18  ;;  %2249 = vrot.lane.b32.xlu0 %v13601_v50, %s12845_s18 }
0x1a43   :  { %v13625_v32 = vpop.trf.xlu1 }
0x1a46   :  { %2251 = vrot.lane.b32.xlu1 %v13607_v11, %s12845_s18  ;;  %2253 = vrot.lane.b32.xlu0 %v13615_v14, %s12845_s18 }
0x1a4a   :  { %2255 = vrot.lane.b32.xlu1 %v13625_v32, %s12845_s18 }
0x1aa8   :  { %v2242_v33 = vpop.permute.xlu0 %2241 }
0x1aa9   :  { %vm2273_vm15 = vcmp.eq.f32.partialorder %v2156_v26, %v2242_v33  ;;  %vm2265_vm4 = vcmp.lt.f32.partialorder %v2156_v26, %v2242_v33 }
0x1aaa   :  { %vm2281_vm1 = vmand %vm2273_vm15, %vm16229_vm5 }
0x1aab   :  { %vm2289_vm11 = vmor %vm2265_vm4, %vm2281_vm1 }
0x1aac   :  { %v2244_v36 = vpop.permute.xlu1 %2243  ;;  %v10465_v35 = vsel %vm2289_vm11, 1.0, %v12843_v0  ;;  %vm16232_vm11 = vcmp.ne.s32.totalorder %v12968_v55, 0 }
0x1aad   :  { %vm2266_vm2 = vcmp.lt.f32.partialorder %v2156_v26, %v2244_v36  ;;  %vm2274_vm3 = vcmp.eq.f32.partialorder %v2156_v26, %v2244_v36 }
0x1aae   :  { %vm2282_vm14 = vmand %vm2274_vm3, %vm16230_vm6 }
0x1aaf   :  { %vm2290_vm13 = vmor %vm2266_vm2, %vm2282_vm14 }
0x1ab0   :  { %v10466_v38 = vsel %vm2290_vm13, 1.0, %v12843_v0  ;;  %v2246_v18 = vpop.permute.xlu0 %2245 }
0x1ab1   :  { %v2313_v16 = vpack.c.bf16 %v10466_v38, %v10465_v35  ;;  %vm2275_vm9 = vcmp.eq.f32.partialorder %v2156_v26, %v2246_v18  ;;  %vm2267_vm12 = vcmp.lt.f32.partialorder %v2156_v26, %v2246_v18 }
0x1ab2   :  { %vm2283_vm10 = vmand %vm2275_vm9, %vm16231_vm8 }
0x1ab3   :  { %2321 = vrot.lane.b32.xlu0 %v2313_v16, %s12846_s25  ;;  %vm2291_vm15 = vmor %vm2267_vm12, %vm2283_vm10  ;;  %vm16235_vm10 = vcmp.ne.s32.totalorder %v12972_v57, 0 }
0x1ab4   :  { %v2250_v60 = vpop.permute.xlu0 %2249  ;;  %v2248_v19 = vpop.permute.xlu1 %2247  ;;  %v10467_v43 = vsel %vm2291_vm15, 1.0, %v12843_v0 }
0x1ab5   :  { %vm2269_vm4 = vcmp.lt.f32.partialorder %v13592_v27, %v2250_v60  ;;  %vm2277_vm5 = vcmp.eq.f32.partialorder %v13592_v27, %v2250_v60  ;;  %vm2276_vm1 = vcmp.eq.f32.partialorder %v2156_v26, %v2248_v19  ;;  %vm2268_vm3 = vcmp.lt.f32.partialorder %v2156_v26, %v2248_v19 }
0x1ab6   :  { %vm2285_vm2 = vmand %vm2277_vm5, %vm16232_vm11  ;;  %vm16236_vm11 = vcmp.ne.s32.totalorder %v12970_v56, 0 }
0x1ab7   :  { %vm13642_vm6 = vmor %vm2269_vm4, %vm2285_vm2 }
0x1ab8   :  { %vm2284_vm14 = vmand %vm2276_vm1, %vm365_vm7  ;;  %v2254_v40 = vpop.permute.xlu0 %2253  ;;  %v2252_v42 = vpop.permute.xlu1 %2251  ;;  %v10469_v10 = vsel %vm13642_vm6, 1.0, %v12843_v0  ;;  %vm16237_vm6 = vcmask 261120  }
0x1ab9   :  { %vm2292_vm13 = vmor %vm2268_vm3, %vm2284_vm14  ;;  %vm2271_vm9 = vcmp.lt.f32.partialorder %v13592_v27, %v2254_v40  ;;  %vm2279_vm12 = vcmp.eq.f32.partialorder %v13592_v27, %v2254_v40  ;;  %vm2278_vm8 = vcmp.eq.f32.partialorder %v13592_v27, %v2252_v42  ;;  %vm2270_vm5 = vcmp.lt.f32.partialorder %v13592_v27, %v2252_v42 }
0x1aba   :  { %v10468_v44 = vsel %vm2292_vm13, 1.0, %v12843_v0  ;;  %vm2287_vm4 = vmand %vm2279_vm12, %vm16235_vm10 }
0x1abb   :  { %v2314_v45 = vpack.c.bf16 %v10468_v44, %v10467_v43  ;;  %vm2295_vm1 = vmor %vm2271_vm9, %vm2287_vm4 }
0x1abc   :  { %vm2286_vm2 = vmand %vm2278_vm8, %vm16236_vm11  ;;  %v2256_v2 = vpop.permute.xlu1 %2255  ;;  %v10471_v47 = vsel %vm2295_vm1, 1.0, %v12843_v0 }
0x1abd   :  { %vm2294_vm3 = vmor %vm2270_vm5, %vm2286_vm2  ;;  %2323 = vrot.lane.b32.xlu1 %v2314_v45, %s12846_s25  ;;  %vm2272_vm14 = vcmp.lt.f32.partialorder %v13592_v27, %v2256_v2  ;;  %vm2280_vm15 = vcmp.eq.f32.partialorder %v13592_v27, %v2256_v2 }
0x1abe   :  { %v10470_v46 = vsel %vm2294_vm3, 1.0, %v12843_v0  ;;  %vm2288_vm13 = vmand %vm2280_vm15, %vm365_vm7 }
0x1abf   :  { %v2315_v62 = vpack.c.bf16 %v10470_v46, %v10469_v10  ;;  %vm2296_vm9 = vmor %vm2272_vm14, %vm2288_vm13 }
0x1ac0   :  { %v10472_v3 = vsel %vm2296_vm9, 1.0, %v12843_v0  ;;  %vm16238_vm12 = vmmov %vm16237_vm6 }
0x1ac1   :  { %v2316_v48 = vpack.c.bf16 %v10472_v3, %v10471_v47  ;;  %2325 = vrot.lane.b32.xlu0 %v2315_v62, %s12846_s25  ;;  %vm16239_vm8 = vmmov %vm16237_vm6 }
0x1ac2   :  { %vm16240_vm10 = vmmov %vm16237_vm6 }
0x1ac3   :  { %2327 = vrot.lane.b32.xlu1 %v2316_v48, %s12846_s25  ;;  %vm16241_vm2 = vmmov %vm16237_vm6 }
0x1ac4   :  { %vm16242_vm3 = vmmov %vm16241_vm2 }
0x1ac5   :  { %2472 = vrot.lane.b32.xlu0 %v13584_v1, %s12846_s25  ;;  %vm16243_vm15 = vmmov %vm16241_vm2 }
0x1ac9   :  { %2657 = vrot.lane.b32.xlu0 %v2655_v15, %s12845_s18 }
0x1b25   :  { %v2322_v8 = vpop.permute.xlu0 %2321 }
0x1b26   :  { %11564 = vmatprep.mubr.msk.bf16.mxu0 %vm16237_vm6, %v2322_v8  ;;  %vm16244_vm6 = vmmov %vm16241_vm2 }
0x1b2f   :  { %v2324_v49 = vpop.permute.xlu1 %2323 }
0x1b30   :  { %11565 = vmatmul.mubr.msk.bf16.vlgmr.msra.gmra.mrb[28].mxu0 %vm16238_vm12, %v2324_v49 }
0x1b31   :  { %11573 = vmatpush3.bf16.msra.mxu0 %v12480_v52 }
0x1b32   :  { %11574 = vmatprep.subr.bf16.mxu0 %v12843_v0 }
0x1b33   :  { %v2326_v51 = vpop.permute.xlu0 %2325 }
0x1b34   :  { %11568 = vmatprep.mubr.msk.bf16.mxu0 %vm16239_vm8, %v2326_v51  ;;  %vm16245_vm8 = vmmov %vm16241_vm2 }
0x1b35   :  { %v2328_v12 = vpop.permute.xlu1 %2327  ;;  %11575 = vmatpush3.bf16.msra.mxu0 %v12481_v53 }
0x1b36   :  { %11576 = vmatprep.subr.bf16.mxu0 %v12843_v0 }
0x1b38   :  { %11569 = vmatmul.mubr.msk.bf16.gmra.mrb[32].mxu0 %vm16240_vm10, %v2328_v12  ;;  %vm16246_vm10 = vmmov %vm16241_vm2 }
0x1b39   :  { %11580 = vmatprep.mubr.msk.bf16.mxu0 %vm16167_vm0, %v12843_v0  ;;  %11577 = vmatpush3.bf16.msra.mxu0 %v12482_v54 }
0x1b3a   :  { %11578 = vmatprep.subr.bf16.mxu0 %v12843_v0 }
0x1b3d   :  { %11579 = vmatpush3.bf16.msra.mxu0 %v12483_v20 }
0x1b3e   :  { %11596 = vmatprep.subr.bf16.mxu0 %v12843_v0 }
0x1c03   :  { %v11566_v5 = vpop.f32.mrb[28].mxu0 }
0x1c04   :  { %v12224_v17 = vtrunc.f32 %v11566_v5  ;;  %v2375_v59 = vpop.f32.mrb[29].mxu0 }
0x1c05   :  { %v12220_v21 = vtrunc.f32 %v2375_v59  ;;  %v11567_v6 = vpop.f32.mrb[30].mxu0 }
0x1c06   :  { %v12225_v63 = vcvt.f32.s32 %v12224_v17  ;;  %v12226_v61 = vtrunc.f32 %v11567_v6  ;;  %v2378_v22 = vpop.f32.mrb[31].mxu0 }
0x1c07   :  { %v12221_v23 = vcvt.f32.s32 %v12220_v21  ;;  %v12222_v24 = vtrunc.f32 %v2378_v22 }
0x1c08   :  { %vm2416_vm4 = vcmp.eq.s32.totalorder %v12225_v63, %v12947_v41  ;;  %v12227_v9 = vcvt.f32.s32 %v12226_v61 }
0x1c09   :  { %vm2414_vm5 = vcmp.eq.s32.totalorder %v12221_v23, %v12947_v41  ;;  %v12223_v25 = vcvt.f32.s32 %v12222_v24  ;;  %v10479_v26 = vsel %vm2416_vm4, 1.0, %v12843_v0  ;;  %vm16247_vm4 = vmmov %vm16241_vm2 }
0x1c0a   :  { %v10477_v27 = vsel %vm2414_vm5, 1.0, %v12843_v0  ;;  %vm2417_vm1 = vcmp.eq.s32.totalorder %v12227_v9, %v12947_v41  ;;  %v2440_v18 = vmul.f32 %v10479_v26, %v13609_v31  ;;  %vm16248_vm5 = vmmov %vm16241_vm2 }
0x1c0b   :  { %v2438_v28 = vmul.f32 %v10477_v27, %v13597_v30  ;;  %v10480_v29 = vsel %vm2417_vm1, 1.0, %v12843_v0  ;;  %vm2415_vm11 = vcmp.eq.s32.totalorder %v12223_v25, %v12947_v41  ;;  %v11570_v33 = vpop.f32.mrb[32].mxu0  ;;  %vm16249_vm1 = vcmask 1041409   ;;  %v12488_v27 = vld [vmem:[%s16152_s5 + $0x20] sm:$0xff]  }
0x1c0c   :  { %v10478_v36 = vsel %vm2415_vm11, 1.0, %v12843_v0  ;;  %v12232_v35 = vtrunc.f32 %v11570_v33  ;;  %v2391_v38 = vpop.f32.mrb[33].mxu0  ;;  %v2441_v39 = vmul.f32 %v10480_v29, %v13613_v7  ;;  %v2449_v31 = vsel %vm16243_vm15, %v2440_v18, 0.0  ;;  %11585 = vmatpush3.bf16.msra.mxu1 %v12488_v27  ;;  %v12490_v29 = vld [vmem:[%s16152_s5 + $0x30] sm:$0xff]   ;;  %v2473_v33 = vpop.permute.xlu0 %2472  ;;  %vm16250_vm11 = vmmov %vm16241_vm2 }
0x1c0d   :  { %v2439_v16 = vmul.f32 %v10478_v36, %v13603_v13  ;;  %v12228_v60 = vtrunc.f32 %v2391_v38  ;;  %v11571_v19 = vpop.f32.mrb[34].mxu0  ;;  %v2446_v43 = vsel %vm16241_vm2, %v2438_v28, 0.0  ;;  %v12489_v28 = vld [vmem:[%s16152_s5 + $0x28] sm:$0xff]   ;;  %11586 = vmatprep.subr.bf16.mxu1 %v12843_v0  ;;  %v12484_v38 = vld [vmem:[%s16149_s2] sm:$0xff]   ;;  %vm16251_vm2 = vcmask 523264  }
0x1c0e   :  { %v12233_v40 = vcvt.f32.s32 %v12232_v35  ;;  %v12234_v42 = vtrunc.f32 %v11571_v19  ;;  %v2394_v30 = vpop.f32.mrb[35].mxu0  ;;  %v2451_v3 = vsel %vm16244_vm6, %v2441_v39, 0.0  ;;  %v10504_v19 = vld [vmem:[%s16147_s0 + $0x4] sm:$0x3]  ;;  %vm16253_vm15 = vmmov %vm16251_vm2  ;;  %vm16254_vm6 = vcmp.ne.s32.totalorder %v12968_v55, 0 }
0x1c0f   :  { %v2447_v44 = vsel %vm16242_vm3, %v2439_v16, 0.0  ;;  %v12229_v45 = vcvt.f32.s32 %v12228_v60  ;;  %v12230_v2 = vtrunc.f32 %v2394_v30  ;;  %v12485_v16 = vld [vmem:[%s16149_s2 + $0x8] sm:$0xff]   ;;  %v12486_v60 = vld [vmem:[%s16149_s2 + $0x10] sm:$0xff]  }
0x1c10   :  { %v2448_v10 = vadd.f32 %v2447_v44, %v2446_v43  ;;  %vm2420_vm14 = vcmp.eq.s32.totalorder %v12233_v40, %v12947_v41  ;;  %v12235_v46 = vcvt.f32.s32 %v12234_v42  ;;  %11587 = vmatpush3.bf16.msra.mxu1 %v12489_v28  ;;  %v2658_v39 = vpop.permute.xlu0 %2657  ;;  %v12487_v40 = vld [vmem:[%s16149_s2 + $0x18] sm:$0xff]  }
0x1c11   :  { %vm2418_vm13 = vcmp.eq.s32.totalorder %v12229_v45, %v12947_v41  ;;  %v12231_v13 = vcvt.f32.s32 %v12230_v2  ;;  %v10483_v7 = vsel %vm2420_vm14, 1.0, %v12843_v0  ;;  %11588 = vmatprep.subr.bf16.mxu1 %v12843_v0  ;;  %v2660_v42 = vsel %vm16242_vm3, %v10504_v19, %v2658_v39  ;;  %vm16252_vm14 = vmmov %vm16251_vm2  ;;  %v12491_v43 = vld [vmem:[%s16152_s5 + $0x38] sm:$0xff]  }
0x1c12   :  { %v2450_v62 = vadd.f32 %v2449_v31, %v2448_v10  ;;  %v10481_v47 = vsel %vm2418_vm13, 1.0, %v12843_v0  ;;  %vm2421_vm9 = vcmp.eq.s32.totalorder %v12235_v46, %v12947_v41  ;;  %v2444_v51 = vmul.f32 %v10483_v7, %v13615_v14 }
0x1c13   :  { %v2442_v48 = vmul.f32 %v10481_v47, %v13601_v50  ;;  %vm2419_vm12 = vcmp.eq.s32.totalorder %v12231_v13, %v12947_v41  ;;  %v10484_v8 = vsel %vm2421_vm9, 1.0, %v12843_v0  ;;  %v2669_v30 = vpack.c.bf16 %v2660_v42, %v2660_v42  ;;  %v10505_v13 = vld [vmem:[%s16150_s3] ss:$0 sm:$0xff] }
0x1c14   :  { %v2452_v15 = vadd.f32 %v2451_v3, %v2450_v62  ;;  %v10482_v49 = vsel %vm2419_vm12, 1.0, %v12843_v0  ;;  %v2445_v54 = vmul.f32 %v10484_v8, %v13625_v32  ;;  %v2462_v17 = vsel %vm16247_vm4, %v2444_v51, 0.0  ;;  %11589 = vmatpush3.bf16.msra.mxu1 %v12490_v29 }
0x1c15   :  { %v2443_v12 = vmul.f32 %v10482_v49, %v13607_v11  ;;  %v2459_v53 = vsel %vm16245_vm8, %v2442_v48, 0.0  ;;  %11590 = vmatprep.subr.bf16.mxu1 %v12843_v0 }
0x1c16   :  { %v2453_v52 = vrot.slane %v2452_v15, 4  ;;  %v2464_v21 = vsel %vm16248_vm5, %v2445_v54, 0.0  ;;  %vm16255_vm5 = vcmp.ne.s32.totalorder %v12970_v56, 0 }
0x1c17   :  { %v2460_v20 = vsel %vm16246_vm10, %v2443_v12, 0.0 }
0x1c18   :  { %v2461_v5 = vadd.f32 %v2460_v20, %v2459_v53  ;;  %v2454_v50 = vadd.f32 %v2453_v52, %v2452_v15  ;;  %11591 = vmatpush3.bf16.msra.mxu1 %v12491_v43 }
0x1c19   :  { %11608 = vmatprep.subr.bf16.mxu1 %v12849_v4 }
0x1c1a   :  { %v2463_v59 = vadd.f32 %v2462_v17, %v2461_v5  ;;  %v2455_v63 = vrot.slane %v2454_v50, 2 }
0x1c1c   :  { %v2465_v6 = vadd.f32 %v2464_v21, %v2463_v59  ;;  %v2456_v14 = vadd.f32 %v2455_v63, %v2454_v50 }
0x1c1e   :  { %v2466_v61 = vrot.slane %v2465_v6, 4  ;;  %v2457_v23 = vrot.slane %v2456_v14, 1 }
0x1c20   :  { %v2467_v22 = vadd.f32 %v2466_v61, %v2465_v6  ;;  %v2458_v25 = vadd.f32 %v2457_v23, %v2456_v14 }
0x1c22   :  { %v2468_v11 = vrot.slane %v2467_v22, 2 }
0x1c24   :  { %v2469_v24 = vadd.f32 %v2468_v11, %v2467_v22 }
0x1c26   :  { %v2470_v9 = vrot.slane %v2469_v24, 1 }
0x1c28   :  { %v2471_v32 = vadd.f32 %v2470_v9, %v2469_v24 }
0x1c2a   :  { %v2477_v26 = vsel %vm16249_vm1, %v2471_v32, %v2458_v25 }
0x1c2b   :  { %2478 = vrot.lane.b32.xlu1 %v2477_v26, %s12845_s18 }
0x1c9d   :  { %v2479_v36 = vpop.permute.xlu1 %2478 }
0x1c9e   :  { %v2481_v35 = vsel %vm16250_vm11, %v2473_v33, %v2479_v36 }
0x1c9f   :  { %v2490_v18 = vpack.c.bf16 %v2481_v35, %v2481_v35 }
0x1ca1   :  { %11581 = vmatmul.mubr.msk.bf16.vlgmr.msra.gmra.mrb[36].mxu0 %vm16251_vm2, %v2490_v18 }
0x1ca2   :  { %11597 = vmatpush3.bf16.msra.mxu0 %v12484_v38  ;;  %11604 = vmatprep.mubr.msk.bf16.mxu0 %vm16167_vm0, %v12843_v0 }
0x1ca3   :  { %11598 = vmatprep.subr.bf16.mxu0 %v12843_v0 }
0x1ca6   :  { %11599 = vmatpush3.bf16.msra.mxu0 %v12485_v16 }
0x1ca7   :  { %11600 = vmatprep.subr.bf16.mxu0 %v12843_v0 }
0x1caa   :  { %11601 = vmatpush3.bf16.msra.mxu0 %v12486_v60 }
0x1cab   :  { %11602 = vmatprep.subr.bf16.mxu0 %v12843_v0 }
0x1cae   :  { %11603 = vmatpush3.bf16.msra.mxu0 %v12487_v40 }
0x1caf   :  { %11632 = vmatprep.subr.bf16.mxu0 %v12843_v0 }
0x1cb1   :  { %11605 = vmatmul.mubr.msk.bf16.vlgmr.msra.gmra.mrb[40].mxu0 %vm16252_vm14, %v2669_v30  ;;  %vm16256_vm14 = vcmp.ne.s32.totalorder %v12972_v57, 0 }
0x1cb2   :  { %11640 = vmatprep.mubr.msk.bf16.mxu0 %vm16167_vm0, %v12843_v0 }
0x1d74   :  { %v2552_v44 = vpop.f32.mrb[36].mxu0 }
0x1d75   :  { %v2558_v45 = vmax.f32 %v2552_v44, 0.0  ;;  %v11582_v2 = vpop.f32.mrb[37].mxu0 }
0x1d76   :  { %v2555_v10 = vpop.f32.mrb[38].mxu0 }
0x1d77   :  { %v2567_v46 = vpack.c.bf16 %v2558_v45, %v2558_v45  ;;  %v11583_v31 = vpop.f32.mrb[39].mxu0 }
0x1d79   :  { %11593 = vmatmul.mubr.msk.bf16.vlgmr.msra.gmra.mrb[36].mxu1 %vm16253_vm15, %v2567_v46 }
0x1d7a   :  { %11609 = vmatpush3.bf16.msra.mxu1 %v12849_v4 }
0x1d7b   :  { %11610 = vmatprep.subr.bf16.mxu1 %v12849_v4 }
0x1d7e   :  { %11611 = vmatpush3.bf16.msra.mxu1 %v12849_v4 }
0x1d7f   :  { %11620 = vmatprep.subr.bf16.mxu1 %v12843_v0 }
0x1d84   :  { %v2738_v62 = vpop.f32.mrb[40].mxu0 }
0x1d85   :  { %v2739_v7 = vadd.f32 %v10505_v13, %v2738_v62  ;;  %v11606_v47 = vpop.f32.mrb[41].mxu0 }
0x1d86   :  { %v2741_v3 = vpop.f32.mrb[42].mxu0 }
0x1d87   :  { %2751 = vrot.lane.b32.xlu1 %v2739_v7, %s12845_s18  ;;  %v11607_v48 = vpop.f32.mrb[43].mxu0  ;;  %v10511_v15 = vmul.f32 -1.442695, %v2739_v7 }
0x1d89   :  { %12668 = vpow2.f32 %v10511_v15 }
0x1d93   :  { %v12669_v8 = vpop.eup %12668 }
0x1d94   :  { %v2747_v49 = vadd.f32 1.0, %v12669_v8 }
0x1d96   :  { %12670 = vrcp.f32 %v2747_v49 }
0x1da0   :  { %v12671_v51 = vpop.eup %12670 }
0x1da1   :  { %v2761_v21 = vsub.f32 1.0, %v12671_v51  ;;  %v2767_v63 = vmul.f32 %v12671_v51, %v2658_v39 }
0x1df9   :  { %v2752_v12 = vpop.permute.xlu1 %2751 }
0x1dfa   :  { %v2754_v52 = vmul.f32 %v12671_v51, %v2752_v12 }
0x1dfc   :  { %2756 = vrot.lane.b32.xlu0 %v2754_v52, %s12841_s7 }
0x1e4c   :  { %v2629_v53 = vpop.f32.mrb[36].mxu1 }
0x1e4d   :  { %v11594_v54 = vpop.f32.mrb[37].mxu1  ;;  %v10503_v60 = vmul.f32 -1.442695, %v2629_v53 }
0x1e4e   :  { %v2632_v20 = vpop.f32.mrb[38].mxu1 }
0x1e4f   :  { %v11595_v5 = vpop.f32.mrb[39].mxu1 }
0x1e6e   :  { %v2757_v50 = vpop.permute.xlu0 %2756 }
0x1e6f   :  { %v2759_v17 = vadd.f32 %v2757_v50, %v2739_v7  ;;  %v12492_v50 = vld [vmem:[#allocation3] sm:$0xff]  }
0x1e71   :  { %12672 = vtanh.f32 %v2759_v17  ;;  %v12493_v17 = vld [vmem:[#allocation3 + $0x8] sm:$0xff]  }
0x1e72   :  { %12674 = vpow2.f32 %v10503_v60 }
0x1e7b   :  { %v12673_v59 = vpop.eup %12672 }
0x1e7c   :  { %2763 = vrot.lane.b32.xlu1 %v12673_v59, %s12846_s25  ;;  %v12675_v2 = vpop.eup %12674  ;;  %v12494_v59 = vld [vmem:[#allocation3 + $0x10] sm:$0xff]  }
0x1e7d   :  { %v2638_v13 = vadd.f32 1.0, %v12675_v2 }
0x1e7f   :  { %12676 = vrcp.f32 %v2638_v13 }
0x1e89   :  { %v12677_v52 = vpop.eup %12676 }
0x1eee   :  { %v2764_v6 = vpop.permute.xlu1 %2763 }
0x1eef   :  { %v2766_v61 = vmul.f32 %v2764_v6, %v2761_v21  ;;  %v12495_v21 = vld [vmem:[#allocation3 + $0x18] sm:$0xff]  }
0x1ef1   :  { %v13772_v14 = vadd.f32 %v2767_v63, %v2766_v61 }
0x1ef3   :  { %v2776_v22 = vrot.slane %v13772_v14, %v12938_v34 }
0x1ef5   :  { %v2777_v11 = vcombine.high %v2776_v22, %v2776_v22  ;;  %v2784_v23 = vrot.slane %v2776_v22, %v12938_v34 }
0x1ef7   :  { %v2791_v24 = vrot.slane %v2777_v11, %v12938_v34  ;;  %v13779_v9 = vrot.slane %v2784_v23, %v12942_v37 }
0x1ef9   :  { %v13782_v25 = vrot.slane %v2791_v24, %v12942_v37  ;;  %2802 = vrot.lane.b32.xlu0 %v13779_v9, %s12846_s25 }
0x1efb   :  { %2804 = vrot.lane.b32.xlu1 %v13782_v25, %s12846_s25 }
0x1f6b   :  { %v2803_v32 = vpop.permute.xlu0 %2802 }
0x1f6c   :  { %2808 = vxpose.xlu0.b32.start [1/4] (short) (narrow) %v2803_v32, 32 }
0x1f6d   :  { %v2805_v26 = vpop.permute.xlu1 %2804 }
0x1f6e   :  { %2840 = vxpose.xlu1.b32.start [1/4] (short) (narrow) %v2805_v26, 32 }
0x1f70   :  { %2809 = vxpose.xlu0.b32.cont [2/4] (short) (narrow) %v2803_v32, 32 }
0x1f72   :  { %2841 = vxpose.xlu1.b32.cont [2/4] (short) (narrow) %v2805_v26, 32 }
0x1f74   :  { %2810 = vxpose.xlu0.b32.cont [3/4] (short) (narrow) %v2803_v32, 32 }
0x1f76   :  { %2842 = vxpose.xlu1.b32.cont [3/4] (short) (narrow) %v2805_v26, 32 }
0x1f78   :  { %2811 = vxpose.xlu0.b32.end [4/4] (short) (narrow) %v2803_v32, 32 }
0x1f7a   :  { %2843 = vxpose.xlu1.b32.end [4/4] (short) (narrow) %v2805_v26, 32 }
0x1fec   :  { %v13788_v27 = vpop.trf.xlu0 }
0x1fed   :  { %2880 = vrot.lane.b32.xlu0 %v13788_v27, %s12845_s18 }
0x1fee   :  { %v13792_v28 = vpop.trf.xlu1 }
0x1ff0   :  { %v13794_v29 = vpop.trf.xlu0 }
0x1ff1   :  { %2882 = vrot.lane.b32.xlu1 %v13794_v29, %s12845_s18 }
0x1ff2   :  { %v13798_v33 = vpop.trf.xlu1 }
0x1ff4   :  { %v13800_v36 = vpop.trf.xlu0 }
0x1ff5   :  { %2884 = vrot.lane.b32.xlu0 %v13800_v36, %s12845_s18 }
0x1ff6   :  { %v13806_v38 = vpop.trf.xlu1 }
0x1ff8   :  { %v13804_v35 = vpop.trf.xlu0 }
0x1ff9   :  { %2886 = vrot.lane.b32.xlu1 %v13804_v35, %s12845_s18  ;;  %2888 = vrot.lane.b32.xlu0 %v13792_v28, %s12845_s18 }
0x1ffa   :  { %v13816_v18 = vpop.trf.xlu1 }
0x1ffd   :  { %2890 = vrot.lane.b32.xlu1 %v13798_v33, %s12845_s18  ;;  %2892 = vrot.lane.b32.xlu0 %v13806_v38, %s12845_s18 }
0x2001   :  { %2894 = vrot.lane.b32.xlu1 %v13816_v18, %s12845_s18 }
0x205f   :  { %v2881_v16 = vpop.permute.xlu0 %2880 }
0x2060   :  { %vm2912_vm13 = vcmp.eq.f32.partialorder %v13779_v9, %v2881_v16  ;;  %vm2904_vm9 = vcmp.lt.f32.partialorder %v13779_v9, %v2881_v16 }
0x2061   :  { %vm2920_vm12 = vmand %vm2912_vm13, %vm16254_vm6 }
0x2062   :  { %vm2928_vm8 = vmor %vm2904_vm9, %vm2920_vm12 }
0x2063   :  { %v2883_v19 = vpop.permute.xlu1 %2882  ;;  %v10512_v39 = vsel %vm2928_vm8, 1.0, %v12843_v0  ;;  %vm16259_vm8 = vcmp.ne.s32.totalorder %v12968_v55, 0 }
0x2064   :  { %vm2905_vm10 = vcmp.lt.f32.partialorder %v13779_v9, %v2883_v19  ;;  %vm2913_vm4 = vcmp.eq.f32.partialorder %v13779_v9, %v2883_v19 }
0x2065   :  { %vm2921_vm1 = vmand %vm2913_vm4, %vm16255_vm5 }
0x2066   :  { %vm2929_vm11 = vmor %vm2905_vm10, %vm2921_vm1 }
0x2067   :  { %v10513_v40 = vsel %vm2929_vm11, 1.0, %v12843_v0  ;;  %v2885_v42 = vpop.permute.xlu0 %2884 }
0x2068   :  { %v2952_v30 = vpack.c.bf16 %v10513_v40, %v10512_v39  ;;  %vm2914_vm2 = vcmp.eq.f32.partialorder %v13779_v9, %v2885_v42  ;;  %vm2906_vm3 = vcmp.lt.f32.partialorder %v13779_v9, %v2885_v42 }
0x2069   :  { %vm2922_vm15 = vmand %vm2914_vm2, %vm16256_vm14 }
0x206a   :  { %2960 = vrot.lane.b32.xlu0 %v2952_v30, %s12846_s25  ;;  %vm13835_vm13 = vmor %vm2906_vm3, %vm2922_vm15  ;;  %vm16262_vm15 = vcmp.ne.s32.totalorder %v12972_v57, 0 }
0x206b   :  { %v2889_v43 = vpop.permute.xlu0 %2888  ;;  %v2887_v44 = vpop.permute.xlu1 %2886  ;;  %v10514_v62 = vsel %vm13835_vm13, 1.0, %v12843_v0 }
0x206c   :  { %vm2908_vm9 = vcmp.lt.f32.partialorder %v13782_v25, %v2889_v43  ;;  %vm2916_vm6 = vcmp.eq.f32.partialorder %v13782_v25, %v2889_v43  ;;  %vm2915_vm12 = vcmp.eq.f32.partialorder %v13779_v9, %v2887_v44  ;;  %vm2907_vm4 = vcmp.lt.f32.partialorder %v13779_v9, %v2887_v44 }
0x206d   :  { %vm2924_vm10 = vmand %vm2916_vm6, %vm16259_vm8  ;;  %vm16263_vm8 = vcmp.ne.s32.totalorder %v12970_v56, 0 }
0x206e   :  { %vm13845_vm5 = vmor %vm2908_vm9, %vm2924_vm10 }
0x206f   :  { %vm2923_vm1 = vmand %vm2915_vm12, %vm365_vm7  ;;  %v2893_v46 = vpop.permute.xlu0 %2892  ;;  %v2891_v31 = vpop.permute.xlu1 %2890  ;;  %v10516_v48 = vsel %vm13845_vm5, 1.0, %v12843_v0  ;;  %vm16264_vm5 = vcmask 261120  }
0x2070   :  { %vm2931_vm11 = vmor %vm2907_vm4, %vm2923_vm1  ;;  %vm2910_vm2 = vcmp.lt.f32.partialorder %v13782_v25, %v2893_v46  ;;  %vm2918_vm3 = vcmp.eq.f32.partialorder %v13782_v25, %v2893_v46  ;;  %vm2917_vm14 = vcmp.eq.f32.partialorder %v13782_v25, %v2891_v31  ;;  %vm2909_vm6 = vcmp.lt.f32.partialorder %v13782_v25, %v2891_v31 }
0x2071   :  { %v10515_v7 = vsel %vm2931_vm11, 1.0, %v12843_v0  ;;  %vm2926_vm9 = vmand %vm2918_vm3, %vm16262_vm15 }
0x2072   :  { %v2953_v47 = vpack.c.bf16 %v10515_v7, %v10514_v62  ;;  %vm2934_vm12 = vmor %vm2910_vm2, %vm2926_vm9 }
0x2073   :  { %vm2925_vm10 = vmand %vm2917_vm14, %vm16263_vm8  ;;  %v2895_v3 = vpop.permute.xlu1 %2894  ;;  %v10518_v49 = vsel %vm2934_vm12, 1.0, %v12843_v0 }
0x2074   :  { %vm2933_vm4 = vmor %vm2909_vm6, %vm2925_vm10  ;;  %2962 = vrot.lane.b32.xlu1 %v2953_v47, %s12846_s25  ;;  %vm2911_vm1 = vcmp.lt.f32.partialorder %v13782_v25, %v2895_v3  ;;  %vm2919_vm13 = vcmp.eq.f32.partialorder %v13782_v25, %v2895_v3 }
0x2075   :  { %v10517_v15 = vsel %vm2933_vm4, 1.0, %v12843_v0  ;;  %vm2927_vm11 = vmand %vm2919_vm13, %vm365_vm7 }
0x2076   :  { %v2954_v8 = vpack.c.bf16 %v10517_v15, %v10516_v48  ;;  %vm2935_vm2 = vmor %vm2911_vm1, %vm2927_vm11 }
0x2077   :  { %v10519_v51 = vsel %vm2935_vm2, 1.0, %v12843_v0  ;;  %vm16265_vm3 = vmmov %vm16264_vm5 }
0x2078   :  { %v2955_v12 = vpack.c.bf16 %v10519_v51, %v10518_v49  ;;  %2964 = vrot.lane.b32.xlu0 %v2954_v8, %s12846_s25  ;;  %vm16266_vm14 = vmmov %vm16265_vm3 }
0x2079   :  { %vm16267_vm15 = vmmov %vm16265_vm3 }
0x207a   :  { %2966 = vrot.lane.b32.xlu1 %v2955_v12, %s12846_s25  ;;  %vm16268_vm10 = vmmov %vm16265_vm3 }
0x207b   :  { %vm16269_vm4 = vmmov %vm16265_vm3 }
0x207c   :  { %3111 = vrot.lane.b32.xlu0 %v13772_v14, %s12846_s25  ;;  %vm16270_vm13 = vmmov %vm16265_vm3 }
0x2080   :  { %2642 = vrot.lane.b32.xlu0 %v12677_v52, %s12845_s18 }
0x20dc   :  { %v2961_v53 = vpop.permute.xlu0 %2960 }
0x20dd   :  { %11612 = vmatprep.mubr.msk.bf16.mxu1 %vm16264_vm5, %v2961_v53  ;;  %vm16271_vm5 = vmmov %vm16265_vm3 }
0x20e6   :  { %v2963_v54 = vpop.permute.xlu1 %2962 }
0x20e7   :  { %11613 = vmatmul.mubr.msk.bf16.vlgmr.msra.gmra.mrb[40].mxu1 %vm16265_vm3, %v2963_v54 }
0x20e8   :  { %11621 = vmatpush3.bf16.msra.mxu1 %v12492_v50 }
0x20e9   :  { %11622 = vmatprep.subr.bf16.mxu1 %v12843_v0 }
0x20ea   :  { %v2965_v20 = vpop.permute.xlu0 %2964 }
0x20eb   :  { %11616 = vmatprep.mubr.msk.bf16.mxu1 %vm16266_vm14, %v2965_v20  ;;  %vm16272_vm14 = vmmov %vm16269_vm4 }
0x20ec   :  { %v2967_v5 = vpop.permute.xlu1 %2966  ;;  %11623 = vmatpush3.bf16.msra.mxu1 %v12493_v17 }
0x20ed   :  { %11624 = vmatprep.subr.bf16.mxu1 %v12843_v0 }
0x20ef   :  { %11617 = vmatmul.mubr.msk.bf16.gmra.mrb[44].mxu1 %vm16267_vm15, %v2967_v5  ;;  %vm16273_vm15 = vmmov %vm16269_vm4 }
0x20f0   :  { %11628 = vmatprep.mubr.msk.bf16.mxu1 %vm16167_vm0, %v12843_v0  ;;  %11625 = vmatpush3.bf16.msra.mxu1 %v12494_v59 }
0x20f1   :  { %11626 = vmatprep.subr.bf16.mxu1 %v12843_v0 }
0x20f4   :  { %11627 = vmatpush3.bf16.msra.mxu1 %v12495_v21 }
0x20f5   :  { %11644 = vmatprep.subr.bf16.mxu1 %v12843_v0 }
0x21ba   :  { %v11614_v6 = vpop.f32.mrb[40].mxu1 }
0x21bb   :  { %v12240_v63 = vtrunc.f32 %v11614_v6  ;;  %v3014_v61 = vpop.f32.mrb[41].mxu1 }
0x21bc   :  { %v12236_v22 = vtrunc.f32 %v3014_v61  ;;  %v11615_v11 = vpop.f32.mrb[42].mxu1 }
0x21bd   :  { %v12241_v23 = vcvt.f32.s32 %v12240_v63  ;;  %v12242_v24 = vtrunc.f32 %v11615_v11  ;;  %v3017_v9 = vpop.f32.mrb[43].mxu1 }
0x21be   :  { %v12237_v25 = vcvt.f32.s32 %v12236_v22  ;;  %v12238_v32 = vtrunc.f32 %v3017_v9 }
0x21bf   :  { %vm3055_vm9 = vcmp.eq.s32.totalorder %v12241_v23, %v12947_v41  ;;  %v12243_v26 = vcvt.f32.s32 %v12242_v24 }
0x21c0   :  { %vm3053_vm6 = vcmp.eq.s32.totalorder %v12237_v25, %v12947_v41  ;;  %v12239_v16 = vcvt.f32.s32 %v12238_v32  ;;  %v10526_v60 = vsel %vm3055_vm9, 1.0, %v12843_v0  ;;  %vm16274_vm9 = vmmov %vm16269_vm4  ;;  %v12496_v32 = vld [vmem:[%s16152_s5] sm:$0xff]  }
0x21c1   :  { %v10524_v19 = vsel %vm3053_vm6, 1.0, %v12843_v0  ;;  %vm3056_vm12 = vcmp.eq.s32.totalorder %v12243_v26, %v12947_v41  ;;  %v3079_v45 = vmul.f32 %v10526_v60, %v13800_v36  ;;  %vm16275_vm6 = vmmov %vm16269_vm4  ;;  %11633 = vmatpush3.bf16.msra.mxu0 %v12496_v32  ;;  %v12497_v60 = vld [vmem:[%s16152_s5 + $0x8] sm:$0xff]  }
0x21c2   :  { %v3077_v39 = vmul.f32 %v10524_v19, %v13788_v27  ;;  %v10527_v40 = vsel %vm3056_vm12, 1.0, %v12843_v0  ;;  %vm3054_vm8 = vcmp.eq.s32.totalorder %v12239_v16, %v12947_v41  ;;  %v11618_v42 = vpop.f32.mrb[44].mxu1  ;;  %11634 = vmatprep.subr.bf16.mxu0 %v12843_v0  ;;  %vm16276_vm12 = vcmask 1041409  }
0x21c3   :  { %v10525_v30 = vsel %vm3054_vm8, 1.0, %v12843_v0  ;;  %v12248_v43 = vtrunc.f32 %v11618_v42  ;;  %v3030_v44 = vpop.f32.mrb[45].mxu1  ;;  %v3080_v31 = vmul.f32 %v10527_v40, %v13804_v35  ;;  %v3088_v36 = vsel %vm16270_vm13, %v3079_v45, 0.0  ;;  %v12498_v42 = vld [vmem:[%s16152_s5 + $0x10] sm:$0xff]   ;;  %vm16277_vm8 = vmmov %vm16269_vm4 }
0x21c4   :  { %v3078_v2 = vmul.f32 %v10525_v30, %v13794_v29  ;;  %v12244_v10 = vtrunc.f32 %v3030_v44  ;;  %v11619_v46 = vpop.f32.mrb[46].mxu1  ;;  %v3085_v7 = vsel %vm16268_vm10, %v3077_v39, 0.0  ;;  %vm16278_vm10 = vcmask 523264  }
0x21c5   :  { %v12249_v13 = vcvt.f32.s32 %v12248_v43  ;;  %v12250_v62 = vtrunc.f32 %v11619_v46  ;;  %v3033_v27 = vpop.f32.mrb[47].mxu1  ;;  %v3090_v12 = vsel %vm16271_vm5, %v3080_v31, 0.0  ;;  %11635 = vmatpush3.bf16.msra.mxu0 %v12497_v60  ;;  %vm16281_vm13 = vmmov %vm16278_vm10 }
0x21c6   :  { %v3086_v47 = vsel %vm16269_vm4, %v3078_v2, 0.0  ;;  %v12245_v3 = vcvt.f32.s32 %v12244_v10  ;;  %v12246_v48 = vtrunc.f32 %v3033_v27  ;;  %11636 = vmatprep.subr.bf16.mxu0 %v12843_v0  ;;  %vm16279_vm4 = vcmask 254976  }
0x21c7   :  { %v3087_v15 = vadd.f32 %v3086_v47, %v3085_v7  ;;  %vm3059_vm1 = vcmp.eq.s32.totalorder %v12249_v13, %v12947_v41  ;;  %v12251_v8 = vcvt.f32.s32 %v12250_v62 }
0x21c8   :  { %vm3057_vm11 = vcmp.eq.s32.totalorder %v12245_v3, %v12947_v41  ;;  %v12247_v29 = vcvt.f32.s32 %v12246_v48  ;;  %v10530_v35 = vsel %vm3059_vm1, 1.0, %v12843_v0  ;;  %vm16280_vm1 = vmmov %vm16279_vm4 }
0x21c9   :  { %v3089_v49 = vadd.f32 %v3088_v36, %v3087_v15  ;;  %v10528_v51 = vsel %vm3057_vm11, 1.0, %v12843_v0  ;;  %vm3060_vm2 = vcmp.eq.s32.totalorder %v12251_v8, %v12947_v41  ;;  %v3083_v5 = vmul.f32 %v10530_v35, %v13806_v38  ;;  %11637 = vmatpush3.bf16.msra.mxu0 %v12498_v42  ;;  %v12500_v35 = vld [vmem:[%s16149_s2 + $0x20] sm:$0xff]   ;;  %vm16282_vm11 = vmmov %vm16280_vm1 }
0x21ca   :  { %v3081_v52 = vmul.f32 %v10528_v51, %v13792_v28  ;;  %vm3058_vm3 = vcmp.eq.s32.totalorder %v12247_v29, %v12947_v41  ;;  %v10531_v54 = vsel %vm3060_vm2, 1.0, %v12843_v0  ;;  %11638 = vmatprep.subr.bf16.mxu0 %v12843_v0  ;;  %v12501_v51 = vld [vmem:[%s16149_s2 + $0x28] sm:$0xff]   ;;  %vm16283_vm2 = vmmov %vm16271_vm5 }
0x21cb   :  { %v3091_v53 = vadd.f32 %v3090_v12, %v3089_v49  ;;  %v10529_v20 = vsel %vm3058_vm3, 1.0, %v12843_v0  ;;  %v3084_v21 = vmul.f32 %v10531_v54, %v13816_v18  ;;  %v3101_v61 = vsel %vm16274_vm9, %v3083_v5, 0.0  ;;  %v3112_v18 = vpop.permute.xlu0 %3111  ;;  %v12502_v12 = vld [vmem:[%s16149_s2 + $0x30] sm:$0xff]   ;;  %v12503_v54 = vld [vmem:[%s16149_s2 + $0x38] sm:$0xff]   ;;  %vm16284_vm5 = vmmov %vm16278_vm10 }
0x21cc   :  { %v3082_v50 = vmul.f32 %v10529_v20, %v13798_v33  ;;  %v3098_v59 = vsel %vm16272_vm14, %v3081_v52, 0.0 }
0x21cd   :  { %v3092_v17 = vrot.slane %v3091_v53, 4  ;;  %v3103_v11 = vsel %vm16275_vm6, %v3084_v21, 0.0 }
0x21ce   :  { %v3099_v6 = vsel %vm16273_vm15, %v3082_v50, 0.0  ;;  %vm16285_vm15 = vcmp.ne.s32.totalorder %v12968_v55, 0 }
0x21cf   :  { %v3100_v63 = vadd.f32 %v3099_v6, %v3098_v59  ;;  %v3093_v28 = vadd.f32 %v3092_v17, %v3091_v53  ;;  %v2643_v30 = vpop.permute.xlu0 %2642  ;;  %v10552_v6 = vld [vmem:[%s16150_s3 + $0x1] ss:$0 sm:$0xff] }
0x21d0   :  { %v2645_v44 = vmul.f32 %v2643_v30, %v13584_v1  ;;  %v12499_v1 = vld [vmem:[%s16152_s5 + $0x18] sm:$0xff]  }
0x21d1   :  { %v3102_v22 = vadd.f32 %v3101_v61, %v3100_v63  ;;  %v3094_v24 = vrot.slane %v3093_v28, 2  ;;  %11639 = vmatpush3.bf16.msra.mxu0 %v12499_v1 }
0x21d2   :  { %11656 = vmatprep.subr.bf16.mxu0 %v12849_v4 }
0x21d3   :  { %v3104_v23 = vadd.f32 %v3103_v11, %v3102_v22  ;;  %v3095_v38 = vadd.f32 %v3094_v24, %v3093_v28 }
0x21d5   :  { %v3105_v9 = vrot.slane %v3104_v23, 4  ;;  %v3096_v26 = vrot.slane %v3095_v38, 1 }
0x21d7   :  { %v3106_v25 = vadd.f32 %v3105_v9, %v3104_v23  ;;  %v3097_v39 = vadd.f32 %v3096_v26, %v3095_v38 }
0x21d9   :  { %v3107_v33 = vrot.slane %v3106_v25, 2 }
0x21db   :  { %v3108_v16 = vadd.f32 %v3107_v33, %v3106_v25 }
0x21dd   :  { %v3109_v19 = vrot.slane %v3108_v16, 1 }
0x21df   :  { %v3110_v40 = vadd.f32 %v3109_v19, %v3108_v16 }
0x21e1   :  { %v3116_v43 = vsel %vm16276_vm12, %v3110_v40, %v3097_v39 }
0x21e2   :  { %3117 = vrot.lane.b32.xlu1 %v3116_v43, %s12845_s18 }
0x21e6   :  { %2647 = vrot.lane.b32.xlu1 %v2645_v44, %s12846_s25 }
0x2254   :  { %v3118_v45 = vpop.permute.xlu1 %3117 }
0x2255   :  { %v3120_v2 = vsel %vm16277_vm8, %v3112_v18, %v3118_v45 }
0x2256   :  { %v3129_v10 = vpack.c.bf16 %v3120_v2, %v3120_v2 }
0x2258   :  { %11629 = vmatmul.mubr.msk.bf16.vlgmr.msra.gmra.mrb[48].mxu1 %vm16278_vm10, %v3129_v10  ;;  %v2648_v46 = vpop.permute.xlu1 %2647  ;;  %vm16286_vm10 = vcmp.ne.s32.totalorder %v12970_v56, 0 }
0x2259   :  { %2650 = vst.msk [vmem:[#allocation2 + $0x2] sm:$0x3] %vm16279_vm4, %v2648_v46  ;;  %11652 = vmatprep.mubr.msk.bf16.mxu1 %vm16167_vm0, %v12843_v0  ;;  %11645 = vmatpush3.bf16.msra.mxu1 %v12500_v35 }
0x225a   :  { %2652 = vst.msk [vmem:[#allocation6 + $0x2] sm:$0x3] %vm16280_vm1, %v2648_v46  ;;  %11646 = vmatprep.subr.bf16.mxu1 %v12843_v0 }
0x225d   :  { %11647 = vmatpush3.bf16.msra.mxu1 %v12501_v51 }
0x225e   :  { %11648 = vmatprep.subr.bf16.mxu1 %v12843_v0 }
0x2260   :  { %v3290_v53 = vld [vmem:[#allocation2 + $0x2] sm:$0x3] }
0x2261   :  { %11649 = vmatpush3.bf16.msra.mxu1 %v12502_v12 }
0x2262   :  { %11650 = vmatprep.subr.bf16.mxu1 %v12843_v0 }
0x2265   :  { %11651 = vmatpush3.bf16.msra.mxu1 %v12503_v54 }
0x2266   :  { %11680 = vmatprep.subr.bf16.mxu1 %v12843_v0 }
0x232b   :  { %v3191_v31 = vpop.f32.mrb[48].mxu1 }
0x232c   :  { %v3197_v13 = vmax.f32 %v3191_v31, 0.0  ;;  %v11630_v62 = vpop.f32.mrb[49].mxu1 }
0x232d   :  { %v3194_v27 = vpop.f32.mrb[50].mxu1 }
0x232e   :  { %v3206_v7 = vpack.c.bf16 %v3197_v13, %v3197_v13  ;;  %v11631_v47 = vpop.f32.mrb[51].mxu1 }
0x2330   :  { %11641 = vmatmul.mubr.msk.bf16.vlgmr.msra.gmra.mrb[44].mxu0 %vm16281_vm13, %v3206_v7 }
0x2331   :  { %11657 = vmatpush3.bf16.msra.mxu0 %v12849_v4 }
0x2332   :  { %11658 = vmatprep.subr.bf16.mxu0 %v12849_v4 }
0x2335   :  { %11659 = vmatpush3.bf16.msra.mxu0 %v12849_v4 }
0x2336   :  { %11668 = vmatprep.subr.bf16.mxu0 %v12843_v0 }
0x2403   :  { %v3268_v3 = vpop.f32.mrb[44].mxu0 }
0x2404   :  { %v10542_v48 = vmul.f32 -1.442695, %v3268_v3  ;;  %v11642_v15 = vpop.f32.mrb[45].mxu0 }
0x2405   :  { %v3271_v8 = vpop.f32.mrb[46].mxu0 }
0x2406   :  { %12678 = vpow2.f32 %v10542_v48  ;;  %v11643_v36 = vpop.f32.mrb[47].mxu0 }
0x2410   :  { %v12679_v29 = vpop.eup %12678 }
0x2411   :  { %v3277_v49 = vadd.f32 1.0, %v12679_v29 }
0x2413   :  { %12680 = vrcp.f32 %v3277_v49 }
0x241d   :  { %v12681_v52 = vpop.eup %12680 }
0x241e   :  { %3281 = vrot.lane.b32.xlu0 %v12681_v52, %s12845_s18 }
0x2422   :  { %3292 = vrot.lane.b32.xlu0 %v3290_v53, %s12845_s18 }
0x2490   :  { %v3282_v20 = vpop.permute.xlu0 %3281 }
0x2491   :  { %v3284_v5 = vmul.f32 %v3282_v20, %v13772_v14 }
0x2493   :  { %3286 = vrot.lane.b32.xlu1 %v3284_v5, %s12846_s25 }
0x2494   :  { %v3293_v50 = vpop.permute.xlu0 %3292 }
0x2505   :  { %v3287_v17 = vpop.permute.xlu1 %3286 }
0x2506   :  { %3289 = vst.msk [vmem:[#allocation2] sm:$0x3] %vm16282_vm11, %v3287_v17  ;;  %v3295_v59 = vsel %vm16283_vm2, %v3287_v17, %v3293_v50  ;;  %vm16287_vm2 = vcmp.ne.s32.totalorder %v12972_v57, 0 }
0x2507   :  { %v3304_v21 = vpack.c.bf16 %v3295_v59, %v3295_v59 }
0x2509   :  { %11653 = vmatmul.mubr.msk.bf16.vlgmr.msra.gmra.mrb[52].mxu1 %vm16284_vm5, %v3304_v21 }
0x250a   :  { %11688 = vmatprep.mubr.msk.bf16.mxu1 %vm16167_vm0, %v12843_v0 }
0x25dc   :  { %v3373_v63 = vpop.f32.mrb[52].mxu1 }
0x25dd   :  { %v3374_v14 = vadd.f32 %v10552_v6, %v3373_v63  ;;  %v11654_v28 = vpop.f32.mrb[53].mxu1 }
0x25de   :  { %v3376_v61 = vpop.f32.mrb[54].mxu1 }
0x25df   :  { %3386 = vrot.lane.b32.xlu1 %v3374_v14, %s12845_s18  ;;  %v11655_v22 = vpop.f32.mrb[55].mxu1  ;;  %v10558_v11 = vmul.f32 -1.442695, %v3374_v14 }
0x25e1   :  { %12682 = vpow2.f32 %v10558_v11 }
0x25eb   :  { %v12683_v23 = vpop.eup %12682 }
0x25ec   :  { %v3382_v24 = vadd.f32 1.0, %v12683_v23  ;;  %v12504_v23 = vld [vmem:[#allocation3 + $0x20] sm:$0xff]  }
0x25ee   :  { %12684 = vrcp.f32 %v3382_v24  ;;  %v12505_v24 = vld [vmem:[#allocation3 + $0x28] sm:$0xff]  }
0x25f8   :  { %v12685_v9 = vpop.eup %12684 }
0x25f9   :  { %v3396_v26 = vsub.f32 1.0, %v12685_v9  ;;  %v3402_v60 = vmul.f32 %v12685_v9, %v3293_v50 }
0x2651   :  { %v3387_v38 = vpop.permute.xlu1 %3386 }
0x2652   :  { %v3389_v25 = vmul.f32 %v12685_v9, %v3387_v38  ;;  %v12506_v9 = vld [vmem:[#allocation3 + $0x30] sm:$0xff]   ;;  %v12507_v38 = vld [vmem:[#allocation3 + $0x38] sm:$0xff]  }
0x2654   :  { %3391 = vrot.lane.b32.xlu0 %v3389_v25, %s12841_s7 }
0x26c6   :  { %v3392_v33 = vpop.permute.xlu0 %3391 }
0x26c7   :  { %v3394_v32 = vadd.f32 %v3392_v33, %v3374_v14  ;;  %v3929_v14 = vld [vmem:[#allocation2] sm:$0x3] }
0x26c9   :  { %12686 = vtanh.f32 %v3394_v32 }
0x26d3   :  { %v12687_v18 = vpop.eup %12686 }
0x26d4   :  { %3398 = vrot.lane.b32.xlu1 %v12687_v18, %s12846_s25 }
0x2746   :  { %v3399_v16 = vpop.permute.xlu1 %3398 }
0x2747   :  { %v3401_v19 = vmul.f32 %v3399_v16, %v3396_v26 }
0x2749   :  { %v13983_v39 = vadd.f32 %v3402_v60, %v3401_v19 }
0x274b   :  { %v3411_v40 = vrot.slane %v13983_v39, %v12938_v34 }
0x274d   :  { %v3412_v42 = vcombine.high %v3411_v40, %v3411_v40  ;;  %v3419_v30 = vrot.slane %v3411_v40, %v12938_v34 }
0x274f   :  { %v3426_v43 = vrot.slane %v3412_v42, %v12938_v34  ;;  %v3430_v44 = vrot.slane %v3419_v30, %v12942_v37 }
0x2751   :  { %v13991_v45 = vrot.slane %v3426_v43, %v12942_v37  ;;  %3437 = vrot.lane.b32.xlu0 %v3430_v44, %s12846_s25 }
0x2753   :  { %3439 = vrot.lane.b32.xlu1 %v13991_v45, %s12846_s25 }
0x27c3   :  { %v3438_v2 = vpop.permute.xlu0 %3437 }
0x27c4   :  { %3443 = vxpose.xlu0.b32.start [1/4] (short) (narrow) %v3438_v2, 32 }
0x27c5   :  { %v3440_v10 = vpop.permute.xlu1 %3439 }
0x27c6   :  { %3475 = vxpose.xlu1.b32.start [1/4] (short) (narrow) %v3440_v10, 32 }
0x27c8   :  { %3444 = vxpose.xlu0.b32.cont [2/4] (short) (narrow) %v3438_v2, 32 }
0x27ca   :  { %3476 = vxpose.xlu1.b32.cont [2/4] (short) (narrow) %v3440_v10, 32 }
0x27cc   :  { %3445 = vxpose.xlu0.b32.cont [3/4] (short) (narrow) %v3438_v2, 32 }
0x27ce   :  { %3477 = vxpose.xlu1.b32.cont [3/4] (short) (narrow) %v3440_v10, 32 }
0x27d0   :  { %3446 = vxpose.xlu0.b32.end [4/4] (short) (narrow) %v3438_v2, 32 }
0x27d2   :  { %3478 = vxpose.xlu1.b32.end [4/4] (short) (narrow) %v3440_v10, 32 }
0x2844   :  { %v13996_v46 = vpop.trf.xlu0 }
0x2845   :  { %3515 = vrot.lane.b32.xlu0 %v13996_v46, %s12845_s18 }
0x2846   :  { %v14000_v1 = vpop.trf.xlu1 }
0x2848   :  { %v14002_v31 = vpop.trf.xlu0 }
0x2849   :  { %3517 = vrot.lane.b32.xlu1 %v14002_v31, %s12845_s18 }
0x284a   :  { %v14006_v13 = vpop.trf.xlu1 }
0x284c   :  { %v14008_v62 = vpop.trf.xlu0 }
0x284d   :  { %3519 = vrot.lane.b32.xlu0 %v14008_v62, %s12845_s18 }
0x284e   :  { %v14014_v7 = vpop.trf.xlu1 }
0x2850   :  { %v14012_v27 = vpop.trf.xlu0 }
0x2851   :  { %3521 = vrot.lane.b32.xlu1 %v14012_v27, %s12845_s18  ;;  %3523 = vrot.lane.b32.xlu0 %v14000_v1, %s12845_s18 }
0x2852   :  { %v14024_v47 = vpop.trf.xlu1 }
0x2855   :  { %3525 = vrot.lane.b32.xlu1 %v14006_v13, %s12845_s18  ;;  %3527 = vrot.lane.b32.xlu0 %v14014_v7, %s12845_s18 }
0x2859   :  { %3529 = vrot.lane.b32.xlu1 %v14024_v47, %s12845_s18 }
0x28b7   :  { %v3516_v3 = vpop.permute.xlu0 %3515 }
0x28b8   :  { %vm3547_vm3 = vcmp.eq.f32.partialorder %v3430_v44, %v3516_v3  ;;  %vm3539_vm14 = vcmp.lt.f32.partialorder %v3430_v44, %v3516_v3 }
0x28b9   :  { %vm3555_vm9 = vmand %vm3547_vm3, %vm16285_vm15 }
0x28ba   :  { %vm3563_vm6 = vmor %vm3539_vm14, %vm3555_vm9 }
0x28bb   :  { %v3518_v48 = vpop.permute.xlu1 %3517  ;;  %v10559_v15 = vsel %vm3563_vm6, 1.0, %v12843_v0  ;;  %vm16288_vm6 = vcmp.ne.s32.totalorder %v12968_v55, 0 }
0x28bc   :  { %vm3540_vm12 = vcmp.lt.f32.partialorder %v3430_v44, %v3518_v48  ;;  %vm3548_vm8 = vcmp.eq.f32.partialorder %v3430_v44, %v3518_v48 }
0x28bd   :  { %vm3556_vm4 = vmand %vm3548_vm8, %vm16286_vm10 }
0x28be   :  { %vm3564_vm1 = vmor %vm3540_vm12, %vm3556_vm4 }
0x28bf   :  { %v10560_v8 = vsel %vm3564_vm1, 1.0, %v12843_v0  ;;  %v3520_v36 = vpop.permute.xlu0 %3519 }
0x28c0   :  { %v3587_v29 = vpack.c.bf16 %v10560_v8, %v10559_v15  ;;  %vm3549_vm13 = vcmp.eq.f32.partialorder %v3430_v44, %v3520_v36  ;;  %vm3541_vm11 = vcmp.lt.f32.partialorder %v3430_v44, %v3520_v36 }
0x28c1   :  { %vm3557_vm5 = vmand %vm3549_vm13, %vm16287_vm2 }
0x28c2   :  { %3595 = vrot.lane.b32.xlu0 %v3587_v29, %s12846_s25  ;;  %vm3565_vm3 = vmor %vm3541_vm11, %vm3557_vm5  ;;  %vm16291_vm5 = vcmp.ne.s32.totalorder %v12972_v57, 0 }
0x28c3   :  { %v3524_v49 = vpop.permute.xlu0 %3523  ;;  %v3522_v35 = vpop.permute.xlu1 %3521  ;;  %v10561_v53 = vsel %vm3565_vm3, 1.0, %v12843_v0 }
0x28c4   :  { %vm3543_vm14 = vcmp.lt.f32.partialorder %v13991_v45, %v3524_v49  ;;  %vm3551_vm15 = vcmp.eq.f32.partialorder %v13991_v45, %v3524_v49  ;;  %vm3550_vm9 = vcmp.eq.f32.partialorder %v3430_v44, %v3522_v35  ;;  %vm3542_vm8 = vcmp.lt.f32.partialorder %v3430_v44, %v3522_v35 }
0x28c5   :  { %vm3559_vm12 = vmand %vm3551_vm15, %vm16288_vm6  ;;  %vm16292_vm6 = vcmp.ne.s32.totalorder %v12970_v56, 0 }
0x28c6   :  { %vm14041_vm10 = vmor %vm3543_vm14, %vm3559_vm12 }
0x28c7   :  { %vm3558_vm4 = vmand %vm3550_vm9, %vm365_vm7  ;;  %v3528_v12 = vpop.permute.xlu0 %3527  ;;  %v3526_v52 = vpop.permute.xlu1 %3525  ;;  %v10563_v50 = vsel %vm14041_vm10, 1.0, %v12843_v0  ;;  %vm16293_vm10 = vcmask 261120  }
0x28c8   :  { %vm3566_vm1 = vmor %vm3542_vm8, %vm3558_vm4  ;;  %vm3545_vm13 = vcmp.lt.f32.partialorder %v13991_v45, %v3528_v12  ;;  %vm3553_vm11 = vcmp.eq.f32.partialorder %v13991_v45, %v3528_v12  ;;  %vm3552_vm2 = vcmp.eq.f32.partialorder %v13991_v45, %v3526_v52  ;;  %vm3544_vm15 = vcmp.lt.f32.partialorder %v13991_v45, %v3526_v52 }
0x28c9   :  { %v10562_v54 = vsel %vm3566_vm1, 1.0, %v12843_v0  ;;  %vm3561_vm14 = vmand %vm3553_vm11, %vm16291_vm5 }
0x28ca   :  { %v3588_v20 = vpack.c.bf16 %v10562_v54, %v10561_v53  ;;  %vm3569_vm9 = vmor %vm3545_vm13, %vm3561_vm14 }
0x28cb   :  { %vm3560_vm12 = vmand %vm3552_vm2, %vm16292_vm6  ;;  %v3530_v5 = vpop.permute.xlu1 %3529  ;;  %v10565_v21 = vsel %vm3569_vm9, 1.0, %v12843_v0 }
0x28cc   :  { %vm3568_vm8 = vmor %vm3544_vm15, %vm3560_vm12  ;;  %3597 = vrot.lane.b32.xlu1 %v3588_v20, %s12846_s25  ;;  %vm3546_vm4 = vcmp.lt.f32.partialorder %v13991_v45, %v3530_v5  ;;  %vm3554_vm3 = vcmp.eq.f32.partialorder %v13991_v45, %v3530_v5 }
0x28cd   :  { %v10564_v17 = vsel %vm3568_vm8, 1.0, %v12843_v0  ;;  %vm3562_vm1 = vmand %vm3554_vm3, %vm365_vm7 }
0x28ce   :  { %v3589_v59 = vpack.c.bf16 %v10564_v17, %v10563_v50  ;;  %vm3570_vm13 = vmor %vm3546_vm4, %vm3562_vm1 }
0x28cf   :  { %v10566_v6 = vsel %vm3570_vm13, 1.0, %v12843_v0  ;;  %vm16294_vm11 = vmmov %vm16293_vm10 }
0x28d0   :  { %v3590_v63 = vpack.c.bf16 %v10566_v6, %v10565_v21  ;;  %3599 = vrot.lane.b32.xlu0 %v3589_v59, %s12846_s25  ;;  %vm16295_vm2 = vmmov %vm16293_vm10 }
0x28d1   :  { %vm16296_vm5 = vmmov %vm16295_vm2 }
0x28d2   :  { %3601 = vrot.lane.b32.xlu1 %v3590_v63, %s12846_s25  ;;  %vm16297_vm12 = vmmov %vm16295_vm2 }
0x28d3   :  { %vm16298_vm8 = vmmov %vm16295_vm2 }
0x28d4   :  { %3746 = vrot.lane.b32.xlu0 %v13983_v39, %s12846_s25  ;;  %vm16299_vm3 = vmmov %vm16295_vm2 }
0x28d8   :  { %3931 = vrot.lane.b32.xlu0 %v3929_v14, %s12845_s18 }
0x2934   :  { %v3596_v28 = vpop.permute.xlu0 %3595 }
0x2935   :  { %11660 = vmatprep.mubr.msk.bf16.mxu0 %vm16293_vm10, %v3596_v28  ;;  %vm16300_vm10 = vmmov %vm16295_vm2 }
0x293e   :  { %v3598_v61 = vpop.permute.xlu1 %3597 }
0x293f   :  { %11661 = vmatmul.mubr.msk.bf16.vlgmr.msra.gmra.mrb[48].mxu0 %vm16294_vm11, %v3598_v61 }
0x2940   :  { %11669 = vmatpush3.bf16.msra.mxu0 %v12504_v23 }
0x2941   :  { %11670 = vmatprep.subr.bf16.mxu0 %v12843_v0 }
0x2942   :  { %v3600_v22 = vpop.permute.xlu0 %3599 }
0x2943   :  { %11664 = vmatprep.mubr.msk.bf16.mxu0 %vm16295_vm2, %v3600_v22 }
0x2944   :  { %v3602_v11 = vpop.permute.xlu1 %3601  ;;  %11671 = vmatpush3.bf16.msra.mxu0 %v12505_v24 }
0x2945   :  { %11672 = vmatprep.subr.bf16.mxu0 %v12843_v0 }
0x2947   :  { %11665 = vmatmul.mubr.msk.bf16.gmra.mrb[52].mxu0 %vm16296_vm5, %v3602_v11  ;;  %vm16301_vm5 = vmmov %vm16295_vm2 }
0x2948   :  { %11676 = vmatprep.mubr.msk.bf16.mxu0 %vm16167_vm0, %v12843_v0  ;;  %11673 = vmatpush3.bf16.msra.mxu0 %v12506_v9 }
0x2949   :  { %11674 = vmatprep.subr.bf16.mxu0 %v12843_v0 }
0x294c   :  { %11675 = vmatpush3.bf16.msra.mxu0 %v12507_v38 }
0x294d   :  { %11692 = vmatprep.subr.bf16.mxu0 %v12843_v0 }
0x2a12   :  { %v11662_v25 = vpop.f32.mrb[48].mxu0 }
0x2a13   :  { %v12256_v33 = vtrunc.f32 %v11662_v25  ;;  %v3649_v32 = vpop.f32.mrb[49].mxu0 }
0x2a14   :  { %v12252_v18 = vtrunc.f32 %v3649_v32  ;;  %v11663_v26 = vpop.f32.mrb[50].mxu0 }
0x2a15   :  { %v12257_v16 = vcvt.f32.s32 %v12256_v33  ;;  %v12258_v60 = vtrunc.f32 %v11663_v26  ;;  %v3652_v19 = vpop.f32.mrb[51].mxu0 }
0x2a16   :  { %v12253_v40 = vcvt.f32.s32 %v12252_v18  ;;  %v12254_v42 = vtrunc.f32 %v3652_v19 }
0x2a17   :  { %vm3690_vm14 = vcmp.eq.s32.totalorder %v12257_v16, %v12947_v41  ;;  %v12259_v30 = vcvt.f32.s32 %v12258_v60 }
0x2a18   :  { %vm3688_vm15 = vcmp.eq.s32.totalorder %v12253_v40, %v12947_v41  ;;  %v12255_v43 = vcvt.f32.s32 %v12254_v42  ;;  %v10573_v44 = vsel %vm3690_vm14, 1.0, %v12843_v0  ;;  %vm16302_vm14 = vmmov %vm16295_vm2 }
0x2a19   :  { %v10571_v45 = vsel %vm3688_vm15, 1.0, %v12843_v0  ;;  %vm3691_vm9 = vcmp.eq.s32.totalorder %v12259_v30, %v12947_v41  ;;  %v3714_v36 = vmul.f32 %v10573_v44, %v14008_v62  ;;  %vm16303_vm15 = vmmov %vm16295_vm2 }
0x2a1a   :  { %v3712_v2 = vmul.f32 %v10571_v45, %v13996_v46  ;;  %v10574_v10 = vsel %vm3691_vm9, 1.0, %v12843_v0  ;;  %vm3689_vm6 = vcmp.eq.s32.totalorder %v12255_v43, %v12947_v41  ;;  %v11666_v3 = vpop.f32.mrb[52].mxu0  ;;  %vm16304_vm9 = vcmask 1041409   ;;  %v12512_v45 = vld [vmem:[%s16152_s5 + $0x20] sm:$0xff]  }
0x2a1b   :  { %v10572_v48 = vsel %vm3689_vm6, 1.0, %v12843_v0  ;;  %v12264_v15 = vtrunc.f32 %v11666_v3  ;;  %v3665_v8 = vpop.f32.mrb[53].mxu0  ;;  %v3715_v51 = vmul.f32 %v10574_v10, %v14012_v27  ;;  %v3723_v62 = vsel %vm16299_vm3, %v3714_v36, 0.0  ;;  %11681 = vmatpush3.bf16.msra.mxu1 %v12512_v45  ;;  %v12514_v10 = vld [vmem:[%s16152_s5 + $0x30] sm:$0xff]   ;;  %v3747_v3 = vpop.permute.xlu0 %3746  ;;  %vm16305_vm6 = vmmov %vm16295_vm2 }
0x2a1c   :  { %v3713_v29 = vmul.f32 %v10572_v48, %v14002_v31  ;;  %v12260_v49 = vtrunc.f32 %v3665_v8  ;;  %v11667_v35 = vpop.f32.mrb[54].mxu0  ;;  %v3720_v53 = vsel %vm16297_vm12, %v3712_v2, 0.0  ;;  %v12513_v2 = vld [vmem:[%s16152_s5 + $0x28] sm:$0xff]   ;;  %11682 = vmatprep.subr.bf16.mxu1 %v12843_v0  ;;  %v12508_v8 = vld [vmem:[%s16149_s2] sm:$0xff]   ;;  %vm16306_vm12 = vcmask 523264  }
0x2a1d   :  { %v12265_v12 = vcvt.f32.s32 %v12264_v15  ;;  %v12266_v52 = vtrunc.f32 %v11667_v35  ;;  %v3668_v46 = vpop.f32.mrb[55].mxu0  ;;  %v3725_v6 = vsel %vm16300_vm10, %v3715_v51, 0.0  ;;  %v10598_v35 = vld [vmem:[%s16147_s0 + $0x6] sm:$0x3]  ;;  %vm16310_vm10 = vcmp.ne.s32.totalorder %v12968_v55, 0 }
0x2a1e   :  { %v3721_v54 = vsel %vm16298_vm8, %v3713_v29, 0.0  ;;  %v12261_v20 = vcvt.f32.s32 %v12260_v49  ;;  %v12262_v5 = vtrunc.f32 %v3668_v46  ;;  %v12509_v29 = vld [vmem:[%s16149_s2 + $0x8] sm:$0xff]   ;;  %v12510_v49 = vld [vmem:[%s16149_s2 + $0x10] sm:$0xff]   ;;  %vm16307_vm8 = vmmov %vm16295_vm2 }
0x2a1f   :  { %v3722_v50 = vadd.f32 %v3721_v54, %v3720_v53  ;;  %vm3694_vm4 = vcmp.eq.s32.totalorder %v12265_v12, %v12947_v41  ;;  %v12267_v17 = vcvt.f32.s32 %v12266_v52  ;;  %11683 = vmatpush3.bf16.msra.mxu1 %v12513_v2  ;;  %v3932_v51 = vpop.permute.xlu0 %3931  ;;  %v12511_v12 = vld [vmem:[%s16149_s2 + $0x18] sm:$0xff]  }
0x2a20   :  { %vm3692_vm1 = vcmp.eq.s32.totalorder %v12261_v20, %v12947_v41  ;;  %v12263_v31 = vcvt.f32.s32 %v12262_v5  ;;  %v10577_v27 = vsel %vm3694_vm4, 1.0, %v12843_v0  ;;  %11684 = vmatprep.subr.bf16.mxu1 %v12843_v0  ;;  %v3934_v52 = vsel %vm16307_vm8, %v10598_v35, %v3932_v51  ;;  %vm16308_vm4 = vmmov %vm16306_vm12  ;;  %v12515_v53 = vld [vmem:[%s16152_s5 + $0x38] sm:$0xff]  }
0x2a21   :  { %v3724_v59 = vadd.f32 %v3723_v62, %v3722_v50  ;;  %v10575_v21 = vsel %vm3692_vm1, 1.0, %v12843_v0  ;;  %vm3695_vm13 = vcmp.eq.s32.totalorder %v12267_v17, %v12947_v41  ;;  %v3718_v22 = vmul.f32 %v10577_v27, %v14014_v7  ;;  %vm16309_vm3 = vmmov %vm16308_vm4 }
0x2a22   :  { %v3716_v63 = vmul.f32 %v10575_v21, %v14000_v1  ;;  %vm3693_vm11 = vcmp.eq.s32.totalorder %v12263_v31, %v12947_v41  ;;  %v10578_v28 = vsel %vm3695_vm13, 1.0, %v12843_v0  ;;  %v3943_v46 = vpack.c.bf16 %v3934_v52, %v3934_v52  ;;  %v10599_v31 = vld [vmem:[%s16150_s3] ss:$0 sm:$0xff] }
0x2a23   :  { %v3726_v14 = vadd.f32 %v3725_v6, %v3724_v59  ;;  %v10576_v61 = vsel %vm3693_vm11, 1.0, %v12843_v0  ;;  %v3719_v9 = vmul.f32 %v10578_v28, %v14024_v47  ;;  %v3736_v33 = vsel %vm16302_vm14, %v3718_v22, 0.0  ;;  %11685 = vmatpush3.bf16.msra.mxu1 %v12514_v10 }
0x2a24   :  { %v3717_v11 = vmul.f32 %v10576_v61, %v14006_v13  ;;  %v3733_v24 = vsel %vm16295_vm2, %v3716_v63, 0.0  ;;  %11686 = vmatprep.subr.bf16.mxu1 %v12843_v0 }
0x2a25   :  { %v3727_v23 = vrot.slane %v3726_v14, 4  ;;  %v3738_v18 = vsel %vm16303_vm15, %v3719_v9, 0.0  ;;  %vm16311_vm15 = vcmp.ne.s32.totalorder %v12970_v56, 0 }
0x2a26   :  { %v3734_v38 = vsel %vm16301_vm5, %v3717_v11, 0.0 }
0x2a27   :  { %v3735_v25 = vadd.f32 %v3734_v38, %v3733_v24  ;;  %v3728_v1 = vadd.f32 %v3727_v23, %v3726_v14  ;;  %11687 = vmatpush3.bf16.msra.mxu1 %v12515_v53 }
0x2a28   :  { %11704 = vmatprep.subr.bf16.mxu1 %v12849_v4 }
0x2a29   :  { %v3737_v32 = vadd.f32 %v3736_v33, %v3735_v25  ;;  %v3729_v16 = vrot.slane %v3728_v1, 2 }
0x2a2b   :  { %v3739_v26 = vadd.f32 %v3738_v18, %v3737_v32  ;;  %v3730_v7 = vadd.f32 %v3729_v16, %v3728_v1 }
0x2a2d   :  { %v3740_v60 = vrot.slane %v3739_v26, 4  ;;  %v3731_v40 = vrot.slane %v3730_v7, 1 }
0x2a2f   :  { %v3741_v19 = vadd.f32 %v3740_v60, %v3739_v26  ;;  %v3732_v43 = vadd.f32 %v3731_v40, %v3730_v7 }
0x2a31   :  { %v3742_v13 = vrot.slane %v3741_v19, 2 }
0x2a33   :  { %v3743_v42 = vadd.f32 %v3742_v13, %v3741_v19 }
0x2a35   :  { %v3744_v30 = vrot.slane %v3743_v42, 1 }
0x2a37   :  { %v3745_v47 = vadd.f32 %v3744_v30, %v3743_v42 }
0x2a39   :  { %v3751_v44 = vsel %vm16304_vm9, %v3745_v47, %v3732_v43 }
0x2a3a   :  { %3752 = vrot.lane.b32.xlu1 %v3751_v44, %s12845_s18 }
0x2aac   :  { %v3753_v48 = vpop.permute.xlu1 %3752 }
0x2aad   :  { %v3755_v15 = vsel %vm16305_vm6, %v3747_v3, %v3753_v48 }
0x2aae   :  { %v3764_v36 = vpack.c.bf16 %v3755_v15, %v3755_v15 }
0x2ab0   :  { %11677 = vmatmul.mubr.msk.bf16.vlgmr.msra.gmra.mrb[56].mxu0 %vm16306_vm12, %v3764_v36 }
0x2ab1   :  { %11693 = vmatpush3.bf16.msra.mxu0 %v12508_v8  ;;  %11700 = vmatprep.mubr.msk.bf16.mxu0 %vm16167_vm0, %v12843_v0 }
0x2ab2   :  { %11694 = vmatprep.subr.bf16.mxu0 %v12843_v0 }
0x2ab5   :  { %11695 = vmatpush3.bf16.msra.mxu0 %v12509_v29 }
0x2ab6   :  { %11696 = vmatprep.subr.bf16.mxu0 %v12843_v0 }
0x2ab9   :  { %11697 = vmatpush3.bf16.msra.mxu0 %v12510_v49 }
0x2aba   :  { %11698 = vmatprep.subr.bf16.mxu0 %v12843_v0 }
0x2abd   :  { %11699 = vmatpush3.bf16.msra.mxu0 %v12511_v12 }
0x2abe   :  { %11728 = vmatprep.subr.bf16.mxu0 %v12843_v0 }
0x2ac0   :  { %11701 = vmatmul.mubr.msk.bf16.vlgmr.msra.gmra.mrb[60].mxu0 %vm16308_vm4, %v3943_v46  ;;  %vm16312_vm4 = vcmp.ne.s32.totalorder %v12972_v57, 0 }
0x2ac1   :  { %11736 = vmatprep.mubr.msk.bf16.mxu0 %vm16167_vm0, %v12843_v0 }
0x2b83   :  { %v3826_v54 = vpop.f32.mrb[56].mxu0 }
0x2b84   :  { %v3832_v20 = vmax.f32 %v3826_v54, 0.0  ;;  %v11678_v5 = vpop.f32.mrb[57].mxu0 }
0x2b85   :  { %v3829_v50 = vpop.f32.mrb[58].mxu0 }
0x2b86   :  { %v3841_v17 = vpack.c.bf16 %v3832_v20, %v3832_v20  ;;  %v11679_v62 = vpop.f32.mrb[59].mxu0 }
0x2b88   :  { %11689 = vmatmul.mubr.msk.bf16.vlgmr.msra.gmra.mrb[56].mxu1 %vm16309_vm3, %v3841_v17 }
0x2b89   :  { %11705 = vmatpush3.bf16.msra.mxu1 %v12849_v4 }
0x2b8a   :  { %11706 = vmatprep.subr.bf16.mxu1 %v12849_v4 }
0x2b8d   :  { %11707 = vmatpush3.bf16.msra.mxu1 %v12849_v4 }
0x2b8e   :  { %11716 = vmatprep.subr.bf16.mxu1 %v12843_v0 }
0x2b93   :  { %v4012_v59 = vpop.f32.mrb[60].mxu0 }
0x2b94   :  { %v4013_v27 = vadd.f32 %v10599_v31, %v4012_v59  ;;  %v11702_v21 = vpop.f32.mrb[61].mxu0 }
0x2b95   :  { %v4015_v6 = vpop.f32.mrb[62].mxu0 }
0x2b96   :  { %4025 = vrot.lane.b32.xlu1 %v4013_v27, %s12845_s18  ;;  %v11703_v63 = vpop.f32.mrb[63].mxu0  ;;  %v10605_v14 = vmul.f32 -1.442695, %v4013_v27 }
0x2b98   :  { %12688 = vpow2.f32 %v10605_v14 }
0x2ba2   :  { %v12689_v28 = vpop.eup %12688 }
0x2ba3   :  { %v4021_v61 = vadd.f32 1.0, %v12689_v28 }
0x2ba5   :  { %12690 = vrcp.f32 %v4021_v61 }
0x2baf   :  { %v12691_v22 = vpop.eup %12690 }
0x2bb0   :  { %v4035_v18 = vsub.f32 1.0, %v12691_v22  ;;  %v4041_v16 = vmul.f32 %v12691_v22, %v3932_v51 }
0x2c08   :  { %v4026_v11 = vpop.permute.xlu1 %4025 }
0x2c09   :  { %v4028_v23 = vmul.f32 %v12691_v22, %v4026_v11 }
0x2c0b   :  { %4030 = vrot.lane.b32.xlu0 %v4028_v23, %s12841_s7 }
0x2c5b   :  { %v3903_v24 = vpop.f32.mrb[56].mxu1 }
0x2c5c   :  { %v11690_v9 = vpop.f32.mrb[57].mxu1  ;;  %v10597_v49 = vmul.f32 -1.442695, %v3903_v24 }
0x2c5d   :  { %v3906_v38 = vpop.f32.mrb[58].mxu1 }
0x2c5e   :  { %v11691_v25 = vpop.f32.mrb[59].mxu1 }
0x2c7d   :  { %v4031_v1 = vpop.permute.xlu0 %4030 }
0x2c7e   :  { %v4033_v33 = vadd.f32 %v4031_v1, %v4013_v27  ;;  %v12516_v1 = vld [vmem:[#allocation3] sm:$0xff]  }
0x2c80   :  { %12692 = vtanh.f32 %v4033_v33  ;;  %v12517_v33 = vld [vmem:[#allocation3 + $0x8] sm:$0xff]  }
0x2c81   :  { %12694 = vpow2.f32 %v10597_v49 }
0x2c8a   :  { %v12693_v32 = vpop.eup %12692 }
0x2c8b   :  { %4037 = vrot.lane.b32.xlu1 %v12693_v32, %s12846_s25  ;;  %v12695_v5 = vpop.eup %12694  ;;  %v12518_v32 = vld [vmem:[#allocation3 + $0x10] sm:$0xff]  }
0x2c8c   :  { %v3912_v31 = vadd.f32 1.0, %v12695_v5 }
0x2c8e   :  { %12696 = vrcp.f32 %v3912_v31 }
0x2c98   :  { %v12697_v23 = vpop.eup %12696 }
0x2cfd   :  { %v4038_v26 = vpop.permute.xlu1 %4037 }
0x2cfe   :  { %v4040_v60 = vmul.f32 %v4038_v26, %v4035_v18  ;;  %v12519_v18 = vld [vmem:[#allocation3 + $0x18] sm:$0xff]  }
0x2d00   :  { %v14171_v7 = vadd.f32 %v4041_v16, %v4040_v60 }
0x2d02   :  { %v4050_v19 = vrot.slane %v14171_v7, %v12938_v34 }
0x2d04   :  { %v4051_v13 = vcombine.high %v4050_v19, %v4050_v19  ;;  %v4058_v40 = vrot.slane %v4050_v19, %v12938_v34 }
0x2d06   :  { %v4065_v42 = vrot.slane %v4051_v13, %v12938_v34  ;;  %v14178_v30 = vrot.slane %v4058_v40, %v12942_v37 }
0x2d08   :  { %v14181_v43 = vrot.slane %v4065_v42, %v12942_v37  ;;  %4076 = vrot.lane.b32.xlu0 %v14178_v30, %s12846_s25 }
0x2d0a   :  { %4078 = vrot.lane.b32.xlu1 %v14181_v43, %s12846_s25 }
0x2d7a   :  { %v4077_v47 = vpop.permute.xlu0 %4076 }
0x2d7b   :  { %4082 = vxpose.xlu0.b32.start [1/4] (short) (narrow) %v4077_v47, 32 }
0x2d7c   :  { %v4079_v44 = vpop.permute.xlu1 %4078 }
0x2d7d   :  { %4114 = vxpose.xlu1.b32.start [1/4] (short) (narrow) %v4079_v44, 32 }
0x2d7f   :  { %4083 = vxpose.xlu0.b32.cont [2/4] (short) (narrow) %v4077_v47, 32 }
0x2d81   :  { %4115 = vxpose.xlu1.b32.cont [2/4] (short) (narrow) %v4079_v44, 32 }
0x2d83   :  { %4084 = vxpose.xlu0.b32.cont [3/4] (short) (narrow) %v4077_v47, 32 }
0x2d85   :  { %4116 = vxpose.xlu1.b32.cont [3/4] (short) (narrow) %v4079_v44, 32 }
0x2d87   :  { %4085 = vxpose.xlu0.b32.end [4/4] (short) (narrow) %v4077_v47, 32 }
0x2d89   :  { %4117 = vxpose.xlu1.b32.end [4/4] (short) (narrow) %v4079_v44, 32 }
0x2dfb   :  { %v14187_v45 = vpop.trf.xlu0 }
0x2dfc   :  { %4154 = vrot.lane.b32.xlu0 %v14187_v45, %s12845_s18 }
0x2dfd   :  { %v14191_v2 = vpop.trf.xlu1 }
0x2dff   :  { %v14193_v10 = vpop.trf.xlu0 }
0x2e00   :  { %4156 = vrot.lane.b32.xlu1 %v14193_v10, %s12845_s18 }
0x2e01   :  { %v14197_v3 = vpop.trf.xlu1 }
0x2e03   :  { %v14199_v48 = vpop.trf.xlu0 }
0x2e04   :  { %4158 = vrot.lane.b32.xlu0 %v14199_v48, %s12845_s18 }
0x2e05   :  { %v14205_v8 = vpop.trf.xlu1 }
0x2e07   :  { %v14203_v15 = vpop.trf.xlu0 }
0x2e08   :  { %4160 = vrot.lane.b32.xlu1 %v14203_v15, %s12845_s18  ;;  %4162 = vrot.lane.b32.xlu0 %v14191_v2, %s12845_s18 }
0x2e09   :  { %v14215_v36 = vpop.trf.xlu1 }
0x2e0c   :  { %4164 = vrot.lane.b32.xlu1 %v14197_v3, %s12845_s18  ;;  %4166 = vrot.lane.b32.xlu0 %v14205_v8, %s12845_s18 }
0x2e10   :  { %4168 = vrot.lane.b32.xlu1 %v14215_v36, %s12845_s18 }
0x2e6e   :  { %v4155_v29 = vpop.permute.xlu0 %4154 }
0x2e6f   :  { %vm4186_vm1 = vcmp.eq.f32.partialorder %v14178_v30, %v4155_v29  ;;  %vm4178_vm13 = vcmp.lt.f32.partialorder %v14178_v30, %v4155_v29 }
0x2e70   :  { %vm4194_vm11 = vmand %vm4186_vm1, %vm16310_vm10 }
0x2e71   :  { %vm4202_vm2 = vmor %vm4178_vm13, %vm4194_vm11 }
0x2e72   :  { %v4157_v35 = vpop.permute.xlu1 %4156  ;;  %v10606_v51 = vsel %vm4202_vm2, 1.0, %v12843_v0  ;;  %vm16315_vm2 = vcmp.ne.s32.totalorder %v12968_v55, 0 }
0x2e73   :  { %vm4179_vm5 = vcmp.lt.f32.partialorder %v14178_v30, %v4157_v35  ;;  %vm4187_vm14 = vcmp.eq.f32.partialorder %v14178_v30, %v4157_v35 }
0x2e74   :  { %vm4195_vm9 = vmand %vm4187_vm14, %vm16311_vm15 }
0x2e75   :  { %vm4203_vm6 = vmor %vm4179_vm5, %vm4195_vm9 }
0x2e76   :  { %v10607_v12 = vsel %vm4203_vm6, 1.0, %v12843_v0  ;;  %v4159_v52 = vpop.permute.xlu0 %4158 }
0x2e77   :  { %v4226_v46 = vpack.c.bf16 %v10607_v12, %v10606_v51  ;;  %vm4188_vm12 = vcmp.eq.f32.partialorder %v14178_v30, %v4159_v52  ;;  %vm4180_vm8 = vcmp.lt.f32.partialorder %v14178_v30, %v4159_v52 }
0x2e78   :  { %vm4196_vm3 = vmand %vm4188_vm12, %vm16312_vm4 }
0x2e79   :  { %4234 = vrot.lane.b32.xlu0 %v4226_v46, %s12846_s25  ;;  %vm14234_vm1 = vmor %vm4180_vm8, %vm4196_vm3  ;;  %vm16318_vm3 = vcmp.ne.s32.totalorder %v12972_v57, 0 }
0x2e7a   :  { %v4163_v53 = vpop.permute.xlu0 %4162  ;;  %v4161_v54 = vpop.permute.xlu1 %4160  ;;  %v10608_v59 = vsel %vm14234_vm1, 1.0, %v12843_v0 }
0x2e7b   :  { %vm4182_vm13 = vcmp.lt.f32.partialorder %v14181_v43, %v4163_v53  ;;  %vm4190_vm10 = vcmp.eq.f32.partialorder %v14181_v43, %v4163_v53  ;;  %vm4189_vm11 = vcmp.eq.f32.partialorder %v14178_v30, %v4161_v54  ;;  %vm4181_vm14 = vcmp.lt.f32.partialorder %v14178_v30, %v4161_v54 }
0x2e7c   :  { %vm4198_vm5 = vmand %vm4190_vm10, %vm16315_vm2  ;;  %vm16319_vm2 = vcmp.ne.s32.totalorder %v12970_v56, 0 }
0x2e7d   :  { %vm14244_vm15 = vmor %vm4182_vm13, %vm4198_vm5 }
0x2e7e   :  { %vm4197_vm9 = vmand %vm4189_vm11, %vm365_vm7  ;;  %v4167_v17 = vpop.permute.xlu0 %4166  ;;  %v4165_v62 = vpop.permute.xlu1 %4164  ;;  %v10610_v63 = vsel %vm14244_vm15, 1.0, %v12843_v0  ;;  %vm16320_vm15 = vcmask 261120  }
0x2e7f   :  { %vm4205_vm6 = vmor %vm4181_vm14, %vm4197_vm9  ;;  %vm4184_vm12 = vcmp.lt.f32.partialorder %v14181_v43, %v4167_v17  ;;  %vm4192_vm8 = vcmp.eq.f32.partialorder %v14181_v43, %v4167_v17  ;;  %vm4191_vm4 = vcmp.eq.f32.partialorder %v14181_v43, %v4165_v62  ;;  %vm4183_vm10 = vcmp.lt.f32.partialorder %v14181_v43, %v4165_v62 }
0x2e80   :  { %v10609_v27 = vsel %vm4205_vm6, 1.0, %v12843_v0  ;;  %vm4200_vm13 = vmand %vm4192_vm8, %vm16318_vm3 }
0x2e81   :  { %v4227_v21 = vpack.c.bf16 %v10609_v27, %v10608_v59  ;;  %vm4208_vm11 = vmor %vm4184_vm12, %vm4200_vm13 }
0x2e82   :  { %vm4199_vm5 = vmand %vm4191_vm4, %vm16319_vm2  ;;  %v4169_v6 = vpop.permute.xlu1 %4168  ;;  %v10612_v61 = vsel %vm4208_vm11, 1.0, %v12843_v0 }
0x2e83   :  { %vm4207_vm14 = vmor %vm4183_vm10, %vm4199_vm5  ;;  %4236 = vrot.lane.b32.xlu1 %v4227_v21, %s12846_s25  ;;  %vm4185_vm9 = vcmp.lt.f32.partialorder %v14181_v43, %v4169_v6  ;;  %vm4193_vm1 = vcmp.eq.f32.partialorder %v14181_v43, %v4169_v6 }
0x2e84   :  { %v10611_v14 = vsel %vm4207_vm14, 1.0, %v12843_v0  ;;  %vm4201_vm6 = vmand %vm4193_vm1, %vm365_vm7 }
0x2e85   :  { %v4228_v28 = vpack.c.bf16 %v10611_v14, %v10610_v63  ;;  %vm4209_vm12 = vmor %vm4185_vm9, %vm4201_vm6 }
0x2e86   :  { %v10613_v22 = vsel %vm4209_vm12, 1.0, %v12843_v0  ;;  %vm16321_vm8 = vmmov %vm16320_vm15 }
0x2e87   :  { %v4229_v11 = vpack.c.bf16 %v10613_v22, %v10612_v61  ;;  %4238 = vrot.lane.b32.xlu0 %v4228_v28, %s12846_s25  ;;  %vm16322_vm4 = vmmov %vm16321_vm8 }
0x2e88   :  { %vm16323_vm3 = vmmov %vm16322_vm4 }
0x2e89   :  { %4240 = vrot.lane.b32.xlu1 %v4229_v11, %s12846_s25  ;;  %vm16324_vm5 = vmmov %vm16323_vm3 }
0x2e8a   :  { %vm16325_vm14 = vmmov %vm16323_vm3 }
0x2e8b   :  { %4385 = vrot.lane.b32.xlu0 %v14171_v7, %s12846_s25  ;;  %vm16326_vm1 = vmmov %vm16323_vm3 }
0x2e8f   :  { %3916 = vrot.lane.b32.xlu0 %v12697_v23, %s12845_s18 }
0x2eeb   :  { %v4235_v24 = vpop.permute.xlu0 %4234 }
0x2eec   :  { %11708 = vmatprep.mubr.msk.bf16.mxu1 %vm16320_vm15, %v4235_v24  ;;  %vm16327_vm15 = vmmov %vm16326_vm1 }
0x2ef5   :  { %v4237_v9 = vpop.permute.xlu1 %4236 }
0x2ef6   :  { %11709 = vmatmul.mubr.msk.bf16.vlgmr.msra.gmra.mrb[60].mxu1 %vm16321_vm8, %v4237_v9 }
0x2ef7   :  { %11717 = vmatpush3.bf16.msra.mxu1 %v12516_v1 }
0x2ef8   :  { %11718 = vmatprep.subr.bf16.mxu1 %v12843_v0 }
0x2ef9   :  { %v4239_v38 = vpop.permute.xlu0 %4238 }
0x2efa   :  { %11712 = vmatprep.mubr.msk.bf16.mxu1 %vm16322_vm4, %v4239_v38  ;;  %vm16328_vm4 = vmmov %vm16326_vm1 }
0x2efb   :  { %v4241_v25 = vpop.permute.xlu1 %4240  ;;  %11719 = vmatpush3.bf16.msra.mxu1 %v12517_v33 }
0x2efc   :  { %11720 = vmatprep.subr.bf16.mxu1 %v12843_v0 }
0x2efe   :  { %11713 = vmatmul.mubr.msk.bf16.gmra.mrb[64].mxu1 %vm16323_vm3, %v4241_v25  ;;  %vm16329_vm3 = vmmov %vm16326_vm1 }
0x2eff   :  { %11724 = vmatprep.mubr.msk.bf16.mxu1 %vm16167_vm0, %v12843_v0  ;;  %11721 = vmatpush3.bf16.msra.mxu1 %v12518_v32 }
0x2f00   :  { %11722 = vmatprep.subr.bf16.mxu1 %v12843_v0 }
0x2f03   :  { %11723 = vmatpush3.bf16.msra.mxu1 %v12519_v18 }
0x2f04   :  { %11740 = vmatprep.subr.bf16.mxu1 %v12843_v0 }
0x2fc9   :  { %v11710_v26 = vpop.f32.mrb[60].mxu1 }
0x2fca   :  { %v12272_v16 = vtrunc.f32 %v11710_v26  ;;  %v4288_v60 = vpop.f32.mrb[61].mxu1 }
0x2fcb   :  { %v12268_v19 = vtrunc.f32 %v4288_v60  ;;  %v11711_v13 = vpop.f32.mrb[62].mxu1 }
0x2fcc   :  { %v12273_v40 = vcvt.f32.s32 %v12272_v16  ;;  %v12274_v42 = vtrunc.f32 %v11711_v13  ;;  %v4291_v30 = vpop.f32.mrb[63].mxu1 }
0x2fcd   :  { %v12269_v43 = vcvt.f32.s32 %v12268_v19  ;;  %v12270_v47 = vtrunc.f32 %v4291_v30 }
0x2fce   :  { %vm4329_vm13 = vcmp.eq.s32.totalorder %v12273_v40, %v12947_v41  ;;  %v12275_v44 = vcvt.f32.s32 %v12274_v42 }
0x2fcf   :  { %vm4327_vm10 = vcmp.eq.s32.totalorder %v12269_v43, %v12947_v41  ;;  %v12271_v29 = vcvt.f32.s32 %v12270_v47  ;;  %v10620_v49 = vsel %vm4329_vm13, 1.0, %v12843_v0  ;;  %vm16330_vm13 = vmmov %vm16326_vm1  ;;  %v12520_v47 = vld [vmem:[%s16152_s5] sm:$0xff]  }
0x2fd0   :  { %v10618_v35 = vsel %vm4327_vm10, 1.0, %v12843_v0  ;;  %vm4330_vm11 = vcmp.eq.s32.totalorder %v12275_v44, %v12947_v41  ;;  %v4353_v20 = vmul.f32 %v10620_v49, %v14199_v48  ;;  %vm16331_vm10 = vmmov %vm16326_vm1  ;;  %11729 = vmatpush3.bf16.msra.mxu0 %v12520_v47  ;;  %v12521_v49 = vld [vmem:[%s16152_s5 + $0x8] sm:$0xff]  }
0x2fd1   :  { %v4351_v51 = vmul.f32 %v10618_v35, %v14187_v45  ;;  %v10621_v12 = vsel %vm4330_vm11, 1.0, %v12843_v0  ;;  %vm4328_vm2 = vcmp.eq.s32.totalorder %v12271_v29, %v12947_v41  ;;  %v11714_v52 = vpop.f32.mrb[64].mxu1  ;;  %11730 = vmatprep.subr.bf16.mxu0 %v12843_v0  ;;  %vm16332_vm11 = vcmask 1041409  }
0x2fd2   :  { %v10619_v46 = vsel %vm4328_vm2, 1.0, %v12843_v0  ;;  %v12280_v53 = vtrunc.f32 %v11714_v52  ;;  %v4304_v54 = vpop.f32.mrb[65].mxu1  ;;  %v4354_v62 = vmul.f32 %v10621_v12, %v14203_v15  ;;  %v4362_v48 = vsel %vm16326_vm1, %v4353_v20, 0.0  ;;  %v12522_v52 = vld [vmem:[%s16152_s5 + $0x10] sm:$0xff]   ;;  %vm16333_vm2 = vmmov %vm16326_vm1 }
0x2fd3   :  { %v4352_v5 = vmul.f32 %v10619_v46, %v14193_v10  ;;  %v12276_v50 = vtrunc.f32 %v4304_v54  ;;  %v11715_v17 = vpop.f32.mrb[66].mxu1  ;;  %v4359_v27 = vsel %vm16324_vm5, %v4351_v51, 0.0  ;;  %vm16334_vm5 = vcmask 523264  }
0x2fd4   :  { %v12281_v31 = vcvt.f32.s32 %v12280_v53  ;;  %v12282_v59 = vtrunc.f32 %v11715_v17  ;;  %v4307_v45 = vpop.f32.mrb[67].mxu1  ;;  %v4364_v11 = vsel %vm16327_vm15, %v4354_v62, 0.0  ;;  %11731 = vmatpush3.bf16.msra.mxu0 %v12521_v49  ;;  %vm16337_vm1 = vmmov %vm16334_vm5 }
0x2fd5   :  { %v4360_v21 = vsel %vm16325_vm14, %v4352_v5, 0.0  ;;  %v12277_v6 = vcvt.f32.s32 %v12276_v50  ;;  %v12278_v63 = vtrunc.f32 %v4307_v45  ;;  %11732 = vmatprep.subr.bf16.mxu0 %v12843_v0  ;;  %vm16335_vm14 = vcmask 254976   ;;  %vm16340_vm15 = vmmov %vm16337_vm1 }
0x2fd6   :  { %v4361_v14 = vadd.f32 %v4360_v21, %v4359_v27  ;;  %vm4333_vm9 = vcmp.eq.s32.totalorder %v12281_v31, %v12947_v41  ;;  %v12283_v28 = vcvt.f32.s32 %v12282_v59 }
0x2fd7   :  { %vm4331_vm6 = vcmp.eq.s32.totalorder %v12277_v6, %v12947_v41  ;;  %v12279_v10 = vcvt.f32.s32 %v12278_v63  ;;  %v10624_v15 = vsel %vm4333_vm9, 1.0, %v12843_v0  ;;  %vm16336_vm9 = vmmov %vm16335_vm14 }
0x2fd8   :  { %v4363_v61 = vadd.f32 %v4362_v48, %v4361_v14  ;;  %v10622_v22 = vsel %vm4331_vm6, 1.0, %v12843_v0  ;;  %vm4334_vm12 = vcmp.eq.s32.totalorder %v12283_v28, %v12947_v41  ;;  %v4357_v25 = vmul.f32 %v10624_v15, %v14205_v8  ;;  %11733 = vmatpush3.bf16.msra.mxu0 %v12522_v52  ;;  %v12524_v15 = vld [vmem:[%s16149_s2 + $0x20] sm:$0xff]   ;;  %vm16338_vm6 = vmmov %vm16336_vm9 }
0x2fd9   :  { %v4355_v23 = vmul.f32 %v10622_v22, %v14191_v2  ;;  %vm4332_vm8 = vcmp.eq.s32.totalorder %v12279_v10, %v12947_v41  ;;  %v10625_v9 = vsel %vm4334_vm12, 1.0, %v12843_v0  ;;  %11734 = vmatprep.subr.bf16.mxu0 %v12843_v0  ;;  %v12525_v22 = vld [vmem:[%s16149_s2 + $0x28] sm:$0xff]   ;;  %vm16339_vm12 = vmmov %vm16333_vm2 }
0x2fda   :  { %v4365_v24 = vadd.f32 %v4364_v11, %v4363_v61  ;;  %v10623_v38 = vsel %vm4332_vm8, 1.0, %v12843_v0  ;;  %v4358_v18 = vmul.f32 %v10625_v9, %v14215_v36  ;;  %v4375_v60 = vsel %vm16330_vm13, %v4357_v25, 0.0  ;;  %v4386_v36 = vpop.permute.xlu0 %4385  ;;  %v12526_v11 = vld [vmem:[%s16149_s2 + $0x30] sm:$0xff]   ;;  %v12527_v9 = vld [vmem:[%s16149_s2 + $0x38] sm:$0xff]  }
0x2fdb   :  { %v4356_v1 = vmul.f32 %v10623_v38, %v14197_v3  ;;  %v4372_v32 = vsel %vm16328_vm4, %v4355_v23, 0.0 }
0x2fdc   :  { %v4366_v33 = vrot.slane %v4365_v24, 4  ;;  %v4377_v13 = vsel %vm16331_vm10, %v4358_v18, 0.0 }
0x2fdd   :  { %v4373_v26 = vsel %vm16329_vm3, %v4356_v1, 0.0  ;;  %vm16341_vm3 = vcmp.ne.s32.totalorder %v12968_v55, 0 }
0x2fde   :  { %v4374_v16 = vadd.f32 %v4373_v26, %v4372_v32  ;;  %v4367_v2 = vadd.f32 %v4366_v33, %v4365_v24  ;;  %v3917_v46 = vpop.permute.xlu0 %3916  ;;  %v10646_v26 = vld [vmem:[%s16150_s3 + $0x1] ss:$0 sm:$0xff] }
0x2fdf   :  { %v3919_v54 = vmul.f32 %v3917_v46, %v13983_v39  ;;  %v12523_v39 = vld [vmem:[%s16152_s5 + $0x18] sm:$0xff]  }
0x2fe0   :  { %v4376_v19 = vadd.f32 %v4375_v60, %v4374_v16  ;;  %v4368_v42 = vrot.slane %v4367_v2, 2  ;;  %11735 = vmatpush3.bf16.msra.mxu0 %v12523_v39 }
0x2fe1   :  { %11752 = vmatprep.subr.bf16.mxu0 %v12849_v4 }
0x2fe2   :  { %v4378_v40 = vadd.f32 %v4377_v13, %v4376_v19  ;;  %v4369_v8 = vadd.f32 %v4368_v42, %v4367_v2 }
0x2fe4   :  { %v4379_v30 = vrot.slane %v4378_v40, 4  ;;  %v4370_v44 = vrot.slane %v4369_v8, 1 }
0x2fe6   :  { %v4380_v43 = vadd.f32 %v4379_v30, %v4378_v40  ;;  %v4371_v51 = vadd.f32 %v4370_v44, %v4369_v8 }
0x2fe8   :  { %v4381_v3 = vrot.slane %v4380_v43, 2 }
0x2fea   :  { %v4382_v29 = vadd.f32 %v4381_v3, %v4380_v43 }
0x2fec   :  { %v4383_v35 = vrot.slane %v4382_v29, 1 }
0x2fee   :  { %v4384_v12 = vadd.f32 %v4383_v35, %v4382_v29 }
0x2ff0   :  { %v4390_v53 = vsel %vm16332_vm11, %v4384_v12, %v4371_v51 }
0x2ff1   :  { %4391 = vrot.lane.b32.xlu1 %v4390_v53, %s12845_s18 }
0x2ff5   :  { %3921 = vrot.lane.b32.xlu1 %v3919_v54, %s12846_s25 }
0x3063   :  { %v4392_v20 = vpop.permute.xlu1 %4391 }
0x3064   :  { %v4394_v5 = vsel %vm16333_vm2, %v4386_v36, %v4392_v20 }
0x3065   :  { %v4403_v50 = vpack.c.bf16 %v4394_v5, %v4394_v5 }
0x3067   :  { %11725 = vmatmul.mubr.msk.bf16.vlgmr.msra.gmra.mrb[68].mxu1 %vm16334_vm5, %v4403_v50  ;;  %v3922_v17 = vpop.permute.xlu1 %3921  ;;  %vm16342_vm5 = vcmp.ne.s32.totalorder %v12970_v56, 0 }
0x3068   :  { %3924 = vst.msk [vmem:[#allocation2 + $0x2] sm:$0x3] %vm16335_vm14, %v3922_v17  ;;  %11748 = vmatprep.mubr.msk.bf16.mxu1 %vm16167_vm0, %v12843_v0  ;;  %11741 = vmatpush3.bf16.msra.mxu1 %v12524_v15 }
0x3069   :  { %3926 = vst.msk [vmem:[#allocation6 + $0x4] sm:$0x3] %vm16336_vm9, %v3922_v17  ;;  %11742 = vmatprep.subr.bf16.mxu1 %v12843_v0 }
0x306c   :  { %11743 = vmatpush3.bf16.msra.mxu1 %v12525_v22 }
0x306d   :  { %11744 = vmatprep.subr.bf16.mxu1 %v12843_v0 }
0x306f   :  { %v4564_v24 = vld [vmem:[#allocation2 + $0x2] sm:$0x3] }
0x3070   :  { %11745 = vmatpush3.bf16.msra.mxu1 %v12526_v11 }
0x3071   :  { %11746 = vmatprep.subr.bf16.mxu1 %v12843_v0 }
0x3074   :  { %11747 = vmatpush3.bf16.msra.mxu1 %v12527_v9 }
0x3075   :  { %11776 = vmatprep.subr.bf16.mxu1 %v12843_v0 }
0x313a   :  { %v4465_v62 = vpop.f32.mrb[68].mxu1 }
0x313b   :  { %v4471_v31 = vmax.f32 %v4465_v62, 0.0  ;;  %v11726_v59 = vpop.f32.mrb[69].mxu1 }
0x313c   :  { %v4468_v45 = vpop.f32.mrb[70].mxu1 }
0x313d   :  { %v4480_v27 = vpack.c.bf16 %v4471_v31, %v4471_v31  ;;  %v11727_v21 = vpop.f32.mrb[71].mxu1 }
0x313f   :  { %11737 = vmatmul.mubr.msk.bf16.vlgmr.msra.gmra.mrb[64].mxu0 %vm16337_vm1, %v4480_v27 }
0x3140   :  { %11753 = vmatpush3.bf16.msra.mxu0 %v12849_v4 }
0x3141   :  { %11754 = vmatprep.subr.bf16.mxu0 %v12849_v4 }
0x3144   :  { %11755 = vmatpush3.bf16.msra.mxu0 %v12849_v4 }
0x3145   :  { %11764 = vmatprep.subr.bf16.mxu0 %v12843_v0 }
0x3212   :  { %v4542_v6 = vpop.f32.mrb[64].mxu0 }
0x3213   :  { %v10636_v63 = vmul.f32 -1.442695, %v4542_v6  ;;  %v11738_v14 = vpop.f32.mrb[65].mxu0 }
0x3214   :  { %v4545_v28 = vpop.f32.mrb[66].mxu0 }
0x3215   :  { %12698 = vpow2.f32 %v10636_v63  ;;  %v11739_v48 = vpop.f32.mrb[67].mxu0 }
0x321f   :  { %v12699_v10 = vpop.eup %12698 }
0x3220   :  { %v4551_v61 = vadd.f32 1.0, %v12699_v10 }
0x3222   :  { %12700 = vrcp.f32 %v4551_v61 }
0x322c   :  { %v12701_v23 = vpop.eup %12700 }
0x322d   :  { %4555 = vrot.lane.b32.xlu0 %v12701_v23, %s12845_s18 }
0x3231   :  { %4566 = vrot.lane.b32.xlu0 %v4564_v24, %s12845_s18 }
0x329f   :  { %v4556_v38 = vpop.permute.xlu0 %4555 }
0x32a0   :  { %v4558_v25 = vmul.f32 %v4556_v38, %v14171_v7 }
0x32a2   :  { %4560 = vrot.lane.b32.xlu1 %v4558_v25, %s12846_s25 }
0x32a3   :  { %v4567_v1 = vpop.permute.xlu0 %4566 }
0x3314   :  { %v4561_v33 = vpop.permute.xlu1 %4560 }
0x3315   :  { %4563 = vst.msk [vmem:[#allocation2] sm:$0x3] %vm16338_vm6, %v4561_v33  ;;  %v4569_v32 = vsel %vm16339_vm12, %v4561_v33, %v4567_v1  ;;  %vm16343_vm12 = vcmp.ne.s32.totalorder %v12972_v57, 0 }
0x3316   :  { %v4578_v18 = vpack.c.bf16 %v4569_v32, %v4569_v32 }
0x3318   :  { %11749 = vmatmul.mubr.msk.bf16.vlgmr.msra.gmra.mrb[72].mxu1 %vm16340_vm15, %v4578_v18 }
0x3319   :  { %11784 = vmatprep.mubr.msk.bf16.mxu1 %vm16167_vm0, %v12843_v0 }
0x33eb   :  { %v4647_v16 = vpop.f32.mrb[72].mxu1 }
0x33ec   :  { %v4648_v7 = vadd.f32 %v10646_v26, %v4647_v16  ;;  %v11750_v2 = vpop.f32.mrb[73].mxu1 }
0x33ed   :  { %v4650_v60 = vpop.f32.mrb[74].mxu1 }
0x33ee   :  { %4660 = vrot.lane.b32.xlu1 %v4648_v7, %s12845_s18  ;;  %v11751_v19 = vpop.f32.mrb[75].mxu1  ;;  %v10652_v13 = vmul.f32 -1.442695, %v4648_v7 }
0x33f0   :  { %12702 = vpow2.f32 %v10652_v13 }
0x33fa   :  { %v12703_v40 = vpop.eup %12702 }
0x33fb   :  { %v4656_v42 = vadd.f32 1.0, %v12703_v40  ;;  %v12528_v40 = vld [vmem:[#allocation3 + $0x20] sm:$0xff]  }
0x33fd   :  { %12704 = vrcp.f32 %v4656_v42  ;;  %v12529_v42 = vld [vmem:[#allocation3 + $0x28] sm:$0xff]  }
0x3407   :  { %v12705_v30 = vpop.eup %12704 }
0x3408   :  { %v4670_v44 = vsub.f32 1.0, %v12705_v30  ;;  %v4676_v49 = vmul.f32 %v12705_v30, %v4567_v1 }
0x3460   :  { %v4661_v8 = vpop.permute.xlu1 %4660 }
0x3461   :  { %v4663_v43 = vmul.f32 %v12705_v30, %v4661_v8  ;;  %v12530_v30 = vld [vmem:[#allocation3 + $0x30] sm:$0xff]   ;;  %v12531_v8 = vld [vmem:[#allocation3 + $0x38] sm:$0xff]  }
0x3463   :  { %4665 = vrot.lane.b32.xlu0 %v4663_v43, %s12841_s7 }
0x34d5   :  { %v4666_v3 = vpop.permute.xlu0 %4665 }
0x34d6   :  { %v4668_v47 = vadd.f32 %v4666_v3, %v4648_v7  ;;  %v5203_v7 = vld [vmem:[#allocation2] sm:$0x3] }
0x34d8   :  { %12706 = vtanh.f32 %v4668_v47 }
0x34e2   :  { %v12707_v36 = vpop.eup %12706 }
0x34e3   :  { %4672 = vrot.lane.b32.xlu1 %v12707_v36, %s12846_s25 }
0x3555   :  { %v4673_v29 = vpop.permute.xlu1 %4672 }
0x3556   :  { %v4675_v35 = vmul.f32 %v4673_v29, %v4670_v44 }
0x3558   :  { %v14382_v51 = vadd.f32 %v4676_v49, %v4675_v35 }
0x355a   :  { %v4685_v12 = vrot.slane %v14382_v51, %v12938_v34 }
0x355c   :  { %v4686_v52 = vcombine.high %v4685_v12, %v4685_v12  ;;  %v4693_v46 = vrot.slane %v4685_v12, %v12938_v34 }
0x355e   :  { %v4700_v53 = vrot.slane %v4686_v52, %v12938_v34  ;;  %v4704_v54 = vrot.slane %v4693_v46, %v12942_v37 }
0x3560   :  { %v14390_v20 = vrot.slane %v4700_v53, %v12942_v37  ;;  %4711 = vrot.lane.b32.xlu0 %v4704_v54, %s12846_s25 }
0x3562   :  { %4713 = vrot.lane.b32.xlu1 %v14390_v20, %s12846_s25 }
0x35d2   :  { %v4712_v5 = vpop.permute.xlu0 %4711 }
0x35d3   :  { %4717 = vxpose.xlu0.b32.start [1/4] (short) (narrow) %v4712_v5, 32 }
0x35d4   :  { %v4714_v50 = vpop.permute.xlu1 %4713 }
0x35d5   :  { %4749 = vxpose.xlu1.b32.start [1/4] (short) (narrow) %v4714_v50, 32 }
0x35d7   :  { %4718 = vxpose.xlu0.b32.cont [2/4] (short) (narrow) %v4712_v5, 32 }
0x35d9   :  { %4750 = vxpose.xlu1.b32.cont [2/4] (short) (narrow) %v4714_v50, 32 }
0x35db   :  { %4719 = vxpose.xlu0.b32.cont [3/4] (short) (narrow) %v4712_v5, 32 }
0x35dd   :  { %4751 = vxpose.xlu1.b32.cont [3/4] (short) (narrow) %v4714_v50, 32 }
0x35df   :  { %4720 = vxpose.xlu0.b32.end [4/4] (short) (narrow) %v4712_v5, 32 }
0x35e1   :  { %4752 = vxpose.xlu1.b32.end [4/4] (short) (narrow) %v4714_v50, 32 }
0x3653   :  { %v14395_v17 = vpop.trf.xlu0 }
0x3654   :  { %4789 = vrot.lane.b32.xlu0 %v14395_v17, %s12845_s18 }
0x3655   :  { %v14399_v39 = vpop.trf.xlu1 }
0x3657   :  { %v14401_v62 = vpop.trf.xlu0 }
0x3658   :  { %4791 = vrot.lane.b32.xlu1 %v14401_v62, %s12845_s18 }
0x3659   :  { %v14405_v31 = vpop.trf.xlu1 }
0x365b   :  { %v14407_v59 = vpop.trf.xlu0 }
0x365c   :  { %4793 = vrot.lane.b32.xlu0 %v14407_v59, %s12845_s18 }
0x365d   :  { %v14413_v27 = vpop.trf.xlu1 }
0x365f   :  { %v14411_v45 = vpop.trf.xlu0 }
0x3660   :  { %4795 = vrot.lane.b32.xlu1 %v14411_v45, %s12845_s18  ;;  %4797 = vrot.lane.b32.xlu0 %v14399_v39, %s12845_s18 }
0x3661   :  { %v14423_v21 = vpop.trf.xlu1 }
0x3664   :  { %4799 = vrot.lane.b32.xlu1 %v14405_v31, %s12845_s18  ;;  %4801 = vrot.lane.b32.xlu0 %v14413_v27, %s12845_s18 }
0x3668   :  { %4803 = vrot.lane.b32.xlu1 %v14423_v21, %s12845_s18 }
0x36c6   :  { %v4790_v6 = vpop.permute.xlu0 %4789 }
0x36c7   :  { %vm4821_vm8 = vcmp.eq.f32.partialorder %v4704_v54, %v4790_v6  ;;  %vm4813_vm4 = vcmp.lt.f32.partialorder %v4704_v54, %v4790_v6 }
0x36c8   :  { %vm4829_vm13 = vmand %vm4821_vm8, %vm16341_vm3 }
0x36c9   :  { %vm4837_vm10 = vmor %vm4813_vm4, %vm4829_vm13 }
0x36ca   :  { %v4792_v63 = vpop.permute.xlu1 %4791  ;;  %v10653_v14 = vsel %vm4837_vm10, 1.0, %v12843_v0  ;;  %vm16344_vm10 = vcmp.ne.s32.totalorder %v12968_v55, 0 }
0x36cb   :  { %vm4814_vm11 = vcmp.lt.f32.partialorder %v4704_v54, %v4792_v63  ;;  %vm4822_vm2 = vcmp.eq.f32.partialorder %v4704_v54, %v4792_v63 }
0x36cc   :  { %vm4830_vm14 = vmand %vm4822_vm2, %vm16342_vm5 }
0x36cd   :  { %vm4838_vm9 = vmor %vm4814_vm11, %vm4830_vm14 }
0x36ce   :  { %v10654_v28 = vsel %vm4838_vm9, 1.0, %v12843_v0  ;;  %v4794_v48 = vpop.permute.xlu0 %4793 }
0x36cf   :  { %v4861_v10 = vpack.c.bf16 %v10654_v28, %v10653_v14  ;;  %vm4823_vm1 = vcmp.eq.f32.partialorder %v4704_v54, %v4794_v48  ;;  %vm4815_vm6 = vcmp.lt.f32.partialorder %v4704_v54, %v4794_v48 }
0x36d0   :  { %vm4831_vm15 = vmand %vm4823_vm1, %vm16343_vm12 }
0x36d1   :  { %4869 = vrot.lane.b32.xlu0 %v4861_v10, %s12846_s25  ;;  %vm4839_vm8 = vmor %vm4815_vm6, %vm4831_vm15  ;;  %vm16347_vm15 = vcmp.ne.s32.totalorder %v12972_v57, 0 }
0x36d2   :  { %v4798_v61 = vpop.permute.xlu0 %4797  ;;  %v4796_v15 = vpop.permute.xlu1 %4795  ;;  %v10655_v24 = vsel %vm4839_vm8, 1.0, %v12843_v0 }
0x36d3   :  { %vm4817_vm4 = vcmp.lt.f32.partialorder %v14390_v20, %v4798_v61  ;;  %vm4825_vm3 = vcmp.eq.f32.partialorder %v14390_v20, %v4798_v61  ;;  %vm4824_vm13 = vcmp.eq.f32.partialorder %v4704_v54, %v4796_v15  ;;  %vm4816_vm2 = vcmp.lt.f32.partialorder %v4704_v54, %v4796_v15 }
0x36d4   :  { %vm4833_vm11 = vmand %vm4825_vm3, %vm16344_vm10  ;;  %vm16348_vm10 = vcmp.ne.s32.totalorder %v12970_v56, 0 }
0x36d5   :  { %vm14440_vm5 = vmor %vm4817_vm4, %vm4833_vm11 }
0x36d6   :  { %vm4832_vm14 = vmand %vm4824_vm13, %vm365_vm7  ;;  %v4802_v11 = vpop.permute.xlu0 %4801  ;;  %v4800_v23 = vpop.permute.xlu1 %4799  ;;  %v10657_v1 = vsel %vm14440_vm5, 1.0, %v12843_v0  ;;  %vm16349_vm5 = vcmask 261120  }
0x36d7   :  { %vm4840_vm9 = vmor %vm4816_vm2, %vm4832_vm14  ;;  %vm4819_vm1 = vcmp.lt.f32.partialorder %v14390_v20, %v4802_v11  ;;  %vm4827_vm6 = vcmp.eq.f32.partialorder %v14390_v20, %v4802_v11  ;;  %vm4826_vm12 = vcmp.eq.f32.partialorder %v14390_v20, %v4800_v23  ;;  %vm4818_vm3 = vcmp.lt.f32.partialorder %v14390_v20, %v4800_v23 }
0x36d8   :  { %v10656_v9 = vsel %vm4840_vm9, 1.0, %v12843_v0  ;;  %vm4835_vm4 = vmand %vm4827_vm6, %vm16347_vm15 }
0x36d9   :  { %v4862_v38 = vpack.c.bf16 %v10656_v9, %v10655_v24  ;;  %vm4843_vm13 = vmor %vm4819_vm1, %vm4835_vm4 }
0x36da   :  { %vm4834_vm11 = vmand %vm4826_vm12, %vm16348_vm10  ;;  %v4804_v25 = vpop.permute.xlu1 %4803  ;;  %v10659_v18 = vsel %vm4843_vm13, 1.0, %v12843_v0 }
0x36db   :  { %vm4842_vm2 = vmor %vm4818_vm3, %vm4834_vm11  ;;  %4871 = vrot.lane.b32.xlu1 %v4862_v38, %s12846_s25  ;;  %vm4820_vm14 = vcmp.lt.f32.partialorder %v14390_v20, %v4804_v25  ;;  %vm4828_vm8 = vcmp.eq.f32.partialorder %v14390_v20, %v4804_v25 }
0x36dc   :  { %v10658_v33 = vsel %vm4842_vm2, 1.0, %v12843_v0  ;;  %vm4836_vm9 = vmand %vm4828_vm8, %vm365_vm7 }
0x36dd   :  { %v4863_v32 = vpack.c.bf16 %v10658_v33, %v10657_v1  ;;  %vm4844_vm1 = vmor %vm4820_vm14, %vm4836_vm9 }
0x36de   :  { %v10660_v26 = vsel %vm4844_vm1, 1.0, %v12843_v0  ;;  %vm16350_vm6 = vmmov %vm16349_vm5 }
0x36df   :  { %v4864_v16 = vpack.c.bf16 %v10660_v26, %v10659_v18  ;;  %4873 = vrot.lane.b32.xlu0 %v4863_v32, %s12846_s25  ;;  %vm16351_vm12 = vmmov %vm16349_vm5 }
0x36e0   :  { %vm16352_vm15 = vmmov %vm16349_vm5 }
0x36e1   :  { %4875 = vrot.lane.b32.xlu1 %v4864_v16, %s12846_s25  ;;  %vm16353_vm11 = vmmov %vm16349_vm5 }
0x36e2   :  { %vm16354_vm2 = vmmov %vm16349_vm5 }
0x36e3   :  { %5020 = vrot.lane.b32.xlu0 %v14382_v51, %s12846_s25  ;;  %vm16355_vm8 = vmmov %vm16354_vm2 }
0x36e7   :  { %5205 = vrot.lane.b32.xlu0 %v5203_v7, %s12845_s18 }
0x3743   :  { %v4870_v2 = vpop.permute.xlu0 %4869 }
0x3744   :  { %11756 = vmatprep.mubr.msk.bf16.mxu0 %vm16349_vm5, %v4870_v2  ;;  %vm16356_vm5 = vmmov %vm16354_vm2 }
0x374d   :  { %v4872_v60 = vpop.permute.xlu1 %4871 }
0x374e   :  { %11757 = vmatmul.mubr.msk.bf16.vlgmr.msra.gmra.mrb[68].mxu0 %vm16350_vm6, %v4872_v60 }
0x374f   :  { %11765 = vmatpush3.bf16.msra.mxu0 %v12528_v40 }
0x3750   :  { %11766 = vmatprep.subr.bf16.mxu0 %v12843_v0 }
0x3751   :  { %v4874_v19 = vpop.permute.xlu0 %4873 }
0x3752   :  { %11760 = vmatprep.mubr.msk.bf16.mxu0 %vm16351_vm12, %v4874_v19  ;;  %vm16357_vm12 = vmmov %vm16354_vm2 }
0x3753   :  { %v4876_v13 = vpop.permute.xlu1 %4875  ;;  %11767 = vmatpush3.bf16.msra.mxu0 %v12529_v42 }
0x3754   :  { %11768 = vmatprep.subr.bf16.mxu0 %v12843_v0 }
0x3756   :  { %11761 = vmatmul.mubr.msk.bf16.gmra.mrb[72].mxu0 %vm16352_vm15, %v4876_v13  ;;  %vm16358_vm15 = vmmov %vm16354_vm2 }
0x3757   :  { %11772 = vmatprep.mubr.msk.bf16.mxu0 %vm16167_vm0, %v12843_v0  ;;  %11769 = vmatpush3.bf16.msra.mxu0 %v12530_v30 }
0x3758   :  { %11770 = vmatprep.subr.bf16.mxu0 %v12843_v0 }
0x375b   :  { %11771 = vmatpush3.bf16.msra.mxu0 %v12531_v8 }
0x375c   :  { %11788 = vmatprep.subr.bf16.mxu0 %v12843_v0 }
0x3821   :  { %v11758_v43 = vpop.f32.mrb[68].mxu0 }
0x3822   :  { %v12288_v3 = vtrunc.f32 %v11758_v43  ;;  %v4923_v47 = vpop.f32.mrb[69].mxu0 }
0x3823   :  { %v12284_v36 = vtrunc.f32 %v4923_v47  ;;  %v11759_v44 = vpop.f32.mrb[70].mxu0 }
0x3824   :  { %v12289_v29 = vcvt.f32.s32 %v12288_v3  ;;  %v12290_v49 = vtrunc.f32 %v11759_v44  ;;  %v4926_v35 = vpop.f32.mrb[71].mxu0 }
0x3825   :  { %v12285_v12 = vcvt.f32.s32 %v12284_v36  ;;  %v12286_v52 = vtrunc.f32 %v4926_v35 }
0x3826   :  { %vm4964_vm4 = vcmp.eq.s32.totalorder %v12289_v29, %v12947_v41  ;;  %v12291_v46 = vcvt.f32.s32 %v12290_v49 }
0x3827   :  { %vm4962_vm3 = vcmp.eq.s32.totalorder %v12285_v12, %v12947_v41  ;;  %v12287_v53 = vcvt.f32.s32 %v12286_v52  ;;  %v10667_v54 = vsel %vm4964_vm4, 1.0, %v12843_v0  ;;  %vm16359_vm4 = vmmov %vm16354_vm2 }
0x3828   :  { %v10665_v20 = vsel %vm4962_vm3, 1.0, %v12843_v0  ;;  %vm4965_vm13 = vcmp.eq.s32.totalorder %v12291_v46, %v12947_v41  ;;  %v4988_v48 = vmul.f32 %v10667_v54, %v14407_v59  ;;  %vm16360_vm3 = vmmov %vm16354_vm2 }
0x3829   :  { %v4986_v5 = vmul.f32 %v10665_v20, %v14395_v17  ;;  %v10668_v50 = vsel %vm4965_vm13, 1.0, %v12843_v0  ;;  %vm4963_vm10 = vcmp.eq.s32.totalorder %v12287_v53, %v12947_v41  ;;  %v11762_v6 = vpop.f32.mrb[72].mxu0  ;;  %vm16361_vm13 = vcmask 1041409   ;;  %v12536_v20 = vld [vmem:[%s16152_s5 + $0x20] sm:$0xff]  }
0x382a   :  { %v10666_v63 = vsel %vm4963_vm10, 1.0, %v12843_v0  ;;  %v12296_v14 = vtrunc.f32 %v11762_v6  ;;  %v4939_v28 = vpop.f32.mrb[73].mxu0  ;;  %v4989_v22 = vmul.f32 %v10668_v50, %v14411_v45  ;;  %v4997_v59 = vsel %vm16355_vm8, %v4988_v48, 0.0  ;;  %11777 = vmatpush3.bf16.msra.mxu1 %v12536_v20  ;;  %v12538_v50 = vld [vmem:[%s16152_s5 + $0x30] sm:$0xff]   ;;  %v5021_v6 = vpop.permute.xlu0 %5020  ;;  %vm16362_vm10 = vmmov %vm16354_vm2 }
0x382b   :  { %v4987_v10 = vmul.f32 %v10666_v63, %v14401_v62  ;;  %v12292_v61 = vtrunc.f32 %v4939_v28  ;;  %v11763_v15 = vpop.f32.mrb[74].mxu0  ;;  %v4994_v24 = vsel %vm16353_vm11, %v4986_v5, 0.0  ;;  %v12537_v5 = vld [vmem:[%s16152_s5 + $0x28] sm:$0xff]   ;;  %11778 = vmatprep.subr.bf16.mxu1 %v12843_v0  ;;  %v12532_v28 = vld [vmem:[%s16149_s2] sm:$0xff]   ;;  %vm16363_vm11 = vcmask 523264  }
0x382c   :  { %v12297_v11 = vcvt.f32.s32 %v12296_v14  ;;  %v12298_v23 = vtrunc.f32 %v11763_v15  ;;  %v4942_v17 = vpop.f32.mrb[75].mxu0  ;;  %v4999_v26 = vsel %vm16356_vm5, %v4989_v22, 0.0  ;;  %v10692_v15 = vld [vmem:[%s16147_s0 + $0x8] sm:$0x3]  ;;  %vm16365_vm8 = vmmov %vm16363_vm11  ;;  %vm16366_vm5 = vcmp.ne.s32.totalorder %v12968_v55, 0 }
0x382d   :  { %v4995_v9 = vsel %vm16354_vm2, %v4987_v10, 0.0  ;;  %v12293_v38 = vcvt.f32.s32 %v12292_v61  ;;  %v12294_v25 = vtrunc.f32 %v4942_v17  ;;  %v12533_v10 = vld [vmem:[%s16149_s2 + $0x8] sm:$0xff]   ;;  %v12534_v61 = vld [vmem:[%s16149_s2 + $0x10] sm:$0xff]  }
0x382e   :  { %v4996_v1 = vadd.f32 %v4995_v9, %v4994_v24  ;;  %vm4968_vm14 = vcmp.eq.s32.totalorder %v12297_v11, %v12947_v41  ;;  %v12299_v33 = vcvt.f32.s32 %v12298_v23  ;;  %11779 = vmatpush3.bf16.msra.mxu1 %v12537_v5  ;;  %v5206_v22 = vpop.permute.xlu0 %5205  ;;  %v12535_v11 = vld [vmem:[%s16149_s2 + $0x18] sm:$0xff]  }
0x382f   :  { %vm4966_vm9 = vcmp.eq.s32.totalorder %v12293_v38, %v12947_v41  ;;  %v12295_v62 = vcvt.f32.s32 %v12294_v25  ;;  %v10671_v45 = vsel %vm4968_vm14, 1.0, %v12843_v0  ;;  %11780 = vmatprep.subr.bf16.mxu1 %v12843_v0  ;;  %v5208_v23 = vsel %vm16354_vm2, %v10692_v15, %v5206_v22  ;;  %vm16364_vm14 = vmmov %vm16363_vm11  ;;  %v12539_v24 = vld [vmem:[%s16152_s5 + $0x38] sm:$0xff]  }
0x3830   :  { %v4998_v32 = vadd.f32 %v4997_v59, %v4996_v1  ;;  %v10669_v18 = vsel %vm4966_vm9, 1.0, %v12843_v0  ;;  %vm4969_vm1 = vcmp.eq.s32.totalorder %v12299_v33, %v12947_v41  ;;  %v4992_v19 = vmul.f32 %v10671_v45, %v14413_v27 }
0x3831   :  { %v4990_v16 = vmul.f32 %v10669_v18, %v14399_v39  ;;  %vm4967_vm6 = vcmp.eq.s32.totalorder %v12295_v62, %v12947_v41  ;;  %v10672_v2 = vsel %vm4969_vm1, 1.0, %v12843_v0  ;;  %v5217_v17 = vpack.c.bf16 %v5208_v23, %v5208_v23  ;;  %v10693_v62 = vld [vmem:[%s16150_s3] ss:$0 sm:$0xff] }
0x3832   :  { %v5000_v7 = vadd.f32 %v4999_v26, %v4998_v32  ;;  %v10670_v60 = vsel %vm4967_vm6, 1.0, %v12843_v0  ;;  %v4993_v30 = vmul.f32 %v10672_v2, %v14423_v21  ;;  %v5010_v3 = vsel %vm16359_vm4, %v4992_v19, 0.0  ;;  %11781 = vmatpush3.bf16.msra.mxu1 %v12538_v50 }
0x3833   :  { %v4991_v13 = vmul.f32 %v10670_v60, %v14405_v31  ;;  %v5007_v42 = vsel %vm16357_vm12, %v4990_v16, 0.0  ;;  %11782 = vmatprep.subr.bf16.mxu1 %v12843_v0 }
0x3834   :  { %v5001_v40 = vrot.slane %v5000_v7, 4  ;;  %v5012_v36 = vsel %vm16360_vm3, %v4993_v30, 0.0  ;;  %vm16367_vm3 = vcmp.ne.s32.totalorder %v12970_v56, 0 }
0x3835   :  { %v5008_v8 = vsel %vm16358_vm15, %v4991_v13, 0.0 }
0x3836   :  { %v5009_v43 = vadd.f32 %v5008_v8, %v5007_v42  ;;  %v5002_v39 = vadd.f32 %v5001_v40, %v5000_v7  ;;  %11783 = vmatpush3.bf16.msra.mxu1 %v12539_v24 }
0x3837   :  { %11800 = vmatprep.subr.bf16.mxu1 %v12849_v4 }
0x3838   :  { %v5011_v47 = vadd.f32 %v5010_v3, %v5009_v43  ;;  %v5003_v29 = vrot.slane %v5002_v39, 2 }
0x383a   :  { %v5013_v44 = vadd.f32 %v5012_v36, %v5011_v47  ;;  %v5004_v27 = vadd.f32 %v5003_v29, %v5002_v39 }
0x383c   :  { %v5014_v49 = vrot.slane %v5013_v44, 4  ;;  %v5005_v12 = vrot.slane %v5004_v27, 1 }
0x383e   :  { %v5015_v35 = vadd.f32 %v5014_v49, %v5013_v44  ;;  %v5006_v53 = vadd.f32 %v5005_v12, %v5004_v27 }
0x3840   :  { %v5016_v31 = vrot.slane %v5015_v35, 2 }
0x3842   :  { %v5017_v52 = vadd.f32 %v5016_v31, %v5015_v35 }
0x3844   :  { %v5018_v46 = vrot.slane %v5017_v52, 1 }
0x3846   :  { %v5019_v21 = vadd.f32 %v5018_v46, %v5017_v52 }
0x3848   :  { %v5025_v54 = vsel %vm16361_vm13, %v5019_v21, %v5006_v53 }
0x3849   :  { %5026 = vrot.lane.b32.xlu1 %v5025_v54, %s12845_s18 }
0x38bb   :  { %v5027_v63 = vpop.permute.xlu1 %5026 }
0x38bc   :  { %v5029_v14 = vsel %vm16362_vm10, %v5021_v6, %v5027_v63 }
0x38bd   :  { %v5038_v48 = vpack.c.bf16 %v5029_v14, %v5029_v14 }
0x38bf   :  { %11773 = vmatmul.mubr.msk.bf16.vlgmr.msra.gmra.mrb[76].mxu0 %vm16363_vm11, %v5038_v48 }
0x38c0   :  { %11789 = vmatpush3.bf16.msra.mxu0 %v12532_v28  ;;  %11796 = vmatprep.mubr.msk.bf16.mxu0 %vm16167_vm0, %v12843_v0 }
0x38c1   :  { %11790 = vmatprep.subr.bf16.mxu0 %v12843_v0 }
0x38c4   :  { %11791 = vmatpush3.bf16.msra.mxu0 %v12533_v10 }
0x38c5   :  { %11792 = vmatprep.subr.bf16.mxu0 %v12843_v0 }
0x38c8   :  { %11793 = vmatpush3.bf16.msra.mxu0 %v12534_v61 }
0x38c9   :  { %11794 = vmatprep.subr.bf16.mxu0 %v12843_v0 }
0x38cc   :  { %11795 = vmatpush3.bf16.msra.mxu0 %v12535_v11 }
0x38cd   :  { %11824 = vmatprep.subr.bf16.mxu0 %v12843_v0 }
0x38cf   :  { %11797 = vmatmul.mubr.msk.bf16.vlgmr.msra.gmra.mrb[80].mxu0 %vm16364_vm14, %v5217_v17  ;;  %vm16368_vm14 = vcmp.ne.s32.totalorder %v12972_v57, 0 }
0x38d0   :  { %11832 = vmatprep.mubr.msk.bf16.mxu0 %vm16167_vm0, %v12843_v0 }
0x3992   :  { %v5100_v9 = vpop.f32.mrb[76].mxu0 }
0x3993   :  { %v5106_v38 = vmax.f32 %v5100_v9, 0.0  ;;  %v11774_v25 = vpop.f32.mrb[77].mxu0 }
0x3994   :  { %v5103_v1 = vpop.f32.mrb[78].mxu0 }
0x3995   :  { %v5115_v33 = vpack.c.bf16 %v5106_v38, %v5106_v38  ;;  %v11775_v59 = vpop.f32.mrb[79].mxu0 }
0x3997   :  { %11785 = vmatmul.mubr.msk.bf16.vlgmr.msra.gmra.mrb[76].mxu1 %vm16365_vm8, %v5115_v33 }
0x3998   :  { %11801 = vmatpush3.bf16.msra.mxu1 %v12849_v4 }
0x3999   :  { %11802 = vmatprep.subr.bf16.mxu1 %v12849_v4 }
0x399c   :  { %11803 = vmatpush3.bf16.msra.mxu1 %v12849_v4 }
0x399d   :  { %11812 = vmatprep.subr.bf16.mxu1 %v12843_v0 }
0x39a2   :  { %v5286_v32 = vpop.f32.mrb[80].mxu0 }
0x39a3   :  { %v5287_v45 = vadd.f32 %v10693_v62, %v5286_v32  ;;  %v11798_v18 = vpop.f32.mrb[81].mxu0 }
0x39a4   :  { %v5289_v26 = vpop.f32.mrb[82].mxu0 }
0x39a5   :  { %5299 = vrot.lane.b32.xlu1 %v5287_v45, %s12845_s18  ;;  %v11799_v16 = vpop.f32.mrb[83].mxu0  ;;  %v10699_v7 = vmul.f32 -1.442695, %v5287_v45 }
0x39a7   :  { %12708 = vpow2.f32 %v10699_v7 }
0x39b1   :  { %v12709_v2 = vpop.eup %12708 }
0x39b2   :  { %v5295_v60 = vadd.f32 1.0, %v12709_v2 }
0x39b4   :  { %12710 = vrcp.f32 %v5295_v60 }
0x39be   :  { %v12711_v19 = vpop.eup %12710 }
0x39bf   :  { %v5309_v36 = vsub.f32 1.0, %v12711_v19  ;;  %v5315_v29 = vmul.f32 %v12711_v19, %v5206_v22 }
0x3a17   :  { %v5300_v13 = vpop.permute.xlu1 %5299 }
0x3a18   :  { %v5302_v40 = vmul.f32 %v12711_v19, %v5300_v13 }
0x3a1a   :  { %5304 = vrot.lane.b32.xlu0 %v5302_v40, %s12841_s7 }
0x3a6a   :  { %v5177_v42 = vpop.f32.mrb[76].mxu1 }
0x3a6b   :  { %v11786_v30 = vpop.f32.mrb[77].mxu1  ;;  %v10691_v61 = vmul.f32 -1.442695, %v5177_v42 }
0x3a6c   :  { %v5180_v8 = vpop.f32.mrb[78].mxu1 }
0x3a6d   :  { %v11787_v43 = vpop.f32.mrb[79].mxu1 }
0x3a8c   :  { %v5305_v39 = vpop.permute.xlu0 %5304 }
0x3a8d   :  { %v5307_v3 = vadd.f32 %v5305_v39, %v5287_v45  ;;  %v12540_v39 = vld [vmem:[#allocation3] sm:$0xff]  }
0x3a8f   :  { %12712 = vtanh.f32 %v5307_v3  ;;  %v12541_v3 = vld [vmem:[#allocation3 + $0x8] sm:$0xff]  }
0x3a90   :  { %12714 = vpow2.f32 %v10691_v61 }
0x3a99   :  { %v12713_v47 = vpop.eup %12712 }
0x3a9a   :  { %5311 = vrot.lane.b32.xlu1 %v12713_v47, %s12846_s25  ;;  %v12715_v25 = vpop.eup %12714  ;;  %v12542_v47 = vld [vmem:[#allocation3 + $0x10] sm:$0xff]  }
0x3a9b   :  { %v5186_v62 = vadd.f32 1.0, %v12715_v25 }
0x3a9d   :  { %12716 = vrcp.f32 %v5186_v62 }
0x3aa7   :  { %v12717_v40 = vpop.eup %12716 }
0x3b0c   :  { %v5312_v44 = vpop.permute.xlu1 %5311 }
0x3b0d   :  { %v5314_v49 = vmul.f32 %v5312_v44, %v5309_v36  ;;  %v12543_v36 = vld [vmem:[#allocation3 + $0x18] sm:$0xff]  }
0x3b0f   :  { %v14570_v27 = vadd.f32 %v5315_v29, %v5314_v49 }
0x3b11   :  { %v5324_v35 = vrot.slane %v14570_v27, %v12938_v34 }
0x3b13   :  { %v5325_v31 = vcombine.high %v5324_v35, %v5324_v35  ;;  %v5332_v12 = vrot.slane %v5324_v35, %v12938_v34 }
0x3b15   :  { %v5339_v52 = vrot.slane %v5325_v31, %v12938_v34  ;;  %v14577_v46 = vrot.slane %v5332_v12, %v12942_v37 }
0x3b17   :  { %v14580_v53 = vrot.slane %v5339_v52, %v12942_v37  ;;  %5350 = vrot.lane.b32.xlu0 %v14577_v46, %s12846_s25 }
0x3b19   :  { %5352 = vrot.lane.b32.xlu1 %v14580_v53, %s12846_s25 }
0x3b89   :  { %v5351_v21 = vpop.permute.xlu0 %5350 }
0x3b8a   :  { %5356 = vxpose.xlu0.b32.start [1/4] (short) (narrow) %v5351_v21, 32 }
0x3b8b   :  { %v5353_v54 = vpop.permute.xlu1 %5352 }
0x3b8c   :  { %5388 = vxpose.xlu1.b32.start [1/4] (short) (narrow) %v5353_v54, 32 }
0x3b8e   :  { %5357 = vxpose.xlu0.b32.cont [2/4] (short) (narrow) %v5351_v21, 32 }
0x3b90   :  { %5389 = vxpose.xlu1.b32.cont [2/4] (short) (narrow) %v5353_v54, 32 }
0x3b92   :  { %5358 = vxpose.xlu0.b32.cont [3/4] (short) (narrow) %v5351_v21, 32 }
0x3b94   :  { %5390 = vxpose.xlu1.b32.cont [3/4] (short) (narrow) %v5353_v54, 32 }
0x3b96   :  { %5359 = vxpose.xlu0.b32.end [4/4] (short) (narrow) %v5351_v21, 32 }
0x3b98   :  { %5391 = vxpose.xlu1.b32.end [4/4] (short) (narrow) %v5353_v54, 32 }
0x3c0a   :  { %v14586_v20 = vpop.trf.xlu0 }
0x3c0b   :  { %5428 = vrot.lane.b32.xlu0 %v14586_v20, %s12845_s18 }
0x3c0c   :  { %v14590_v5 = vpop.trf.xlu1 }
0x3c0e   :  { %v14592_v50 = vpop.trf.xlu0 }
0x3c0f   :  { %5430 = vrot.lane.b32.xlu1 %v14592_v50, %s12845_s18 }
0x3c10   :  { %v14596_v6 = vpop.trf.xlu1 }
0x3c12   :  { %v14598_v63 = vpop.trf.xlu0 }
0x3c13   :  { %5432 = vrot.lane.b32.xlu0 %v14598_v63, %s12845_s18 }
0x3c14   :  { %v14604_v28 = vpop.trf.xlu1 }
0x3c16   :  { %v14602_v14 = vpop.trf.xlu0 }
0x3c17   :  { %5434 = vrot.lane.b32.xlu1 %v14602_v14, %s12845_s18  ;;  %5436 = vrot.lane.b32.xlu0 %v14590_v5, %s12845_s18 }
0x3c18   :  { %v14614_v48 = vpop.trf.xlu1 }
0x3c1b   :  { %5438 = vrot.lane.b32.xlu1 %v14596_v6, %s12845_s18  ;;  %5440 = vrot.lane.b32.xlu0 %v14604_v28, %s12845_s18 }
0x3c1f   :  { %5442 = vrot.lane.b32.xlu1 %v14614_v48, %s12845_s18 }
0x3c7d   :  { %v5429_v10 = vpop.permute.xlu0 %5428 }
0x3c7e   :  { %vm5460_vm9 = vcmp.eq.f32.partialorder %v14577_v46, %v5429_v10  ;;  %vm5452_vm1 = vcmp.lt.f32.partialorder %v14577_v46, %v5429_v10 }
0x3c7f   :  { %vm5468_vm6 = vmand %vm5460_vm9, %vm16366_vm5 }
0x3c80   :  { %vm5476_vm12 = vmor %vm5452_vm1, %vm5468_vm6 }
0x3c81   :  { %v5431_v15 = vpop.permute.xlu1 %5430  ;;  %v10700_v22 = vsel %vm5476_vm12, 1.0, %v12843_v0  ;;  %vm16371_vm12 = vcmp.ne.s32.totalorder %v12968_v55, 0 }
0x3c82   :  { %vm5453_vm15 = vcmp.lt.f32.partialorder %v14577_v46, %v5431_v15  ;;  %vm5461_vm4 = vcmp.eq.f32.partialorder %v14577_v46, %v5431_v15 }
0x3c83   :  { %vm5469_vm13 = vmand %vm5461_vm4, %vm16367_vm3 }
0x3c84   :  { %vm5477_vm10 = vmor %vm5453_vm15, %vm5469_vm13 }
0x3c85   :  { %v10701_v11 = vsel %vm5477_vm10, 1.0, %v12843_v0  ;;  %v5433_v23 = vpop.permute.xlu0 %5432 }
0x3c86   :  { %v5500_v17 = vpack.c.bf16 %v10701_v11, %v10700_v22  ;;  %vm5462_vm11 = vcmp.eq.f32.partialorder %v14577_v46, %v5433_v23  ;;  %vm5454_vm2 = vcmp.lt.f32.partialorder %v14577_v46, %v5433_v23 }
0x3c87   :  { %vm5470_vm8 = vmand %vm5462_vm11, %vm16368_vm14 }
0x3c88   :  { %5508 = vrot.lane.b32.xlu0 %v5500_v17, %s12846_s25  ;;  %vm14633_vm9 = vmor %vm5454_vm2, %vm5470_vm8  ;;  %vm16374_vm8 = vcmp.ne.s32.totalorder %v12972_v57, 0 }
0x3c89   :  { %v5437_v24 = vpop.permute.xlu0 %5436  ;;  %v5435_v9 = vpop.permute.xlu1 %5434  ;;  %v10702_v32 = vsel %vm14633_vm9, 1.0, %v12843_v0 }
0x3c8a   :  { %vm5456_vm1 = vcmp.lt.f32.partialorder %v14580_v53, %v5437_v24  ;;  %vm5464_vm5 = vcmp.eq.f32.partialorder %v14580_v53, %v5437_v24  ;;  %vm5463_vm6 = vcmp.eq.f32.partialorder %v14577_v46, %v5435_v9  ;;  %vm5455_vm4 = vcmp.lt.f32.partialorder %v14577_v46, %v5435_v9 }
0x3c8b   :  { %vm5472_vm15 = vmand %vm5464_vm5, %vm16371_vm12  ;;  %vm16375_vm12 = vcmp.ne.s32.totalorder %v12970_v56, 0 }
0x3c8c   :  { %vm14643_vm3 = vmor %vm5456_vm1, %vm5472_vm15 }
0x3c8d   :  { %vm5471_vm13 = vmand %vm5463_vm6, %vm365_vm7  ;;  %v5441_v33 = vpop.permute.xlu0 %5440  ;;  %v5439_v59 = vpop.permute.xlu1 %5438  ;;  %v10704_v16 = vsel %vm14643_vm3, 1.0, %v12843_v0  ;;  %vm16376_vm3 = vcmask 261120  }
0x3c8e   :  { %vm5479_vm10 = vmor %vm5455_vm4, %vm5471_vm13  ;;  %vm5458_vm11 = vcmp.lt.f32.partialorder %v14580_v53, %v5441_v33  ;;  %vm5466_vm2 = vcmp.eq.f32.partialorder %v14580_v53, %v5441_v33  ;;  %vm5465_vm14 = vcmp.eq.f32.partialorder %v14580_v53, %v5439_v59  ;;  %vm5457_vm5 = vcmp.lt.f32.partialorder %v14580_v53, %v5439_v59 }
0x3c8f   :  { %v10703_v45 = vsel %vm5479_vm10, 1.0, %v12843_v0  ;;  %vm5474_vm1 = vmand %vm5466_vm2, %vm16374_vm8 }
0x3c90   :  { %v5501_v18 = vpack.c.bf16 %v10703_v45, %v10702_v32  ;;  %vm5482_vm6 = vmor %vm5458_vm11, %vm5474_vm1 }
0x3c91   :  { %vm5473_vm15 = vmand %vm5465_vm14, %vm16375_vm12  ;;  %v5443_v26 = vpop.permute.xlu1 %5442  ;;  %v10706_v60 = vsel %vm5482_vm6, 1.0, %v12843_v0 }
0x3c92   :  { %vm5481_vm4 = vmor %vm5457_vm5, %vm5473_vm15  ;;  %5510 = vrot.lane.b32.xlu1 %v5501_v18, %s12846_s25  ;;  %vm5459_vm13 = vcmp.lt.f32.partialorder %v14580_v53, %v5443_v26  ;;  %vm5467_vm9 = vcmp.eq.f32.partialorder %v14580_v53, %v5443_v26 }
0x3c93   :  { %v10705_v7 = vsel %vm5481_vm4, 1.0, %v12843_v0  ;;  %vm5475_vm10 = vmand %vm5467_vm9, %vm365_vm7 }
0x3c94   :  { %v5502_v2 = vpack.c.bf16 %v10705_v7, %v10704_v16  ;;  %vm5483_vm11 = vmor %vm5459_vm13, %vm5475_vm10 }
0x3c95   :  { %v10707_v19 = vsel %vm5483_vm11, 1.0, %v12843_v0  ;;  %vm16377_vm2 = vmmov %vm16376_vm3 }
0x3c96   :  { %v5503_v13 = vpack.c.bf16 %v10707_v19, %v10706_v60  ;;  %5512 = vrot.lane.b32.xlu0 %v5502_v2, %s12846_s25  ;;  %vm16378_vm14 = vmmov %vm16377_vm2 }
0x3c97   :  { %vm16379_vm8 = vmmov %vm16377_vm2 }
0x3c98   :  { %5514 = vrot.lane.b32.xlu1 %v5503_v13, %s12846_s25  ;;  %vm16380_vm15 = vmmov %vm16377_vm2 }
0x3c99   :  { %vm16381_vm4 = vmmov %vm16377_vm2 }
0x3c9a   :  { %5659 = vrot.lane.b32.xlu0 %v14570_v27, %s12846_s25  ;;  %vm16382_vm9 = vmmov %vm16377_vm2 }
0x3c9e   :  { %5190 = vrot.lane.b32.xlu0 %v12717_v40, %s12845_s18 }
0x3cfa   :  { %v5509_v42 = vpop.permute.xlu0 %5508 }
0x3cfb   :  { %11804 = vmatprep.mubr.msk.bf16.mxu1 %vm16376_vm3, %v5509_v42  ;;  %vm16383_vm3 = vmmov %vm16377_vm2 }
0x3d04   :  { %v5511_v30 = vpop.permute.xlu1 %5510 }
0x3d05   :  { %11805 = vmatmul.mubr.msk.bf16.vlgmr.msra.gmra.mrb[80].mxu1 %vm16377_vm2, %v5511_v30 }
0x3d06   :  { %11813 = vmatpush3.bf16.msra.mxu1 %v12540_v39 }
0x3d07   :  { %11814 = vmatprep.subr.bf16.mxu1 %v12843_v0 }
0x3d08   :  { %v5513_v8 = vpop.permute.xlu0 %5512 }
0x3d09   :  { %11808 = vmatprep.mubr.msk.bf16.mxu1 %vm16378_vm14, %v5513_v8  ;;  %vm16384_vm14 = vmmov %vm16383_vm3 }
0x3d0a   :  { %v5515_v43 = vpop.permute.xlu1 %5514  ;;  %11815 = vmatpush3.bf16.msra.mxu1 %v12541_v3 }
0x3d0b   :  { %11816 = vmatprep.subr.bf16.mxu1 %v12843_v0 }
0x3d0d   :  { %11809 = vmatmul.mubr.msk.bf16.gmra.mrb[84].mxu1 %vm16379_vm8, %v5515_v43  ;;  %vm16385_vm8 = vmmov %vm16383_vm3 }
0x3d0e   :  { %11820 = vmatprep.mubr.msk.bf16.mxu1 %vm16167_vm0, %v12843_v0  ;;  %11817 = vmatpush3.bf16.msra.mxu1 %v12542_v47 }
0x3d0f   :  { %11818 = vmatprep.subr.bf16.mxu1 %v12843_v0 }
0x3d12   :  { %11819 = vmatpush3.bf16.msra.mxu1 %v12543_v36 }
0x3d13   :  { %11836 = vmatprep.subr.bf16.mxu1 %v12843_v0 }
0x3dd8   :  { %v11806_v44 = vpop.f32.mrb[80].mxu1 }
0x3dd9   :  { %v12304_v29 = vtrunc.f32 %v11806_v44  ;;  %v5562_v49 = vpop.f32.mrb[81].mxu1 }
0x3dda   :  { %v12300_v35 = vtrunc.f32 %v5562_v49  ;;  %v11807_v31 = vpop.f32.mrb[82].mxu1 }
0x3ddb   :  { %v12305_v12 = vcvt.f32.s32 %v12304_v29  ;;  %v12306_v52 = vtrunc.f32 %v11807_v31  ;;  %v5565_v46 = vpop.f32.mrb[83].mxu1 }
0x3ddc   :  { %v12301_v53 = vcvt.f32.s32 %v12300_v35  ;;  %v12302_v21 = vtrunc.f32 %v5565_v46 }
0x3ddd   :  { %vm5603_vm1 = vcmp.eq.s32.totalorder %v12305_v12, %v12947_v41  ;;  %v12307_v54 = vcvt.f32.s32 %v12306_v52 }
0x3dde   :  { %vm5601_vm5 = vcmp.eq.s32.totalorder %v12301_v53, %v12947_v41  ;;  %v12303_v10 = vcvt.f32.s32 %v12302_v21  ;;  %v10714_v61 = vsel %vm5603_vm1, 1.0, %v12843_v0  ;;  %vm16386_vm1 = vmmov %vm16383_vm3  ;;  %v12544_v21 = vld [vmem:[%s16152_s5] sm:$0xff]  }
0x3ddf   :  { %v10712_v15 = vsel %vm5601_vm5, 1.0, %v12843_v0  ;;  %vm5604_vm6 = vcmp.eq.s32.totalorder %v12307_v54, %v12947_v41  ;;  %v5627_v38 = vmul.f32 %v10714_v61, %v14598_v63  ;;  %vm16387_vm5 = vmmov %vm16386_vm1  ;;  %11825 = vmatpush3.bf16.msra.mxu0 %v12544_v21  ;;  %v12545_v61 = vld [vmem:[%s16152_s5 + $0x8] sm:$0xff]  }
0x3de0   :  { %v5625_v22 = vmul.f32 %v10712_v15, %v14586_v20  ;;  %v10715_v11 = vsel %vm5604_vm6, 1.0, %v12843_v0  ;;  %vm5602_vm12 = vcmp.eq.s32.totalorder %v12303_v10, %v12947_v41  ;;  %v11810_v23 = vpop.f32.mrb[84].mxu1  ;;  %11826 = vmatprep.subr.bf16.mxu0 %v12843_v0  ;;  %vm16388_vm6 = vcmask 1041409  }
0x3de1   :  { %v10713_v17 = vsel %vm5602_vm12, 1.0, %v12843_v0  ;;  %v12312_v24 = vtrunc.f32 %v11810_v23  ;;  %v5578_v9 = vpop.f32.mrb[85].mxu1  ;;  %v5628_v59 = vmul.f32 %v10715_v11, %v14602_v14  ;;  %v5636_v63 = vsel %vm16382_vm9, %v5627_v38, 0.0  ;;  %v12546_v23 = vld [vmem:[%s16152_s5 + $0x10] sm:$0xff]   ;;  %vm16389_vm12 = vmmov %vm16386_vm1 }
0x3de2   :  { %v5626_v25 = vmul.f32 %v10713_v17, %v14592_v50  ;;  %v12308_v1 = vtrunc.f32 %v5578_v9  ;;  %v11811_v33 = vpop.f32.mrb[86].mxu1  ;;  %v5633_v45 = vsel %vm16380_vm15, %v5625_v22, 0.0  ;;  %vm16390_vm15 = vcmask 523264  }
0x3de3   :  { %v12313_v62 = vcvt.f32.s32 %v12312_v24  ;;  %v12314_v32 = vtrunc.f32 %v11811_v33  ;;  %v5581_v20 = vpop.f32.mrb[87].mxu1  ;;  %v5638_v13 = vsel %vm16383_vm3, %v5628_v59, 0.0  ;;  %11827 = vmatpush3.bf16.msra.mxu0 %v12545_v61  ;;  %vm16393_vm9 = vmmov %vm16390_vm15 }
0x3de4   :  { %v5634_v18 = vsel %vm16381_vm4, %v5626_v25, 0.0  ;;  %v12309_v26 = vcvt.f32.s32 %v12308_v1  ;;  %v12310_v16 = vtrunc.f32 %v5581_v20  ;;  %11828 = vmatprep.subr.bf16.mxu0 %v12843_v0  ;;  %vm16391_vm4 = vcmask 254976   ;;  %vm16396_vm3 = vmmov %vm16393_vm9 }
0x3de5   :  { %v5635_v7 = vadd.f32 %v5634_v18, %v5633_v45  ;;  %vm5607_vm13 = vcmp.eq.s32.totalorder %v12313_v62, %v12947_v41  ;;  %v12315_v2 = vcvt.f32.s32 %v12314_v32 }
0x3de6   :  { %vm5605_vm10 = vcmp.eq.s32.totalorder %v12309_v26, %v12947_v41  ;;  %v12311_v50 = vcvt.f32.s32 %v12310_v16  ;;  %v10718_v14 = vsel %vm5607_vm13, 1.0, %v12843_v0  ;;  %vm16392_vm13 = vmmov %vm16391_vm4 }
0x3de7   :  { %v5637_v60 = vadd.f32 %v5636_v63, %v5635_v7  ;;  %v10716_v19 = vsel %vm5605_vm10, 1.0, %v12843_v0  ;;  %vm5608_vm11 = vcmp.eq.s32.totalorder %v12315_v2, %v12947_v41  ;;  %v5631_v43 = vmul.f32 %v10718_v14, %v14604_v28  ;;  %11829 = vmatpush3.bf16.msra.mxu0 %v12546_v23  ;;  %v12548_v14 = vld [vmem:[%s16149_s2 + $0x20] sm:$0xff]   ;;  %vm16394_vm10 = vmmov %vm16391_vm4 }
0x3de8   :  { %v5629_v40 = vmul.f32 %v10716_v19, %v14590_v5  ;;  %vm5606_vm2 = vcmp.eq.s32.totalorder %v12311_v50, %v12947_v41  ;;  %v10719_v30 = vsel %vm5608_vm11, 1.0, %v12843_v0  ;;  %11830 = vmatprep.subr.bf16.mxu0 %v12843_v0  ;;  %v12549_v19 = vld [vmem:[%s16149_s2 + $0x28] sm:$0xff]   ;;  %vm16395_vm11 = vmmov %vm16386_vm1 }
0x3de9   :  { %v5639_v42 = vadd.f32 %v5638_v13, %v5637_v60  ;;  %v10717_v8 = vsel %vm5606_vm2, 1.0, %v12843_v0  ;;  %v5632_v36 = vmul.f32 %v10719_v30, %v14614_v48  ;;  %v5649_v49 = vsel %vm16386_vm1, %v5631_v43, 0.0  ;;  %v5660_v48 = vpop.permute.xlu0 %5659  ;;  %v12550_v13 = vld [vmem:[%s16149_s2 + $0x30] sm:$0xff]   ;;  %v12551_v30 = vld [vmem:[%s16149_s2 + $0x38] sm:$0xff]  }
0x3dea   :  { %v5630_v39 = vmul.f32 %v10717_v8, %v14596_v6  ;;  %v5646_v47 = vsel %vm16384_vm14, %v5629_v40, 0.0 }
0x3deb   :  { %v5640_v3 = vrot.slane %v5639_v42, 4  ;;  %v5651_v31 = vsel %vm16387_vm5, %v5632_v36, 0.0 }
0x3dec   :  { %v5647_v44 = vsel %vm16385_vm8, %v5630_v39, 0.0  ;;  %vm16397_vm8 = vcmp.ne.s32.totalorder %v12968_v55, 0 }
0x3ded   :  { %v5648_v29 = vadd.f32 %v5647_v44, %v5646_v47  ;;  %v5641_v5 = vadd.f32 %v5640_v3, %v5639_v42  ;;  %v5191_v17 = vpop.permute.xlu0 %5190  ;;  %v10740_v44 = vld [vmem:[%s16150_s3 + $0x1] ss:$0 sm:$0xff] }
0x3dee   :  { %v5193_v9 = vmul.f32 %v5191_v17, %v14382_v51  ;;  %v12547_v51 = vld [vmem:[%s16152_s5 + $0x18] sm:$0xff]  }
0x3def   :  { %v5650_v35 = vadd.f32 %v5649_v49, %v5648_v29  ;;  %v5642_v52 = vrot.slane %v5641_v5, 2  ;;  %11831 = vmatpush3.bf16.msra.mxu0 %v12547_v51 }
0x3df0   :  { %11848 = vmatprep.subr.bf16.mxu0 %v12849_v4 }
0x3df1   :  { %v5652_v12 = vadd.f32 %v5651_v31, %v5650_v35  ;;  %v5643_v28 = vadd.f32 %v5642_v52, %v5641_v5 }
0x3df3   :  { %v5653_v46 = vrot.slane %v5652_v12, 4  ;;  %v5644_v54 = vrot.slane %v5643_v28, 1 }
0x3df5   :  { %v5654_v53 = vadd.f32 %v5653_v46, %v5652_v12  ;;  %v5645_v22 = vadd.f32 %v5644_v54, %v5643_v28 }
0x3df7   :  { %v5655_v6 = vrot.slane %v5654_v53, 2 }
0x3df9   :  { %v5656_v10 = vadd.f32 %v5655_v6, %v5654_v53 }
0x3dfb   :  { %v5657_v15 = vrot.slane %v5656_v10, 1 }
0x3dfd   :  { %v5658_v11 = vadd.f32 %v5657_v15, %v5656_v10 }
0x3dff   :  { %v5664_v24 = vsel %vm16388_vm6, %v5658_v11, %v5645_v22 }
0x3e00   :  { %5665 = vrot.lane.b32.xlu1 %v5664_v24, %s12845_s18 }
0x3e04   :  { %5195 = vrot.lane.b32.xlu1 %v5193_v9, %s12846_s25 }
0x3e72   :  { %v5666_v38 = vpop.permute.xlu1 %5665 }
0x3e73   :  { %v5668_v25 = vsel %vm16389_vm12, %v5660_v48, %v5666_v38 }
0x3e74   :  { %v5677_v1 = vpack.c.bf16 %v5668_v25, %v5668_v25 }
0x3e76   :  { %11821 = vmatmul.mubr.msk.bf16.vlgmr.msra.gmra.mrb[88].mxu1 %vm16390_vm15, %v5677_v1  ;;  %v5196_v33 = vpop.permute.xlu1 %5195  ;;  %vm16398_vm15 = vcmp.ne.s32.totalorder %v12970_v56, 0 }
0x3e77   :  { %5198 = vst.msk [vmem:[#allocation2 + $0x2] sm:$0x3] %vm16391_vm4, %v5196_v33  ;;  %11844 = vmatprep.mubr.msk.bf16.mxu1 %vm16167_vm0, %v12843_v0  ;;  %11837 = vmatpush3.bf16.msra.mxu1 %v12548_v14 }
0x3e78   :  { %5200 = vst.msk [vmem:[#allocation6 + $0x6] sm:$0x3] %vm16392_vm13, %v5196_v33  ;;  %11838 = vmatprep.subr.bf16.mxu1 %v12843_v0 }
0x3e7b   :  { %11839 = vmatpush3.bf16.msra.mxu1 %v12549_v19 }
0x3e7c   :  { %11840 = vmatprep.subr.bf16.mxu1 %v12843_v0 }
0x3e7e   :  { %v5838_v42 = vld [vmem:[#allocation2 + $0x2] sm:$0x3] }
0x3e7f   :  { %11841 = vmatpush3.bf16.msra.mxu1 %v12550_v13 }
0x3e80   :  { %11842 = vmatprep.subr.bf16.mxu1 %v12843_v0 }
0x3e83   :  { %11843 = vmatpush3.bf16.msra.mxu1 %v12551_v30 }
0x3e84   :  { %11872 = vmatprep.subr.bf16.mxu1 %v12843_v0 }
0x3f49   :  { %v5739_v59 = vpop.f32.mrb[88].mxu1 }
0x3f4a   :  { %v5745_v62 = vmax.f32 %v5739_v59, 0.0  ;;  %v11822_v32 = vpop.f32.mrb[89].mxu1 }
0x3f4b   :  { %v5742_v20 = vpop.f32.mrb[90].mxu1 }
0x3f4c   :  { %v5754_v45 = vpack.c.bf16 %v5745_v62, %v5745_v62  ;;  %v11823_v18 = vpop.f32.mrb[91].mxu1 }
0x3f4e   :  { %11833 = vmatmul.mubr.msk.bf16.vlgmr.msra.gmra.mrb[84].mxu0 %vm16393_vm9, %v5754_v45 }
0x3f4f   :  { %11849 = vmatpush3.bf16.msra.mxu0 %v12849_v4 }
0x3f50   :  { %11850 = vmatprep.subr.bf16.mxu0 %v12849_v4 }
0x3f53   :  { %11851 = vmatpush3.bf16.msra.mxu0 %v12849_v4 }
0x3f54   :  { %11860 = vmatprep.subr.bf16.mxu0 %v12843_v0 }
0x4021   :  { %v5816_v26 = vpop.f32.mrb[84].mxu0 }
0x4022   :  { %v10730_v16 = vmul.f32 -1.442695, %v5816_v26  ;;  %v11834_v7 = vpop.f32.mrb[85].mxu0 }
0x4023   :  { %v5819_v2 = vpop.f32.mrb[86].mxu0 }
0x4024   :  { %12718 = vpow2.f32 %v10730_v16  ;;  %v11835_v63 = vpop.f32.mrb[87].mxu0 }
0x402e   :  { %v12719_v50 = vpop.eup %12718 }
0x402f   :  { %v5825_v60 = vadd.f32 1.0, %v12719_v50 }
0x4031   :  { %12720 = vrcp.f32 %v5825_v60 }
0x403b   :  { %v12721_v40 = vpop.eup %12720 }
0x403c   :  { %5829 = vrot.lane.b32.xlu0 %v12721_v40, %s12845_s18 }
0x4040   :  { %5840 = vrot.lane.b32.xlu0 %v5838_v42, %s12845_s18 }
0x40ae   :  { %v5830_v8 = vpop.permute.xlu0 %5829 }
0x40af   :  { %v5832_v43 = vmul.f32 %v5830_v8, %v14570_v27 }
0x40b1   :  { %5834 = vrot.lane.b32.xlu1 %v5832_v43, %s12846_s25 }
0x40b2   :  { %v5841_v39 = vpop.permute.xlu0 %5840 }
0x4123   :  { %v5835_v3 = vpop.permute.xlu1 %5834 }
0x4124   :  { %5837 = vst.msk [vmem:[#allocation2] sm:$0x3] %vm16394_vm10, %v5835_v3  ;;  %v5843_v47 = vsel %vm16395_vm11, %v5835_v3, %v5841_v39  ;;  %vm16399_vm11 = vcmp.ne.s32.totalorder %v12972_v57, 0 }
0x4125   :  { %v5852_v36 = vpack.c.bf16 %v5843_v47, %v5843_v47 }
0x4127   :  { %11845 = vmatmul.mubr.msk.bf16.vlgmr.msra.gmra.mrb[92].mxu1 %vm16396_vm3, %v5852_v36 }
0x4128   :  { %11880 = vmatprep.mubr.msk.bf16.mxu1 %vm16167_vm0, %v12843_v0 }
0x41fa   :  { %v5921_v29 = vpop.f32.mrb[92].mxu1 }
0x41fb   :  { %v5922_v27 = vadd.f32 %v10740_v44, %v5921_v29  ;;  %v11846_v5 = vpop.f32.mrb[93].mxu1 }
0x41fc   :  { %v5924_v49 = vpop.f32.mrb[94].mxu1 }
0x41fd   :  { %5934 = vrot.lane.b32.xlu1 %v5922_v27, %s12845_s18  ;;  %v11847_v35 = vpop.f32.mrb[95].mxu1  ;;  %v10746_v31 = vmul.f32 -1.442695, %v5922_v27 }
0x41ff   :  { %12722 = vpow2.f32 %v10746_v31 }
0x4209   :  { %v12723_v12 = vpop.eup %12722 }
0x420a   :  { %v5930_v52 = vadd.f32 1.0, %v12723_v12  ;;  %v12552_v12 = vld [vmem:[#allocation3 + $0x20] sm:$0xff]  }
0x420c   :  { %12724 = vrcp.f32 %v5930_v52  ;;  %v12553_v52 = vld [vmem:[#allocation3 + $0x28] sm:$0xff]  }
0x4216   :  { %v12725_v46 = vpop.eup %12724 }
0x4217   :  { %v5944_v54 = vsub.f32 1.0, %v12725_v46  ;;  %v5950_v61 = vmul.f32 %v12725_v46, %v5841_v39 }
0x426f   :  { %v5935_v28 = vpop.permute.xlu1 %5934 }
0x4270   :  { %v5937_v53 = vmul.f32 %v12725_v46, %v5935_v28  ;;  %v12554_v46 = vld [vmem:[#allocation3 + $0x30] sm:$0xff]   ;;  %v12555_v28 = vld [vmem:[#allocation3 + $0x38] sm:$0xff]  }
0x4272   :  { %5939 = vrot.lane.b32.xlu0 %v5937_v53, %s12841_s7 }
0x42e4   :  { %v5940_v6 = vpop.permute.xlu0 %5939 }
0x42e5   :  { %v5942_v21 = vadd.f32 %v5940_v6, %v5922_v27  ;;  %v6477_v27 = vld [vmem:[#allocation2] sm:$0x3] }
0x42e7   :  { %12726 = vtanh.f32 %v5942_v21 }
0x42f1   :  { %v12727_v48 = vpop.eup %12726 }
0x42f2   :  { %5946 = vrot.lane.b32.xlu1 %v12727_v48, %s12846_s25 }
0x4364   :  { %v5947_v10 = vpop.permute.xlu1 %5946 }
0x4365   :  { %v5949_v15 = vmul.f32 %v5947_v10, %v5944_v54 }
0x4367   :  { %v14781_v22 = vadd.f32 %v5950_v61, %v5949_v15 }
0x4369   :  { %v5959_v11 = vrot.slane %v14781_v22, %v12938_v34 }
0x436b   :  { %v5960_v23 = vcombine.high %v5959_v11, %v5959_v11  ;;  %v5967_v17 = vrot.slane %v5959_v11, %v12938_v34 }
0x436d   :  { %v5974_v24 = vrot.slane %v5960_v23, %v12938_v34  ;;  %v5978_v9 = vrot.slane %v5967_v17, %v12942_v37 }
0x436f   :  { %v14789_v38 = vrot.slane %v5974_v24, %v12942_v37  ;;  %5985 = vrot.lane.b32.xlu0 %v5978_v9, %s12846_s25 }
0x4371   :  { %5987 = vrot.lane.b32.xlu1 %v14789_v38, %s12846_s25 }
0x43e1   :  { %v5986_v25 = vpop.permute.xlu0 %5985 }
0x43e2   :  { %5991 = vxpose.xlu0.b32.start [1/4] (short) (narrow) %v5986_v25, 32 }
0x43e3   :  { %v5988_v1 = vpop.permute.xlu1 %5987 }
0x43e4   :  { %6023 = vxpose.xlu1.b32.start [1/4] (short) (narrow) %v5988_v1, 32 }
0x43e6   :  { %5992 = vxpose.xlu0.b32.cont [2/4] (short) (narrow) %v5986_v25, 32 }
0x43e8   :  { %6024 = vxpose.xlu1.b32.cont [2/4] (short) (narrow) %v5988_v1, 32 }
0x43ea   :  { %5993 = vxpose.xlu0.b32.cont [3/4] (short) (narrow) %v5986_v25, 32 }
0x43ec   :  { %6025 = vxpose.xlu1.b32.cont [3/4] (short) (narrow) %v5988_v1, 32 }
0x43ee   :  { %5994 = vxpose.xlu0.b32.end [4/4] (short) (narrow) %v5986_v25, 32 }
0x43f0   :  { %6026 = vxpose.xlu1.b32.end [4/4] (short) (narrow) %v5988_v1, 32 }
0x4462   :  { %v14794_v33 = vpop.trf.xlu0 }
0x4463   :  { %6063 = vrot.lane.b32.xlu0 %v14794_v33, %s12845_s18 }
0x4464   :  { %v14798_v51 = vpop.trf.xlu1 }
0x4466   :  { %v14800_v59 = vpop.trf.xlu0 }
0x4467   :  { %6065 = vrot.lane.b32.xlu1 %v14800_v59, %s12845_s18 }
0x4468   :  { %v14804_v62 = vpop.trf.xlu1 }
0x446a   :  { %v14806_v32 = vpop.trf.xlu0 }
0x446b   :  { %6067 = vrot.lane.b32.xlu0 %v14806_v32, %s12845_s18 }
0x446c   :  { %v14812_v45 = vpop.trf.xlu1 }
0x446e   :  { %v14810_v20 = vpop.trf.xlu0 }
0x446f   :  { %6069 = vrot.lane.b32.xlu1 %v14810_v20, %s12845_s18  ;;  %6071 = vrot.lane.b32.xlu0 %v14798_v51, %s12845_s18 }
0x4470   :  { %v14822_v18 = vpop.trf.xlu1 }
0x4473   :  { %6073 = vrot.lane.b32.xlu1 %v14804_v62, %s12845_s18  ;;  %6075 = vrot.lane.b32.xlu0 %v14812_v45, %s12845_s18 }
0x4477   :  { %6077 = vrot.lane.b32.xlu1 %v14822_v18, %s12845_s18 }
0x44d5   :  { %v6064_v26 = vpop.permute.xlu0 %6063 }
0x44d6   :  { %vm6095_vm2 = vcmp.eq.f32.partialorder %v5978_v9, %v6064_v26  ;;  %vm6087_vm14 = vcmp.lt.f32.partialorder %v5978_v9, %v6064_v26 }
0x44d7   :  { %vm6103_vm1 = vmand %vm6095_vm2, %vm16397_vm8 }
0x44d8   :  { %vm6111_vm5 = vmor %vm6087_vm14, %vm6103_vm1 }
0x44d9   :  { %v6066_v16 = vpop.permute.xlu1 %6065  ;;  %v10747_v7 = vsel %vm6111_vm5, 1.0, %v12843_v0  ;;  %vm16400_vm5 = vcmp.ne.s32.totalorder %v12968_v55, 0 }
0x44da   :  { %vm6088_vm6 = vcmp.lt.f32.partialorder %v5978_v9, %v6066_v16  ;;  %vm6096_vm12 = vcmp.eq.f32.partialorder %v5978_v9, %v6066_v16 }
0x44db   :  { %vm6104_vm4 = vmand %vm6096_vm12, %vm16398_vm15 }
0x44dc   :  { %vm6112_vm13 = vmor %vm6088_vm6, %vm6104_vm4 }
0x44dd   :  { %v10748_v2 = vsel %vm6112_vm13, 1.0, %v12843_v0  ;;  %v6068_v63 = vpop.permute.xlu0 %6067 }
0x44de   :  { %v6135_v50 = vpack.c.bf16 %v10748_v2, %v10747_v7  ;;  %vm6097_vm9 = vcmp.eq.f32.partialorder %v5978_v9, %v6068_v63  ;;  %vm6089_vm10 = vcmp.lt.f32.partialorder %v5978_v9, %v6068_v63 }
0x44df   :  { %vm6105_vm3 = vmand %vm6097_vm9, %vm16399_vm11 }
0x44e0   :  { %6143 = vrot.lane.b32.xlu0 %v6135_v50, %s12846_s25  ;;  %vm6113_vm2 = vmor %vm6089_vm10, %vm6105_vm3  ;;  %vm16403_vm3 = vcmp.ne.s32.totalorder %v12972_v57, 0 }
0x44e1   :  { %v6072_v60 = vpop.permute.xlu0 %6071  ;;  %v6070_v14 = vpop.permute.xlu1 %6069  ;;  %v10749_v42 = vsel %vm6113_vm2, 1.0, %v12843_v0 }
0x44e2   :  { %vm6091_vm14 = vcmp.lt.f32.partialorder %v14789_v38, %v6072_v60  ;;  %vm6099_vm8 = vcmp.eq.f32.partialorder %v14789_v38, %v6072_v60  ;;  %vm6098_vm1 = vcmp.eq.f32.partialorder %v5978_v9, %v6070_v14  ;;  %vm6090_vm12 = vcmp.lt.f32.partialorder %v5978_v9, %v6070_v14 }
0x44e3   :  { %vm6107_vm6 = vmand %vm6099_vm8, %vm16400_vm5  ;;  %vm16404_vm5 = vcmp.ne.s32.totalorder %v12970_v56, 0 }
0x44e4   :  { %vm14839_vm15 = vmor %vm6091_vm14, %vm6107_vm6 }
0x44e5   :  { %vm6106_vm4 = vmand %vm6098_vm1, %vm365_vm7  ;;  %v6076_v13 = vpop.permute.xlu0 %6075  ;;  %v6074_v40 = vpop.permute.xlu1 %6073  ;;  %v10751_v39 = vsel %vm14839_vm15, 1.0, %v12843_v0  ;;  %vm16405_vm15 = vcmask 261120  }
0x44e6   :  { %vm6114_vm13 = vmor %vm6090_vm12, %vm6106_vm4  ;;  %vm6093_vm9 = vcmp.lt.f32.partialorder %v14789_v38, %v6076_v13  ;;  %vm6101_vm10 = vcmp.eq.f32.partialorder %v14789_v38, %v6076_v13  ;;  %vm6100_vm11 = vcmp.eq.f32.partialorder %v14789_v38, %v6074_v40  ;;  %vm6092_vm8 = vcmp.lt.f32.partialorder %v14789_v38, %v6074_v40 }
0x44e7   :  { %v10750_v30 = vsel %vm6114_vm13, 1.0, %v12843_v0  ;;  %vm6109_vm14 = vmand %vm6101_vm10, %vm16403_vm3 }
0x44e8   :  { %v6136_v8 = vpack.c.bf16 %v10750_v30, %v10749_v42  ;;  %vm6117_vm1 = vmor %vm6093_vm9, %vm6109_vm14 }
0x44e9   :  { %vm6108_vm6 = vmand %vm6100_vm11, %vm16404_vm5  ;;  %v6078_v43 = vpop.permute.xlu1 %6077  ;;  %v10753_v36 = vsel %vm6117_vm1, 1.0, %v12843_v0 }
0x44ea   :  { %vm6116_vm12 = vmor %vm6092_vm8, %vm6108_vm6  ;;  %6145 = vrot.lane.b32.xlu1 %v6136_v8, %s12846_s25  ;;  %vm6094_vm4 = vcmp.lt.f32.partialorder %v14789_v38, %v6078_v43  ;;  %vm6102_vm2 = vcmp.eq.f32.partialorder %v14789_v38, %v6078_v43 }
0x44eb   :  { %v10752_v3 = vsel %vm6116_vm12, 1.0, %v12843_v0  ;;  %vm6110_vm13 = vmand %vm6102_vm2, %vm365_vm7 }
0x44ec   :  { %v6137_v47 = vpack.c.bf16 %v10752_v3, %v10751_v39  ;;  %vm6118_vm9 = vmor %vm6094_vm4, %vm6110_vm13 }
0x44ed   :  { %v10754_v44 = vsel %vm6118_vm9, 1.0, %v12843_v0  ;;  %vm16406_vm10 = vmmov %vm16405_vm15 }
0x44ee   :  { %v6138_v29 = vpack.c.bf16 %v10754_v44, %v10753_v36  ;;  %6147 = vrot.lane.b32.xlu0 %v6137_v47, %s12846_s25  ;;  %vm16407_vm11 = vmmov %vm16406_vm10 }
0x44ef   :  { %vm16408_vm3 = vmmov %vm16406_vm10 }
0x44f0   :  { %6149 = vrot.lane.b32.xlu1 %v6138_v29, %s12846_s25  ;;  %vm16409_vm6 = vmmov %vm16408_vm3 }
0x44f1   :  { %vm16410_vm12 = vmmov %vm16408_vm3 }
0x44f2   :  { %6294 = vrot.lane.b32.xlu0 %v14781_v22, %s12846_s25  ;;  %vm16411_vm2 = vmmov %vm16408_vm3 }
0x44f6   :  { %6479 = vrot.lane.b32.xlu0 %v6477_v27, %s12845_s18 }
0x4552   :  { %v6144_v5 = vpop.permute.xlu0 %6143 }
0x4553   :  { %11852 = vmatprep.mubr.msk.bf16.mxu0 %vm16405_vm15, %v6144_v5  ;;  %vm16412_vm15 = vmmov %vm16411_vm2 }
0x455c   :  { %v6146_v49 = vpop.permute.xlu1 %6145 }
0x455d   :  { %11853 = vmatmul.mubr.msk.bf16.vlgmr.msra.gmra.mrb[88].mxu0 %vm16406_vm10, %v6146_v49 }
0x455e   :  { %11861 = vmatpush3.bf16.msra.mxu0 %v12552_v12 }
0x455f   :  { %11862 = vmatprep.subr.bf16.mxu0 %v12843_v0 }
0x4560   :  { %v6148_v35 = vpop.permute.xlu0 %6147 }
0x4561   :  { %11856 = vmatprep.mubr.msk.bf16.mxu0 %vm16407_vm11, %v6148_v35  ;;  %vm16413_vm11 = vmmov %vm16411_vm2 }
0x4562   :  { %v6150_v31 = vpop.permute.xlu1 %6149  ;;  %11863 = vmatpush3.bf16.msra.mxu0 %v12553_v52 }
0x4563   :  { %11864 = vmatprep.subr.bf16.mxu0 %v12843_v0 }
0x4565   :  { %11857 = vmatmul.mubr.msk.bf16.gmra.mrb[92].mxu0 %vm16408_vm3, %v6150_v31  ;;  %vm16414_vm3 = vmmov %vm16411_vm2 }
0x4566   :  { %11868 = vmatprep.mubr.msk.bf16.mxu0 %vm16167_vm0, %v12843_v0  ;;  %11865 = vmatpush3.bf16.msra.mxu0 %v12554_v46 }
0x4567   :  { %11866 = vmatprep.subr.bf16.mxu0 %v12843_v0 }
0x456a   :  { %11867 = vmatpush3.bf16.msra.mxu0 %v12555_v28 }
0x456b   :  { %11884 = vmatprep.subr.bf16.mxu0 %v12843_v0 }
0x4630   :  { %v11854_v53 = vpop.f32.mrb[88].mxu0 }
0x4631   :  { %v12320_v6 = vtrunc.f32 %v11854_v53  ;;  %v6197_v21 = vpop.f32.mrb[89].mxu0 }
0x4632   :  { %v12316_v48 = vtrunc.f32 %v6197_v21  ;;  %v11855_v54 = vpop.f32.mrb[90].mxu0 }
0x4633   :  { %v12321_v10 = vcvt.f32.s32 %v12320_v6  ;;  %v12322_v61 = vtrunc.f32 %v11855_v54  ;;  %v6200_v15 = vpop.f32.mrb[91].mxu0 }
0x4634   :  { %v12317_v11 = vcvt.f32.s32 %v12316_v48  ;;  %v12318_v23 = vtrunc.f32 %v6200_v15 }
0x4635   :  { %vm6238_vm14 = vcmp.eq.s32.totalorder %v12321_v10, %v12947_v41  ;;  %v12323_v17 = vcvt.f32.s32 %v12322_v61 }
0x4636   :  { %vm6236_vm8 = vcmp.eq.s32.totalorder %v12317_v11, %v12947_v41  ;;  %v12319_v24 = vcvt.f32.s32 %v12318_v23  ;;  %v10761_v9 = vsel %vm6238_vm14, 1.0, %v12843_v0  ;;  %vm16415_vm14 = vmmov %vm16411_vm2 }
0x4637   :  { %v10759_v38 = vsel %vm6236_vm8, 1.0, %v12843_v0  ;;  %vm6239_vm1 = vcmp.eq.s32.totalorder %v12323_v17, %v12947_v41  ;;  %v6262_v63 = vmul.f32 %v10761_v9, %v14806_v32  ;;  %vm16416_vm8 = vmmov %vm16411_vm2 }
0x4638   :  { %v6260_v25 = vmul.f32 %v10759_v38, %v14794_v33  ;;  %v10762_v1 = vsel %vm6239_vm1, 1.0, %v12843_v0  ;;  %vm6237_vm5 = vcmp.eq.s32.totalorder %v12319_v24, %v12947_v41  ;;  %v11858_v26 = vpop.f32.mrb[92].mxu0  ;;  %vm16417_vm1 = vcmask 1041409   ;;  %v12560_v38 = vld [vmem:[%s16152_s5 + $0x20] sm:$0xff]  }
0x4639   :  { %v10760_v16 = vsel %vm6237_vm5, 1.0, %v12843_v0  ;;  %v12328_v7 = vtrunc.f32 %v11858_v26  ;;  %v6213_v2 = vpop.f32.mrb[93].mxu0  ;;  %v6263_v19 = vmul.f32 %v10762_v1, %v14810_v20  ;;  %v6271_v32 = vsel %vm16411_vm2, %v6262_v63, 0.0  ;;  %11873 = vmatpush3.bf16.msra.mxu1 %v12560_v38  ;;  %v12562_v1 = vld [vmem:[%s16152_s5 + $0x30] sm:$0xff]   ;;  %v6295_v26 = vpop.permute.xlu0 %6294  ;;  %vm16418_vm5 = vmmov %vm16411_vm2 }
0x463a   :  { %v6261_v50 = vmul.f32 %v10760_v16, %v14800_v59  ;;  %v12324_v60 = vtrunc.f32 %v6213_v2  ;;  %v11859_v14 = vpop.f32.mrb[94].mxu0  ;;  %v6268_v42 = vsel %vm16409_vm6, %v6260_v25, 0.0  ;;  %v12561_v25 = vld [vmem:[%s16152_s5 + $0x28] sm:$0xff]   ;;  %11874 = vmatprep.subr.bf16.mxu1 %v12843_v0  ;;  %v12556_v2 = vld [vmem:[%s16149_s2] sm:$0xff]   ;;  %vm16419_vm6 = vcmask 523264  }
0x463b   :  { %v12329_v13 = vcvt.f32.s32 %v12328_v7  ;;  %v12330_v40 = vtrunc.f32 %v11859_v14  ;;  %v6216_v33 = vpop.f32.mrb[95].mxu0  ;;  %v6273_v44 = vsel %vm16412_vm15, %v6263_v19, 0.0  ;;  %v10786_v14 = vld [vmem:[%s16147_s0 + $0xa] sm:$0x3]  ;;  %vm16423_vm15 = vcmp.ne.s32.totalorder %v12968_v55, 0 }
0x463c   :  { %v6269_v30 = vsel %vm16410_vm12, %v6261_v50, 0.0  ;;  %v12325_v8 = vcvt.f32.s32 %v12324_v60  ;;  %v12326_v43 = vtrunc.f32 %v6216_v33  ;;  %v12557_v50 = vld [vmem:[%s16149_s2 + $0x8] sm:$0xff]   ;;  %v12558_v60 = vld [vmem:[%s16149_s2 + $0x10] sm:$0xff]   ;;  %vm16420_vm12 = vmmov %vm16411_vm2 }
0x463d   :  { %v6270_v39 = vadd.f32 %v6269_v30, %v6268_v42  ;;  %vm6242_vm4 = vcmp.eq.s32.totalorder %v12329_v13, %v12947_v41  ;;  %v12331_v3 = vcvt.f32.s32 %v12330_v40  ;;  %11875 = vmatpush3.bf16.msra.mxu1 %v12561_v25  ;;  %v6480_v19 = vpop.permute.xlu0 %6479  ;;  %v12559_v13 = vld [vmem:[%s16149_s2 + $0x18] sm:$0xff]  }
0x463e   :  { %vm6240_vm13 = vcmp.eq.s32.totalorder %v12325_v8, %v12947_v41  ;;  %v12327_v59 = vcvt.f32.s32 %v12326_v43  ;;  %v10765_v20 = vsel %vm6242_vm4, 1.0, %v12843_v0  ;;  %11876 = vmatprep.subr.bf16.mxu1 %v12843_v0  ;;  %v6482_v40 = vsel %vm16420_vm12, %v10786_v14, %v6480_v19  ;;  %vm16421_vm4 = vmmov %vm16419_vm6  ;;  %v12563_v42 = vld [vmem:[%s16152_s5 + $0x38] sm:$0xff]  }
0x463f   :  { %v6272_v47 = vadd.f32 %v6271_v32, %v6270_v39  ;;  %v10763_v36 = vsel %vm6240_vm13, 1.0, %v12843_v0  ;;  %vm6243_vm9 = vcmp.eq.s32.totalorder %v12331_v3, %v12947_v41  ;;  %v6266_v35 = vmul.f32 %v10765_v20, %v14812_v45  ;;  %vm16422_vm2 = vmmov %vm16421_vm4 }
0x4640   :  { %v6264_v29 = vmul.f32 %v10763_v36, %v14798_v51  ;;  %vm6241_vm10 = vcmp.eq.s32.totalorder %v12327_v59, %v12947_v41  ;;  %v10766_v5 = vsel %vm6243_vm9, 1.0, %v12843_v0  ;;  %v6491_v33 = vpack.c.bf16 %v6482_v40, %v6482_v40  ;;  %v10787_v59 = vld [vmem:[%s16150_s3] ss:$0 sm:$0xff] }
0x4641   :  { %v6274_v27 = vadd.f32 %v6273_v44, %v6272_v47  ;;  %v10764_v49 = vsel %vm6241_vm10, 1.0, %v12843_v0  ;;  %v6267_v46 = vmul.f32 %v10766_v5, %v14822_v18  ;;  %v6284_v6 = vsel %vm16415_vm14, %v6266_v35, 0.0  ;;  %11877 = vmatpush3.bf16.msra.mxu1 %v12562_v1 }
0x4642   :  { %v6265_v31 = vmul.f32 %v10764_v49, %v14804_v62  ;;  %v6281_v52 = vsel %vm16413_vm11, %v6264_v29, 0.0  ;;  %11878 = vmatprep.subr.bf16.mxu1 %v12843_v0 }
0x4643   :  { %v6275_v12 = vrot.slane %v6274_v27, 4  ;;  %v6286_v48 = vsel %vm16416_vm8, %v6267_v46, 0.0  ;;  %vm16424_vm8 = vcmp.ne.s32.totalorder %v12970_v56, 0 }
0x4644   :  { %v6282_v28 = vsel %vm16414_vm3, %v6265_v31, 0.0 }
0x4645   :  { %v6283_v53 = vadd.f32 %v6282_v28, %v6281_v52  ;;  %v6276_v51 = vadd.f32 %v6275_v12, %v6274_v27  ;;  %11879 = vmatpush3.bf16.msra.mxu1 %v12563_v42 }
0x4646   :  { %11896 = vmatprep.subr.bf16.mxu1 %v12849_v4 }
0x4647   :  { %v6285_v21 = vadd.f32 %v6284_v6, %v6283_v53  ;;  %v6277_v10 = vrot.slane %v6276_v51, 2 }
0x4649   :  { %v6287_v54 = vadd.f32 %v6286_v48, %v6285_v21  ;;  %v6278_v45 = vadd.f32 %v6277_v10, %v6276_v51 }
0x464b   :  { %v6288_v61 = vrot.slane %v6287_v54, 4  ;;  %v6279_v11 = vrot.slane %v6278_v45, 1 }
0x464d   :  { %v6289_v15 = vadd.f32 %v6288_v61, %v6287_v54  ;;  %v6280_v24 = vadd.f32 %v6279_v11, %v6278_v45 }
0x464f   :  { %v6290_v62 = vrot.slane %v6289_v15, 2 }
0x4651   :  { %v6291_v23 = vadd.f32 %v6290_v62, %v6289_v15 }
0x4653   :  { %v6292_v17 = vrot.slane %v6291_v23, 1 }
0x4655   :  { %v6293_v18 = vadd.f32 %v6292_v17, %v6291_v23 }
0x4657   :  { %v6299_v9 = vsel %vm16417_vm1, %v6293_v18, %v6280_v24 }
0x4658   :  { %6300 = vrot.lane.b32.xlu1 %v6299_v9, %s12845_s18 }
0x46ca   :  { %v6301_v16 = vpop.permute.xlu1 %6300 }
0x46cb   :  { %v6303_v7 = vsel %vm16418_vm5, %v6295_v26, %v6301_v16 }
0x46cc   :  { %v6312_v63 = vpack.c.bf16 %v6303_v7, %v6303_v7 }
0x46ce   :  { %11869 = vmatmul.mubr.msk.bf16.vlgmr.msra.gmra.mrb[96].mxu0 %vm16419_vm6, %v6312_v63 }
0x46cf   :  { %11885 = vmatpush3.bf16.msra.mxu0 %v12556_v2  ;;  %11892 = vmatprep.mubr.msk.bf16.mxu0 %vm16167_vm0, %v12843_v0 }
0x46d0   :  { %11886 = vmatprep.subr.bf16.mxu0 %v12843_v0 }
0x46d3   :  { %11887 = vmatpush3.bf16.msra.mxu0 %v12557_v50 }
0x46d4   :  { %11888 = vmatprep.subr.bf16.mxu0 %v12843_v0 }
0x46d7   :  { %11889 = vmatpush3.bf16.msra.mxu0 %v12558_v60 }
0x46d8   :  { %11890 = vmatprep.subr.bf16.mxu0 %v12843_v0 }
0x46db   :  { %11891 = vmatpush3.bf16.msra.mxu0 %v12559_v13 }
0x46dc   :  { %11920 = vmatprep.subr.bf16.mxu0 %v12843_v0 }
0x46de   :  { %11893 = vmatmul.mubr.msk.bf16.vlgmr.msra.gmra.mrb[100].mxu0 %vm16421_vm4, %v6491_v33  ;;  %vm16425_vm4 = vcmp.ne.s32.totalorder %v12972_v57, 0 }
0x46df   :  { %11928 = vmatprep.mubr.msk.bf16.mxu0 %vm16167_vm0, %v12843_v0 }
0x47a1   :  { %v6374_v30 = vpop.f32.mrb[96].mxu0 }
0x47a2   :  { %v6380_v8 = vmax.f32 %v6374_v30, 0.0  ;;  %v11870_v43 = vpop.f32.mrb[97].mxu0 }
0x47a3   :  { %v6377_v39 = vpop.f32.mrb[98].mxu0 }
0x47a4   :  { %v6389_v3 = vpack.c.bf16 %v6380_v8, %v6380_v8  ;;  %v11871_v32 = vpop.f32.mrb[99].mxu0 }
0x47a6   :  { %11881 = vmatmul.mubr.msk.bf16.vlgmr.msra.gmra.mrb[96].mxu1 %vm16422_vm2, %v6389_v3 }
0x47a7   :  { %11897 = vmatpush3.bf16.msra.mxu1 %v12849_v4 }
0x47a8   :  { %11898 = vmatprep.subr.bf16.mxu1 %v12849_v4 }
0x47ab   :  { %11899 = vmatpush3.bf16.msra.mxu1 %v12849_v4 }
0x47ac   :  { %11908 = vmatprep.subr.bf16.mxu1 %v12843_v0 }
0x47b1   :  { %v6560_v47 = vpop.f32.mrb[100].mxu0 }
0x47b2   :  { %v6561_v20 = vadd.f32 %v10787_v59, %v6560_v47  ;;  %v11894_v36 = vpop.f32.mrb[101].mxu0 }
0x47b3   :  { %v6563_v44 = vpop.f32.mrb[102].mxu0 }
0x47b4   :  { %6573 = vrot.lane.b32.xlu1 %v6561_v20, %s12845_s18  ;;  %v11895_v29 = vpop.f32.mrb[103].mxu0  ;;  %v10793_v27 = vmul.f32 -1.442695, %v6561_v20 }
0x47b6   :  { %12728 = vpow2.f32 %v10793_v27 }
0x47c0   :  { %v12729_v5 = vpop.eup %12728 }
0x47c1   :  { %v6569_v49 = vadd.f32 1.0, %v12729_v5 }
0x47c3   :  { %12730 = vrcp.f32 %v6569_v49 }
0x47cd   :  { %v12731_v35 = vpop.eup %12730 }
0x47ce   :  { %v6583_v48 = vsub.f32 1.0, %v12731_v35  ;;  %v6589_v10 = vmul.f32 %v12731_v35, %v6480_v19 }
0x4826   :  { %v6574_v31 = vpop.permute.xlu1 %6573 }
0x4827   :  { %v6576_v12 = vmul.f32 %v12731_v35, %v6574_v31 }
0x4829   :  { %6578 = vrot.lane.b32.xlu0 %v6576_v12, %s12841_s7 }
0x4879   :  { %v6451_v52 = vpop.f32.mrb[96].mxu1 }
0x487a   :  { %v11882_v46 = vpop.f32.mrb[97].mxu1  ;;  %v10785_v60 = vmul.f32 -1.442695, %v6451_v52 }
0x487b   :  { %v6454_v28 = vpop.f32.mrb[98].mxu1 }
0x487c   :  { %v11883_v53 = vpop.f32.mrb[99].mxu1 }
0x489b   :  { %v6579_v51 = vpop.permute.xlu0 %6578 }
0x489c   :  { %v6581_v6 = vadd.f32 %v6579_v51, %v6561_v20  ;;  %v12564_v51 = vld [vmem:[#allocation3] sm:$0xff]  }
0x489e   :  { %12732 = vtanh.f32 %v6581_v6  ;;  %v12565_v6 = vld [vmem:[#allocation3 + $0x8] sm:$0xff]  }
0x489f   :  { %12734 = vpow2.f32 %v10785_v60 }
0x48a8   :  { %v12733_v21 = vpop.eup %12732 }
0x48a9   :  { %6585 = vrot.lane.b32.xlu1 %v12733_v21, %s12846_s25  ;;  %v12735_v43 = vpop.eup %12734  ;;  %v12566_v21 = vld [vmem:[#allocation3 + $0x10] sm:$0xff]  }
0x48aa   :  { %v6460_v59 = vadd.f32 1.0, %v12735_v43 }
0x48ac   :  { %12736 = vrcp.f32 %v6460_v59 }
0x48b6   :  { %v12737_v12 = vpop.eup %12736 }
0x491b   :  { %v6586_v54 = vpop.permute.xlu1 %6585 }
0x491c   :  { %v6588_v61 = vmul.f32 %v6586_v54, %v6583_v48  ;;  %v12567_v48 = vld [vmem:[#allocation3 + $0x18] sm:$0xff]  }
0x491e   :  { %v14969_v45 = vadd.f32 %v6589_v10, %v6588_v61 }
0x4920   :  { %v6598_v15 = vrot.slane %v14969_v45, %v12938_v34 }
0x4922   :  { %v6599_v62 = vcombine.high %v6598_v15, %v6598_v15  ;;  %v6606_v11 = vrot.slane %v6598_v15, %v12938_v34 }
0x4924   :  { %v6613_v23 = vrot.slane %v6599_v62, %v12938_v34  ;;  %v14976_v17 = vrot.slane %v6606_v11, %v12942_v37 }
0x4926   :  { %v14979_v24 = vrot.slane %v6613_v23, %v12942_v37  ;;  %6624 = vrot.lane.b32.xlu0 %v14976_v17, %s12846_s25 }
0x4928   :  { %6626 = vrot.lane.b32.xlu1 %v14979_v24, %s12846_s25 }
0x4998   :  { %v6625_v18 = vpop.permute.xlu0 %6624 }
0x4999   :  { %6630 = vxpose.xlu0.b32.start [1/4] (short) (narrow) %v6625_v18, 32 }
0x499a   :  { %v6627_v9 = vpop.permute.xlu1 %6626 }
0x499b   :  { %6662 = vxpose.xlu1.b32.start [1/4] (short) (narrow) %v6627_v9, 32 }
0x499d   :  { %6631 = vxpose.xlu0.b32.cont [2/4] (short) (narrow) %v6625_v18, 32 }
0x499f   :  { %6663 = vxpose.xlu1.b32.cont [2/4] (short) (narrow) %v6627_v9, 32 }
0x49a1   :  { %6632 = vxpose.xlu0.b32.cont [3/4] (short) (narrow) %v6625_v18, 32 }
0x49a3   :  { %6664 = vxpose.xlu1.b32.cont [3/4] (short) (narrow) %v6627_v9, 32 }
0x49a5   :  { %6633 = vxpose.xlu0.b32.end [4/4] (short) (narrow) %v6625_v18, 32 }
0x49a7   :  { %6665 = vxpose.xlu1.b32.end [4/4] (short) (narrow) %v6627_v9, 32 }
0x4a19   :  { %v14985_v38 = vpop.trf.xlu0 }
0x4a1a   :  { %6702 = vrot.lane.b32.xlu0 %v14985_v38, %s12845_s18 }
0x4a1b   :  { %v14989_v25 = vpop.trf.xlu1 }
0x4a1d   :  { %v14991_v1 = vpop.trf.xlu0 }
0x4a1e   :  { %6704 = vrot.lane.b32.xlu1 %v14991_v1, %s12845_s18 }
0x4a1f   :  { %v14995_v26 = vpop.trf.xlu1 }
0x4a21   :  { %v14997_v16 = vpop.trf.xlu0 }
0x4a22   :  { %6706 = vrot.lane.b32.xlu0 %v14997_v16, %s12845_s18 }
0x4a23   :  { %v15003_v2 = vpop.trf.xlu1 }
0x4a25   :  { %v15001_v7 = vpop.trf.xlu0 }
0x4a26   :  { %6708 = vrot.lane.b32.xlu1 %v15001_v7, %s12845_s18  ;;  %6710 = vrot.lane.b32.xlu0 %v14989_v25, %s12845_s18 }
0x4a27   :  { %v15013_v63 = vpop.trf.xlu1 }
0x4a2a   :  { %6712 = vrot.lane.b32.xlu1 %v14995_v26, %s12845_s18  ;;  %6714 = vrot.lane.b32.xlu0 %v15003_v2, %s12845_s18 }
0x4a2e   :  { %6716 = vrot.lane.b32.xlu1 %v15013_v63, %s12845_s18 }
0x4a8c   :  { %v6703_v50 = vpop.permute.xlu0 %6702 }
0x4a8d   :  { %vm6734_vm13 = vcmp.eq.f32.partialorder %v14976_v17, %v6703_v50  ;;  %vm6726_vm9 = vcmp.lt.f32.partialorder %v14976_v17, %v6703_v50 }
0x4a8e   :  { %vm6742_vm10 = vmand %vm6734_vm13, %vm16423_vm15 }
0x4a8f   :  { %vm6750_vm11 = vmor %vm6726_vm9, %vm6742_vm10 }
0x4a90   :  { %v6705_v14 = vpop.permute.xlu1 %6704  ;;  %v10794_v19 = vsel %vm6750_vm11, 1.0, %v12843_v0  ;;  %vm16428_vm11 = vcmp.ne.s32.totalorder %v12968_v55, 0 }
0x4a91   :  { %vm6727_vm3 = vcmp.lt.f32.partialorder %v14976_v17, %v6705_v14  ;;  %vm6735_vm14 = vcmp.eq.f32.partialorder %v14976_v17, %v6705_v14 }
0x4a92   :  { %vm6743_vm1 = vmand %vm6735_vm14, %vm16424_vm8 }
0x4a93   :  { %vm6751_vm5 = vmor %vm6727_vm3, %vm6743_vm1 }
0x4a94   :  { %v10795_v13 = vsel %vm6751_vm5, 1.0, %v12843_v0  ;;  %v6707_v40 = vpop.permute.xlu0 %6706 }
0x4a95   :  { %v6774_v33 = vpack.c.bf16 %v10795_v13, %v10794_v19  ;;  %vm6736_vm6 = vcmp.eq.f32.partialorder %v14976_v17, %v6707_v40  ;;  %vm6728_vm12 = vcmp.lt.f32.partialorder %v14976_v17, %v6707_v40 }
0x4a96   :  { %vm6744_vm2 = vmand %vm6736_vm6, %vm16425_vm4 }
0x4a97   :  { %6782 = vrot.lane.b32.xlu0 %v6774_v33, %s12846_s25  ;;  %vm15032_vm13 = vmor %vm6728_vm12, %vm6744_vm2  ;;  %vm16431_vm2 = vcmp.ne.s32.totalorder %v12972_v57, 0 }
0x4a98   :  { %v6711_v42 = vpop.permute.xlu0 %6710  ;;  %v6709_v30 = vpop.permute.xlu1 %6708  ;;  %v10796_v47 = vsel %vm15032_vm13, 1.0, %v12843_v0 }
0x4a99   :  { %vm6730_vm9 = vcmp.lt.f32.partialorder %v14979_v24, %v6711_v42  ;;  %vm6738_vm15 = vcmp.eq.f32.partialorder %v14979_v24, %v6711_v42  ;;  %vm6737_vm10 = vcmp.eq.f32.partialorder %v14976_v17, %v6709_v30  ;;  %vm6729_vm14 = vcmp.lt.f32.partialorder %v14976_v17, %v6709_v30 }
0x4a9a   :  { %vm6746_vm3 = vmand %vm6738_vm15, %vm16428_vm11  ;;  %vm16432_vm11 = vcmp.ne.s32.totalorder %v12970_v56, 0 }
0x4a9b   :  { %vm15042_vm8 = vmor %vm6730_vm9, %vm6746_vm3 }
0x4a9c   :  { %vm6745_vm1 = vmand %vm6737_vm10, %vm365_vm7  ;;  %v6715_v3 = vpop.permute.xlu0 %6714  ;;  %v6713_v32 = vpop.permute.xlu1 %6712  ;;  %v10798_v29 = vsel %vm15042_vm8, 1.0, %v12843_v0  ;;  %vm16433_vm8 = vcmask 261120  }
0x4a9d   :  { %vm6753_vm5 = vmor %vm6729_vm14, %vm6745_vm1  ;;  %vm6732_vm6 = vcmp.lt.f32.partialorder %v14979_v24, %v6715_v3  ;;  %vm6740_vm12 = vcmp.eq.f32.partialorder %v14979_v24, %v6715_v3  ;;  %vm6739_vm4 = vcmp.eq.f32.partialorder %v14979_v24, %v6713_v32  ;;  %vm6731_vm15 = vcmp.lt.f32.partialorder %v14979_v24, %v6713_v32 }
0x4a9e   :  { %v10797_v20 = vsel %vm6753_vm5, 1.0, %v12843_v0  ;;  %vm6748_vm9 = vmand %vm6740_vm12, %vm16431_vm2 }
0x4a9f   :  { %v6775_v36 = vpack.c.bf16 %v10797_v20, %v10796_v47  ;;  %vm6756_vm10 = vmor %vm6732_vm6, %vm6748_vm9 }
0x4aa0   :  { %vm6747_vm3 = vmand %vm6739_vm4, %vm16432_vm11  ;;  %v6717_v44 = vpop.permute.xlu1 %6716  ;;  %v10800_v49 = vsel %vm6756_vm10, 1.0, %v12843_v0 }
0x4aa1   :  { %vm6755_vm14 = vmor %vm6731_vm15, %vm6747_vm3  ;;  %6784 = vrot.lane.b32.xlu1 %v6775_v36, %s12846_s25  ;;  %vm6733_vm1 = vcmp.lt.f32.partialorder %v14979_v24, %v6717_v44  ;;  %vm6741_vm13 = vcmp.eq.f32.partialorder %v14979_v24, %v6717_v44 }
0x4aa2   :  { %v10799_v27 = vsel %vm6755_vm14, 1.0, %v12843_v0  ;;  %vm6749_vm5 = vmand %vm6741_vm13, %vm365_vm7 }
0x4aa3   :  { %v6776_v5 = vpack.c.bf16 %v10799_v27, %v10798_v29  ;;  %vm6757_vm6 = vmor %vm6733_vm1, %vm6749_vm5 }
0x4aa4   :  { %v10801_v35 = vsel %vm6757_vm6, 1.0, %v12843_v0  ;;  %vm16434_vm12 = vmmov %vm16433_vm8 }
0x4aa5   :  { %v6777_v31 = vpack.c.bf16 %v10801_v35, %v10800_v49  ;;  %6786 = vrot.lane.b32.xlu0 %v6776_v5, %s12846_s25  ;;  %vm16435_vm4 = vmmov %vm16433_vm8 }
0x4aa6   :  { %vm16436_vm2 = vmmov %vm16435_vm4 }
0x4aa7   :  { %6788 = vrot.lane.b32.xlu1 %v6777_v31, %s12846_s25  ;;  %vm16437_vm3 = vmmov %vm16436_vm2 }
0x4aa8   :  { %vm16438_vm14 = vmmov %vm16436_vm2 }
0x4aa9   :  { %6933 = vrot.lane.b32.xlu0 %v14969_v45, %s12846_s25  ;;  %vm16439_vm13 = vmmov %vm16436_vm2 }
0x4aad   :  { %6464 = vrot.lane.b32.xlu0 %v12737_v12, %s12845_s18 }
0x4b09   :  { %v6783_v52 = vpop.permute.xlu0 %6782 }
0x4b0a   :  { %11900 = vmatprep.mubr.msk.bf16.mxu1 %vm16433_vm8, %v6783_v52  ;;  %vm16440_vm8 = vmmov %vm16436_vm2 }
0x4b13   :  { %v6785_v46 = vpop.permute.xlu1 %6784 }
0x4b14   :  { %11901 = vmatmul.mubr.msk.bf16.vlgmr.msra.gmra.mrb[100].mxu1 %vm16434_vm12, %v6785_v46 }
0x4b15   :  { %11909 = vmatpush3.bf16.msra.mxu1 %v12564_v51 }
0x4b16   :  { %11910 = vmatprep.subr.bf16.mxu1 %v12843_v0 }
0x4b17   :  { %v6787_v28 = vpop.permute.xlu0 %6786 }
0x4b18   :  { %11904 = vmatprep.mubr.msk.bf16.mxu1 %vm16435_vm4, %v6787_v28  ;;  %vm16441_vm4 = vmmov %vm16436_vm2 }
0x4b19   :  { %v6789_v53 = vpop.permute.xlu1 %6788  ;;  %11911 = vmatpush3.bf16.msra.mxu1 %v12565_v6 }
0x4b1a   :  { %11912 = vmatprep.subr.bf16.mxu1 %v12843_v0 }
0x4b1c   :  { %11905 = vmatmul.mubr.msk.bf16.gmra.mrb[104].mxu1 %vm16436_vm2, %v6789_v53 }
0x4b1d   :  { %11916 = vmatprep.mubr.msk.bf16.mxu1 %vm16167_vm0, %v12843_v0  ;;  %11913 = vmatpush3.bf16.msra.mxu1 %v12566_v21 }
0x4b1e   :  { %11914 = vmatprep.subr.bf16.mxu1 %v12843_v0 }
0x4b21   :  { %11915 = vmatpush3.bf16.msra.mxu1 %v12567_v48 }
0x4b22   :  { %11932 = vmatprep.subr.bf16.mxu1 %v12843_v0 }
0x4be7   :  { %v11902_v54 = vpop.f32.mrb[100].mxu1 }
0x4be8   :  { %v12336_v10 = vtrunc.f32 %v11902_v54  ;;  %v6836_v61 = vpop.f32.mrb[101].mxu1 }
0x4be9   :  { %v12332_v15 = vtrunc.f32 %v6836_v61  ;;  %v11903_v62 = vpop.f32.mrb[102].mxu1 }
0x4bea   :  { %v12337_v11 = vcvt.f32.s32 %v12336_v10  ;;  %v12338_v23 = vtrunc.f32 %v11903_v62  ;;  %v6839_v17 = vpop.f32.mrb[103].mxu1 }
0x4beb   :  { %v12333_v24 = vcvt.f32.s32 %v12332_v15  ;;  %v12334_v18 = vtrunc.f32 %v6839_v17 }
0x4bec   :  { %vm6877_vm9 = vcmp.eq.s32.totalorder %v12337_v11, %v12947_v41  ;;  %v12339_v9 = vcvt.f32.s32 %v12338_v23 }
0x4bed   :  { %vm6875_vm15 = vcmp.eq.s32.totalorder %v12333_v24, %v12947_v41  ;;  %v12335_v50 = vcvt.f32.s32 %v12334_v18  ;;  %v10808_v60 = vsel %vm6877_vm9, 1.0, %v12843_v0  ;;  %vm16442_vm9 = vmmov %vm16436_vm2  ;;  %v12568_v18 = vld [vmem:[%s16152_s5] sm:$0xff]  }
0x4bee   :  { %v10806_v14 = vsel %vm6875_vm15, 1.0, %v12843_v0  ;;  %vm6878_vm10 = vcmp.eq.s32.totalorder %v12339_v9, %v12947_v41  ;;  %v6901_v8 = vmul.f32 %v10808_v60, %v14997_v16  ;;  %vm16443_vm15 = vmmov %vm16436_vm2  ;;  %11921 = vmatpush3.bf16.msra.mxu0 %v12568_v18  ;;  %v12569_v60 = vld [vmem:[%s16152_s5 + $0x8] sm:$0xff]  }
0x4bef   :  { %v6899_v19 = vmul.f32 %v10806_v14, %v14985_v38  ;;  %v10809_v13 = vsel %vm6878_vm10, 1.0, %v12843_v0  ;;  %vm6876_vm11 = vcmp.eq.s32.totalorder %v12335_v50, %v12947_v41  ;;  %v11906_v40 = vpop.f32.mrb[104].mxu1  ;;  %11922 = vmatprep.subr.bf16.mxu0 %v12843_v0  ;;  %vm16444_vm10 = vcmask 1041409  }
0x4bf0   :  { %v10807_v33 = vsel %vm6876_vm11, 1.0, %v12843_v0  ;;  %v12344_v42 = vtrunc.f32 %v11906_v40  ;;  %v6852_v30 = vpop.f32.mrb[105].mxu1  ;;  %v6902_v32 = vmul.f32 %v10809_v13, %v15001_v7  ;;  %v6910_v16 = vsel %vm16439_vm13, %v6901_v8, 0.0  ;;  %v12570_v40 = vld [vmem:[%s16152_s5 + $0x10] sm:$0xff]   ;;  %vm16445_vm11 = vmmov %vm16436_vm2 }
0x4bf1   :  { %v6900_v43 = vmul.f32 %v10807_v33, %v14991_v1  ;;  %v12340_v39 = vtrunc.f32 %v6852_v30  ;;  %v11907_v3 = vpop.f32.mrb[106].mxu1  ;;  %v6907_v20 = vsel %vm16437_vm3, %v6899_v19, 0.0  ;;  %vm16446_vm3 = vcmask 523264  }
0x4bf2   :  { %v12345_v59 = vcvt.f32.s32 %v12344_v42  ;;  %v12346_v47 = vtrunc.f32 %v11907_v3  ;;  %v6855_v38 = vpop.f32.mrb[107].mxu1  ;;  %v6912_v31 = vsel %vm16440_vm8, %v6902_v32, 0.0  ;;  %11923 = vmatpush3.bf16.msra.mxu0 %v12569_v60  ;;  %vm16449_vm13 = vmmov %vm16446_vm3 }
0x4bf3   :  { %v6908_v36 = vsel %vm16438_vm14, %v6900_v43, 0.0  ;;  %v12341_v44 = vcvt.f32.s32 %v12340_v39  ;;  %v12342_v29 = vtrunc.f32 %v6855_v38  ;;  %11924 = vmatprep.subr.bf16.mxu0 %v12843_v0  ;;  %vm16447_vm14 = vcmask 254976   ;;  %vm16452_vm8 = vmmov %vm16446_vm3 }
0x4bf4   :  { %v6909_v27 = vadd.f32 %v6908_v36, %v6907_v20  ;;  %vm6881_vm1 = vcmp.eq.s32.totalorder %v12345_v59, %v12947_v41  ;;  %v12347_v5 = vcvt.f32.s32 %v12346_v47 }
0x4bf5   :  { %vm6879_vm5 = vcmp.eq.s32.totalorder %v12341_v44, %v12947_v41  ;;  %v12343_v1 = vcvt.f32.s32 %v12342_v29  ;;  %v10812_v7 = vsel %vm6881_vm1, 1.0, %v12843_v0  ;;  %vm16448_vm1 = vmmov %vm16447_vm14 }
0x4bf6   :  { %v6911_v49 = vadd.f32 %v6910_v16, %v6909_v27  ;;  %v10810_v35 = vsel %vm6879_vm5, 1.0, %v12843_v0  ;;  %vm6882_vm6 = vcmp.eq.s32.totalorder %v12347_v5, %v12947_v41  ;;  %v6905_v53 = vmul.f32 %v10812_v7, %v15003_v2  ;;  %11925 = vmatpush3.bf16.msra.mxu0 %v12570_v40  ;;  %v12572_v7 = vld [vmem:[%s16149_s2 + $0x20] sm:$0xff]   ;;  %vm16450_vm5 = vmmov %vm16448_vm1 }
0x4bf7   :  { %v6903_v12 = vmul.f32 %v10810_v35, %v14989_v25  ;;  %vm6880_vm12 = vcmp.eq.s32.totalorder %v12343_v1, %v12947_v41  ;;  %v10813_v46 = vsel %vm6882_vm6, 1.0, %v12843_v0  ;;  %11926 = vmatprep.subr.bf16.mxu0 %v12843_v0  ;;  %v12573_v35 = vld [vmem:[%s16149_s2 + $0x28] sm:$0xff]   ;;  %vm16451_vm6 = vmmov %vm16436_vm2 }
0x4bf8   :  { %v6913_v52 = vadd.f32 %v6912_v31, %v6911_v49  ;;  %v10811_v28 = vsel %vm6880_vm12, 1.0, %v12843_v0  ;;  %v6906_v48 = vmul.f32 %v10813_v46, %v15013_v63  ;;  %v6923_v61 = vsel %vm16442_vm9, %v6905_v53, 0.0  ;;  %v6934_v63 = vpop.permute.xlu0 %6933  ;;  %v12574_v31 = vld [vmem:[%s16149_s2 + $0x30] sm:$0xff]   ;;  %v12575_v46 = vld [vmem:[%s16149_s2 + $0x38] sm:$0xff]  }
0x4bf9   :  { %v6904_v51 = vmul.f32 %v10811_v28, %v14995_v26  ;;  %v6920_v21 = vsel %vm16441_vm4, %v6903_v12, 0.0 }
0x4bfa   :  { %v6914_v6 = vrot.slane %v6913_v52, 4  ;;  %v6925_v62 = vsel %vm16443_vm15, %v6906_v48, 0.0 }
0x4bfb   :  { %v6921_v54 = vsel %vm16436_vm2, %v6904_v51, 0.0  ;;  %vm16453_vm2 = vcmp.ne.s32.totalorder %v12968_v55, 0 }
0x4bfc   :  { %v6922_v10 = vadd.f32 %v6921_v54, %v6920_v21  ;;  %v6915_v25 = vadd.f32 %v6914_v6, %v6913_v52  ;;  %v6465_v33 = vpop.permute.xlu0 %6464  ;;  %v10834_v54 = vld [vmem:[%s16150_s3 + $0x1] ss:$0 sm:$0xff] }
0x4bfd   :  { %v6467_v30 = vmul.f32 %v6465_v33, %v14781_v22  ;;  %v12571_v22 = vld [vmem:[%s16152_s5 + $0x18] sm:$0xff]  }
0x4bfe   :  { %v6924_v15 = vadd.f32 %v6923_v61, %v6922_v10  ;;  %v6916_v23 = vrot.slane %v6915_v25, 2  ;;  %11927 = vmatpush3.bf16.msra.mxu0 %v12571_v22 }
0x4bff   :  { %11944 = vmatprep.subr.bf16.mxu0 %v12849_v4 }
0x4c00   :  { %v6926_v11 = vadd.f32 %v6925_v62, %v6924_v15  ;;  %v6917_v2 = vadd.f32 %v6916_v23, %v6915_v25 }
0x4c02   :  { %v6927_v17 = vrot.slane %v6926_v11, 4  ;;  %v6918_v9 = vrot.slane %v6917_v2, 1 }
0x4c04   :  { %v6928_v24 = vadd.f32 %v6927_v17, %v6926_v11  ;;  %v6919_v19 = vadd.f32 %v6918_v9, %v6917_v2 }
0x4c06   :  { %v6929_v26 = vrot.slane %v6928_v24, 2 }
0x4c08   :  { %v6930_v50 = vadd.f32 %v6929_v26, %v6928_v24 }
0x4c0a   :  { %v6931_v14 = vrot.slane %v6930_v50, 1 }
0x4c0c   :  { %v6932_v13 = vadd.f32 %v6931_v14, %v6930_v50 }
0x4c0e   :  { %v6938_v42 = vsel %vm16444_vm10, %v6932_v13, %v6919_v19 }
0x4c0f   :  { %6939 = vrot.lane.b32.xlu1 %v6938_v42, %s12845_s18 }
0x4c13   :  { %6469 = vrot.lane.b32.xlu1 %v6467_v30, %s12846_s25 }
0x4c81   :  { %v6940_v8 = vpop.permute.xlu1 %6939 }
0x4c82   :  { %v6942_v43 = vsel %vm16445_vm11, %v6934_v63, %v6940_v8 }
0x4c83   :  { %v6951_v39 = vpack.c.bf16 %v6942_v43, %v6942_v43 }
0x4c85   :  { %11917 = vmatmul.mubr.msk.bf16.vlgmr.msra.gmra.mrb[108].mxu1 %vm16446_vm3, %v6951_v39  ;;  %v6470_v3 = vpop.permute.xlu1 %6469  ;;  %vm16454_vm3 = vcmp.ne.s32.totalorder %v12970_v56, 0 }
0x4c86   :  { %6472 = vst.msk [vmem:[#allocation2 + $0x2] sm:$0x3] %vm16447_vm14, %v6470_v3  ;;  %11940 = vmatprep.mubr.msk.bf16.mxu1 %vm16167_vm0, %v12843_v0  ;;  %11933 = vmatpush3.bf16.msra.mxu1 %v12572_v7 }
0x4c87   :  { %6474 = vst.msk [vmem:[#allocation6 + $0x8] sm:$0x3] %vm16448_vm1, %v6470_v3  ;;  %11934 = vmatprep.subr.bf16.mxu1 %v12843_v0 }
0x4c8a   :  { %11935 = vmatpush3.bf16.msra.mxu1 %v12573_v35 }
0x4c8b   :  { %11936 = vmatprep.subr.bf16.mxu1 %v12843_v0 }
0x4c8d   :  { %v7112_v52 = vld [vmem:[#allocation2 + $0x2] sm:$0x3] }
0x4c8e   :  { %11937 = vmatpush3.bf16.msra.mxu1 %v12574_v31 }
0x4c8f   :  { %11938 = vmatprep.subr.bf16.mxu1 %v12843_v0 }
0x4c92   :  { %11939 = vmatpush3.bf16.msra.mxu1 %v12575_v46 }
0x4c93   :  { %11968 = vmatprep.subr.bf16.mxu1 %v12843_v0 }
0x4d58   :  { %v7013_v32 = vpop.f32.mrb[108].mxu1 }
0x4d59   :  { %v7019_v59 = vmax.f32 %v7013_v32, 0.0  ;;  %v11918_v47 = vpop.f32.mrb[109].mxu1 }
0x4d5a   :  { %v7016_v38 = vpop.f32.mrb[110].mxu1 }
0x4d5b   :  { %v7028_v20 = vpack.c.bf16 %v7019_v59, %v7019_v59  ;;  %v11919_v36 = vpop.f32.mrb[111].mxu1 }
0x4d5d   :  { %11929 = vmatmul.mubr.msk.bf16.vlgmr.msra.gmra.mrb[104].mxu0 %vm16449_vm13, %v7028_v20 }
0x4d5e   :  { %11945 = vmatpush3.bf16.msra.mxu0 %v12849_v4 }
0x4d5f   :  { %11946 = vmatprep.subr.bf16.mxu0 %v12849_v4 }
0x4d62   :  { %11947 = vmatpush3.bf16.msra.mxu0 %v12849_v4 }
0x4d63   :  { %11956 = vmatprep.subr.bf16.mxu0 %v12843_v0 }
0x4e30   :  { %v7090_v44 = vpop.f32.mrb[104].mxu0 }
0x4e31   :  { %v10824_v29 = vmul.f32 -1.442695, %v7090_v44  ;;  %v11930_v27 = vpop.f32.mrb[105].mxu0 }
0x4e32   :  { %v7093_v5 = vpop.f32.mrb[106].mxu0 }
0x4e33   :  { %12738 = vpow2.f32 %v10824_v29  ;;  %v11931_v16 = vpop.f32.mrb[107].mxu0 }
0x4e3d   :  { %v12739_v1 = vpop.eup %12738 }
0x4e3e   :  { %v7099_v49 = vadd.f32 1.0, %v12739_v1 }
0x4e40   :  { %12740 = vrcp.f32 %v7099_v49 }
0x4e4a   :  { %v12741_v12 = vpop.eup %12740 }
0x4e4b   :  { %7103 = vrot.lane.b32.xlu0 %v12741_v12, %s12845_s18 }
0x4e4f   :  { %7114 = vrot.lane.b32.xlu0 %v7112_v52, %s12845_s18 }
0x4ebd   :  { %v7104_v28 = vpop.permute.xlu0 %7103 }
0x4ebe   :  { %v7106_v53 = vmul.f32 %v7104_v28, %v14969_v45 }
0x4ec0   :  { %7108 = vrot.lane.b32.xlu1 %v7106_v53, %s12846_s25 }
0x4ec1   :  { %v7115_v51 = vpop.permute.xlu0 %7114 }
0x4f32   :  { %v7109_v6 = vpop.permute.xlu1 %7108 }
0x4f33   :  { %7111 = vst.msk [vmem:[#allocation2] sm:$0x3] %vm16450_vm5, %v7109_v6  ;;  %v7117_v21 = vsel %vm16451_vm6, %v7109_v6, %v7115_v51  ;;  %vm16455_vm6 = vcmp.ne.s32.totalorder %v12972_v57, 0 }
0x4f34   :  { %v7126_v48 = vpack.c.bf16 %v7117_v21, %v7117_v21 }
0x4f36   :  { %11941 = vmatmul.mubr.msk.bf16.vlgmr.msra.gmra.mrb[112].mxu1 %vm16452_vm8, %v7126_v48 }
0x4f37   :  { %11976 = vmatprep.mubr.msk.bf16.mxu1 %vm16167_vm0, %v12843_v0 }
0x5009   :  { %v7195_v10 = vpop.f32.mrb[112].mxu1 }
0x500a   :  { %v7196_v45 = vadd.f32 %v10834_v54, %v7195_v10  ;;  %v11942_v25 = vpop.f32.mrb[113].mxu1 }
0x500b   :  { %v7198_v61 = vpop.f32.mrb[114].mxu1 }
0x500c   :  { %7208 = vrot.lane.b32.xlu1 %v7196_v45, %s12845_s18  ;;  %v11943_v15 = vpop.f32.mrb[115].mxu1  ;;  %v10840_v62 = vmul.f32 -1.442695, %v7196_v45 }
0x500e   :  { %12742 = vpow2.f32 %v10840_v62 }
0x5018   :  { %v12743_v11 = vpop.eup %12742 }
0x5019   :  { %v7204_v23 = vadd.f32 1.0, %v12743_v11  ;;  %v12576_v11 = vld [vmem:[#allocation3 + $0x20] sm:$0xff]  }
0x501b   :  { %12744 = vrcp.f32 %v7204_v23  ;;  %v12577_v23 = vld [vmem:[#allocation3 + $0x28] sm:$0xff]  }
0x5025   :  { %v12745_v17 = vpop.eup %12744 }
0x5026   :  { %v7218_v9 = vsub.f32 1.0, %v12745_v17  ;;  %v7224_v60 = vmul.f32 %v12745_v17, %v7115_v51 }
0x507e   :  { %v7209_v2 = vpop.permute.xlu1 %7208 }
0x507f   :  { %v7211_v24 = vmul.f32 %v12745_v17, %v7209_v2  ;;  %v12578_v17 = vld [vmem:[#allocation3 + $0x30] sm:$0xff]   ;;  %v12579_v2 = vld [vmem:[#allocation3 + $0x38] sm:$0xff]  }
0x5081   :  { %7213 = vrot.lane.b32.xlu0 %v7211_v24, %s12841_s7 }
0x50f3   :  { %v7214_v26 = vpop.permute.xlu0 %7213 }
0x50f4   :  { %v7216_v18 = vadd.f32 %v7214_v26, %v7196_v45  ;;  %v7751_v45 = vld [vmem:[#allocation2] sm:$0x3] }
0x50f6   :  { %12746 = vtanh.f32 %v7216_v18 }
0x5100   :  { %v12747_v63 = vpop.eup %12746 }
0x5101   :  { %7220 = vrot.lane.b32.xlu1 %v12747_v63, %s12846_s25 }
0x5173   :  { %v7221_v50 = vpop.permute.xlu1 %7220 }
0x5174   :  { %v7223_v14 = vmul.f32 %v7221_v50, %v7218_v9 }
0x5176   :  { %v15180_v19 = vadd.f32 %v7224_v60, %v7223_v14 }
0x5178   :  { %v7233_v13 = vrot.slane %v15180_v19, %v12938_v34 }
0x517a   :  { %v7234_v40 = vcombine.high %v7233_v13, %v7233_v13  ;;  %v7241_v33 = vrot.slane %v7233_v13, %v12938_v34 }
0x517c   :  { %v7248_v42 = vrot.slane %v7234_v40, %v12938_v34  ;;  %v7252_v30 = vrot.slane %v7241_v33, %v12942_v37 }
0x517e   :  { %v15188_v8 = vrot.slane %v7248_v42, %v12942_v37  ;;  %7259 = vrot.lane.b32.xlu0 %v7252_v30, %s12846_s25 }
0x5180   :  { %7261 = vrot.lane.b32.xlu1 %v15188_v8, %s12846_s25 }
0x51f0   :  { %v7260_v43 = vpop.permute.xlu0 %7259 }
0x51f1   :  { %7265 = vxpose.xlu0.b32.start [1/4] (short) (narrow) %v7260_v43, 32 }
0x51f2   :  { %v7262_v39 = vpop.permute.xlu1 %7261 }
0x51f3   :  { %7297 = vxpose.xlu1.b32.start [1/4] (short) (narrow) %v7262_v39, 32 }
0x51f5   :  { %7266 = vxpose.xlu0.b32.cont [2/4] (short) (narrow) %v7260_v43, 32 }
0x51f7   :  { %7298 = vxpose.xlu1.b32.cont [2/4] (short) (narrow) %v7262_v39, 32 }
0x51f9   :  { %7267 = vxpose.xlu0.b32.cont [3/4] (short) (narrow) %v7260_v43, 32 }
0x51fb   :  { %7299 = vxpose.xlu1.b32.cont [3/4] (short) (narrow) %v7262_v39, 32 }
0x51fd   :  { %7268 = vxpose.xlu0.b32.end [4/4] (short) (narrow) %v7260_v43, 32 }
0x51ff   :  { %7300 = vxpose.xlu1.b32.end [4/4] (short) (narrow) %v7262_v39, 32 }
0x5271   :  { %v15193_v3 = vpop.trf.xlu0 }
0x5272   :  { %7337 = vrot.lane.b32.xlu0 %v15193_v3, %s12845_s18 }
0x5273   :  { %v15197_v22 = vpop.trf.xlu1 }
0x5275   :  { %v15199_v32 = vpop.trf.xlu0 }
0x5276   :  { %7339 = vrot.lane.b32.xlu1 %v15199_v32, %s12845_s18 }
0x5277   :  { %v15203_v59 = vpop.trf.xlu1 }
0x5279   :  { %v15205_v47 = vpop.trf.xlu0 }
0x527a   :  { %7341 = vrot.lane.b32.xlu0 %v15205_v47, %s12845_s18 }
0x527b   :  { %v15211_v20 = vpop.trf.xlu1 }
0x527d   :  { %v15209_v38 = vpop.trf.xlu0 }
0x527e   :  { %7343 = vrot.lane.b32.xlu1 %v15209_v38, %s12845_s18  ;;  %7345 = vrot.lane.b32.xlu0 %v15197_v22, %s12845_s18 }
0x527f   :  { %v15221_v36 = vpop.trf.xlu1 }
0x5282   :  { %7347 = vrot.lane.b32.xlu1 %v15203_v59, %s12845_s18  ;;  %7349 = vrot.lane.b32.xlu0 %v15211_v20, %s12845_s18 }
0x5286   :  { %7351 = vrot.lane.b32.xlu1 %v15221_v36, %s12845_s18 }
0x52e4   :  { %v7338_v44 = vpop.permute.xlu0 %7337 }
0x52e5   :  { %vm7369_vm12 = vcmp.eq.f32.partialorder %v7252_v30, %v7338_v44  ;;  %vm7361_vm4 = vcmp.lt.f32.partialorder %v7252_v30, %v7338_v44 }
0x52e6   :  { %vm7377_vm9 = vmand %vm7369_vm12, %vm16453_vm2 }
0x52e7   :  { %vm7385_vm15 = vmor %vm7361_vm4, %vm7377_vm9 }
0x52e8   :  { %v7340_v29 = vpop.permute.xlu1 %7339  ;;  %v10841_v27 = vsel %vm7385_vm15, 1.0, %v12843_v0  ;;  %vm16456_vm15 = vcmp.ne.s32.totalorder %v12968_v55, 0 }
0x52e9   :  { %vm7362_vm10 = vcmp.lt.f32.partialorder %v7252_v30, %v7340_v29  ;;  %vm7370_vm11 = vcmp.eq.f32.partialorder %v7252_v30, %v7340_v29 }
0x52ea   :  { %vm7378_vm14 = vmand %vm7370_vm11, %vm16454_vm3 }
0x52eb   :  { %vm7386_vm1 = vmor %vm7362_vm10, %vm7378_vm14 }
0x52ec   :  { %v10842_v5 = vsel %vm7386_vm1, 1.0, %v12843_v0  ;;  %v7342_v16 = vpop.permute.xlu0 %7341 }
0x52ed   :  { %v7409_v1 = vpack.c.bf16 %v10842_v5, %v10841_v27  ;;  %vm7371_vm13 = vcmp.eq.f32.partialorder %v7252_v30, %v7342_v16  ;;  %vm7363_vm5 = vcmp.lt.f32.partialorder %v7252_v30, %v7342_v16 }
0x52ee   :  { %vm7379_vm8 = vmand %vm7371_vm13, %vm16455_vm6 }
0x52ef   :  { %7417 = vrot.lane.b32.xlu0 %v7409_v1, %s12846_s25  ;;  %vm7387_vm12 = vmor %vm7363_vm5, %vm7379_vm8  ;;  %vm16459_vm8 = vcmp.ne.s32.totalorder %v12972_v57, 0 }
0x52f0   :  { %v7346_v49 = vpop.permute.xlu0 %7345  ;;  %v7344_v7 = vpop.permute.xlu1 %7343  ;;  %v10843_v52 = vsel %vm7387_vm12, 1.0, %v12843_v0 }
0x52f1   :  { %vm7365_vm4 = vcmp.lt.f32.partialorder %v15188_v8, %v7346_v49  ;;  %vm7373_vm2 = vcmp.eq.f32.partialorder %v15188_v8, %v7346_v49  ;;  %vm7372_vm9 = vcmp.eq.f32.partialorder %v7252_v30, %v7344_v7  ;;  %vm7364_vm11 = vcmp.lt.f32.partialorder %v7252_v30, %v7344_v7 }
0x52f2   :  { %vm7381_vm10 = vmand %vm7373_vm2, %vm16456_vm15  ;;  %vm16460_vm15 = vcmp.ne.s32.totalorder %v12970_v56, 0 }
0x52f3   :  { %vm15238_vm3 = vmor %vm7365_vm4, %vm7381_vm10 }
0x52f4   :  { %vm7380_vm14 = vmand %vm7372_vm9, %vm365_vm7  ;;  %v7350_v31 = vpop.permute.xlu0 %7349  ;;  %v7348_v12 = vpop.permute.xlu1 %7347  ;;  %v10845_v51 = vsel %vm15238_vm3, 1.0, %v12843_v0  ;;  %vm16461_vm3 = vcmask 261120  }
0x52f5   :  { %vm7388_vm1 = vmor %vm7364_vm11, %vm7380_vm14  ;;  %vm7367_vm13 = vcmp.lt.f32.partialorder %v15188_v8, %v7350_v31  ;;  %vm7375_vm5 = vcmp.eq.f32.partialorder %v15188_v8, %v7350_v31  ;;  %vm7374_vm6 = vcmp.eq.f32.partialorder %v15188_v8, %v7348_v12  ;;  %vm7366_vm2 = vcmp.lt.f32.partialorder %v15188_v8, %v7348_v12 }
0x52f6   :  { %v10844_v46 = vsel %vm7388_vm1, 1.0, %v12843_v0  ;;  %vm7383_vm4 = vmand %vm7375_vm5, %vm16459_vm8 }
0x52f7   :  { %v7410_v28 = vpack.c.bf16 %v10844_v46, %v10843_v52  ;;  %vm7391_vm9 = vmor %vm7367_vm13, %vm7383_vm4 }
0x52f8   :  { %vm7382_vm10 = vmand %vm7374_vm6, %vm16460_vm15  ;;  %v7352_v53 = vpop.permute.xlu1 %7351  ;;  %v10847_v48 = vsel %vm7391_vm9, 1.0, %v12843_v0 }
0x52f9   :  { %vm7390_vm11 = vmor %vm7366_vm2, %vm7382_vm10  ;;  %7419 = vrot.lane.b32.xlu1 %v7410_v28, %s12846_s25  ;;  %vm7368_vm14 = vcmp.lt.f32.partialorder %v15188_v8, %v7352_v53  ;;  %vm7376_vm12 = vcmp.eq.f32.partialorder %v15188_v8, %v7352_v53 }
0x52fa   :  { %v10846_v6 = vsel %vm7390_vm11, 1.0, %v12843_v0  ;;  %vm7384_vm1 = vmand %vm7376_vm12, %vm365_vm7 }
0x52fb   :  { %v7411_v21 = vpack.c.bf16 %v10846_v6, %v10845_v51  ;;  %vm7392_vm13 = vmor %vm7368_vm14, %vm7384_vm1 }
0x52fc   :  { %v10848_v54 = vsel %vm7392_vm13, 1.0, %v12843_v0  ;;  %vm16462_vm5 = vmmov %vm16461_vm3 }
0x52fd   :  { %v7412_v10 = vpack.c.bf16 %v10848_v54, %v10847_v48  ;;  %7421 = vrot.lane.b32.xlu0 %v7411_v21, %s12846_s25  ;;  %vm16463_vm6 = vmmov %vm16461_vm3 }
0x52fe   :  { %vm16464_vm8 = vmmov %vm16461_vm3 }
0x52ff   :  { %7423 = vrot.lane.b32.xlu1 %v7412_v10, %s12846_s25  ;;  %vm16465_vm10 = vmmov %vm16461_vm3 }
0x5300   :  { %vm16466_vm11 = vmmov %vm16461_vm3 }
0x5301   :  { %7568 = vrot.lane.b32.xlu0 %v15180_v19, %s12846_s25  ;;  %vm16467_vm12 = vmmov %vm16461_vm3 }
0x5305   :  { %7753 = vrot.lane.b32.xlu0 %v7751_v45, %s12845_s18 }
0x5361   :  { %v7418_v25 = vpop.permute.xlu0 %7417 }
0x5362   :  { %11948 = vmatprep.mubr.msk.bf16.mxu0 %vm16461_vm3, %v7418_v25 }
0x536b   :  { %v7420_v61 = vpop.permute.xlu1 %7419 }
0x536c   :  { %11949 = vmatmul.mubr.msk.bf16.vlgmr.msra.gmra.mrb[108].mxu0 %vm16462_vm5, %v7420_v61 }
0x536d   :  { %11957 = vmatpush3.bf16.msra.mxu0 %v12576_v11 }
0x536e   :  { %11958 = vmatprep.subr.bf16.mxu0 %v12843_v0 }
0x536f   :  { %v7422_v15 = vpop.permute.xlu0 %7421 }
0x5370   :  { %11952 = vmatprep.mubr.msk.bf16.mxu0 %vm16463_vm6, %v7422_v15  ;;  %vm16468_vm6 = vmmov %vm16461_vm3 }
0x5371   :  { %v7424_v62 = vpop.permute.xlu1 %7423  ;;  %11959 = vmatpush3.bf16.msra.mxu0 %v12577_v23 }
0x5372   :  { %11960 = vmatprep.subr.bf16.mxu0 %v12843_v0 }
0x5374   :  { %11953 = vmatmul.mubr.msk.bf16.gmra.mrb[112].mxu0 %vm16464_vm8, %v7424_v62  ;;  %vm16469_vm8 = vmmov %vm16461_vm3 }
0x5375   :  { %11964 = vmatprep.mubr.msk.bf16.mxu0 %vm16167_vm0, %v12843_v0  ;;  %11961 = vmatpush3.bf16.msra.mxu0 %v12578_v17 }
0x5376   :  { %11962 = vmatprep.subr.bf16.mxu0 %v12843_v0 }
0x5379   :  { %11963 = vmatpush3.bf16.msra.mxu0 %v12579_v2 }
0x537a   :  { %11980 = vmatprep.subr.bf16.mxu0 %v12843_v0 }
0x543f   :  { %v11950_v24 = vpop.f32.mrb[108].mxu0 }
0x5440   :  { %v12352_v26 = vtrunc.f32 %v11950_v24  ;;  %v7471_v18 = vpop.f32.mrb[109].mxu0 }
0x5441   :  { %v12348_v63 = vtrunc.f32 %v7471_v18  ;;  %v11951_v9 = vpop.f32.mrb[110].mxu0 }
0x5442   :  { %v12353_v50 = vcvt.f32.s32 %v12352_v26  ;;  %v12354_v60 = vtrunc.f32 %v11951_v9  ;;  %v7474_v14 = vpop.f32.mrb[111].mxu0 }
0x5443   :  { %v12349_v13 = vcvt.f32.s32 %v12348_v63  ;;  %v12350_v40 = vtrunc.f32 %v7474_v14 }
0x5444   :  { %vm7512_vm4 = vcmp.eq.s32.totalorder %v12353_v50, %v12947_v41  ;;  %v12355_v33 = vcvt.f32.s32 %v12354_v60 }
0x5445   :  { %vm7510_vm2 = vcmp.eq.s32.totalorder %v12349_v13, %v12947_v41  ;;  %v12351_v42 = vcvt.f32.s32 %v12350_v40  ;;  %v10855_v30 = vsel %vm7512_vm4, 1.0, %v12843_v0  ;;  %vm16470_vm4 = vmmov %vm16461_vm3 }
0x5446   :  { %v10853_v8 = vsel %vm7510_vm2, 1.0, %v12843_v0  ;;  %vm7513_vm9 = vcmp.eq.s32.totalorder %v12355_v33, %v12947_v41  ;;  %v7536_v16 = vmul.f32 %v10855_v30, %v15205_v47  ;;  %vm16471_vm2 = vmmov %vm16461_vm3 }
0x5447   :  { %v7534_v43 = vmul.f32 %v10853_v8, %v15193_v3  ;;  %v10856_v39 = vsel %vm7513_vm9, 1.0, %v12843_v0  ;;  %vm7511_vm15 = vcmp.eq.s32.totalorder %v12351_v42, %v12947_v41  ;;  %v11954_v44 = vpop.f32.mrb[112].mxu0  ;;  %vm16472_vm9 = vcmask 1041409   ;;  %v12584_v8 = vld [vmem:[%s16152_s5 + $0x20] sm:$0xff]  }
0x5448   :  { %v10854_v29 = vsel %vm7511_vm15, 1.0, %v12843_v0  ;;  %v12360_v27 = vtrunc.f32 %v11954_v44  ;;  %v7487_v5 = vpop.f32.mrb[113].mxu0  ;;  %v7537_v35 = vmul.f32 %v10856_v39, %v15209_v38  ;;  %v7545_v47 = vsel %vm16467_vm12, %v7536_v16, 0.0  ;;  %11969 = vmatpush3.bf16.msra.mxu1 %v12584_v8  ;;  %v12586_v39 = vld [vmem:[%s16152_s5 + $0x30] sm:$0xff]   ;;  %v7569_v44 = vpop.permute.xlu0 %7568  ;;  %vm16473_vm15 = vmmov %vm16471_vm2 }
0x5449   :  { %v7535_v1 = vmul.f32 %v10854_v29, %v15199_v32  ;;  %v12356_v49 = vtrunc.f32 %v7487_v5  ;;  %v11955_v7 = vpop.f32.mrb[114].mxu0  ;;  %v7542_v52 = vsel %vm16465_vm10, %v7534_v43, 0.0  ;;  %v12585_v43 = vld [vmem:[%s16152_s5 + $0x28] sm:$0xff]   ;;  %11970 = vmatprep.subr.bf16.mxu1 %v12843_v0  ;;  %v12580_v5 = vld [vmem:[%s16149_s2] sm:$0xff]   ;;  %vm16474_vm10 = vcmask 523264  }
0x544a   :  { %v12361_v31 = vcvt.f32.s32 %v12360_v27  ;;  %v12362_v12 = vtrunc.f32 %v11955_v7  ;;  %v7490_v3 = vpop.f32.mrb[115].mxu0  ;;  %v7547_v54 = vsel %vm16461_vm3, %v7537_v35, 0.0  ;;  %v10880_v7 = vld [vmem:[%s16147_s0 + $0xc] sm:$0x3]  ;;  %vm16477_vm12 = vmmov %vm16474_vm10  ;;  %vm16478_vm3 = vcmp.ne.s32.totalorder %v12968_v55, 0 }
0x544b   :  { %v7543_v46 = vsel %vm16466_vm11, %v7535_v1, 0.0  ;;  %v12357_v28 = vcvt.f32.s32 %v12356_v49  ;;  %v12358_v53 = vtrunc.f32 %v7490_v3  ;;  %v12581_v1 = vld [vmem:[%s16149_s2 + $0x8] sm:$0xff]   ;;  %v12582_v49 = vld [vmem:[%s16149_s2 + $0x10] sm:$0xff]   ;;  %vm16475_vm11 = vmmov %vm16471_vm2 }
0x544c   :  { %v7544_v51 = vadd.f32 %v7543_v46, %v7542_v52  ;;  %vm7516_vm14 = vcmp.eq.s32.totalorder %v12361_v31, %v12947_v41  ;;  %v12363_v6 = vcvt.f32.s32 %v12362_v12  ;;  %11971 = vmatpush3.bf16.msra.mxu1 %v12585_v43  ;;  %v7754_v35 = vpop.permute.xlu0 %7753  ;;  %v12583_v31 = vld [vmem:[%s16149_s2 + $0x18] sm:$0xff]  }
0x544d   :  { %vm7514_vm1 = vcmp.eq.s32.totalorder %v12357_v28, %v12947_v41  ;;  %v12359_v32 = vcvt.f32.s32 %v12358_v53  ;;  %v10859_v38 = vsel %vm7516_vm14, 1.0, %v12843_v0  ;;  %11972 = vmatprep.subr.bf16.mxu1 %v12843_v0  ;;  %v7756_v12 = vsel %vm16475_vm11, %v10880_v7, %v7754_v35  ;;  %vm16476_vm14 = vmmov %vm16474_vm10  ;;  %v12587_v52 = vld [vmem:[%s16152_s5 + $0x38] sm:$0xff]  }
0x544e   :  { %v7546_v21 = vadd.f32 %v7545_v47, %v7544_v51  ;;  %v10857_v48 = vsel %vm7514_vm1, 1.0, %v12843_v0  ;;  %vm7517_vm13 = vcmp.eq.s32.totalorder %v12363_v6, %v12947_v41  ;;  %v7540_v15 = vmul.f32 %v10859_v38, %v15211_v20 }
0x544f   :  { %v7538_v10 = vmul.f32 %v10857_v48, %v15197_v22  ;;  %vm7515_vm5 = vcmp.eq.s32.totalorder %v12359_v32, %v12947_v41  ;;  %v10860_v25 = vsel %vm7517_vm13, 1.0, %v12843_v0  ;;  %v7765_v3 = vpack.c.bf16 %v7756_v12, %v7756_v12  ;;  %v10881_v32 = vld [vmem:[%s16150_s3] ss:$0 sm:$0xff] }
0x5450   :  { %v7548_v45 = vadd.f32 %v7547_v54, %v7546_v21  ;;  %v10858_v61 = vsel %vm7515_vm5, 1.0, %v12843_v0  ;;  %v7541_v17 = vmul.f32 %v10860_v25, %v15221_v36  ;;  %v7558_v26 = vsel %vm16470_vm4, %v7540_v15, 0.0  ;;  %11973 = vmatpush3.bf16.msra.mxu1 %v12586_v39 }
0x5451   :  { %v7539_v62 = vmul.f32 %v10858_v61, %v15203_v59  ;;  %v7555_v23 = vsel %vm16468_vm6, %v7538_v10, 0.0  ;;  %11974 = vmatprep.subr.bf16.mxu1 %v12843_v0 }
0x5452   :  { %v7549_v11 = vrot.slane %v7548_v45, 4  ;;  %v7560_v63 = vsel %vm16471_vm2, %v7541_v17, 0.0  ;;  %vm16479_vm2 = vcmp.ne.s32.totalorder %v12970_v56, 0 }
0x5453   :  { %v7556_v2 = vsel %vm16469_vm8, %v7539_v62, 0.0 }
0x5454   :  { %v7557_v24 = vadd.f32 %v7556_v2, %v7555_v23  ;;  %v7550_v22 = vadd.f32 %v7549_v11, %v7548_v45  ;;  %11975 = vmatpush3.bf16.msra.mxu1 %v12587_v52 }
0x5455   :  { %11992 = vmatprep.subr.bf16.mxu1 %v12849_v4 }
0x5456   :  { %v7559_v18 = vadd.f32 %v7558_v26, %v7557_v24  ;;  %v7551_v50 = vrot.slane %v7550_v22, 2 }
0x5458   :  { %v7561_v9 = vadd.f32 %v7560_v63, %v7559_v18  ;;  %v7552_v20 = vadd.f32 %v7551_v50, %v7550_v22 }
0x545a   :  { %v7562_v60 = vrot.slane %v7561_v9, 4  ;;  %v7553_v13 = vrot.slane %v7552_v20, 1 }
0x545c   :  { %v7563_v14 = vadd.f32 %v7562_v60, %v7561_v9  ;;  %v7554_v42 = vadd.f32 %v7553_v13, %v7552_v20 }
0x545e   :  { %v7564_v59 = vrot.slane %v7563_v14, 2 }
0x5460   :  { %v7565_v40 = vadd.f32 %v7564_v59, %v7563_v14 }
0x5462   :  { %v7566_v33 = vrot.slane %v7565_v40, 1 }
0x5464   :  { %v7567_v36 = vadd.f32 %v7566_v33, %v7565_v40 }
0x5466   :  { %v7573_v30 = vsel %vm16472_vm9, %v7567_v36, %v7554_v42 }
0x5467   :  { %7574 = vrot.lane.b32.xlu1 %v7573_v30, %s12845_s18 }
0x54d9   :  { %v7575_v29 = vpop.permute.xlu1 %7574 }
0x54da   :  { %v7577_v27 = vsel %vm16473_vm15, %v7569_v44, %v7575_v29 }
0x54db   :  { %v7586_v16 = vpack.c.bf16 %v7577_v27, %v7577_v27 }
0x54dd   :  { %11965 = vmatmul.mubr.msk.bf16.vlgmr.msra.gmra.mrb[116].mxu0 %vm16474_vm10, %v7586_v16 }
0x54de   :  { %11981 = vmatpush3.bf16.msra.mxu0 %v12580_v5  ;;  %11988 = vmatprep.mubr.msk.bf16.mxu0 %vm16167_vm0, %v12843_v0 }
0x54df   :  { %11982 = vmatprep.subr.bf16.mxu0 %v12843_v0 }
0x54e2   :  { %11983 = vmatpush3.bf16.msra.mxu0 %v12581_v1 }
0x54e3   :  { %11984 = vmatprep.subr.bf16.mxu0 %v12843_v0 }
0x54e6   :  { %11985 = vmatpush3.bf16.msra.mxu0 %v12582_v49 }
0x54e7   :  { %11986 = vmatprep.subr.bf16.mxu0 %v12843_v0 }
0x54ea   :  { %11987 = vmatpush3.bf16.msra.mxu0 %v12583_v31 }
0x54eb   :  { %12016 = vmatprep.subr.bf16.mxu0 %v12843_v0 }
0x54ed   :  { %11989 = vmatmul.mubr.msk.bf16.vlgmr.msra.gmra.mrb[120].mxu0 %vm16476_vm14, %v7765_v3  ;;  %vm16480_vm14 = vcmp.ne.s32.totalorder %v12972_v57, 0 }
0x54ee   :  { %12024 = vmatprep.mubr.msk.bf16.mxu0 %vm16167_vm0, %v12843_v0 }
0x55b0   :  { %v7648_v46 = vpop.f32.mrb[116].mxu0 }
0x55b1   :  { %v7654_v28 = vmax.f32 %v7648_v46, 0.0  ;;  %v11966_v53 = vpop.f32.mrb[117].mxu0 }
0x55b2   :  { %v7651_v51 = vpop.f32.mrb[118].mxu0 }
0x55b3   :  { %v7663_v6 = vpack.c.bf16 %v7654_v28, %v7654_v28  ;;  %v11967_v47 = vpop.f32.mrb[119].mxu0 }
0x55b5   :  { %11977 = vmatmul.mubr.msk.bf16.vlgmr.msra.gmra.mrb[116].mxu1 %vm16477_vm12, %v7663_v6 }
0x55b6   :  { %11993 = vmatpush3.bf16.msra.mxu1 %v12849_v4 }
0x55b7   :  { %11994 = vmatprep.subr.bf16.mxu1 %v12849_v4 }
0x55ba   :  { %11995 = vmatpush3.bf16.msra.mxu1 %v12849_v4 }
0x55bb   :  { %12004 = vmatprep.subr.bf16.mxu1 %v12843_v0 }
0x55c0   :  { %v7834_v21 = vpop.f32.mrb[120].mxu0 }
0x55c1   :  { %v7835_v38 = vadd.f32 %v10881_v32, %v7834_v21  ;;  %v11990_v48 = vpop.f32.mrb[121].mxu0 }
0x55c2   :  { %v7837_v54 = vpop.f32.mrb[122].mxu0 }
0x55c3   :  { %7847 = vrot.lane.b32.xlu1 %v7835_v38, %s12845_s18  ;;  %v11991_v10 = vpop.f32.mrb[123].mxu0  ;;  %v10887_v45 = vmul.f32 -1.442695, %v7835_v38 }
0x55c5   :  { %12748 = vpow2.f32 %v10887_v45 }
0x55cf   :  { %v12749_v25 = vpop.eup %12748 }
0x55d0   :  { %v7843_v61 = vadd.f32 1.0, %v12749_v25 }
0x55d2   :  { %12750 = vrcp.f32 %v7843_v61 }
0x55dc   :  { %v12751_v15 = vpop.eup %12750 }
0x55dd   :  { %v7857_v63 = vsub.f32 1.0, %v12751_v15  ;;  %v7863_v50 = vmul.f32 %v12751_v15, %v7754_v35 }
0x5635   :  { %v7848_v62 = vpop.permute.xlu1 %7847 }
0x5636   :  { %v7850_v11 = vmul.f32 %v12751_v15, %v7848_v62 }
0x5638   :  { %7852 = vrot.lane.b32.xlu0 %v7850_v11, %s12841_s7 }
0x5688   :  { %v7725_v23 = vpop.f32.mrb[116].mxu1 }
0x5689   :  { %v11978_v17 = vpop.f32.mrb[117].mxu1  ;;  %v10879_v49 = vmul.f32 -1.442695, %v7725_v23 }
0x568a   :  { %v7728_v2 = vpop.f32.mrb[118].mxu1 }
0x568b   :  { %v11979_v24 = vpop.f32.mrb[119].mxu1 }
0x56aa   :  { %v7853_v22 = vpop.permute.xlu0 %7852 }
0x56ab   :  { %v7855_v26 = vadd.f32 %v7853_v22, %v7835_v38  ;;  %v12588_v22 = vld [vmem:[#allocation3] sm:$0xff]  }
0x56ad   :  { %12752 = vtanh.f32 %v7855_v26  ;;  %v12589_v26 = vld [vmem:[#allocation3 + $0x8] sm:$0xff]  }
0x56ae   :  { %12754 = vpow2.f32 %v10879_v49 }
0x56b7   :  { %v12753_v18 = vpop.eup %12752 }
0x56b8   :  { %7859 = vrot.lane.b32.xlu1 %v12753_v18, %s12846_s25  ;;  %v12755_v53 = vpop.eup %12754  ;;  %v12590_v18 = vld [vmem:[#allocation3 + $0x10] sm:$0xff]  }
0x56b9   :  { %v7734_v32 = vadd.f32 1.0, %v12755_v53 }
0x56bb   :  { %12756 = vrcp.f32 %v7734_v32 }
0x56c5   :  { %v12757_v11 = vpop.eup %12756 }
0x572a   :  { %v7860_v9 = vpop.permute.xlu1 %7859 }
0x572b   :  { %v7862_v60 = vmul.f32 %v7860_v9, %v7857_v63  ;;  %v12591_v63 = vld [vmem:[#allocation3 + $0x18] sm:$0xff]  }
0x572d   :  { %v15368_v20 = vadd.f32 %v7863_v50, %v7862_v60 }
0x572f   :  { %v7872_v14 = vrot.slane %v15368_v20, %v12938_v34 }
0x5731   :  { %v7873_v59 = vcombine.high %v7872_v14, %v7872_v14  ;;  %v7880_v13 = vrot.slane %v7872_v14, %v12938_v34 }
0x5733   :  { %v7887_v40 = vrot.slane %v7873_v59, %v12938_v34  ;;  %v15375_v33 = vrot.slane %v7880_v13, %v12942_v37 }
0x5735   :  { %v15378_v42 = vrot.slane %v7887_v40, %v12942_v37  ;;  %7898 = vrot.lane.b32.xlu0 %v15375_v33, %s12846_s25 }
0x5737   :  { %7900 = vrot.lane.b32.xlu1 %v15378_v42, %s12846_s25 }
0x57a7   :  { %v7899_v36 = vpop.permute.xlu0 %7898 }
0x57a8   :  { %7904 = vxpose.xlu0.b32.start [1/4] (short) (narrow) %v7899_v36, 32 }
0x57a9   :  { %v7901_v30 = vpop.permute.xlu1 %7900 }
0x57aa   :  { %7936 = vxpose.xlu1.b32.start [1/4] (short) (narrow) %v7901_v30, 32 }
0x57ac   :  { %7905 = vxpose.xlu0.b32.cont [2/4] (short) (narrow) %v7899_v36, 32 }
0x57ae   :  { %7937 = vxpose.xlu1.b32.cont [2/4] (short) (narrow) %v7901_v30, 32 }
0x57b0   :  { %7906 = vxpose.xlu0.b32.cont [3/4] (short) (narrow) %v7899_v36, 32 }
0x57b2   :  { %7938 = vxpose.xlu1.b32.cont [3/4] (short) (narrow) %v7901_v30, 32 }
0x57b4   :  { %7907 = vxpose.xlu0.b32.end [4/4] (short) (narrow) %v7899_v36, 32 }
0x57b6   :  { %7939 = vxpose.xlu1.b32.end [4/4] (short) (narrow) %v7901_v30, 32 }
0x5828   :  { %v15384_v8 = vpop.trf.xlu0 }
0x5829   :  { %7976 = vrot.lane.b32.xlu0 %v15384_v8, %s12845_s18 }
0x582a   :  { %v15388_v43 = vpop.trf.xlu1 }
0x582c   :  { %v15390_v39 = vpop.trf.xlu0 }
0x582d   :  { %7978 = vrot.lane.b32.xlu1 %v15390_v39, %s12845_s18 }
0x582e   :  { %v15394_v44 = vpop.trf.xlu1 }
0x5830   :  { %v15396_v29 = vpop.trf.xlu0 }
0x5831   :  { %7980 = vrot.lane.b32.xlu0 %v15396_v29, %s12845_s18 }
0x5832   :  { %v15402_v5 = vpop.trf.xlu1 }
0x5834   :  { %v15400_v27 = vpop.trf.xlu0 }
0x5835   :  { %7982 = vrot.lane.b32.xlu1 %v15400_v27, %s12845_s18  ;;  %7984 = vrot.lane.b32.xlu0 %v15388_v43, %s12845_s18 }
0x5836   :  { %v15412_v16 = vpop.trf.xlu1 }
0x5839   :  { %7986 = vrot.lane.b32.xlu1 %v15394_v44, %s12845_s18  ;;  %7988 = vrot.lane.b32.xlu0 %v15402_v5, %s12845_s18 }
0x583d   :  { %7990 = vrot.lane.b32.xlu1 %v15412_v16, %s12845_s18 }
0x589b   :  { %v7977_v1 = vpop.permute.xlu0 %7976 }
0x589c   :  { %vm8008_vm1 = vcmp.eq.f32.partialorder %v15375_v33, %v7977_v1  ;;  %vm8000_vm13 = vcmp.lt.f32.partialorder %v15375_v33, %v7977_v1 }
0x589d   :  { %vm8016_vm5 = vmand %vm8008_vm1, %vm16478_vm3 }
0x589e   :  { %vm8024_vm6 = vmor %vm8000_vm13, %vm8016_vm5 }
0x589f   :  { %v7979_v7 = vpop.permute.xlu1 %7978  ;;  %v10888_v35 = vsel %vm8024_vm6, 1.0, %v12843_v0  ;;  %vm16483_vm6 = vcmp.ne.s32.totalorder %v12968_v55, 0 }
0x58a0   :  { %vm8001_vm8 = vcmp.lt.f32.partialorder %v15375_v33, %v7979_v7  ;;  %vm8009_vm4 = vcmp.eq.f32.partialorder %v15375_v33, %v7979_v7 }
0x58a1   :  { %vm8017_vm9 = vmand %vm8009_vm4, %vm16479_vm2 }
0x58a2   :  { %vm8025_vm15 = vmor %vm8001_vm8, %vm8017_vm9 }
0x58a3   :  { %v10889_v31 = vsel %vm8025_vm15, 1.0, %v12843_v0  ;;  %v7981_v12 = vpop.permute.xlu0 %7980 }
0x58a4   :  { %v8048_v3 = vpack.c.bf16 %v10889_v31, %v10888_v35  ;;  %vm8010_vm10 = vcmp.eq.f32.partialorder %v15375_v33, %v7981_v12  ;;  %vm8002_vm11 = vcmp.lt.f32.partialorder %v15375_v33, %v7981_v12 }
0x58a5   :  { %vm8018_vm12 = vmand %vm8010_vm10, %vm16480_vm14 }
0x58a6   :  { %8056 = vrot.lane.b32.xlu0 %v8048_v3, %s12846_s25  ;;  %vm15431_vm1 = vmor %vm8002_vm11, %vm8018_vm12  ;;  %vm16486_vm12 = vcmp.ne.s32.totalorder %v12972_v57, 0 }
0x58a7   :  { %v7985_v52 = vpop.permute.xlu0 %7984  ;;  %v7983_v46 = vpop.permute.xlu1 %7982  ;;  %v10890_v21 = vsel %vm15431_vm1, 1.0, %v12843_v0 }
0x58a8   :  { %vm8004_vm13 = vcmp.lt.f32.partialorder %v15378_v42, %v7985_v52  ;;  %vm8012_vm3 = vcmp.eq.f32.partialorder %v15378_v42, %v7985_v52  ;;  %vm8011_vm5 = vcmp.eq.f32.partialorder %v15375_v33, %v7983_v46  ;;  %vm8003_vm4 = vcmp.lt.f32.partialorder %v15375_v33, %v7983_v46 }
0x58a9   :  { %vm8020_vm8 = vmand %vm8012_vm3, %vm16483_vm6  ;;  %vm16487_vm6 = vcmp.ne.s32.totalorder %v12970_v56, 0 }
0x58aa   :  { %vm15441_vm2 = vmor %vm8004_vm13, %vm8020_vm8 }
0x58ab   :  { %vm8019_vm9 = vmand %vm8011_vm5, %vm365_vm7  ;;  %v7989_v6 = vpop.permute.xlu0 %7988  ;;  %v7987_v47 = vpop.permute.xlu1 %7986  ;;  %v10892_v10 = vsel %vm15441_vm2, 1.0, %v12843_v0  ;;  %vm16488_vm2 = vcmask 261120  }
0x58ac   :  { %vm8027_vm15 = vmor %vm8003_vm4, %vm8019_vm9  ;;  %vm8006_vm10 = vcmp.lt.f32.partialorder %v15378_v42, %v7989_v6  ;;  %vm8014_vm11 = vcmp.eq.f32.partialorder %v15378_v42, %v7989_v6  ;;  %vm8013_vm14 = vcmp.eq.f32.partialorder %v15378_v42, %v7987_v47  ;;  %vm8005_vm3 = vcmp.lt.f32.partialorder %v15378_v42, %v7987_v47 }
0x58ad   :  { %v10891_v38 = vsel %vm8027_vm15, 1.0, %v12843_v0  ;;  %vm8022_vm13 = vmand %vm8014_vm11, %vm16486_vm12 }
0x58ae   :  { %v8049_v48 = vpack.c.bf16 %v10891_v38, %v10890_v21  ;;  %vm8030_vm5 = vmor %vm8006_vm10, %vm8022_vm13 }
0x58af   :  { %vm8021_vm8 = vmand %vm8013_vm14, %vm16487_vm6  ;;  %v7991_v54 = vpop.permute.xlu1 %7990  ;;  %v10894_v61 = vsel %vm8030_vm5, 1.0, %v12843_v0 }
0x58b0   :  { %vm8029_vm4 = vmor %vm8005_vm3, %vm8021_vm8  ;;  %8058 = vrot.lane.b32.xlu1 %v8049_v48, %s12846_s25  ;;  %vm8007_vm9 = vcmp.lt.f32.partialorder %v15378_v42, %v7991_v54  ;;  %vm8015_vm1 = vcmp.eq.f32.partialorder %v15378_v42, %v7991_v54 }
0x58b1   :  { %v10893_v45 = vsel %vm8029_vm4, 1.0, %v12843_v0  ;;  %vm8023_vm15 = vmand %vm8015_vm1, %vm365_vm7 }
0x58b2   :  { %v8050_v25 = vpack.c.bf16 %v10893_v45, %v10892_v10  ;;  %vm8031_vm10 = vmor %vm8007_vm9, %vm8023_vm15 }
0x58b3   :  { %v10895_v15 = vsel %vm8031_vm10, 1.0, %v12843_v0  ;;  %vm16489_vm11 = vmmov %vm16488_vm2 }
0x58b4   :  { %v8051_v62 = vpack.c.bf16 %v10895_v15, %v10894_v61  ;;  %8060 = vrot.lane.b32.xlu0 %v8050_v25, %s12846_s25  ;;  %vm16490_vm14 = vmmov %vm16488_vm2 }
0x58b5   :  { %vm16491_vm12 = vmmov %vm16488_vm2 }
0x58b6   :  { %8062 = vrot.lane.b32.xlu1 %v8051_v62, %s12846_s25  ;;  %vm16492_vm8 = vmmov %vm16488_vm2 }
0x58b7   :  { %vm16493_vm4 = vmmov %vm16488_vm2 }
0x58b8   :  { %8207 = vrot.lane.b32.xlu0 %v15368_v20, %s12846_s25  ;;  %vm16494_vm1 = vmmov %vm16488_vm2 }
0x58bc   :  { %7738 = vrot.lane.b32.xlu0 %v12757_v11, %s12845_s18 }
0x5918   :  { %v8057_v23 = vpop.permute.xlu0 %8056 }
0x5919   :  { %11996 = vmatprep.mubr.msk.bf16.mxu1 %vm16488_vm2, %v8057_v23  ;;  %vm16495_vm2 = vmmov %vm16494_vm1 }
0x5922   :  { %v8059_v17 = vpop.permute.xlu1 %8058 }
0x5923   :  { %11997 = vmatmul.mubr.msk.bf16.vlgmr.msra.gmra.mrb[120].mxu1 %vm16489_vm11, %v8059_v17 }
0x5924   :  { %12005 = vmatpush3.bf16.msra.mxu1 %v12588_v22 }
0x5925   :  { %12006 = vmatprep.subr.bf16.mxu1 %v12843_v0 }
0x5926   :  { %v8061_v2 = vpop.permute.xlu0 %8060 }
0x5927   :  { %12000 = vmatprep.mubr.msk.bf16.mxu1 %vm16490_vm14, %v8061_v2  ;;  %vm16496_vm14 = vmmov %vm16494_vm1 }
0x5928   :  { %v8063_v24 = vpop.permute.xlu1 %8062  ;;  %12007 = vmatpush3.bf16.msra.mxu1 %v12589_v26 }
0x5929   :  { %12008 = vmatprep.subr.bf16.mxu1 %v12843_v0 }
0x592b   :  { %12001 = vmatmul.mubr.msk.bf16.gmra.mrb[124].mxu1 %vm16491_vm12, %v8063_v24  ;;  %vm16497_vm12 = vmmov %vm16494_vm1 }
0x592c   :  { %12012 = vmatprep.mubr.msk.bf16.mxu1 %vm16167_vm0, %v12843_v0  ;;  %12009 = vmatpush3.bf16.msra.mxu1 %v12590_v18 }
0x592d   :  { %12010 = vmatprep.subr.bf16.mxu1 %v12843_v0 }
0x5930   :  { %12011 = vmatpush3.bf16.msra.mxu1 %v12591_v63 }
0x5931   :  { %12028 = vmatprep.subr.bf16.mxu1 %v12843_v0 }
0x59f6   :  { %v11998_v9 = vpop.f32.mrb[120].mxu1 }
0x59f7   :  { %v12368_v50 = vtrunc.f32 %v11998_v9  ;;  %v8110_v60 = vpop.f32.mrb[121].mxu1 }
0x59f8   :  { %v12364_v14 = vtrunc.f32 %v8110_v60  ;;  %v11999_v59 = vpop.f32.mrb[122].mxu1 }
0x59f9   :  { %v12369_v13 = vcvt.f32.s32 %v12368_v50  ;;  %v12370_v40 = vtrunc.f32 %v11999_v59  ;;  %v8113_v33 = vpop.f32.mrb[123].mxu1 }
0x59fa   :  { %v12365_v42 = vcvt.f32.s32 %v12364_v14  ;;  %v12366_v36 = vtrunc.f32 %v8113_v33 }
0x59fb   :  { %vm8151_vm13 = vcmp.eq.s32.totalorder %v12369_v13, %v12947_v41  ;;  %v12371_v30 = vcvt.f32.s32 %v12370_v40 }
0x59fc   :  { %vm8149_vm3 = vcmp.eq.s32.totalorder %v12365_v42, %v12947_v41  ;;  %v12367_v1 = vcvt.f32.s32 %v12366_v36  ;;  %v10902_v49 = vsel %vm8151_vm13, 1.0, %v12843_v0  ;;  %vm16498_vm13 = vmmov %vm16494_vm1  ;;  %v12592_v36 = vld [vmem:[%s16152_s5] sm:$0xff]  }
0x59fd   :  { %v10900_v7 = vsel %vm8149_vm3, 1.0, %v12843_v0  ;;  %vm8152_vm5 = vcmp.eq.s32.totalorder %v12371_v30, %v12947_v41  ;;  %v8175_v28 = vmul.f32 %v10902_v49, %v15396_v29  ;;  %vm16499_vm3 = vmmov %vm16494_vm1  ;;  %12017 = vmatpush3.bf16.msra.mxu0 %v12592_v36  ;;  %v12593_v49 = vld [vmem:[%s16152_s5 + $0x8] sm:$0xff]  }
0x59fe   :  { %v8173_v35 = vmul.f32 %v10900_v7, %v15384_v8  ;;  %v10903_v31 = vsel %vm8152_vm5, 1.0, %v12843_v0  ;;  %vm8150_vm6 = vcmp.eq.s32.totalorder %v12367_v1, %v12947_v41  ;;  %v12002_v12 = vpop.f32.mrb[124].mxu1  ;;  %12018 = vmatprep.subr.bf16.mxu0 %v12843_v0  ;;  %vm16500_vm5 = vcmask 1041409  }
0x59ff   :  { %v10901_v3 = vsel %vm8150_vm6, 1.0, %v12843_v0  ;;  %v12376_v52 = vtrunc.f32 %v12002_v12  ;;  %v8126_v46 = vpop.f32.mrb[125].mxu1  ;;  %v8176_v47 = vmul.f32 %v10903_v31, %v15400_v27  ;;  %v8184_v29 = vsel %vm16494_vm1, %v8175_v28, 0.0  ;;  %v12594_v12 = vld [vmem:[%s16152_s5 + $0x10] sm:$0xff]   ;;  %vm16501_vm6 = vmmov %vm16494_vm1 }
0x5a00   :  { %v8174_v53 = vmul.f32 %v10901_v3, %v15390_v39  ;;  %v12372_v51 = vtrunc.f32 %v8126_v46  ;;  %v12003_v6 = vpop.f32.mrb[126].mxu1  ;;  %v8181_v38 = vsel %vm16492_vm8, %v8173_v35, 0.0  ;;  %vm16502_vm8 = vcmask 523264  }
0x5a01   :  { %v12377_v32 = vcvt.f32.s32 %v12376_v52  ;;  %v12378_v21 = vtrunc.f32 %v12003_v6  ;;  %v8129_v8 = vpop.f32.mrb[127].mxu1  ;;  %v8186_v62 = vsel %vm16495_vm2, %v8176_v47, 0.0  ;;  %12019 = vmatpush3.bf16.msra.mxu0 %v12593_v49  ;;  %vm16505_vm1 = vmmov %vm16502_vm8 }
0x5a02   :  { %v8182_v48 = vsel %vm16493_vm4, %v8174_v53, 0.0  ;;  %v12373_v54 = vcvt.f32.s32 %v12372_v51  ;;  %v12374_v10 = vtrunc.f32 %v8129_v8  ;;  %12020 = vmatprep.subr.bf16.mxu0 %v12843_v0  ;;  %vm16503_vm4 = vcmask 254976  }
0x5a03   :  { %v8183_v45 = vadd.f32 %v8182_v48, %v8181_v38  ;;  %vm8155_vm9 = vcmp.eq.s32.totalorder %v12377_v32, %v12947_v41  ;;  %v12379_v25 = vcvt.f32.s32 %v12378_v21 }
0x5a04   :  { %vm8153_vm15 = vcmp.eq.s32.totalorder %v12373_v54, %v12947_v41  ;;  %v12375_v39 = vcvt.f32.s32 %v12374_v10  ;;  %v10906_v27 = vsel %vm8155_vm9, 1.0, %v12843_v0  ;;  %vm16504_vm9 = vmmov %vm16503_vm4 }
0x5a05   :  { %v8185_v61 = vadd.f32 %v8184_v29, %v8183_v45  ;;  %v10904_v15 = vsel %vm8153_vm15, 1.0, %v12843_v0  ;;  %vm8156_vm10 = vcmp.eq.s32.totalorder %v12379_v25, %v12947_v41  ;;  %v8179_v24 = vmul.f32 %v10906_v27, %v15402_v5  ;;  %12021 = vmatpush3.bf16.msra.mxu0 %v12594_v12  ;;  %v12596_v27 = vld [vmem:[%s16149_s2 + $0x20] sm:$0xff]   ;;  %vm16506_vm15 = vmmov %vm16503_vm4 }
0x5a06   :  { %v8177_v11 = vmul.f32 %v10904_v15, %v15388_v43  ;;  %vm8154_vm11 = vcmp.eq.s32.totalorder %v12375_v39, %v12947_v41  ;;  %v10907_v17 = vsel %vm8156_vm10, 1.0, %v12843_v0  ;;  %12022 = vmatprep.subr.bf16.mxu0 %v12843_v0  ;;  %v12597_v15 = vld [vmem:[%s16149_s2 + $0x28] sm:$0xff]   ;;  %vm16507_vm10 = vmmov %vm16495_vm2 }
0x5a07   :  { %v8187_v23 = vadd.f32 %v8186_v62, %v8185_v61  ;;  %v10905_v2 = vsel %vm8154_vm11, 1.0, %v12843_v0  ;;  %v8180_v63 = vmul.f32 %v10907_v17, %v15412_v16  ;;  %v8197_v60 = vsel %vm16498_vm13, %v8179_v24, 0.0  ;;  %v8208_v16 = vpop.permute.xlu0 %8207  ;;  %v12598_v62 = vld [vmem:[%s16149_s2 + $0x30] sm:$0xff]   ;;  %v12599_v17 = vld [vmem:[%s16149_s2 + $0x38] sm:$0xff]   ;;  %vm16508_vm2 = vmmov %vm16505_vm1 }
0x5a08   :  { %v8178_v22 = vmul.f32 %v10905_v2, %v15394_v44  ;;  %v8194_v18 = vsel %vm16496_vm14, %v8177_v11, 0.0 }
0x5a09   :  { %v8188_v26 = vrot.slane %v8187_v23, 4  ;;  %v8199_v59 = vsel %vm16499_vm3, %v8180_v63, 0.0 }
0x5a0a   :  { %v8195_v9 = vsel %vm16497_vm12, %v8178_v22, 0.0  ;;  %vm16509_vm12 = vcmp.ne.s32.totalorder %v12968_v55, 0 }
0x5a0b   :  { %v8196_v50 = vadd.f32 %v8195_v9, %v8194_v18  ;;  %v8189_v43 = vadd.f32 %v8188_v26, %v8187_v23  ;;  %v7739_v3 = vpop.permute.xlu0 %7738  ;;  %v10928_v9 = vld [vmem:[%s16150_s3 + $0x1] ss:$0 sm:$0xff] }
0x5a0c   :  { %v7741_v46 = vmul.f32 %v7739_v3, %v15180_v19  ;;  %v12595_v19 = vld [vmem:[%s16152_s5 + $0x18] sm:$0xff]  }
0x5a0d   :  { %v8198_v14 = vadd.f32 %v8197_v60, %v8196_v50  ;;  %v8190_v40 = vrot.slane %v8189_v43, 2  ;;  %12023 = vmatpush3.bf16.msra.mxu0 %v12595_v19 }
0x5a0e   :  { %12040 = vmatprep.subr.bf16.mxu0 %v12849_v4 }
0x5a0f   :  { %v8200_v13 = vadd.f32 %v8199_v59, %v8198_v14  ;;  %v8191_v5 = vadd.f32 %v8190_v40, %v8189_v43 }
0x5a11   :  { %v8201_v33 = vrot.slane %v8200_v13, 4  ;;  %v8192_v30 = vrot.slane %v8191_v5, 1 }
0x5a13   :  { %v8202_v42 = vadd.f32 %v8201_v33, %v8200_v13  ;;  %v8193_v35 = vadd.f32 %v8192_v30, %v8191_v5 }
0x5a15   :  { %v8203_v44 = vrot.slane %v8202_v42, 2 }
0x5a17   :  { %v8204_v1 = vadd.f32 %v8203_v44, %v8202_v42 }
0x5a19   :  { %v8205_v7 = vrot.slane %v8204_v1, 1 }
0x5a1b   :  { %v8206_v31 = vadd.f32 %v8205_v7, %v8204_v1 }
0x5a1d   :  { %v8212_v52 = vsel %vm16500_vm5, %v8206_v31, %v8193_v35 }
0x5a1e   :  { %8213 = vrot.lane.b32.xlu1 %v8212_v52, %s12845_s18 }
0x5a22   :  { %7743 = vrot.lane.b32.xlu1 %v7741_v46, %s12846_s25 }
0x5a90   :  { %v8214_v28 = vpop.permute.xlu1 %8213 }
0x5a91   :  { %v8216_v53 = vsel %vm16501_vm6, %v8208_v16, %v8214_v28 }
0x5a92   :  { %v8225_v51 = vpack.c.bf16 %v8216_v53, %v8216_v53 }
0x5a94   :  { %12013 = vmatmul.mubr.msk.bf16.vlgmr.msra.gmra.mrb[128].mxu1 %vm16502_vm8, %v8225_v51  ;;  %v7744_v6 = vpop.permute.xlu1 %7743  ;;  %vm16510_vm8 = vcmp.ne.s32.totalorder %v12970_v56, 0 }
0x5a95   :  { %7746 = vst.msk [vmem:[#allocation2 + $0x2] sm:$0x3] %vm16503_vm4, %v7744_v6  ;;  %12036 = vmatprep.mubr.msk.bf16.mxu1 %vm16167_vm0, %v12843_v0  ;;  %12029 = vmatpush3.bf16.msra.mxu1 %v12596_v27 }
0x5a96   :  { %7748 = vst.msk [vmem:[#allocation6 + $0xa] sm:$0x3] %vm16504_vm9, %v7744_v6  ;;  %12030 = vmatprep.subr.bf16.mxu1 %v12843_v0 }
0x5a99   :  { %12031 = vmatpush3.bf16.msra.mxu1 %v12597_v15 }
0x5a9a   :  { %12032 = vmatprep.subr.bf16.mxu1 %v12843_v0 }
0x5a9c   :  { %v8386_v23 = vld [vmem:[#allocation2 + $0x2] sm:$0x3] }
0x5a9d   :  { %12033 = vmatpush3.bf16.msra.mxu1 %v12598_v62 }
0x5a9e   :  { %12034 = vmatprep.subr.bf16.mxu1 %v12843_v0 }
0x5aa1   :  { %12035 = vmatpush3.bf16.msra.mxu1 %v12599_v17 }
0x5aa2   :  { %12064 = vmatprep.subr.bf16.mxu1 %v12843_v0 }
0x5b67   :  { %v8287_v47 = vpop.f32.mrb[128].mxu1 }
0x5b68   :  { %v8293_v32 = vmax.f32 %v8287_v47, 0.0  ;;  %v12014_v21 = vpop.f32.mrb[129].mxu1 }
0x5b69   :  { %v8290_v8 = vpop.f32.mrb[130].mxu1 }
0x5b6a   :  { %v8302_v38 = vpack.c.bf16 %v8293_v32, %v8293_v32  ;;  %v12015_v48 = vpop.f32.mrb[131].mxu1 }
0x5b6c   :  { %12025 = vmatmul.mubr.msk.bf16.vlgmr.msra.gmra.mrb[124].mxu0 %vm16505_vm1, %v8302_v38 }
0x5b6d   :  { %12041 = vmatpush3.bf16.msra.mxu0 %v12849_v4 }
0x5b6e   :  { %12042 = vmatprep.subr.bf16.mxu0 %v12849_v4 }
0x5b71   :  { %12043 = vmatpush3.bf16.msra.mxu0 %v12849_v4 }
0x5b72   :  { %12052 = vmatprep.subr.bf16.mxu0 %v12843_v0 }
0x5c3f   :  { %v8364_v54 = vpop.f32.mrb[124].mxu0 }
0x5c40   :  { %v10918_v10 = vmul.f32 -1.442695, %v8364_v54  ;;  %v12026_v45 = vpop.f32.mrb[125].mxu0 }
0x5c41   :  { %v8367_v25 = vpop.f32.mrb[126].mxu0 }
0x5c42   :  { %12758 = vpow2.f32 %v10918_v10  ;;  %v12027_v29 = vpop.f32.mrb[127].mxu0 }
0x5c4c   :  { %v12759_v39 = vpop.eup %12758 }
0x5c4d   :  { %v8373_v61 = vadd.f32 1.0, %v12759_v39 }
0x5c4f   :  { %12760 = vrcp.f32 %v8373_v61 }
0x5c59   :  { %v12761_v11 = vpop.eup %12760 }
0x5c5a   :  { %8377 = vrot.lane.b32.xlu0 %v12761_v11, %s12845_s18 }
0x5c5e   :  { %8388 = vrot.lane.b32.xlu0 %v8386_v23, %s12845_s18 }
0x5ccc   :  { %v8378_v2 = vpop.permute.xlu0 %8377 }
0x5ccd   :  { %v8380_v24 = vmul.f32 %v8378_v2, %v15368_v20 }
0x5ccf   :  { %8382 = vrot.lane.b32.xlu1 %v8380_v24, %s12846_s25 }
0x5cd0   :  { %v8389_v22 = vpop.permute.xlu0 %8388 }
0x5d41   :  { %v8383_v26 = vpop.permute.xlu1 %8382 }
0x5d42   :  { %8385 = vst.msk [vmem:[#allocation2] sm:$0x3] %vm16506_vm15, %v8383_v26  ;;  %v8391_v18 = vsel %vm16507_vm10, %v8383_v26, %v8389_v22  ;;  %vm16511_vm10 = vcmp.ne.s32.totalorder %v12972_v57, 0 }
0x5d43   :  { %v8400_v63 = vpack.c.bf16 %v8391_v18, %v8391_v18 }
0x5d45   :  { %12037 = vmatmul.mubr.msk.bf16.vlgmr.msra.gmra.mrb[132].mxu1 %vm16508_vm2, %v8400_v63 }
0x5d46   :  { %12072 = vmatprep.mubr.msk.bf16.mxu1 %vm16167_vm0, %v12843_v0 }
0x5e18   :  { %v8469_v50 = vpop.f32.mrb[132].mxu1 }
0x5e19   :  { %v8470_v20 = vadd.f32 %v10928_v9, %v8469_v50  ;;  %v12038_v43 = vpop.f32.mrb[133].mxu1 }
0x5e1a   :  { %v8472_v60 = vpop.f32.mrb[134].mxu1 }
0x5e1b   :  { %8482 = vrot.lane.b32.xlu1 %v8470_v20, %s12845_s18  ;;  %v12039_v14 = vpop.f32.mrb[135].mxu1  ;;  %v10934_v59 = vmul.f32 -1.442695, %v8470_v20 }
0x5e1d   :  { %12762 = vpow2.f32 %v10934_v59 }
0x5e27   :  { %v12763_v13 = vpop.eup %12762 }
0x5e28   :  { %v8478_v40 = vadd.f32 1.0, %v12763_v13  ;;  %v12600_v13 = vld [vmem:[#allocation3 + $0x20] sm:$0xff]  }
0x5e2a   :  { %12764 = vrcp.f32 %v8478_v40  ;;  %v12601_v40 = vld [vmem:[#allocation3 + $0x28] sm:$0xff]  }
0x5e34   :  { %v12765_v33 = vpop.eup %12764 }
0x5e35   :  { %v8492_v30 = vsub.f32 1.0, %v12765_v33  ;;  %v8498_v49 = vmul.f32 %v12765_v33, %v8389_v22 }
0x5e8d   :  { %v8483_v5 = vpop.permute.xlu1 %8482 }
0x5e8e   :  { %v8485_v42 = vmul.f32 %v12765_v33, %v8483_v5  ;;  %v12602_v33 = vld [vmem:[#allocation3 + $0x30] sm:$0xff]   ;;  %v12603_v5 = vld [vmem:[#allocation3 + $0x38] sm:$0xff]  }
0x5e90   :  { %8487 = vrot.lane.b32.xlu0 %v8485_v42, %s12841_s7 }
0x5f02   :  { %v8488_v44 = vpop.permute.xlu0 %8487 }
0x5f03   :  { %v8490_v36 = vadd.f32 %v8488_v44, %v8470_v20  ;;  %v9025_v20 = vld [vmem:[#allocation2] sm:$0x3] }
0x5f05   :  { %12766 = vtanh.f32 %v8490_v36 }
0x5f0f   :  { %v12767_v16 = vpop.eup %12766 }
0x5f10   :  { %8494 = vrot.lane.b32.xlu1 %v12767_v16, %s12846_s25 }
0x5f82   :  { %v8495_v1 = vpop.permute.xlu1 %8494 }
0x5f83   :  { %v8497_v7 = vmul.f32 %v8495_v1, %v8492_v30 }
0x5f85   :  { %v15579_v35 = vadd.f32 %v8498_v49, %v8497_v7 }
0x5f87   :  { %v8507_v31 = vrot.slane %v15579_v35, %v12938_v34 }
0x5f89   :  { %v8508_v12 = vcombine.high %v8507_v31, %v8507_v31  ;;  %v8515_v3 = vrot.slane %v8507_v31, %v12938_v34 }
0x5f8b   :  { %v8522_v52 = vrot.slane %v8508_v12, %v12938_v34  ;;  %v8526_v46 = vrot.slane %v8515_v3, %v12942_v37 }
0x5f8d   :  { %v15587_v28 = vrot.slane %v8522_v52, %v12942_v37  ;;  %8533 = vrot.lane.b32.xlu0 %v8526_v46, %s12846_s25 }
0x5f8f   :  { %8535 = vrot.lane.b32.xlu1 %v15587_v28, %s12846_s25 }
0x5fff   :  { %v8534_v53 = vpop.permute.xlu0 %8533 }
0x6000   :  { %8539 = vxpose.xlu0.b32.start [1/4] (short) (narrow) %v8534_v53, 32 }
0x6001   :  { %v8536_v51 = vpop.permute.xlu1 %8535 }
0x6002   :  { %8571 = vxpose.xlu1.b32.start [1/4] (short) (narrow) %v8536_v51, 32 }
0x6004   :  { %8540 = vxpose.xlu0.b32.cont [2/4] (short) (narrow) %v8534_v53, 32 }
0x6006   :  { %8572 = vxpose.xlu1.b32.cont [2/4] (short) (narrow) %v8536_v51, 32 }
0x6008   :  { %8541 = vxpose.xlu0.b32.cont [3/4] (short) (narrow) %v8534_v53, 32 }
0x600a   :  { %8573 = vxpose.xlu1.b32.cont [3/4] (short) (narrow) %v8536_v51, 32 }
0x600c   :  { %8542 = vxpose.xlu0.b32.end [4/4] (short) (narrow) %v8534_v53, 32 }
0x600e   :  { %8574 = vxpose.xlu1.b32.end [4/4] (short) (narrow) %v8536_v51, 32 }
0x6080   :  { %v15592_v6 = vpop.trf.xlu0 }
0x6081   :  { %8611 = vrot.lane.b32.xlu0 %v15592_v6, %s12845_s18 }
0x6082   :  { %v15596_v19 = vpop.trf.xlu1 }
0x6084   :  { %v15598_v47 = vpop.trf.xlu0 }
0x6085   :  { %8613 = vrot.lane.b32.xlu1 %v15598_v47, %s12845_s18 }
0x6086   :  { %v15602_v32 = vpop.trf.xlu1 }
0x6088   :  { %v15604_v21 = vpop.trf.xlu0 }
0x6089   :  { %8615 = vrot.lane.b32.xlu0 %v15604_v21, %s12845_s18 }
0x608a   :  { %v15610_v38 = vpop.trf.xlu1 }
0x608c   :  { %v15608_v8 = vpop.trf.xlu0 }
0x608d   :  { %8617 = vrot.lane.b32.xlu1 %v15608_v8, %s12845_s18  ;;  %8619 = vrot.lane.b32.xlu0 %v15596_v19, %s12845_s18 }
0x608e   :  { %v15620_v48 = vpop.trf.xlu1 }
0x6091   :  { %8621 = vrot.lane.b32.xlu1 %v15602_v32, %s12845_s18  ;;  %8623 = vrot.lane.b32.xlu0 %v15610_v38, %s12845_s18 }
0x6095   :  { %8625 = vrot.lane.b32.xlu1 %v15620_v48, %s12845_s18 }
0x60f3   :  { %v8612_v54 = vpop.permute.xlu0 %8611 }
0x60f4   :  { %vm8643_vm11 = vcmp.eq.f32.partialorder %v8526_v46, %v8612_v54  ;;  %vm8635_vm14 = vcmp.lt.f32.partialorder %v8526_v46, %v8612_v54 }
0x60f5   :  { %vm8651_vm13 = vmand %vm8643_vm11, %vm16509_vm12 }
0x60f6   :  { %vm8659_vm3 = vmor %vm8635_vm14, %vm8651_vm13 }
0x60f7   :  { %v8614_v10 = vpop.permute.xlu1 %8613  ;;  %v10935_v45 = vsel %vm8659_vm3, 1.0, %v12843_v0  ;;  %vm16512_vm3 = vcmp.ne.s32.totalorder %v12968_v55, 0 }
0x60f8   :  { %vm8636_vm5 = vcmp.lt.f32.partialorder %v8526_v46, %v8614_v10  ;;  %vm8644_vm6 = vcmp.eq.f32.partialorder %v8526_v46, %v8614_v10 }
0x60f9   :  { %vm8652_vm4 = vmand %vm8644_vm6, %vm16510_vm8 }
0x60fa   :  { %vm8660_vm9 = vmor %vm8636_vm5, %vm8652_vm4 }
0x60fb   :  { %v10936_v25 = vsel %vm8660_vm9, 1.0, %v12843_v0  ;;  %v8616_v29 = vpop.permute.xlu0 %8615 }
0x60fc   :  { %v8683_v39 = vpack.c.bf16 %v10936_v25, %v10935_v45  ;;  %vm8645_vm1 = vcmp.eq.f32.partialorder %v8526_v46, %v8616_v29  ;;  %vm8637_vm15 = vcmp.lt.f32.partialorder %v8526_v46, %v8616_v29 }
0x60fd   :  { %vm8653_vm2 = vmand %vm8645_vm1, %vm16511_vm10 }
0x60fe   :  { %8691 = vrot.lane.b32.xlu0 %v8683_v39, %s12846_s25  ;;  %vm8661_vm11 = vmor %vm8637_vm15, %vm8653_vm2  ;;  %vm16515_vm2 = vcmp.ne.s32.totalorder %v12972_v57, 0 }
0x60ff   :  { %v8620_v61 = vpop.permute.xlu0 %8619  ;;  %v8618_v27 = vpop.permute.xlu1 %8617  ;;  %v10937_v23 = vsel %vm8661_vm11, 1.0, %v12843_v0 }
0x6100   :  { %vm8639_vm14 = vcmp.lt.f32.partialorder %v15587_v28, %v8620_v61  ;;  %vm8647_vm12 = vcmp.eq.f32.partialorder %v15587_v28, %v8620_v61  ;;  %vm8646_vm13 = vcmp.eq.f32.partialorder %v8526_v46, %v8618_v27  ;;  %vm8638_vm6 = vcmp.lt.f32.partialorder %v8526_v46, %v8618_v27 }
0x6101   :  { %vm8655_vm5 = vmand %vm8647_vm12, %vm16512_vm3  ;;  %vm16516_vm3 = vcmp.ne.s32.totalorder %v12970_v56, 0 }
0x6102   :  { %vm15637_vm8 = vmor %vm8639_vm14, %vm8655_vm5 }
0x6103   :  { %vm8654_vm4 = vmand %vm8646_vm13, %vm365_vm7  ;;  %v8624_v62 = vpop.permute.xlu0 %8623  ;;  %v8622_v11 = vpop.permute.xlu1 %8621  ;;  %v10939_v22 = vsel %vm15637_vm8, 1.0, %v12843_v0  ;;  %vm16517_vm8 = vcmask 261120  }
0x6104   :  { %vm8662_vm9 = vmor %vm8638_vm6, %vm8654_vm4  ;;  %vm8641_vm1 = vcmp.lt.f32.partialorder %v15587_v28, %v8624_v62  ;;  %vm8649_vm15 = vcmp.eq.f32.partialorder %v15587_v28, %v8624_v62  ;;  %vm8648_vm10 = vcmp.eq.f32.partialorder %v15587_v28, %v8622_v11  ;;  %vm8640_vm12 = vcmp.lt.f32.partialorder %v15587_v28, %v8622_v11 }
0x6105   :  { %v10938_v17 = vsel %vm8662_vm9, 1.0, %v12843_v0  ;;  %vm8657_vm14 = vmand %vm8649_vm15, %vm16515_vm2 }
0x6106   :  { %v8684_v2 = vpack.c.bf16 %v10938_v17, %v10937_v23  ;;  %vm8665_vm13 = vmor %vm8641_vm1, %vm8657_vm14 }
0x6107   :  { %vm8656_vm5 = vmand %vm8648_vm10, %vm16516_vm3  ;;  %v8626_v24 = vpop.permute.xlu1 %8625  ;;  %v10941_v63 = vsel %vm8665_vm13, 1.0, %v12843_v0 }
0x6108   :  { %vm8664_vm6 = vmor %vm8640_vm12, %vm8656_vm5  ;;  %8693 = vrot.lane.b32.xlu1 %v8684_v2, %s12846_s25  ;;  %vm8642_vm4 = vcmp.lt.f32.partialorder %v15587_v28, %v8626_v24  ;;  %vm8650_vm11 = vcmp.eq.f32.partialorder %v15587_v28, %v8626_v24 }
0x6109   :  { %v10940_v26 = vsel %vm8664_vm6, 1.0, %v12843_v0  ;;  %vm8658_vm9 = vmand %vm8650_vm11, %vm365_vm7 }
0x610a   :  { %v8685_v18 = vpack.c.bf16 %v10940_v26, %v10939_v22  ;;  %vm8666_vm1 = vmor %vm8642_vm4, %vm8658_vm9 }
0x610b   :  { %v10942_v9 = vsel %vm8666_vm1, 1.0, %v12843_v0  ;;  %vm16518_vm15 = vmmov %vm16517_vm8 }
0x610c   :  { %v8686_v50 = vpack.c.bf16 %v10942_v9, %v10941_v63  ;;  %8695 = vrot.lane.b32.xlu0 %v8685_v18, %s12846_s25  ;;  %vm16519_vm10 = vmmov %vm16517_vm8 }
0x610d   :  { %vm16520_vm2 = vmmov %vm16517_vm8 }
0x610e   :  { %8697 = vrot.lane.b32.xlu1 %v8686_v50, %s12846_s25  ;;  %vm16521_vm5 = vmmov %vm16520_vm2 }
0x610f   :  { %vm16522_vm6 = vmmov %vm16520_vm2 }
0x6110   :  { %8842 = vrot.lane.b32.xlu0 %v15579_v35, %s12846_s25  ;;  %vm16523_vm11 = vmmov %vm16520_vm2 }
0x6114   :  { %9027 = vrot.lane.b32.xlu0 %v9025_v20, %s12845_s18 }
0x6170   :  { %v8692_v43 = vpop.permute.xlu0 %8691 }
0x6171   :  { %12044 = vmatprep.mubr.msk.bf16.mxu0 %vm16517_vm8, %v8692_v43  ;;  %vm16524_vm8 = vmmov %vm16520_vm2 }
0x617a   :  { %v8694_v60 = vpop.permute.xlu1 %8693 }
0x617b   :  { %12045 = vmatmul.mubr.msk.bf16.vlgmr.msra.gmra.mrb[128].mxu0 %vm16518_vm15, %v8694_v60 }
0x617c   :  { %12053 = vmatpush3.bf16.msra.mxu0 %v12600_v13 }
0x617d   :  { %12054 = vmatprep.subr.bf16.mxu0 %v12843_v0 }
0x617e   :  { %v8696_v14 = vpop.permute.xlu0 %8695 }
0x617f   :  { %12048 = vmatprep.mubr.msk.bf16.mxu0 %vm16519_vm10, %v8696_v14  ;;  %vm16525_vm10 = vmmov %vm16520_vm2 }
0x6180   :  { %v8698_v59 = vpop.permute.xlu1 %8697  ;;  %12055 = vmatpush3.bf16.msra.mxu0 %v12601_v40 }
0x6181   :  { %12056 = vmatprep.subr.bf16.mxu0 %v12843_v0 }
0x6183   :  { %12049 = vmatmul.mubr.msk.bf16.gmra.mrb[132].mxu0 %vm16520_vm2, %v8698_v59 }
0x6184   :  { %12060 = vmatprep.mubr.msk.bf16.mxu0 %vm16167_vm0, %v12843_v0  ;;  %12057 = vmatpush3.bf16.msra.mxu0 %v12602_v33 }
0x6185   :  { %12058 = vmatprep.subr.bf16.mxu0 %v12843_v0 }
0x6188   :  { %12059 = vmatpush3.bf16.msra.mxu0 %v12603_v5 }
0x6189   :  { %12076 = vmatprep.subr.bf16.mxu0 %v12843_v0 }
0x624e   :  { %v12046_v42 = vpop.f32.mrb[128].mxu0 }
0x624f   :  { %v12384_v44 = vtrunc.f32 %v12046_v42  ;;  %v8745_v36 = vpop.f32.mrb[129].mxu0 }
0x6250   :  { %v12380_v16 = vtrunc.f32 %v8745_v36  ;;  %v12047_v30 = vpop.f32.mrb[130].mxu0 }
0x6251   :  { %v12385_v1 = vcvt.f32.s32 %v12384_v44  ;;  %v12386_v49 = vtrunc.f32 %v12047_v30  ;;  %v8748_v7 = vpop.f32.mrb[131].mxu0 }
0x6252   :  { %v12381_v31 = vcvt.f32.s32 %v12380_v16  ;;  %v12382_v12 = vtrunc.f32 %v8748_v7 }
0x6253   :  { %vm8786_vm14 = vcmp.eq.s32.totalorder %v12385_v1, %v12947_v41  ;;  %v12387_v3 = vcvt.f32.s32 %v12386_v49 }
0x6254   :  { %vm8784_vm12 = vcmp.eq.s32.totalorder %v12381_v31, %v12947_v41  ;;  %v12383_v52 = vcvt.f32.s32 %v12382_v12  ;;  %v10949_v46 = vsel %vm8786_vm14, 1.0, %v12843_v0  ;;  %vm16526_vm14 = vmmov %vm16520_vm2 }
0x6255   :  { %v10947_v28 = vsel %vm8784_vm12, 1.0, %v12843_v0  ;;  %vm8787_vm13 = vcmp.eq.s32.totalorder %v12387_v3, %v12947_v41  ;;  %v8810_v29 = vmul.f32 %v10949_v46, %v15604_v21  ;;  %vm16527_vm12 = vmmov %vm16520_vm2 }
0x6256   :  { %v8808_v53 = vmul.f32 %v10947_v28, %v15592_v6  ;;  %v10950_v51 = vsel %vm8787_vm13, 1.0, %v12843_v0  ;;  %vm8785_vm3 = vcmp.eq.s32.totalorder %v12383_v52, %v12947_v41  ;;  %v12050_v54 = vpop.f32.mrb[132].mxu0  ;;  %vm16528_vm13 = vcmask 1041409   ;;  %v12608_v28 = vld [vmem:[%s16152_s5 + $0x20] sm:$0xff]  }
0x6257   :  { %v10948_v10 = vsel %vm8785_vm3, 1.0, %v12843_v0  ;;  %v12392_v45 = vtrunc.f32 %v12050_v54  ;;  %v8761_v25 = vpop.f32.mrb[133].mxu0  ;;  %v8811_v15 = vmul.f32 %v10950_v51, %v15608_v8  ;;  %v8819_v21 = vsel %vm16523_vm11, %v8810_v29, 0.0  ;;  %12065 = vmatpush3.bf16.msra.mxu1 %v12608_v28  ;;  %v12610_v51 = vld [vmem:[%s16152_s5 + $0x30] sm:$0xff]   ;;  %v8843_v54 = vpop.permute.xlu0 %8842  ;;  %vm16529_vm3 = vmmov %vm16520_vm2 }
0x6258   :  { %v8809_v39 = vmul.f32 %v10948_v10, %v15598_v47  ;;  %v12388_v61 = vtrunc.f32 %v8761_v25  ;;  %v12051_v27 = vpop.f32.mrb[134].mxu0  ;;  %v8816_v23 = vsel %vm16521_vm5, %v8808_v53, 0.0  ;;  %v12609_v53 = vld [vmem:[%s16152_s5 + $0x28] sm:$0xff]   ;;  %12066 = vmatprep.subr.bf16.mxu1 %v12843_v0  ;;  %v12604_v25 = vld [vmem:[%s16149_s2] sm:$0xff]   ;;  %vm16530_vm5 = vcmask 523264  }
0x6259   :  { %v12393_v62 = vcvt.f32.s32 %v12392_v45  ;;  %v12394_v11 = vtrunc.f32 %v12051_v27  ;;  %v8764_v6 = vpop.f32.mrb[135].mxu0  ;;  %v8821_v9 = vsel %vm16524_vm8, %v8811_v15, 0.0  ;;  %v10974_v27 = vld [vmem:[%s16147_s0 + $0xe] sm:$0x3]  ;;  %vm16534_vm8 = vcmp.ne.s32.totalorder %v12968_v55, 0 }
0x625a   :  { %v8817_v17 = vsel %vm16522_vm6, %v8809_v39, 0.0  ;;  %v12389_v2 = vcvt.f32.s32 %v12388_v61  ;;  %v12390_v24 = vtrunc.f32 %v8764_v6  ;;  %v12605_v39 = vld [vmem:[%s16149_s2 + $0x8] sm:$0xff]   ;;  %v12606_v61 = vld [vmem:[%s16149_s2 + $0x10] sm:$0xff]   ;;  %vm16531_vm6 = vmmov %vm16520_vm2 }
0x625b   :  { %v8818_v22 = vadd.f32 %v8817_v17, %v8816_v23  ;;  %vm8790_vm4 = vcmp.eq.s32.totalorder %v12393_v62, %v12947_v41  ;;  %v12395_v26 = vcvt.f32.s32 %v12394_v11  ;;  %12067 = vmatpush3.bf16.msra.mxu1 %v12609_v53  ;;  %v9028_v15 = vpop.permute.xlu0 %9027  ;;  %v12607_v62 = vld [vmem:[%s16149_s2 + $0x18] sm:$0xff]  }
0x625c   :  { %vm8788_vm9 = vcmp.eq.s32.totalorder %v12389_v2, %v12947_v41  ;;  %v12391_v47 = vcvt.f32.s32 %v12390_v24  ;;  %v10953_v8 = vsel %vm8790_vm4, 1.0, %v12843_v0  ;;  %12068 = vmatprep.subr.bf16.mxu1 %v12843_v0  ;;  %v9030_v11 = vsel %vm16531_vm6, %v10974_v27, %v9028_v15  ;;  %vm16532_vm4 = vmmov %vm16530_vm5  ;;  %v12611_v23 = vld [vmem:[%s16152_s5 + $0x38] sm:$0xff]  }
0x625d   :  { %v8820_v18 = vadd.f32 %v8819_v21, %v8818_v22  ;;  %v10951_v63 = vsel %vm8788_vm9, 1.0, %v12843_v0  ;;  %vm8791_vm1 = vcmp.eq.s32.totalorder %v12395_v26, %v12947_v41  ;;  %v8814_v14 = vmul.f32 %v10953_v8, %v15610_v38  ;;  %vm16533_vm11 = vmmov %vm16532_vm4 }
0x625e   :  { %v8812_v50 = vmul.f32 %v10951_v63, %v15596_v19  ;;  %vm8789_vm15 = vcmp.eq.s32.totalorder %v12391_v47, %v12947_v41  ;;  %v10954_v43 = vsel %vm8791_vm1, 1.0, %v12843_v0  ;;  %v9039_v6 = vpack.c.bf16 %v9030_v11, %v9030_v11  ;;  %v10975_v47 = vld [vmem:[%s16150_s3] ss:$0 sm:$0xff] }
0x625f   :  { %v8822_v20 = vadd.f32 %v8821_v9, %v8820_v18  ;;  %v10952_v60 = vsel %vm8789_vm15, 1.0, %v12843_v0  ;;  %v8815_v33 = vmul.f32 %v10954_v43, %v15620_v48  ;;  %v8832_v44 = vsel %vm16526_vm14, %v8814_v14, 0.0  ;;  %12069 = vmatpush3.bf16.msra.mxu1 %v12610_v51 }
0x6260   :  { %v8813_v59 = vmul.f32 %v10952_v60, %v15602_v32  ;;  %v8829_v40 = vsel %vm16525_vm10, %v8812_v50, 0.0  ;;  %12070 = vmatprep.subr.bf16.mxu1 %v12843_v0 }
0x6261   :  { %v8823_v13 = vrot.slane %v8822_v20, 4  ;;  %v8834_v16 = vsel %vm16527_vm12, %v8815_v33, 0.0  ;;  %vm16535_vm12 = vcmp.ne.s32.totalorder %v12970_v56, 0 }
0x6262   :  { %v8830_v5 = vsel %vm16520_vm2, %v8813_v59, 0.0 }
0x6263   :  { %v8831_v42 = vadd.f32 %v8830_v5, %v8829_v40  ;;  %v8824_v19 = vadd.f32 %v8823_v13, %v8822_v20  ;;  %12071 = vmatpush3.bf16.msra.mxu1 %v12611_v23 }
0x6264   :  { %12088 = vmatprep.subr.bf16.mxu1 %v12849_v4 }
0x6265   :  { %v8833_v36 = vadd.f32 %v8832_v44, %v8831_v42  ;;  %v8825_v1 = vrot.slane %v8824_v19, 2 }
0x6267   :  { %v8835_v30 = vadd.f32 %v8834_v16, %v8833_v36  ;;  %v8826_v38 = vadd.f32 %v8825_v1, %v8824_v19 }
0x6269   :  { %v8836_v49 = vrot.slane %v8835_v30, 4  ;;  %v8827_v31 = vrot.slane %v8826_v38, 1 }
0x626b   :  { %v8837_v7 = vadd.f32 %v8836_v49, %v8835_v30  ;;  %v8828_v52 = vadd.f32 %v8827_v31, %v8826_v38 }
0x626d   :  { %v8838_v32 = vrot.slane %v8837_v7, 2 }
0x626f   :  { %v8839_v12 = vadd.f32 %v8838_v32, %v8837_v7 }
0x6271   :  { %v8840_v3 = vrot.slane %v8839_v12, 1 }
0x6273   :  { %v8841_v48 = vadd.f32 %v8840_v3, %v8839_v12 }
0x6275   :  { %v8847_v46 = vsel %vm16528_vm13, %v8841_v48, %v8828_v52 }
0x6276   :  { %8848 = vrot.lane.b32.xlu1 %v8847_v46, %s12845_s18 }
0x62e8   :  { %v8849_v10 = vpop.permute.xlu1 %8848 }
0x62e9   :  { %v8851_v45 = vsel %vm16529_vm3, %v8843_v54, %v8849_v10 }
0x62ea   :  { %v8860_v29 = vpack.c.bf16 %v8851_v45, %v8851_v45 }
0x62ec   :  { %12061 = vmatmul.mubr.msk.bf16.vlgmr.msra.gmra.mrb[136].mxu0 %vm16530_vm5, %v8860_v29 }
0x62ed   :  { %12077 = vmatpush3.bf16.msra.mxu0 %v12604_v25  ;;  %12084 = vmatprep.mubr.msk.bf16.mxu0 %vm16167_vm0, %v12843_v0 }
0x62ee   :  { %12078 = vmatprep.subr.bf16.mxu0 %v12843_v0 }
0x62f1   :  { %12079 = vmatpush3.bf16.msra.mxu0 %v12605_v39 }
0x62f2   :  { %12080 = vmatprep.subr.bf16.mxu0 %v12843_v0 }
0x62f5   :  { %12081 = vmatpush3.bf16.msra.mxu0 %v12606_v61 }
0x62f6   :  { %12082 = vmatprep.subr.bf16.mxu0 %v12843_v0 }
0x62f9   :  { %12083 = vmatpush3.bf16.msra.mxu0 %v12607_v62 }
0x62fa   :  { %12112 = vmatprep.subr.bf16.mxu0 %v12843_v0 }
0x62fc   :  { %12085 = vmatmul.mubr.msk.bf16.vlgmr.msra.gmra.mrb[140].mxu0 %vm16532_vm4, %v9039_v6  ;;  %vm16536_vm4 = vcmp.ne.s32.totalorder %v12972_v57, 0 }
0x62fd   :  { %12120 = vmatprep.mubr.msk.bf16.mxu0 %vm16167_vm0, %v12843_v0 }
0x63bf   :  { %v8922_v17 = vpop.f32.mrb[136].mxu0 }
0x63c0   :  { %v8928_v2 = vmax.f32 %v8922_v17, 0.0  ;;  %v12062_v24 = vpop.f32.mrb[137].mxu0 }
0x63c1   :  { %v8925_v22 = vpop.f32.mrb[138].mxu0 }
0x63c2   :  { %v8937_v26 = vpack.c.bf16 %v8928_v2, %v8928_v2  ;;  %v12063_v21 = vpop.f32.mrb[139].mxu0 }
0x63c4   :  { %12073 = vmatmul.mubr.msk.bf16.vlgmr.msra.gmra.mrb[136].mxu1 %vm16533_vm11, %v8937_v26 }
0x63c5   :  { %12089 = vmatpush3.bf16.msra.mxu1 %v12849_v4 }
0x63c6   :  { %12090 = vmatprep.subr.bf16.mxu1 %v12849_v4 }
0x63c9   :  { %12091 = vmatpush3.bf16.msra.mxu1 %v12849_v4 }
0x63ca   :  { %12100 = vmatprep.subr.bf16.mxu1 %v12843_v0 }
0x63cf   :  { %v9108_v18 = vpop.f32.mrb[140].mxu0 }
0x63d0   :  { %v9109_v8 = vadd.f32 %v10975_v47, %v9108_v18  ;;  %v12086_v63 = vpop.f32.mrb[141].mxu0 }
0x63d1   :  { %v9111_v9 = vpop.f32.mrb[142].mxu0 }
0x63d2   :  { %9121 = vrot.lane.b32.xlu1 %v9109_v8, %s12845_s18  ;;  %v12087_v50 = vpop.f32.mrb[143].mxu0  ;;  %v10981_v20 = vmul.f32 -1.442695, %v9109_v8 }
0x63d4   :  { %12768 = vpow2.f32 %v10981_v20 }
0x63de   :  { %v12769_v43 = vpop.eup %12768 }
0x63df   :  { %v9117_v60 = vadd.f32 1.0, %v12769_v43 }
0x63e1   :  { %12770 = vrcp.f32 %v9117_v60 }
0x63eb   :  { %v12771_v14 = vpop.eup %12770 }
0x63ec   :  { %v9131_v16 = vsub.f32 1.0, %v12771_v14  ;;  %v9137_v1 = vmul.f32 %v12771_v14, %v9028_v15 }
0x6444   :  { %v9122_v59 = vpop.permute.xlu1 %9121 }
0x6445   :  { %v9124_v13 = vmul.f32 %v12771_v14, %v9122_v59 }
0x6447   :  { %9126 = vrot.lane.b32.xlu0 %v9124_v13, %s12841_s7 }
0x6497   :  { %v8999_v40 = vpop.f32.mrb[136].mxu1 }
0x6498   :  { %v12074_v33 = vpop.f32.mrb[137].mxu1  ;;  %v10973_v61 = vmul.f32 -1.442695, %v8999_v40 }
0x6499   :  { %v9002_v5 = vpop.f32.mrb[138].mxu1 }
0x649a   :  { %v12075_v42 = vpop.f32.mrb[139].mxu1 }
0x64b9   :  { %v9127_v19 = vpop.permute.xlu0 %9126 }
0x64ba   :  { %v9129_v44 = vadd.f32 %v9127_v19, %v9109_v8  ;;  %v12612_v19 = vld [vmem:[#allocation3] sm:$0xff]  }
0x64bc   :  { %12772 = vtanh.f32 %v9129_v44  ;;  %v12613_v44 = vld [vmem:[#allocation3 + $0x8] sm:$0xff]  }
0x64bd   :  { %12774 = vpow2.f32 %v10973_v61 }
0x64c6   :  { %v12773_v36 = vpop.eup %12772 }
0x64c7   :  { %9133 = vrot.lane.b32.xlu1 %v12773_v36, %s12846_s25  ;;  %v12775_v24 = vpop.eup %12774  ;;  %v12614_v36 = vld [vmem:[#allocation3 + $0x10] sm:$0xff]  }
0x64c8   :  { %v9008_v47 = vadd.f32 1.0, %v12775_v24 }
0x64ca   :  { %12776 = vrcp.f32 %v9008_v47 }
0x64d4   :  { %v12777_v13 = vpop.eup %12776 }
0x6539   :  { %v9134_v30 = vpop.permute.xlu1 %9133 }
0x653a   :  { %v9136_v49 = vmul.f32 %v9134_v30, %v9131_v16  ;;  %v12615_v16 = vld [vmem:[#allocation3 + $0x18] sm:$0xff]  }
0x653c   :  { %v15767_v38 = vadd.f32 %v9137_v1, %v9136_v49 }
0x653e   :  { %v9146_v7 = vrot.slane %v15767_v38, %v12938_v34 }
0x6540   :  { %v9147_v32 = vcombine.high %v9146_v7, %v9146_v7  ;;  %v9154_v31 = vrot.slane %v9146_v7, %v12938_v34 }
0x6542   :  { %v9161_v12 = vrot.slane %v9147_v32, %v12938_v34  ;;  %v15774_v3 = vrot.slane %v9154_v31, %v12942_v37 }
0x6544   :  { %v15777_v52 = vrot.slane %v9161_v12, %v12942_v37  ;;  %9172 = vrot.lane.b32.xlu0 %v15774_v3, %s12846_s25 }
0x6546   :  { %9174 = vrot.lane.b32.xlu1 %v15777_v52, %s12846_s25 }
0x65b6   :  { %v9173_v48 = vpop.permute.xlu0 %9172 }
0x65b7   :  { %9178 = vxpose.xlu0.b32.start [1/4] (short) (narrow) %v9173_v48, 32 }
0x65b8   :  { %v9175_v46 = vpop.permute.xlu1 %9174 }
0x65b9   :  { %9210 = vxpose.xlu1.b32.start [1/4] (short) (narrow) %v9175_v46, 32 }
0x65bb   :  { %9179 = vxpose.xlu0.b32.cont [2/4] (short) (narrow) %v9173_v48, 32 }
0x65bd   :  { %9211 = vxpose.xlu1.b32.cont [2/4] (short) (narrow) %v9175_v46, 32 }
0x65bf   :  { %9180 = vxpose.xlu0.b32.cont [3/4] (short) (narrow) %v9173_v48, 32 }
0x65c1   :  { %9212 = vxpose.xlu1.b32.cont [3/4] (short) (narrow) %v9175_v46, 32 }
0x65c3   :  { %9181 = vxpose.xlu0.b32.end [4/4] (short) (narrow) %v9173_v48, 32 }
0x65c5   :  { %9213 = vxpose.xlu1.b32.end [4/4] (short) (narrow) %v9175_v46, 32 }
0x6637   :  { %v15783_v28 = vpop.trf.xlu0 }
0x6638   :  { %9250 = vrot.lane.b32.xlu0 %v15783_v28, %s12845_s18 }
0x6639   :  { %v15787_v53 = vpop.trf.xlu1 }
0x663b   :  { %v15789_v51 = vpop.trf.xlu0 }
0x663c   :  { %9252 = vrot.lane.b32.xlu1 %v15789_v51, %s12845_s18 }
0x663d   :  { %v15793_v54 = vpop.trf.xlu1 }
0x663f   :  { %v15795_v10 = vpop.trf.xlu0 }
0x6640   :  { %9254 = vrot.lane.b32.xlu0 %v15795_v10, %s12845_s18 }
0x6641   :  { %v15801_v25 = vpop.trf.xlu1 }
0x6643   :  { %v15799_v45 = vpop.trf.xlu0 }
0x6644   :  { %9256 = vrot.lane.b32.xlu1 %v15799_v45, %s12845_s18  ;;  %9258 = vrot.lane.b32.xlu0 %v15787_v53, %s12845_s18 }
0x6645   :  { %v15811_v29 = vpop.trf.xlu1 }
0x6648   :  { %9260 = vrot.lane.b32.xlu1 %v15793_v54, %s12845_s18  ;;  %9262 = vrot.lane.b32.xlu0 %v15801_v25, %s12845_s18 }
0x664c   :  { %9264 = vrot.lane.b32.xlu1 %v15811_v29, %s12845_s18 }
0x66aa   :  { %v9251_v39 = vpop.permute.xlu0 %9250 }
0x66ab   :  { %vm9282_vm9 = vcmp.eq.f32.partialorder %v15774_v3, %v9251_v39  ;;  %vm9274_vm1 = vcmp.lt.f32.partialorder %v15774_v3, %v9251_v39 }
0x66ac   :  { %vm9290_vm15 = vmand %vm9282_vm9, %vm16534_vm8 }
0x66ad   :  { %vm9298_vm10 = vmor %vm9274_vm1, %vm9290_vm15 }
0x66ae   :  { %v9253_v27 = vpop.permute.xlu1 %9252  ;;  %v10982_v15 = vsel %vm9298_vm10, 1.0, %v12843_v0  ;;  %vm16539_vm10 = vcmp.ne.s32.totalorder %v12968_v55, 0 }
0x66af   :  { %vm9275_vm2 = vcmp.lt.f32.partialorder %v15774_v3, %v9253_v27  ;;  %vm9283_vm14 = vcmp.eq.f32.partialorder %v15774_v3, %v9253_v27 }
0x66b0   :  { %vm9291_vm13 = vmand %vm9283_vm14, %vm16535_vm12 }
0x66b1   :  { %vm9299_vm3 = vmor %vm9275_vm2, %vm9291_vm13 }
0x66b2   :  { %v10983_v62 = vsel %vm9299_vm3, 1.0, %v12843_v0  ;;  %v9255_v11 = vpop.permute.xlu0 %9254 }
0x66b3   :  { %v9322_v6 = vpack.c.bf16 %v10983_v62, %v10982_v15  ;;  %vm9284_vm5 = vcmp.eq.f32.partialorder %v15774_v3, %v9255_v11  ;;  %vm9276_vm6 = vcmp.lt.f32.partialorder %v15774_v3, %v9255_v11 }
0x66b4   :  { %vm9292_vm11 = vmand %vm9284_vm5, %vm16536_vm4 }
0x66b5   :  { %9330 = vrot.lane.b32.xlu0 %v9322_v6, %s12846_s25  ;;  %vm15830_vm9 = vmor %vm9276_vm6, %vm9292_vm11  ;;  %vm16542_vm11 = vcmp.ne.s32.totalorder %v12972_v57, 0 }
0x66b6   :  { %v9259_v23 = vpop.permute.xlu0 %9258  ;;  %v9257_v17 = vpop.permute.xlu1 %9256  ;;  %v10984_v18 = vsel %vm15830_vm9, 1.0, %v12843_v0 }
0x66b7   :  { %vm9278_vm1 = vcmp.lt.f32.partialorder %v15777_v52, %v9259_v23  ;;  %vm9286_vm8 = vcmp.eq.f32.partialorder %v15777_v52, %v9259_v23  ;;  %vm9285_vm15 = vcmp.eq.f32.partialorder %v15774_v3, %v9257_v17  ;;  %vm9277_vm14 = vcmp.lt.f32.partialorder %v15774_v3, %v9257_v17 }
0x66b8   :  { %vm9294_vm2 = vmand %vm9286_vm8, %vm16539_vm10  ;;  %vm16543_vm10 = vcmp.ne.s32.totalorder %v12970_v56, 0 }
0x66b9   :  { %vm15840_vm12 = vmor %vm9278_vm1, %vm9294_vm2 }
0x66ba   :  { %vm9293_vm13 = vmand %vm9285_vm15, %vm365_vm7  ;;  %v9263_v26 = vpop.permute.xlu0 %9262  ;;  %v9261_v21 = vpop.permute.xlu1 %9260  ;;  %v10986_v50 = vsel %vm15840_vm12, 1.0, %v12843_v0  ;;  %vm16544_vm12 = vcmask 261120  }
0x66bb   :  { %vm9301_vm3 = vmor %vm9277_vm14, %vm9293_vm13  ;;  %vm9280_vm5 = vcmp.lt.f32.partialorder %v15777_v52, %v9263_v26  ;;  %vm9288_vm6 = vcmp.eq.f32.partialorder %v15777_v52, %v9263_v26  ;;  %vm9287_vm4 = vcmp.eq.f32.partialorder %v15777_v52, %v9261_v21  ;;  %vm9279_vm8 = vcmp.lt.f32.partialorder %v15777_v52, %v9261_v21 }
0x66bc   :  { %v10985_v8 = vsel %vm9301_vm3, 1.0, %v12843_v0  ;;  %vm9296_vm1 = vmand %vm9288_vm6, %vm16542_vm11 }
0x66bd   :  { %v9323_v63 = vpack.c.bf16 %v10985_v8, %v10984_v18  ;;  %vm9304_vm15 = vmor %vm9280_vm5, %vm9296_vm1 }
0x66be   :  { %vm9295_vm2 = vmand %vm9287_vm4, %vm16543_vm10  ;;  %v9265_v9 = vpop.permute.xlu1 %9264  ;;  %v10988_v60 = vsel %vm9304_vm15, 1.0, %v12843_v0 }
0x66bf   :  { %vm9303_vm14 = vmor %vm9279_vm8, %vm9295_vm2  ;;  %9332 = vrot.lane.b32.xlu1 %v9323_v63, %s12846_s25  ;;  %vm9281_vm13 = vcmp.lt.f32.partialorder %v15777_v52, %v9265_v9  ;;  %vm9289_vm9 = vcmp.eq.f32.partialorder %v15777_v52, %v9265_v9 }
0x66c0   :  { %v10987_v20 = vsel %vm9303_vm14, 1.0, %v12843_v0  ;;  %vm9297_vm3 = vmand %vm9289_vm9, %vm365_vm7 }
0x66c1   :  { %v9324_v43 = vpack.c.bf16 %v10987_v20, %v10986_v50  ;;  %vm9305_vm5 = vmor %vm9281_vm13, %vm9297_vm3 }
0x66c2   :  { %v10989_v14 = vsel %vm9305_vm5, 1.0, %v12843_v0  ;;  %vm16545_vm6 = vmmov %vm16544_vm12 }
0x66c3   :  { %v9325_v59 = vpack.c.bf16 %v10989_v14, %v10988_v60  ;;  %9334 = vrot.lane.b32.xlu0 %v9324_v43, %s12846_s25  ;;  %vm16546_vm4 = vmmov %vm16545_vm6 }
0x66c4   :  { %vm16547_vm11 = vmmov %vm16546_vm4 }
0x66c5   :  { %9336 = vrot.lane.b32.xlu1 %v9325_v59, %s12846_s25  ;;  %vm16548_vm2 = vmmov %vm16546_vm4 }
0x66c6   :  { %vm16549_vm14 = vmmov %vm16548_vm2 }
0x66c7   :  { %9481 = vrot.lane.b32.xlu0 %v15767_v38, %s12846_s25  ;;  %vm16550_vm9 = vmmov %vm16548_vm2 }
0x66cb   :  { %9012 = vrot.lane.b32.xlu0 %v12777_v13, %s12845_s18 }
0x6727   :  { %v9331_v40 = vpop.permute.xlu0 %9330 }
0x6728   :  { %12092 = vmatprep.mubr.msk.bf16.mxu1 %vm16544_vm12, %v9331_v40  ;;  %vm16551_vm12 = vmmov %vm16548_vm2 }
0x6731   :  { %v9333_v33 = vpop.permute.xlu1 %9332 }
0x6732   :  { %12093 = vmatmul.mubr.msk.bf16.vlgmr.msra.gmra.mrb[140].mxu1 %vm16545_vm6, %v9333_v33 }
0x6733   :  { %12101 = vmatpush3.bf16.msra.mxu1 %v12612_v19 }
0x6734   :  { %12102 = vmatprep.subr.bf16.mxu1 %v12843_v0 }
0x6735   :  { %v9335_v5 = vpop.permute.xlu0 %9334 }
0x6736   :  { %12096 = vmatprep.mubr.msk.bf16.mxu1 %vm16546_vm4, %v9335_v5  ;;  %vm16552_vm4 = vmmov %vm16548_vm2 }
0x6737   :  { %v9337_v42 = vpop.permute.xlu1 %9336  ;;  %12103 = vmatpush3.bf16.msra.mxu1 %v12613_v44 }
0x6738   :  { %12104 = vmatprep.subr.bf16.mxu1 %v12843_v0 }
0x673a   :  { %12097 = vmatmul.mubr.msk.bf16.gmra.mrb[144].mxu1 %vm16547_vm11, %v9337_v42  ;;  %vm16553_vm11 = vmmov %vm16548_vm2 }
0x673b   :  { %12108 = vmatprep.mubr.msk.bf16.mxu1 %vm16167_vm0, %v12843_v0  ;;  %12105 = vmatpush3.bf16.msra.mxu1 %v12614_v36 }
0x673c   :  { %12106 = vmatprep.subr.bf16.mxu1 %v12843_v0 }
0x673f   :  { %12107 = vmatpush3.bf16.msra.mxu1 %v12615_v16 }
0x6740   :  { %12124 = vmatprep.subr.bf16.mxu1 %v12843_v0 }
0x6805   :  { %v12094_v30 = vpop.f32.mrb[140].mxu1 }
0x6806   :  { %v12400_v1 = vtrunc.f32 %v12094_v30  ;;  %v9384_v49 = vpop.f32.mrb[141].mxu1 }
0x6807   :  { %v12396_v7 = vtrunc.f32 %v9384_v49  ;;  %v12095_v32 = vpop.f32.mrb[142].mxu1 }
0x6808   :  { %v12401_v31 = vcvt.f32.s32 %v12400_v1  ;;  %v12402_v12 = vtrunc.f32 %v12095_v32  ;;  %v9387_v3 = vpop.f32.mrb[143].mxu1 }
0x6809   :  { %v12397_v52 = vcvt.f32.s32 %v12396_v7  ;;  %v12398_v48 = vtrunc.f32 %v9387_v3 }
0x680a   :  { %vm9425_vm1 = vcmp.eq.s32.totalorder %v12401_v31, %v12947_v41  ;;  %v12403_v46 = vcvt.f32.s32 %v12402_v12 }
0x680b   :  { %vm9423_vm8 = vcmp.eq.s32.totalorder %v12397_v52, %v12947_v41  ;;  %v12399_v39 = vcvt.f32.s32 %v12398_v48  ;;  %v10996_v61 = vsel %vm9425_vm1, 1.0, %v12843_v0  ;;  %vm16554_vm1 = vmmov %vm16548_vm2  ;;  %v12616_v48 = vld [vmem:[%s16152_s5] sm:$0xff]  }
0x680c   :  { %v10994_v27 = vsel %vm9423_vm8, 1.0, %v12843_v0  ;;  %vm9426_vm15 = vcmp.eq.s32.totalorder %v12403_v46, %v12947_v41  ;;  %v9449_v2 = vmul.f32 %v10996_v61, %v15795_v10  ;;  %vm16555_vm8 = vmmov %vm16554_vm1  ;;  %12113 = vmatpush3.bf16.msra.mxu0 %v12616_v48  ;;  %v12617_v61 = vld [vmem:[%s16152_s5 + $0x8] sm:$0xff]  }
0x680d   :  { %v9447_v15 = vmul.f32 %v10994_v27, %v15783_v28  ;;  %v10997_v62 = vsel %vm9426_vm15, 1.0, %v12843_v0  ;;  %vm9424_vm10 = vcmp.eq.s32.totalorder %v12399_v39, %v12947_v41  ;;  %v12098_v11 = vpop.f32.mrb[144].mxu1  ;;  %12114 = vmatprep.subr.bf16.mxu0 %v12843_v0  ;;  %vm16556_vm15 = vcmask 1041409  }
0x680e   :  { %v10995_v6 = vsel %vm9424_vm10, 1.0, %v12843_v0  ;;  %v12408_v23 = vtrunc.f32 %v12098_v11  ;;  %v9400_v17 = vpop.f32.mrb[145].mxu1  ;;  %v9450_v21 = vmul.f32 %v10997_v62, %v15799_v45  ;;  %v9458_v10 = vsel %vm16550_vm9, %v9449_v2, 0.0  ;;  %v12618_v11 = vld [vmem:[%s16152_s5 + $0x10] sm:$0xff]   ;;  %vm16557_vm10 = vmmov %vm16554_vm1 }
0x680f   :  { %v9448_v24 = vmul.f32 %v10995_v6, %v15789_v51  ;;  %v12404_v22 = vtrunc.f32 %v9400_v17  ;;  %v12099_v26 = vpop.f32.mrb[146].mxu1  ;;  %v9455_v8 = vsel %vm16548_vm2, %v9447_v15, 0.0  ;;  %vm16558_vm2 = vcmask 523264  }
0x6810   :  { %v12409_v47 = vcvt.f32.s32 %v12408_v23  ;;  %v12410_v18 = vtrunc.f32 %v12099_v26  ;;  %v9403_v28 = vpop.f32.mrb[147].mxu1  ;;  %v9460_v59 = vsel %vm16551_vm12, %v9450_v21, 0.0  ;;  %12115 = vmatpush3.bf16.msra.mxu0 %v12617_v61  ;;  %vm16561_vm9 = vmmov %vm16558_vm2 }
0x6811   :  { %v9456_v63 = vsel %vm16549_vm14, %v9448_v24, 0.0  ;;  %v12405_v9 = vcvt.f32.s32 %v12404_v22  ;;  %v12406_v50 = vtrunc.f32 %v9403_v28  ;;  %12116 = vmatprep.subr.bf16.mxu0 %v12843_v0  ;;  %vm16559_vm14 = vcmask 254976   ;;  %vm16564_vm12 = vmmov %vm16558_vm2 }
0x6812   :  { %v9457_v20 = vadd.f32 %v9456_v63, %v9455_v8  ;;  %vm9429_vm13 = vcmp.eq.s32.totalorder %v12409_v47, %v12947_v41  ;;  %v12411_v43 = vcvt.f32.s32 %v12410_v18 }
0x6813   :  { %vm9427_vm3 = vcmp.eq.s32.totalorder %v12405_v9, %v12947_v41  ;;  %v12407_v51 = vcvt.f32.s32 %v12406_v50  ;;  %v11000_v45 = vsel %vm9429_vm13, 1.0, %v12843_v0  ;;  %vm16560_vm13 = vmmov %vm16559_vm14 }
0x6814   :  { %v9459_v60 = vadd.f32 %v9458_v10, %v9457_v20  ;;  %v10998_v14 = vsel %vm9427_vm3, 1.0, %v12843_v0  ;;  %vm9430_vm5 = vcmp.eq.s32.totalorder %v12411_v43, %v12947_v41  ;;  %v9453_v42 = vmul.f32 %v11000_v45, %v15801_v25  ;;  %12117 = vmatpush3.bf16.msra.mxu0 %v12618_v11  ;;  %v12620_v45 = vld [vmem:[%s16149_s2 + $0x20] sm:$0xff]   ;;  %vm16562_vm3 = vmmov %vm16560_vm13 }
0x6815   :  { %v9451_v13 = vmul.f32 %v10998_v14, %v15787_v53  ;;  %vm9428_vm6 = vcmp.eq.s32.totalorder %v12407_v51, %v12947_v41  ;;  %v11001_v33 = vsel %vm9430_vm5, 1.0, %v12843_v0  ;;  %12118 = vmatprep.subr.bf16.mxu0 %v12843_v0  ;;  %v12622_v14 = vld [vmem:[%s16149_s2 + $0x30] sm:$0xff]   ;;  %vm16563_vm5 = vmmov %vm16554_vm1 }
0x6816   :  { %v9461_v40 = vadd.f32 %v9460_v59, %v9459_v60  ;;  %v10999_v5 = vsel %vm9428_vm6, 1.0, %v12843_v0  ;;  %v9454_v16 = vmul.f32 %v11001_v33, %v15811_v29  ;;  %v9471_v49 = vsel %vm16554_vm1, %v9453_v42, 0.0  ;;  %v9482_v29 = vpop.permute.xlu0 %9481 }
0x6817   :  { %v9452_v19 = vmul.f32 %v10999_v5, %v15793_v54  ;;  %v9468_v36 = vsel %vm16552_vm4, %v9451_v13, 0.0 }
0x6818   :  { %v9462_v44 = vrot.slane %v9461_v40, 4  ;;  %v9473_v32 = vsel %vm16555_vm8, %v9454_v16, 0.0  ;;  %v11022_v16 = vld [vmem:[%s16150_s3 + $0x1] ss:$0 sm:$0xff] }
0x6819   :  { %v9469_v30 = vsel %vm16553_vm11, %v9452_v19, 0.0  ;;  %vm16565_vm11 = vcmp.ne.s32.totalorder %v12968_v55, 0 }
0x681a   :  { %v9470_v1 = vadd.f32 %v9469_v30, %v9468_v36  ;;  %v9463_v53 = vadd.f32 %v9462_v44, %v9461_v40  ;;  %v9013_v6 = vpop.permute.xlu0 %9012  ;;  %v12623_v40 = vld [vmem:[%s16149_s2 + $0x38] sm:$0xff]  }
0x681b   :  { %v9015_v17 = vmul.f32 %v9013_v6, %v15579_v35  ;;  %v12619_v35 = vld [vmem:[%s16152_s5 + $0x18] sm:$0xff]  }
0x681c   :  { %v9472_v7 = vadd.f32 %v9471_v49, %v9470_v1  ;;  %v9464_v12 = vrot.slane %v9463_v53, 2  ;;  %12119 = vmatpush3.bf16.msra.mxu0 %v12619_v35 }
0x681d   :  { %12136 = vmatprep.subr.bf16.mxu0 %v12849_v4 }
0x681e   :  { %v9474_v31 = vadd.f32 %v9473_v32, %v9472_v7  ;;  %v9465_v25 = vadd.f32 %v9464_v12, %v9463_v53 }
0x6820   :  { %v9475_v3 = vrot.slane %v9474_v31, 4  ;;  %v9466_v46 = vrot.slane %v9465_v25, 1 }
0x6822   :  { %v9476_v52 = vadd.f32 %v9475_v3, %v9474_v31  ;;  %v9467_v15 = vadd.f32 %v9466_v46, %v9465_v25 }
0x6824   :  { %v9477_v54 = vrot.slane %v9476_v52, 2 }
0x6826   :  { %v9478_v39 = vadd.f32 %v9477_v54, %v9476_v52 }
0x6828   :  { %v9479_v27 = vrot.slane %v9478_v39, 1 }
0x682a   :  { %v9480_v62 = vadd.f32 %v9479_v27, %v9478_v39 }
0x682c   :  { %v9486_v23 = vsel %vm16556_vm15, %v9480_v62, %v9467_v15 }
0x682d   :  { %9487 = vrot.lane.b32.xlu1 %v9486_v23, %s12845_s18 }
0x6831   :  { %9017 = vrot.lane.b32.xlu1 %v9015_v17, %s12846_s25 }
0x689f   :  { %v9488_v2 = vpop.permute.xlu1 %9487 }
0x68a0   :  { %v9490_v24 = vsel %vm16557_vm10, %v9482_v29, %v9488_v2 }
0x68a1   :  { %v9499_v22 = vpack.c.bf16 %v9490_v24, %v9490_v24 }
0x68a3   :  { %12109 = vmatmul.mubr.msk.bf16.vlgmr.msra.gmra.mrb[148].mxu1 %vm16558_vm2, %v9499_v22  ;;  %v9018_v26 = vpop.permute.xlu1 %9017  ;;  %vm16566_vm2 = vcmp.ne.s32.totalorder %v12970_v56, 0 }
0x68a4   :  { %9020 = vst.msk [vmem:[#allocation2 + $0x2] sm:$0x3] %vm16559_vm14, %v9018_v26  ;;  %12132 = vmatprep.mubr.msk.bf16.mxu1 %vm16167_vm0, %v12843_v0  ;;  %12125 = vmatpush3.bf16.msra.mxu1 %v12620_v45 }
0x68a5   :  { %9022 = vst.msk [vmem:[#allocation6 + $0xc] sm:$0x3] %vm16560_vm13, %v9018_v26  ;;  %12126 = vmatprep.subr.bf16.mxu1 %v12843_v0 }
0x68ab   :  { %v9660_v13 = vld [vmem:[#allocation2 + $0x2] sm:$0x3] }
0x6976   :  { %v9561_v21 = vpop.f32.mrb[148].mxu1 }
0x6977   :  { %v9567_v47 = vmax.f32 %v9561_v21, 0.0  ;;  %v12110_v18 = vpop.f32.mrb[149].mxu1 }
0x6978   :  { %v9564_v28 = vpop.f32.mrb[150].mxu1 }
0x6979   :  { %v9576_v8 = vpack.c.bf16 %v9567_v47, %v9567_v47  ;;  %v12111_v63 = vpop.f32.mrb[151].mxu1 }
0x697b   :  { %12121 = vmatmul.mubr.msk.bf16.vlgmr.msra.gmra.mrb[144].mxu0 %vm16561_vm9, %v9576_v8 }
0x697c   :  { %12137 = vmatpush3.bf16.msra.mxu0 %v12849_v4 }
0x697d   :  { %12138 = vmatprep.subr.bf16.mxu0 %v12849_v4 }
0x6980   :  { %12139 = vmatpush3.bf16.msra.mxu0 %v12849_v4  ;;  %v12621_v4 = vld [vmem:[%s16149_s2 + $0x28] sm:$0xff]  }
0x6981   :  { %12148 = vmatprep.subr.bf16.mxu0 %v12843_v0  ;;  %12127 = vmatpush3.bf16.msra.mxu1 %v12621_v4 }
0x6982   :  { %12128 = vmatprep.subr.bf16.mxu1 %v12843_v0 }
0x6985   :  { %12129 = vmatpush3.bf16.msra.mxu1 %v12622_v14 }
0x6986   :  { %12130 = vmatprep.subr.bf16.mxu1 %v12843_v0 }
0x6989   :  { %12131 = vmatpush3.bf16.msra.mxu1 %v12623_v40 }
0x698a   :  { %12160 = vmatprep.subr.bf16.mxu1 %v12843_v0 }
0x6a4e   :  { %v9638_v9 = vpop.f32.mrb[144].mxu0 }
0x6a4f   :  { %v11012_v50 = vmul.f32 -1.442695, %v9638_v9  ;;  %v12122_v20 = vpop.f32.mrb[145].mxu0 }
0x6a50   :  { %v9641_v43 = vpop.f32.mrb[146].mxu0 }
0x6a51   :  { %12778 = vpow2.f32 %v11012_v50  ;;  %v12123_v10 = vpop.f32.mrb[147].mxu0 }
0x6a5b   :  { %v12779_v51 = vpop.eup %12778 }
0x6a5c   :  { %v9647_v60 = vadd.f32 1.0, %v12779_v51 }
0x6a5e   :  { %12780 = vrcp.f32 %v9647_v60 }
0x6a68   :  { %v12781_v59 = vpop.eup %12780 }
0x6a69   :  { %9651 = vrot.lane.b32.xlu0 %v12781_v59, %s12845_s18 }
0x6a6d   :  { %9662 = vrot.lane.b32.xlu0 %v9660_v13, %s12845_s18 }
0x6adb   :  { %v9652_v33 = vpop.permute.xlu0 %9651 }
0x6adc   :  { %v9654_v5 = vmul.f32 %v9652_v33, %v15767_v38 }
0x6ade   :  { %9656 = vrot.lane.b32.xlu1 %v9654_v5, %s12846_s25 }
0x6adf   :  { %v9663_v42 = vpop.permute.xlu0 %9662 }
0x6b50   :  { %v9657_v19 = vpop.permute.xlu1 %9656 }
0x6b51   :  { %9659 = vst.msk [vmem:[#allocation2] sm:$0x3] %vm16562_vm3, %v9657_v19  ;;  %v9665_v44 = vsel %vm16563_vm5, %v9657_v19, %v9663_v42  ;;  %vm16567_vm5 = vcmp.ne.s32.totalorder %v12972_v57, 0 }
0x6b52   :  { %v9674_v36 = vpack.c.bf16 %v9665_v44, %v9665_v44 }
0x6b54   :  { %12133 = vmatmul.mubr.msk.bf16.vlgmr.msra.gmra.mrb[152].mxu1 %vm16564_vm12, %v9674_v36  ;;  %v12624_v36 = vld [vmem:[#allocation3 + $0x20] sm:$0xff]  }
0x6b55   :  { %12168 = vmatprep.mubr.msk.bf16.mxu1 %vm16167_vm0, %v12843_v0 }
0x6c27   :  { %v9743_v30 = vpop.f32.mrb[152].mxu1 }
0x6c28   :  { %v9744_v38 = vadd.f32 %v11022_v16, %v9743_v30  ;;  %v12134_v1 = vpop.f32.mrb[153].mxu1  ;;  %v12625_v16 = vld [vmem:[#allocation3 + $0x28] sm:$0xff]   ;;  %v12626_v30 = vld [vmem:[#allocation3 + $0x30] sm:$0xff]  }
0x6c29   :  { %v9746_v53 = vpop.f32.mrb[154].mxu1 }
0x6c2a   :  { %9756 = vrot.lane.b32.xlu1 %v9744_v38, %s12845_s18  ;;  %v12135_v49 = vpop.f32.mrb[155].mxu1  ;;  %v11028_v7 = vmul.f32 -1.442695, %v9744_v38 }
0x6c2c   :  { %12782 = vpow2.f32 %v11028_v7 }
0x6c36   :  { %v12783_v32 = vpop.eup %12782 }
0x6c37   :  { %v9752_v31 = vadd.f32 1.0, %v12783_v32 }
0x6c39   :  { %12784 = vrcp.f32 %v9752_v31 }
0x6c43   :  { %v12785_v12 = vpop.eup %12784 }
0x6c44   :  { %v9766_v29 = vsub.f32 1.0, %v12785_v12  ;;  %v9772_v39 = vmul.f32 %v12785_v12, %v9663_v42 }
0x6c9c   :  { %v9757_v3 = vpop.permute.xlu1 %9756 }
0x6c9d   :  { %v9759_v25 = vmul.f32 %v12785_v12, %v9757_v3 }
0x6c9f   :  { %9761 = vrot.lane.b32.xlu0 %v9759_v25, %s12841_s7 }
0x6d11   :  { %v9762_v52 = vpop.permute.xlu0 %9761 }
0x6d12   :  { %v9764_v54 = vadd.f32 %v9762_v52, %v9744_v38  ;;  %v12627_v38 = vld [vmem:[#allocation3 + $0x38] sm:$0xff]  }
0x6d14   :  { %12786 = vtanh.f32 %v9764_v54 }
0x6d1e   :  { %v12787_v48 = vpop.eup %12786 }
0x6d1f   :  { %9768 = vrot.lane.b32.xlu1 %v12787_v48, %s12846_s25 }
0x6d91   :  { %v9769_v46 = vpop.permute.xlu1 %9768 }
0x6d92   :  { %v9771_v61 = vmul.f32 %v9769_v46, %v9766_v29 }
0x6d94   :  { %v15978_v27 = vadd.f32 %v9772_v39, %v9771_v61 }
0x6d96   :  { %v9781_v15 = vrot.slane %v15978_v27, %v12938_v34 }
0x6d98   :  { %v9782_v62 = vcombine.high %v9781_v15, %v9781_v15  ;;  %v9789_v11 = vrot.slane %v9781_v15, %v12938_v34 }
0x6d9a   :  { %v9796_v6 = vrot.slane %v9782_v62, %v12938_v34  ;;  %v9800_v23 = vrot.slane %v9789_v11, %v12942_v37 }
0x6d9c   :  { %v15986_v17 = vrot.slane %v9796_v6, %v12942_v37  ;;  %9807 = vrot.lane.b32.xlu0 %v9800_v23, %s12846_s25 }
0x6d9e   :  { %9809 = vrot.lane.b32.xlu1 %v15986_v17, %s12846_s25 }
0x6e0e   :  { %v9808_v2 = vpop.permute.xlu0 %9807 }
0x6e0f   :  { %9813 = vxpose.xlu0.b32.start [1/4] (short) (narrow) %v9808_v2, 32 }
0x6e10   :  { %v9810_v24 = vpop.permute.xlu1 %9809 }
0x6e11   :  { %9845 = vxpose.xlu1.b32.start [1/4] (short) (narrow) %v9810_v24, 32 }
0x6e13   :  { %9814 = vxpose.xlu0.b32.cont [2/4] (short) (narrow) %v9808_v2, 32 }
0x6e15   :  { %9846 = vxpose.xlu1.b32.cont [2/4] (short) (narrow) %v9810_v24, 32 }
0x6e17   :  { %9815 = vxpose.xlu0.b32.cont [3/4] (short) (narrow) %v9808_v2, 32 }
0x6e19   :  { %9847 = vxpose.xlu1.b32.cont [3/4] (short) (narrow) %v9810_v24, 32 }
0x6e1b   :  { %9816 = vxpose.xlu0.b32.end [4/4] (short) (narrow) %v9808_v2, 32 }
0x6e1d   :  { %9848 = vxpose.xlu1.b32.end [4/4] (short) (narrow) %v9810_v24, 32 }
0x6e8f   :  { %v15991_v34 = vpop.trf.xlu0 }
0x6e90   :  { %9885 = vrot.lane.b32.xlu0 %v15991_v34, %s12845_s18 }
0x6e91   :  { %v15995_v37 = vpop.trf.xlu1 }
0x6e93   :  { %v15997_v22 = vpop.trf.xlu0 }
0x6e94   :  { %9887 = vrot.lane.b32.xlu1 %v15997_v22, %s12845_s18 }
0x6e95   :  { %v16001_v26 = vpop.trf.xlu1 }
0x6e97   :  { %v16003_v35 = vpop.trf.xlu0 }
0x6e98   :  { %9889 = vrot.lane.b32.xlu0 %v16003_v35, %s12845_s18 }
0x6e99   :  { %v16009_v47 = vpop.trf.xlu1 }
0x6e9b   :  { %v16007_v21 = vpop.trf.xlu0 }
0x6e9c   :  { %9891 = vrot.lane.b32.xlu1 %v16007_v21, %s12845_s18  ;;  %9893 = vrot.lane.b32.xlu0 %v15995_v37, %s12845_s18 }
0x6e9d   :  { %v16019_v18 = vpop.trf.xlu1 }
0x6ea0   :  { %9895 = vrot.lane.b32.xlu1 %v16001_v26, %s12845_s18  ;;  %9897 = vrot.lane.b32.xlu0 %v16009_v47, %s12845_s18 }
0x6ea4   :  { %9899 = vrot.lane.b32.xlu1 %v16019_v18, %s12845_s18 }
0x6f02   :  { %v9886_v28 = vpop.permute.xlu0 %9885 }
0x6f03   :  { %vm9917_vm6 = vcmp.eq.f32.partialorder %v9800_v23, %v9886_v28  ;;  %vm9909_vm4 = vcmp.lt.f32.partialorder %v9800_v23, %v9886_v28 }
0x6f04   :  { %vm9925_vm1 = vmand %vm9917_vm6, %vm16565_vm11 }
0x6f05   :  { %vm9933_vm8 = vmor %vm9909_vm4, %vm9925_vm1 }
0x6f06   :  { %v9888_v8 = vpop.permute.xlu1 %9887  ;;  %v11029_v63 = vsel %vm9933_vm8, 1.0, %v12843_v0  ;;  %vm16568_vm8 = vcmp.ne.s32.totalorder %v12968_v55, 0 }
0x6f07   :  { %vm9910_vm15 = vcmp.lt.f32.partialorder %v9800_v23, %v9888_v8  ;;  %vm9918_vm10 = vcmp.eq.f32.partialorder %v9800_v23, %v9888_v8 }
0x6f08   :  { %vm9926_vm14 = vmand %vm9918_vm10, %vm16566_vm2 }
0x6f09   :  { %vm9934_vm13 = vmor %vm9910_vm15, %vm9926_vm14 }
0x6f0a   :  { %v11030_v9 = vsel %vm9934_vm13, 1.0, %v12843_v0  ;;  %v9890_v50 = vpop.permute.xlu0 %9889 }
0x6f0b   :  { %v9957_v20 = vpack.c.bf16 %v11030_v9, %v11029_v63  ;;  %vm9919_vm9 = vcmp.eq.f32.partialorder %v9800_v23, %v9890_v50  ;;  %vm9911_vm3 = vcmp.lt.f32.partialorder %v9800_v23, %v9890_v50 }
0x6f0c   :  { %vm9927_vm12 = vmand %vm9919_vm9, %vm16567_vm5 }
0x6f0d   :  { %9965 = vrot.lane.b32.xlu0 %v9957_v20, %s12846_s25  ;;  %vm9935_vm6 = vmor %vm9911_vm3, %vm9927_vm12  ;;  %vm16571_vm12 = vcmp.ne.s32.totalorder %v12972_v57, 0 }
0x6f0e   :  { %v9894_v43 = vpop.permute.xlu0 %9893  ;;  %v9892_v10 = vpop.permute.xlu1 %9891  ;;  %v11031_v55 = vsel %vm9935_vm6, 1.0, %v12843_v0 }
0x6f0f   :  { %vm9913_vm4 = vcmp.lt.f32.partialorder %v15986_v17, %v9894_v43  ;;  %vm9921_vm11 = vcmp.eq.f32.partialorder %v15986_v17, %v9894_v43  ;;  %vm9920_vm1 = vcmp.eq.f32.partialorder %v9800_v23, %v9892_v10  ;;  %vm9912_vm10 = vcmp.lt.f32.partialorder %v9800_v23, %v9892_v10 }
0x6f10   :  { %vm9929_vm15 = vmand %vm9921_vm11, %vm16568_vm8  ;;  %vm16572_vm8 = vcmp.ne.s32.totalorder %v12970_v56, 0 }
0x6f11   :  { %vm16036_vm2 = vmor %vm9913_vm4, %vm9929_vm15 }
0x6f12   :  { %vm9928_vm14 = vmand %vm9920_vm1, %vm365_vm7  ;;  %v9898_v60 = vpop.permute.xlu0 %9897  ;;  %v9896_v45 = vpop.permute.xlu1 %9895  ;;  %v11033_v57 = vsel %vm16036_vm2, 1.0, %v12843_v0  ;;  %vm16573_vm2 = vcmask 261120  }
0x6f13   :  { %vm9936_vm13 = vmor %vm9912_vm10, %vm9928_vm14  ;;  %vm9915_vm9 = vcmp.lt.f32.partialorder %v15986_v17, %v9898_v60  ;;  %vm9923_vm3 = vcmp.eq.f32.partialorder %v15986_v17, %v9898_v60  ;;  %vm9922_vm5 = vcmp.eq.f32.partialorder %v15986_v17, %v9896_v45  ;;  %vm9914_vm11 = vcmp.lt.f32.partialorder %v15986_v17, %v9896_v45 }
0x6f14   :  { %v11032_v4 = vsel %vm9936_vm13, 1.0, %v12843_v0  ;;  %vm9931_vm4 = vmand %vm9923_vm3, %vm16571_vm12 }
0x6f15   :  { %v9958_v14 = vpack.c.bf16 %v11032_v4, %v11031_v55  ;;  %vm9939_vm1 = vmor %vm9915_vm9, %vm9931_vm4 }
0x6f16   :  { %vm9930_vm15 = vmand %vm9922_vm5, %vm16572_vm8  ;;  %v9900_v59 = vpop.permute.xlu1 %9899  ;;  %v11035_v56 = vsel %vm9939_vm1, 1.0, %v12843_v0 }
0x6f17   :  { %vm9938_vm10 = vmor %vm9914_vm11, %vm9930_vm15  ;;  %9967 = vrot.lane.b32.xlu1 %v9958_v14, %s12846_s25  ;;  %vm9916_vm14 = vcmp.lt.f32.partialorder %v15986_v17, %v9900_v59  ;;  %vm9924_vm6 = vcmp.eq.f32.partialorder %v15986_v17, %v9900_v59 }
0x6f18   :  { %v11034_v13 = vsel %vm9938_vm10, 1.0, %v12843_v0  ;;  %vm9932_vm13 = vmand %vm9924_vm6, %vm365_vm7 }
0x6f19   :  { %v9959_v40 = vpack.c.bf16 %v11034_v13, %v11033_v57  ;;  %vm9940_vm9 = vmor %vm9916_vm14, %vm9932_vm13 }
0x6f1a   :  { %v11036_v33 = vsel %vm9940_vm9, 1.0, %v12843_v0  ;;  %vm16574_vm3 = vmmov %vm16573_vm2 }
0x6f1b   :  { %v9960_v5 = vpack.c.bf16 %v11036_v33, %v11035_v56  ;;  %9969 = vrot.lane.b32.xlu0 %v9959_v40, %s12846_s25  ;;  %vm16575_vm7 = vmmov %vm16573_vm2 }
0x6f1c   :  { %vm16576_vm5 = vmmov %vm16573_vm2 }
0x6f1d   :  { %9971 = vrot.lane.b32.xlu1 %v9960_v5, %s12846_s25  ;;  %vm16577_vm1 = vmmov %vm16573_vm2 }
0x6f1e   :  { %vm16578_vm8 = vmmov %vm16577_vm1 }
0x6f1f   :  { %10116 = vrot.lane.b32.xlu0 %v15978_v27, %s12846_s25  ;;  %vm16579_vm10 = vmmov %vm16577_vm1 }
0x6f20   :  { %vm16580_vm13 = vmmov %vm16577_vm1 }
0x6f7f   :  { %v9966_v42 = vpop.permute.xlu0 %9965 }
0x6f80   :  { %12140 = vmatprep.mubr.msk.bf16.mxu0 %vm16573_vm2, %v9966_v42  ;;  %vm16581_vm2 = vmmov %vm16577_vm1 }
0x6f89   :  { %v9968_v19 = vpop.permute.xlu1 %9967 }
0x6f8a   :  { %12141 = vmatmul.mubr.msk.bf16.vlgmr.msra.gmra.mrb[148].mxu0 %vm16574_vm3, %v9968_v19  ;;  %vm16582_vm3 = vmmov %vm16577_vm1 }
0x6f8b   :  { %12149 = vmatpush3.bf16.msra.mxu0 %v12624_v36 }
0x6f8c   :  { %12150 = vmatprep.subr.bf16.mxu0 %v12843_v0 }
0x6f8d   :  { %v9970_v58 = vpop.permute.xlu0 %9969 }
0x6f8e   :  { %12144 = vmatprep.mubr.msk.bf16.mxu0 %vm16575_vm7, %v9970_v58  ;;  %vm16583_vm7 = vmmov %vm16577_vm1 }
0x6f8f   :  { %v9972_v44 = vpop.permute.xlu1 %9971  ;;  %12151 = vmatpush3.bf16.msra.mxu0 %v12625_v16 }
0x6f90   :  { %12152 = vmatprep.subr.bf16.mxu0 %v12843_v0 }
0x6f92   :  { %12145 = vmatmul.mubr.msk.bf16.gmra.mrb[152].mxu0 %vm16576_vm5, %v9972_v44  ;;  %vm16584_vm5 = vmmov %vm16577_vm1 }
0x6f93   :  { %12156 = vmatprep.mubr.msk.bf16.mxu0 %vm16167_vm0, %v12843_v0  ;;  %12153 = vmatpush3.bf16.msra.mxu0 %v12626_v30 }
0x6f94   :  { %12154 = vmatprep.subr.bf16.mxu0 %v12843_v0 }
0x6f97   :  { %12155 = vmatpush3.bf16.msra.mxu0 %v12627_v38 }
0x705d   :  { %v12142_v1 = vpop.f32.mrb[148].mxu0 }
0x705e   :  { %v12416_v53 = vtrunc.f32 %v12142_v1  ;;  %v10019_v49 = vpop.f32.mrb[149].mxu0 }
0x705f   :  { %v12412_v7 = vtrunc.f32 %v10019_v49  ;;  %v12143_v32 = vpop.f32.mrb[150].mxu0 }
0x7060   :  { %v12417_v31 = vcvt.f32.s32 %v12416_v53  ;;  %v12418_v12 = vtrunc.f32 %v12143_v32  ;;  %v10022_v3 = vpop.f32.mrb[151].mxu0  ;;  %v12630_v32 = vld [vmem:[%s16152_s5 + $0x30] sm:$0xff]  }
0x7061   :  { %v12413_v25 = vcvt.f32.s32 %v12412_v7  ;;  %v12414_v52 = vtrunc.f32 %v10022_v3 }
0x7062   :  { %vm10060_vm0 = vcmp.eq.s32.totalorder %v12417_v31, %v12947_v41  ;;  %v12419_v54 = vcvt.f32.s32 %v12418_v12 }
0x7063   :  { %vm10058_vm12 = vcmp.eq.s32.totalorder %v12413_v25, %v12947_v41  ;;  %v12415_v48 = vcvt.f32.s32 %v12414_v52  ;;  %v11043_v29 = vsel %vm10060_vm0, 1.0, %v12843_v0  ;;  %vm16585_vm0 = vcmask 1041409   ;;  %v10117_v25 = vpop.permute.xlu0 %10116 }
0x7064   :  { %v11041_v46 = vsel %vm10058_vm12, 1.0, %v12843_v0  ;;  %vm10061_vm4 = vcmp.eq.s32.totalorder %v12419_v54, %v12947_v41  ;;  %v10084_v23 = vmul.f32 %v11043_v29, %v16003_v35  ;;  %vm16586_vm12 = vmmov %vm16577_vm1  ;;  %v12631_v29 = vld [vmem:[%s16152_s5 + $0x38] sm:$0xff]  }
0x7065   :  { %v10082_v39 = vmul.f32 %v11041_v46, %v15991_v34  ;;  %v11044_v61 = vsel %vm10061_vm4, 1.0, %v12843_v0  ;;  %vm10059_vm11 = vcmp.eq.s32.totalorder %v12415_v48, %v12947_v41  ;;  %v12146_v15 = vpop.f32.mrb[152].mxu0  ;;  %vm16587_vm4 = vcmask 523264  }
0x7066   :  { %v11042_v62 = vsel %vm10059_vm11, 1.0, %v12843_v0  ;;  %v12424_v11 = vtrunc.f32 %v12146_v15  ;;  %v10035_v6 = vpop.f32.mrb[153].mxu0  ;;  %v10085_v28 = vmul.f32 %v11044_v61, %v16007_v21  ;;  %v10093_v35 = vsel %vm16579_vm10, %v10084_v23, 0.0  ;;  %vm16588_vm11 = vmmov %vm16587_vm4 }
0x7067   :  { %v10083_v17 = vmul.f32 %v11042_v62, %v15997_v22  ;;  %v12420_v2 = vtrunc.f32 %v10035_v6  ;;  %v12147_v24 = vpop.f32.mrb[154].mxu0  ;;  %v10090_v9 = vsel %vm16577_vm1, %v10082_v39, 0.0  ;;  %vm16589_vm1 = vcmask 254976  }
0x7068   :  { %v12425_v8 = vcvt.f32.s32 %v12424_v11  ;;  %v12426_v63 = vtrunc.f32 %v12147_v24  ;;  %v10038_v34 = vpop.f32.mrb[155].mxu0  ;;  %v10095_v55 = vsel %vm16580_vm13, %v10085_v28, 0.0 }
0x7069   :  { %v10091_v50 = vsel %vm16578_vm8, %v10083_v17, 0.0  ;;  %v12421_v20 = vcvt.f32.s32 %v12420_v2  ;;  %v12422_v43 = vtrunc.f32 %v10038_v34  ;;  %vm16590_vm8 = vmmov %vm16589_vm1 }
0x706a   :  { %v10092_v10 = vadd.f32 %v10091_v50, %v10090_v9  ;;  %vm10064_vm15 = vcmp.eq.s32.totalorder %v12425_v8, %v12947_v41  ;;  %v12427_v51 = vcvt.f32.s32 %v12426_v63 }
0x706b   :  { %vm10062_vm14 = vcmp.eq.s32.totalorder %v12421_v20, %v12947_v41  ;;  %v12423_v22 = vcvt.f32.s32 %v12422_v43  ;;  %v11047_v21 = vsel %vm10064_vm15, 1.0, %v12843_v0 }
0x706c   :  { %v10094_v60 = vadd.f32 %v10093_v35, %v10092_v10  ;;  %v11045_v45 = vsel %vm10062_vm14, 1.0, %v12843_v0  ;;  %vm10065_vm6 = vcmp.eq.s32.totalorder %v12427_v51, %v12947_v41  ;;  %v10088_v13 = vmul.f32 %v11047_v21, %v16009_v47 }
0x706d   :  { %v10086_v4 = vmul.f32 %v11045_v45, %v15995_v37  ;;  %vm10063_vm9 = vcmp.eq.s32.totalorder %v12423_v22, %v12947_v41  ;;  %v11048_v59 = vsel %vm10065_vm6, 1.0, %v12843_v0 }
0x706e   :  { %v10096_v14 = vadd.f32 %v10095_v55, %v10094_v60  ;;  %v11046_v57 = vsel %vm10063_vm9, 1.0, %v12843_v0  ;;  %v10089_v5 = vmul.f32 %v11048_v59, %v16019_v18  ;;  %v10106_v41 = vsel %vm16583_vm7, %v10088_v13, 0.0  ;;  %v12629_v18 = vld [vmem:[%s16152_s5 + $0x28] sm:$0xff]  }
0x706f   :  { %v10087_v40 = vmul.f32 %v11046_v57, %v16001_v26  ;;  %v10103_v33 = vsel %vm16581_vm2, %v10086_v4, 0.0  ;;  %v12628_v26 = vld [vmem:[%s16152_s5 + $0x20] sm:$0xff]   ;;  %s12850_s5 = smov [#allocation6]  }
0x7070   :  { %v10097_v56 = vrot.slane %v10096_v14, 4  ;;  %v10108_v44 = vsel %vm16584_vm5, %v10089_v5, 0.0  ;;  %12161 = vmatpush3.bf16.msra.mxu1 %v12628_v26  ;;  %s10302_s15 = sshll.u32 %s12850_s5, 4  ;;  %s10303_s15 = int_to_ptr.vmem [resolvable:$true] %s10302_s15 }
0x7071   :  { %v10104_v42 = vsel %vm16582_vm3, %v10087_v40, 0.0  ;;  %12162 = vmatprep.subr.bf16.mxu1 %v12843_v0  ;;  %s12814_s16 = scalar_lea.vmem %s10303_s15, 256  ;;  %p12819_p9 = scmp.lt.s32.totalorder %s10303_s15, %s10303_s15 }
0x7072   :  { %v10105_v19 = vadd.f32 %v10104_v42, %v10103_v33  ;;  %v10098_v37 = vadd.f32 %v10097_v56, %v10096_v14  ;;  %p12815_p8 = scmp.ne.s32.totalorder %s10303_s15, %s12814_s16  ;;  %p12820_p10 = scmp.lt.s32.totalorder %s12814_s16, %s12814_s16 }
0x7074   :  { %v10107_v58 = vadd.f32 %v10106_v41, %v10105_v19  ;;  %v10099_v16 = vrot.slane %v10098_v37, 2  ;;  %12163 = vmatpush3.bf16.msra.mxu1 %v12629_v18  ;;  %p12821_p11 = por %p12820_p10, %p12819_p9 }
0x7075   :  { %12164 = vmatprep.subr.bf16.mxu1 %v12843_v0 }
0x7076   :  { %v10109_v36 = vadd.f32 %v10108_v44, %v10107_v58  ;;  %v10100_v47 = vadd.f32 %v10099_v16, %v10098_v37  ;;  %p12822_p12 = pnand %p12821_p11, %p12815_p8 }
0x7078   :  { %v10110_v30 = vrot.slane %v10109_v36, 4  ;;  %v10101_v53 = vrot.slane %v10100_v47, 1  ;;  %12165 = vmatpush3.bf16.msra.mxu1 %v12630_v32 }
0x7079   :  { %12166 = vmatprep.subr.bf16.mxu1 %v12843_v0 }
0x707a   :  { %v10111_v38 = vadd.f32 %v10110_v30, %v10109_v36  ;;  %v10102_v31 = vadd.f32 %v10101_v53, %v10100_v47 }
0x707c   :  { %v10112_v1 = vrot.slane %v10111_v38, 2  ;;  %12167 = vmatpush3.bf16.msra.mxu1 %v12631_v29 }
0x707e   :  { %v10113_v49 = vadd.f32 %v10112_v1, %v10111_v38 }
0x7080   :  { %v10114_v7 = vrot.slane %v10113_v49, 1 }
0x7082   :  { %v10115_v12 = vadd.f32 %v10114_v7, %v10113_v49 }
0x7084   :  { %v10121_v3 = vsel %vm16585_vm0, %v10115_v12, %v10102_v31 }
0x7085   :  { %10122 = vrot.lane.b32.xlu1 %v10121_v3, %s12845_s18 }
0x70f7   :  { %v10123_v52 = vpop.permute.xlu1 %10122 }
0x70f8   :  { %v10125_v54 = vsel %vm16586_vm12, %v10117_v25, %v10123_v52 }
0x70f9   :  { %v10134_v48 = vpack.c.bf16 %v10125_v54, %v10125_v54 }
0x70fb   :  { %12157 = vmatmul.mubr.msk.bf16.vlgmr.msra.gmra.mrb[156].mxu0 %vm16587_vm4, %v10134_v48 }
0x71ce   :  { %v10196_v46 = vpop.f32.mrb[156].mxu0 }
0x71cf   :  { %v10202_v39 = vmax.f32 %v10196_v46, 0.0  ;;  %v12158_v61 = vpop.f32.mrb[157].mxu0 }
0x71d0   :  { %v10199_v15 = vpop.f32.mrb[158].mxu0 }
0x71d1   :  { %v10211_v62 = vpack.c.bf16 %v10202_v39, %v10202_v39  ;;  %v12159_v11 = vpop.f32.mrb[159].mxu0 }
0x71d3   :  { %12169 = vmatmul.mubr.msk.bf16.vlgmr.msra.gmra.mrb[156].mxu1 %vm16588_vm11, %v10211_v62 }
0x72a6   :  { %v10273_v0 = vpop.f32.mrb[156].mxu1 }
0x72a7   :  { %v11067_v6 = vmul.f32 -1.442695, %v10273_v0  ;;  %v12170_v23 = vpop.f32.mrb[157].mxu1 }
0x72a8   :  { %v10276_v17 = vpop.f32.mrb[158].mxu1 }
0x72a9   :  { %12788 = vpow2.f32 %v11067_v6  ;;  %v12171_v2 = vpop.f32.mrb[159].mxu1 }
0x72b3   :  { %v12789_v24 = vpop.eup %12788 }
0x72b4   :  { %v10282_v28 = vadd.f32 1.0, %v12789_v24 }
0x72b6   :  { %12790 = vrcp.f32 %v10282_v28 }
0x72c0   :  { %v12791_v8 = vpop.eup %12790 }
0x72c1   :  { %10286 = vrot.lane.b32.xlu0 %v12791_v8, %s12845_s18 }
0x7333   :  { %v10287_v63 = vpop.permute.xlu0 %10286 }
0x7334   :  { %v10289_v34 = vmul.f32 %v10287_v63, %v15978_v27 }
0x7336   :  { %10291 = vrot.lane.b32.xlu1 %v10289_v34, %s12846_s25 }
0x73a8   :  { %v10292_v9 = vpop.permute.xlu1 %10291 }
0x73a9   :  { %10294 = vst.msk [vmem:[#allocation2 + $0x2] sm:$0x3] %vm16589_vm1, %v10292_v9 }
0x73aa   :  { %10296 = vst.msk [vmem:[#allocation6 + $0xe] sm:$0x3] %vm16590_vm8, %v10292_v9 }
0x73ab   :  { %12825 = shalt.err (!%p12822_p12)
}
0x73ac   :  { %s12826_s19 = scalar_lea.hbm %s16153_s6, 256 }
0x73ad   :  { %p12827_p13 = scmp.ne.s32.totalorder %s16153_s6, %s12826_s19  ;;  %p12830_p0 = scmp.lt.u32.totalorder %s12826_s19, %s16153_s6 }
0x73af   :  { %p12832_p1 = pnand %p12830_p0, %p12827_p13 }
0x73b1   :  { %12835 = shalt.err (!%p12832_p1)
}
0x73b2   :  { %s12851_s23 = smov 2  }
0x73b3   :  { %10308 = dma.vmem_to_hbm [thread:$0]  %s10303_s15, 256, %s16153_s6, [#allocation5], %s12845_s18, %s12845_s18, %s12851_s23  }
0x73b4   :  { %12838 = dma.done.wait [#allocation5], 256  }
0x73b5   :  { %12839 = vsyncadd [#allocation5], 4294967040 }
0x73b6   :  { %10312 = vsyncpa [#allocation4], 1 }
0x73b7   :  { %10313 = vsyncpa [#allocation5], 1 }

</bundles_post_ra>
